<compile_context>
chip_gen: v7x
topology: tpu7x:2x2x1
jax: 0.10.0
libtpu: 0.0.40
codegen_flags: <defaults>
</compile_context>

<pallas_src>
import functools
import math

import jax
import jax.numpy as jnp
import numpy as np
from jax.experimental import pallas as pl
from jax.experimental.pallas import tpu as pltpu


# ---------------------------------------------------------------------------
# Static layer configuration (mirrors the PyTorch Generator)
# ---------------------------------------------------------------------------
def _layer_configs(nz, ngf, nc):
    return [
        dict(name="b1",   k=1, p=0, H=1,  W=1,  ci=nz,      co=ngf * 8 * 16, r=4,    bias=True),
        dict(name="b2",   k=3, p=1, H=4,  W=4,  ci=ngf * 8, co=ngf * 4 * 4,  r=2,    bias=True),
        dict(name="b3",   k=3, p=1, H=8,  W=8,  ci=ngf * 4, co=ngf * 2 * 4,  r=2,    bias=True),
        dict(name="b4",   k=3, p=1, H=16, W=16, ci=ngf * 2, co=ngf * 4,      r=2,    bias=True),
        dict(name="b5",   k=3, p=1, H=32, W=32, ci=ngf,     co=ngf * 4,      r=2,    bias=True),
        dict(name="conv", k=3, p=1, H=64, W=64, ci=ngf,     co=nc,           r=None, bias=False),
    ]


# ---------------------------------------------------------------------------
# Parameter initialisation (synthetic, deterministic)
# ---------------------------------------------------------------------------
def init_generator_params(key, nz, ngf, nc):
    """Conv weights ~ N(0, 0.02) (as in the module); biases ~ U(+/- 1/sqrt(fan_in))."""
    params = {}
    for cfg in _layer_configs(nz, ngf, nc):
        name, cout, cin, k = cfg["name"], cfg["co"], cfg["ci"], cfg["k"]
        key, kw_, kb_ = jax.random.split(key, 3)
        params[f"{name}_w"] = 0.02 * jax.random.normal(
            kw_, (cout, cin, k, k), dtype=jnp.float32)
        if cfg["bias"]:
            bound = 1.0 / math.sqrt(cin * k * k)
            params[f"{name}_b"] = jax.random.uniform(
                kb_, (cout,), dtype=jnp.float32, minval=-bound, maxval=bound)
    return params


# ---------------------------------------------------------------------------
# Weight preparation: fold horizontal taps + pixel-shuffle into weight columns
# and K-concatenate the vertical taps along the contraction axis.
# ---------------------------------------------------------------------------
def _banded_weight(w_oihw, k, p, W, ci, co, r, pad_cols_to=None):
    """Return (k*W*ci, Nout) bf16: vertical taps concatenated along rows.

    Rows are (dy, x_in, c_in); columns are (i, x_out, j, c') for shuffle
    layers (i, j = pixel-shuffle sub-positions, c' = post-shuffle channel) or
    (x_out, o) for the plain final conv (optionally zero-padded to a
    multiple of 128 lanes)."""
    xi = np.arange(W)[:, None, None]
    xo = np.arange(W)[None, :, None]
    dx = np.arange(k)[None, None, :]
    band = jnp.asarray((xi == xo + dx - p).astype(np.float32))       # (W_in, W_out, k)
    mats = []
    for dy in range(k):
        wdy = w_oihw[:, :, dy, :]                                    # (co, ci, k)
        if r is not None:
            cp = co // (r * r)
            m = wdy.reshape(cp, r, r, ci, k)                         # (c', i, j, cin, dx)
            m = jnp.transpose(m, (3, 4, 1, 2, 0))                    # (cin, dx, i, j, c')
            t = jnp.einsum("xyd,cdijw->xciyjw", band, m)             # (xin, cin, i, xout, j, c')
            t = t.reshape(W * ci, r * W * r * cp)
        else:
            m = jnp.transpose(wdy, (1, 2, 0))                        # (cin, dx, o)
            t = jnp.einsum("xyd,cdo->xcyo", band, m)                 # (xin, cin, xout, o)
            t = t.reshape(W * ci, W * co)
        mats.append(t)
    w = jnp.concatenate(mats, axis=0)                                # (k*W*ci, Nout)
    if pad_cols_to is not None and pad_cols_to > w.shape[1]:
        w = jnp.pad(w, ((0, 0), (0, pad_cols_to - w.shape[1])))
    return w.astype(jnp.bfloat16)


def _folded_bias(bias, W, co, r):
    if r is not None:
        cp = co // (r * r)
        b = jnp.transpose(bias.reshape(cp, r, r), (1, 2, 0))         # (i, j, c')
        b = jnp.broadcast_to(b[:, None, :, :], (r, W, r, cp))        # (i, xout, j, c')
        return b.reshape(1, r * W * r * cp).astype(jnp.float32)
    return jnp.broadcast_to(bias[None, :], (W, co)).reshape(1, W * co).astype(jnp.float32)


def _interleave_perm(H, r, bblk):
    """0/1 permutation implementing the pixel-shuffle row interleave for a
    batch-stacked activation of bblk images (rows ordered (b, y))."""
    M = bblk * H
    P = np.zeros((r * M, r * M), np.float32)
    for b in range(bblk):
        for y in range(H):
            for i in range(r):
                P[b * r * H + y * r + i, i * M + b * H + y] = 1.0
    return jnp.asarray(P, jnp.bfloat16)


def prepare_generator(params, nz, ngf, nc, bblk):
    ops = []
    for cfg in _layer_configs(nz, ngf, nc):
        name, r, wdim, co = cfg["name"], cfg["r"], cfg["W"], cfg["co"]
        pad_to = None
        if r is None:
            pad_to = ((wdim * co + 127) // 128) * 128                # lane-dense output
        ops.append(_banded_weight(params[f"{name}_w"], cfg["k"], cfg["p"],
                                  wdim, cfg["ci"], co, r, pad_cols_to=pad_to))
        if cfg["bias"]:
            ops.append(_folded_bias(params[f"{name}_b"], wdim, co, r))
        if r is not None:
            ops.append(_interleave_perm(cfg["H"], r, bblk))
    return tuple(ops)


# ---------------------------------------------------------------------------
# The fused Pallas kernel (entire generator, bblk batch elements per grid step)
# ---------------------------------------------------------------------------
def _generator_kernel(cfgs, bblk, *refs):
    o_ref = refs[-1]
    it = iter(refs[:-1])
    z_ref = next(it)
    x = z_ref[...]                                                   # (bblk, nz) f32

    for cfg in cfgs:
        w_ref = next(it)
        b_ref = next(it) if cfg["bias"] else None
        k, h = cfg["k"], cfg["H"]

        xb = x.astype(jnp.bfloat16)                                  # one cast per layer
        if k == 1:
            xcat = xb
        else:
            m, kw = xb.shape
            zrow = jnp.zeros((1, kw), xb.dtype)
            # Vertical tap shifts (dy = 0 -> x[y-1], dy = 2 -> x[y+1]).
            down = jnp.concatenate([zrow, xb[:m - 1]], axis=0)
            up = jnp.concatenate([xb[1:], zrow], axis=0)
            if bblk > 1:
                # Zero rows that would leak across image boundaries.
                yrow = jax.lax.broadcasted_iota(jnp.int32, (m, 1), 0) % h
                down = jnp.where(yrow == 0, jnp.zeros_like(down), down)
                up = jnp.where(yrow == h - 1, jnp.zeros_like(up), up)
            # Lane-concat in the same (dy = 0, 1, 2) order as the weight rows:
            # one matmul accumulates all vertical taps inside the MXU.
            xcat = jnp.concatenate([down, xb, up], axis=1)

        acc = jnp.dot(xcat, w_ref[...], preferred_element_type=jnp.float32)
        if b_ref is not None:
            acc = acc + b_ref[...]

        if cfg["r"] is not None:
            # Fused PixelShuffle: column groups -> rows via a 0/1 perm matmul.
            r = cfg["r"]
            p_ref = next(it)
            wn = acc.shape[1] // r
            cat = jnp.concatenate(
                [acc[:, g * wn:(g + 1) * wn] for g in range(r)],
                axis=0).astype(jnp.bfloat16)
            x = jnp.dot(p_ref[...], cat, preferred_element_type=jnp.float32)
        else:
            x = acc

    out = jnp.tanh(x)                                                # (bblk*64, out_pad) f32
    hout = o_ref.shape[1]
    for b in range(bblk):
        o_ref[b] = out[b * hout:(b + 1) * hout, :]


# ---------------------------------------------------------------------------
# Forward pass
# ---------------------------------------------------------------------------
def generator_forward(x_nchw, prepared, nz, ngf, nc, bblk):
    B = x_nchw.shape[0]
    assert B % bblk == 0, (B, bblk)
    cfgs = _layer_configs(nz, ngf, nc)
    hout, wout = cfgs[-1]["H"], cfgs[-1]["W"]                        # 64, 64
    out_cols = wout * nc
    out_pad = ((out_cols + 127) // 128) * 128                        # lane-dense store

    z = x_nchw.reshape(B, 1, nz).astype(jnp.float32)

    in_specs = [pl.BlockSpec((bblk, None, nz), lambda b: (b, 0, 0))]
    for arr in prepared:
        in_specs.append(pl.BlockSpec(arr.shape, lambda b: (0, 0)))   # VMEM-resident

    out = pl.pallas_call(
        functools.partial(_generator_kernel, cfgs, bblk),
        out_shape=jax.ShapeDtypeStruct((B, hout, out_pad), jnp.float32),
        grid_spec=pltpu.PrefetchScalarGridSpec(
            num_scalar_prefetch=0,
            grid=(B // bblk,),
            in_specs=in_specs,
            out_specs=pl.BlockSpec((bblk, hout, out_pad), lambda b: (b, 0, 0)),
        ),
        compiler_params=pltpu.CompilerParams(
            dimension_semantics=("parallel",),
            vmem_limit_bytes=40 * 1024 * 1024,
        ),
    )(z, *prepared)

    # Drop the lane padding and go (B, y, x*nc) -> NCHW: tiny XLA epilogue.
    out = out[:, :, :out_cols]
    return jnp.transpose(out.reshape(B, hout, wout, nc), (0, 3, 1, 2))


# ---------------------------------------------------------------------------
# Pure-JAX reference (bf16-faithful: same MXU input precision as the kernel)
# ---------------------------------------------------------------------------
def _ref_conv_nhwc(x, w_oihw, bias, pad):
    k = w_oihw.shape[-1]
    _, h, wd, _ = x.shape
    xb = x.astype(jnp.bfloat16)
    xp = jnp.pad(xb, ((0, 0), (pad, pad), (pad, pad), (0, 0)))
    acc = None
    for dy in range(k):
        for dx in range(k):
            patch = xp[:, dy:dy + h, dx:dx + wd, :]
            wtap = w_oihw[:, :, dy, dx].astype(jnp.bfloat16)
            term = jnp.einsum("bhwc,oc->bhwo", patch, wtap,
                              preferred_element_type=jnp.float32)
            acc = term if acc is None else acc + term
    if bias is not None:
        acc = acc + bias
    return acc


def _ref_pixel_shuffle(x, r):
    n, h, w, c = x.shape
    cp = c // (r * r)
    x = x.reshape(n, h, w, cp, r, r)
    x = x.transpose(0, 1, 4, 2, 5, 3)
    return x.reshape(n, h * r, w * r, cp)


def reference_forward(x_nchw, params):
    x = jnp.transpose(x_nchw, (0, 2, 3, 1)).astype(jnp.float32)
    x = _ref_pixel_shuffle(_ref_conv_nhwc(x, params["b1_w"], params["b1_b"], 0), 4)
    for name in ("b2", "b3", "b4", "b5"):
        x = _ref_pixel_shuffle(
            _ref_conv_nhwc(x, params[f"{name}_w"], params[f"{name}_b"], 1), 2)
    x = jnp.tanh(_ref_conv_nhwc(x, params["conv_w"], None, 1))
    return jnp.transpose(x, (0, 3, 1, 2))


# ---------------------------------------------------------------------------
if __name__ == "__main__":
    batch, nz, ngf, nc = 4, 8, 8, 3
    # Stack 2 images per grid step (exercises batch blocking + boundary masks)
    # while keeping >= 2 "parallel" grid steps so both v7x TensorCores work.
    bblk = 2 if batch % 2 == 0 else 1

    key = jax.random.PRNGKey(0)
    key, xkey = jax.random.split(key)
    x = jax.random.normal(xkey, (batch, nz, 1, 1), dtype=jnp.float32)

    params = init_generator_params(key, nz, ngf, nc)
    prepared = prepare_generator(params, nz, ngf, nc, bblk)

    fwd = jax.jit(functools.partial(generator_forward,
                                    nz=nz, ngf=ngf, nc=nc, bblk=bblk))
    out = jax.block_until_ready(fwd(x, prepared))

    expected_shape = (batch, nc, 64, 64)
    assert out.shape == expected_shape, (out.shape, expected_shape)
    assert bool(jnp.all(jnp.isfinite(out)))
    assert bool(jnp.all(jnp.abs(out) <= 1.0))   # tanh range

    # Correctness check against a bf16-faithful pure-JAX reference.
    ref = jax.block_until_ready(jax.jit(reference_forward)(x, params))
    rel_err = float(jnp.max(jnp.abs(out - ref)) / (jnp.max(jnp.abs(ref)) + 1e-12))
    assert rel_err < 1e-3, rel_err

    print("KERNEL_OK")
</pallas_src>

<mosaic_0001>
module attributes {stable_mosaic.version = 11 : i64} {
  func.func @_generator_kernel(%arg0: i32, %arg1: memref<2x1x8xf32, #tpu.memory_space<vmem>>, %arg2: memref<8x1024xbf16, #tpu.memory_space<vmem>>, %arg3: memref<1x1024xf32, #tpu.memory_space<vmem>>, %arg4: memref<8x8xbf16, #tpu.memory_space<vmem>>, %arg5: memref<768x512xbf16, #tpu.memory_space<vmem>>, %arg6: memref<1x512xf32, #tpu.memory_space<vmem>>, %arg7: memref<16x16xbf16, #tpu.memory_space<vmem>>, %arg8: memref<768x512xbf16, #tpu.memory_space<vmem>>, %arg9: memref<1x512xf32, #tpu.memory_space<vmem>>, %arg10: memref<32x32xbf16, #tpu.memory_space<vmem>>, %arg11: memref<768x512xbf16, #tpu.memory_space<vmem>>, %arg12: memref<1x512xf32, #tpu.memory_space<vmem>>, %arg13: memref<64x64xbf16, #tpu.memory_space<vmem>>, %arg14: memref<768x1024xbf16, #tpu.memory_space<vmem>>, %arg15: memref<1x1024xf32, #tpu.memory_space<vmem>>, %arg16: memref<128x128xbf16, #tpu.memory_space<vmem>>, %arg17: memref<1536x256xbf16, #tpu.memory_space<vmem>>, %arg18: memref<2x64x256xf32, #tpu.memory_space<vmem>>) attributes {dimension_semantics = [#tpu.dimension_semantics<parallel>], iteration_bounds = array<i64: 2>, scalar_prefetch = 0 : i64, scratch_operands = 0 : i64, tpu.core_type = #tpu.core_type<tc>, window_params = [{transform_indices = @transform_0, window_bounds = array<i64: 2, 1, 8>}, {pipeline_mode = #tpu.pipeline_mode<synchronous>, transform_indices = @transform_1, window_bounds = array<i64: 8, 1024>}, {pipeline_mode = #tpu.pipeline_mode<synchronous>, transform_indices = @transform_2, window_bounds = array<i64: 1, 1024>}, {pipeline_mode = #tpu.pipeline_mode<synchronous>, transform_indices = @transform_3, window_bounds = array<i64: 8, 8>}, {pipeline_mode = #tpu.pipeline_mode<synchronous>, transform_indices = @transform_4, window_bounds = array<i64: 768, 512>}, {pipeline_mode = #tpu.pipeline_mode<synchronous>, transform_indices = @transform_5, window_bounds = array<i64: 1, 512>}, {pipeline_mode = #tpu.pipeline_mode<synchronous>, transform_indices = @transform_6, window_bounds = array<i64: 16, 16>}, {pipeline_mode = #tpu.pipeline_mode<synchronous>, transform_indices = @transform_7, window_bounds = array<i64: 768, 512>}, {pipeline_mode = #tpu.pipeline_mode<synchronous>, transform_indices = @transform_8, window_bounds = array<i64: 1, 512>}, {pipeline_mode = #tpu.pipeline_mode<synchronous>, transform_indices = @transform_9, window_bounds = array<i64: 32, 32>}, {pipeline_mode = #tpu.pipeline_mode<synchronous>, transform_indices = @transform_10, window_bounds = array<i64: 768, 512>}, {pipeline_mode = #tpu.pipeline_mode<synchronous>, transform_indices = @transform_11, window_bounds = array<i64: 1, 512>}, {pipeline_mode = #tpu.pipeline_mode<synchronous>, transform_indices = @transform_12, window_bounds = array<i64: 64, 64>}, {pipeline_mode = #tpu.pipeline_mode<synchronous>, transform_indices = @transform_13, window_bounds = array<i64: 768, 1024>}, {pipeline_mode = #tpu.pipeline_mode<synchronous>, transform_indices = @transform_14, window_bounds = array<i64: 1, 1024>}, {pipeline_mode = #tpu.pipeline_mode<synchronous>, transform_indices = @transform_15, window_bounds = array<i64: 128, 128>}, {pipeline_mode = #tpu.pipeline_mode<synchronous>, transform_indices = @transform_16, window_bounds = array<i64: 1536, 256>}, {transform_indices = @transform_17, window_bounds = array<i64: 2, 64, 256>}]} {
    %c0 = arith.constant 0 : index
    %c0_0 = arith.constant 0 : index
    %c0_1 = arith.constant 0 : index
    %0 = vector.load %arg1[%c0, %c0_0, %c0_1] : memref<2x1x8xf32, #tpu.memory_space<vmem>>, vector<2x1x8xf32>
    %1 = vector.shape_cast %0 : vector<2x1x8xf32> to vector<2x8xf32>
    %2 = arith.truncf %1 : vector<2x8xf32> to vector<2x8xbf16>
    %c0_2 = arith.constant 0 : index
    %c0_3 = arith.constant 0 : index
    %3 = vector.load %arg2[%c0_2, %c0_3] : memref<8x1024xbf16, #tpu.memory_space<vmem>>, vector<8x1024xbf16>
    %cst = arith.constant dense<0.000000e+00> : vector<2x1024xf32>
    %4 = tpu.matmul %2, %3, %cst {dimension_numbers = #tpu.dot_dimension_numbers<[1], [0], [0], [1], [0, 0, 1, 1], [], []>} : vector<2x8xbf16>, vector<8x1024xbf16>, vector<2x1024xf32> -> vector<2x1024xf32>
    %c0_4 = arith.constant 0 : index
    %c0_5 = arith.constant 0 : index
    %5 = vector.load %arg3[%c0_4, %c0_5] : memref<1x1024xf32, #tpu.memory_space<vmem>>, vector<1x1024xf32>
    %6 = vector.broadcast %5 : vector<1x1024xf32> to vector<2x1024xf32>
    %7 = arith.addf %4, %6 : vector<2x1024xf32>
    %8 = vector.extract_strided_slice %7 {offsets = [0, 0], sizes = [2, 256], strides = [1, 1]} : vector<2x1024xf32> to vector<2x256xf32>
    %9 = vector.extract_strided_slice %7 {offsets = [0, 256], sizes = [2, 256], strides = [1, 1]} : vector<2x1024xf32> to vector<2x256xf32>
    %10 = vector.extract_strided_slice %7 {offsets = [0, 512], sizes = [2, 256], strides = [1, 1]} : vector<2x1024xf32> to vector<2x256xf32>
    %11 = vector.extract_strided_slice %7 {offsets = [0, 768], sizes = [2, 256], strides = [1, 1]} : vector<2x1024xf32> to vector<2x256xf32>
    %12 = tpu.concatenate %8, %9, %10, %11 in 0 : vector<2x256xf32>, vector<2x256xf32>, vector<2x256xf32>, vector<2x256xf32> -> vector<8x256xf32>
    %13 = arith.truncf %12 : vector<8x256xf32> to vector<8x256xbf16>
    %c0_6 = arith.constant 0 : index
    %c0_7 = arith.constant 0 : index
    %14 = vector.load %arg4[%c0_6, %c0_7] : memref<8x8xbf16, #tpu.memory_space<vmem>>, vector<8x8xbf16>
    %cst_8 = arith.constant dense<0.000000e+00> : vector<8x256xf32>
    %15 = tpu.matmul %14, %13, %cst_8 {dimension_numbers = #tpu.dot_dimension_numbers<[1], [0], [0], [1], [0, 0, 1, 1], [], []>} : vector<8x8xbf16>, vector<8x256xbf16>, vector<8x256xf32> -> vector<8x256xf32>
    %16 = arith.truncf %15 : vector<8x256xf32> to vector<8x256xbf16>
    %cst_9 = arith.constant 0.000000e+00 : bf16
    %17 = vector.broadcast %cst_9 : bf16 to vector<1x256xbf16>
    %18 = vector.extract_strided_slice %16 {offsets = [0, 0], sizes = [7, 256], strides = [1, 1]} : vector<8x256xbf16> to vector<7x256xbf16>
    %19 = tpu.concatenate %17, %18 in 0 : vector<1x256xbf16>, vector<7x256xbf16> -> vector<8x256xbf16>
    %20 = vector.extract_strided_slice %16 {offsets = [1, 0], sizes = [7, 256], strides = [1, 1]} : vector<8x256xbf16> to vector<7x256xbf16>
    %21 = tpu.concatenate %20, %17 in 0 : vector<7x256xbf16>, vector<1x256xbf16> -> vector<8x256xbf16>
    %22 = tpu.iota {dimensions = array<i32: 0>} : vector<8x1xi32>
    %c4_i32 = arith.constant 4 : i32
    %c0_i32 = arith.constant 0 : i32
    %23 = arith.cmpi eq, %c4_i32, %c0_i32 : i32
    %c1_i32 = arith.constant 1 : i32
    %24 = arith.select %23, %c1_i32, %c4_i32 : i32
    %25 = vector.broadcast %24 : i32 to vector<8x1xi32>
    %26 = arith.remsi %22, %25 : vector<8x1xi32>
    %c0_i32_10 = arith.constant 0 : i32
    %27 = vector.broadcast %c0_i32_10 : i32 to vector<8x1xi32>
    %28 = arith.cmpi ne, %26, %27 : vector<8x1xi32>
    %c0_i32_11 = arith.constant 0 : i32
    %29 = vector.broadcast %c0_i32_11 : i32 to vector<8x1xi32>
    %30 = arith.cmpi slt, %26, %29 : vector<8x1xi32>
    %c0_i32_12 = arith.constant 0 : i32
    %31 = arith.cmpi slt, %24, %c0_i32_12 : i32
    %32 = vector.broadcast %31 : i1 to vector<8x1xi1>
    %33 = vector.broadcast %32 : vector<8x1xi1> to vector<8x1xi1>
    %34 = arith.xori %30, %33 : vector<8x1xi1>
    %35 = arith.andi %34, %28 : vector<8x1xi1>
    %36 = vector.broadcast %24 : i32 to vector<8x1xi32>
    %37 = arith.addi %26, %36 : vector<8x1xi32>
    %38 = arith.select %35, %37, %26 : vector<8x1xi1>, vector<8x1xi32>
    %c0_i32_13 = arith.constant 0 : i32
    %39 = vector.broadcast %c0_i32_13 : i32 to vector<8x1xi32>
    %40 = arith.cmpi eq, %38, %39 : vector<8x1xi32>
    %cst_14 = arith.constant 0.000000e+00 : bf16
    %41 = vector.broadcast %cst_14 : bf16 to vector<8x256xbf16>
    %42 = vector.shape_cast %40 : vector<8x1xi1> to vector<8x1xi1>
    %43 = vector.broadcast %42 : vector<8x1xi1> to vector<8x256xi1>
    %44 = arith.select %43, %41, %19 : vector<8x256xi1>, vector<8x256xbf16>
    %c3_i32 = arith.constant 3 : i32
    %45 = vector.broadcast %c3_i32 : i32 to vector<8x1xi32>
    %46 = arith.cmpi eq, %38, %45 : vector<8x1xi32>
    %cst_15 = arith.constant 0.000000e+00 : bf16
    %47 = vector.broadcast %cst_15 : bf16 to vector<8x256xbf16>
    %48 = vector.shape_cast %46 : vector<8x1xi1> to vector<8x1xi1>
    %49 = vector.broadcast %48 : vector<8x1xi1> to vector<8x256xi1>
    %50 = arith.select %49, %47, %21 : vector<8x256xi1>, vector<8x256xbf16>
    %51 = tpu.concatenate %44, %16, %50 in 1 : vector<8x256xbf16>, vector<8x256xbf16>, vector<8x256xbf16> -> vector<8x768xbf16>
    %c0_16 = arith.constant 0 : index
    %c0_17 = arith.constant 0 : index
    %52 = vector.load %arg5[%c0_16, %c0_17] : memref<768x512xbf16, #tpu.memory_space<vmem>>, vector<768x512xbf16>
    %cst_18 = arith.constant dense<0.000000e+00> : vector<8x512xf32>
    %53 = tpu.matmul %51, %52, %cst_18 {dimension_numbers = #tpu.dot_dimension_numbers<[1], [0], [0], [1], [0, 0, 1, 1], [], []>} : vector<8x768xbf16>, vector<768x512xbf16>, vector<8x512xf32> -> vector<8x512xf32>
    %c0_19 = arith.constant 0 : index
    %c0_20 = arith.constant 0 : index
    %54 = vector.load %arg6[%c0_19, %c0_20] : memref<1x512xf32, #tpu.memory_space<vmem>>, vector<1x512xf32>
    %55 = vector.broadcast %54 : vector<1x512xf32> to vector<8x512xf32>
    %56 = arith.addf %53, %55 : vector<8x512xf32>
    %57 = vector.extract_strided_slice %56 {offsets = [0, 0], sizes = [8, 256], strides = [1, 1]} : vector<8x512xf32> to vector<8x256xf32>
    %58 = vector.extract_strided_slice %56 {offsets = [0, 256], sizes = [8, 256], strides = [1, 1]} : vector<8x512xf32> to vector<8x256xf32>
    %59 = tpu.concatenate %57, %58 in 0 : vector<8x256xf32>, vector<8x256xf32> -> vector<16x256xf32>
    %60 = arith.truncf %59 : vector<16x256xf32> to vector<16x256xbf16>
    %c0_21 = arith.constant 0 : index
    %c0_22 = arith.constant 0 : index
    %61 = vector.load %arg7[%c0_21, %c0_22] : memref<16x16xbf16, #tpu.memory_space<vmem>>, vector<16x16xbf16>
    %cst_23 = arith.constant dense<0.000000e+00> : vector<16x256xf32>
    %62 = tpu.matmul %61, %60, %cst_23 {dimension_numbers = #tpu.dot_dimension_numbers<[1], [0], [0], [1], [0, 0, 1, 1], [], []>} : vector<16x16xbf16>, vector<16x256xbf16>, vector<16x256xf32> -> vector<16x256xf32>
    %63 = arith.truncf %62 : vector<16x256xf32> to vector<16x256xbf16>
    %cst_24 = arith.constant 0.000000e+00 : bf16
    %64 = vector.broadcast %cst_24 : bf16 to vector<1x256xbf16>
    %65 = vector.extract_strided_slice %63 {offsets = [0, 0], sizes = [15, 256], strides = [1, 1]} : vector<16x256xbf16> to vector<15x256xbf16>
    %66 = tpu.concatenate %64, %65 in 0 : vector<1x256xbf16>, vector<15x256xbf16> -> vector<16x256xbf16>
    %67 = vector.extract_strided_slice %63 {offsets = [1, 0], sizes = [15, 256], strides = [1, 1]} : vector<16x256xbf16> to vector<15x256xbf16>
    %68 = tpu.concatenate %67, %64 in 0 : vector<15x256xbf16>, vector<1x256xbf16> -> vector<16x256xbf16>
    %69 = tpu.iota {dimensions = array<i32: 0>} : vector<16x1xi32>
    %c8_i32 = arith.constant 8 : i32
    %c0_i32_25 = arith.constant 0 : i32
    %70 = arith.cmpi eq, %c8_i32, %c0_i32_25 : i32
    %c1_i32_26 = arith.constant 1 : i32
    %71 = arith.select %70, %c1_i32_26, %c8_i32 : i32
    %72 = vector.broadcast %71 : i32 to vector<16x1xi32>
    %73 = arith.remsi %69, %72 : vector<16x1xi32>
    %c0_i32_27 = arith.constant 0 : i32
    %74 = vector.broadcast %c0_i32_27 : i32 to vector<16x1xi32>
    %75 = arith.cmpi ne, %73, %74 : vector<16x1xi32>
    %c0_i32_28 = arith.constant 0 : i32
    %76 = vector.broadcast %c0_i32_28 : i32 to vector<16x1xi32>
    %77 = arith.cmpi slt, %73, %76 : vector<16x1xi32>
    %c0_i32_29 = arith.constant 0 : i32
    %78 = arith.cmpi slt, %71, %c0_i32_29 : i32
    %79 = vector.broadcast %78 : i1 to vector<16x1xi1>
    %80 = vector.broadcast %79 : vector<16x1xi1> to vector<16x1xi1>
    %81 = arith.xori %77, %80 : vector<16x1xi1>
    %82 = arith.andi %81, %75 : vector<16x1xi1>
    %83 = vector.broadcast %71 : i32 to vector<16x1xi32>
    %84 = arith.addi %73, %83 : vector<16x1xi32>
    %85 = arith.select %82, %84, %73 : vector<16x1xi1>, vector<16x1xi32>
    %c0_i32_30 = arith.constant 0 : i32
    %86 = vector.broadcast %c0_i32_30 : i32 to vector<16x1xi32>
    %87 = arith.cmpi eq, %85, %86 : vector<16x1xi32>
    %cst_31 = arith.constant 0.000000e+00 : bf16
    %88 = vector.broadcast %cst_31 : bf16 to vector<16x256xbf16>
    %89 = vector.shape_cast %87 : vector<16x1xi1> to vector<16x1xi1>
    %90 = vector.broadcast %89 : vector<16x1xi1> to vector<16x256xi1>
    %91 = arith.select %90, %88, %66 : vector<16x256xi1>, vector<16x256xbf16>
    %c7_i32 = arith.constant 7 : i32
    %92 = vector.broadcast %c7_i32 : i32 to vector<16x1xi32>
    %93 = arith.cmpi eq, %85, %92 : vector<16x1xi32>
    %cst_32 = arith.constant 0.000000e+00 : bf16
    %94 = vector.broadcast %cst_32 : bf16 to vector<16x256xbf16>
    %95 = vector.shape_cast %93 : vector<16x1xi1> to vector<16x1xi1>
    %96 = vector.broadcast %95 : vector<16x1xi1> to vector<16x256xi1>
    %97 = arith.select %96, %94, %68 : vector<16x256xi1>, vector<16x256xbf16>
    %98 = tpu.concatenate %91, %63, %97 in 1 : vector<16x256xbf16>, vector<16x256xbf16>, vector<16x256xbf16> -> vector<16x768xbf16>
    %c0_33 = arith.constant 0 : index
    %c0_34 = arith.constant 0 : index
    %99 = vector.load %arg8[%c0_33, %c0_34] : memref<768x512xbf16, #tpu.memory_space<vmem>>, vector<768x512xbf16>
    %cst_35 = arith.constant dense<0.000000e+00> : vector<16x512xf32>
    %100 = tpu.matmul %98, %99, %cst_35 {dimension_numbers = #tpu.dot_dimension_numbers<[1], [0], [0], [1], [0, 0, 1, 1], [], []>} : vector<16x768xbf16>, vector<768x512xbf16>, vector<16x512xf32> -> vector<16x512xf32>
    %c0_36 = arith.constant 0 : index
    %c0_37 = arith.constant 0 : index
    %101 = vector.load %arg9[%c0_36, %c0_37] : memref<1x512xf32, #tpu.memory_space<vmem>>, vector<1x512xf32>
    %102 = vector.broadcast %101 : vector<1x512xf32> to vector<16x512xf32>
    %103 = arith.addf %100, %102 : vector<16x512xf32>
    %104 = vector.extract_strided_slice %103 {offsets = [0, 0], sizes = [16, 256], strides = [1, 1]} : vector<16x512xf32> to vector<16x256xf32>
    %105 = vector.extract_strided_slice %103 {offsets = [0, 256], sizes = [16, 256], strides = [1, 1]} : vector<16x512xf32> to vector<16x256xf32>
    %106 = tpu.concatenate %104, %105 in 0 : vector<16x256xf32>, vector<16x256xf32> -> vector<32x256xf32>
    %107 = arith.truncf %106 : vector<32x256xf32> to vector<32x256xbf16>
    %c0_38 = arith.constant 0 : index
    %c0_39 = arith.constant 0 : index
    %108 = vector.load %arg10[%c0_38, %c0_39] : memref<32x32xbf16, #tpu.memory_space<vmem>>, vector<32x32xbf16>
    %cst_40 = arith.constant dense<0.000000e+00> : vector<32x256xf32>
    %109 = tpu.matmul %108, %107, %cst_40 {dimension_numbers = #tpu.dot_dimension_numbers<[1], [0], [0], [1], [0, 0, 1, 1], [], []>} : vector<32x32xbf16>, vector<32x256xbf16>, vector<32x256xf32> -> vector<32x256xf32>
    %110 = arith.truncf %109 : vector<32x256xf32> to vector<32x256xbf16>
    %cst_41 = arith.constant 0.000000e+00 : bf16
    %111 = vector.broadcast %cst_41 : bf16 to vector<1x256xbf16>
    %112 = vector.extract_strided_slice %110 {offsets = [0, 0], sizes = [31, 256], strides = [1, 1]} : vector<32x256xbf16> to vector<31x256xbf16>
    %113 = tpu.concatenate %111, %112 in 0 : vector<1x256xbf16>, vector<31x256xbf16> -> vector<32x256xbf16>
    %114 = vector.extract_strided_slice %110 {offsets = [1, 0], sizes = [31, 256], strides = [1, 1]} : vector<32x256xbf16> to vector<31x256xbf16>
    %115 = tpu.concatenate %114, %111 in 0 : vector<31x256xbf16>, vector<1x256xbf16> -> vector<32x256xbf16>
    %116 = tpu.iota {dimensions = array<i32: 0>} : vector<32x1xi32>
    %c16_i32 = arith.constant 16 : i32
    %c0_i32_42 = arith.constant 0 : i32
    %117 = arith.cmpi eq, %c16_i32, %c0_i32_42 : i32
    %c1_i32_43 = arith.constant 1 : i32
    %118 = arith.select %117, %c1_i32_43, %c16_i32 : i32
    %119 = vector.broadcast %118 : i32 to vector<32x1xi32>
    %120 = arith.remsi %116, %119 : vector<32x1xi32>
    %c0_i32_44 = arith.constant 0 : i32
    %121 = vector.broadcast %c0_i32_44 : i32 to vector<32x1xi32>
    %122 = arith.cmpi ne, %120, %121 : vector<32x1xi32>
    %c0_i32_45 = arith.constant 0 : i32
    %123 = vector.broadcast %c0_i32_45 : i32 to vector<32x1xi32>
    %124 = arith.cmpi slt, %120, %123 : vector<32x1xi32>
    %c0_i32_46 = arith.constant 0 : i32
    %125 = arith.cmpi slt, %118, %c0_i32_46 : i32
    %126 = vector.broadcast %125 : i1 to vector<32x1xi1>
    %127 = vector.broadcast %126 : vector<32x1xi1> to vector<32x1xi1>
    %128 = arith.xori %124, %127 : vector<32x1xi1>
    %129 = arith.andi %128, %122 : vector<32x1xi1>
    %130 = vector.broadcast %118 : i32 to vector<32x1xi32>
    %131 = arith.addi %120, %130 : vector<32x1xi32>
    %132 = arith.select %129, %131, %120 : vector<32x1xi1>, vector<32x1xi32>
    %c0_i32_47 = arith.constant 0 : i32
    %133 = vector.broadcast %c0_i32_47 : i32 to vector<32x1xi32>
    %134 = arith.cmpi eq, %132, %133 : vector<32x1xi32>
    %cst_48 = arith.constant 0.000000e+00 : bf16
    %135 = vector.broadcast %cst_48 : bf16 to vector<32x256xbf16>
    %136 = vector.shape_cast %134 : vector<32x1xi1> to vector<32x1xi1>
    %137 = vector.broadcast %136 : vector<32x1xi1> to vector<32x256xi1>
    %138 = arith.select %137, %135, %113 : vector<32x256xi1>, vector<32x256xbf16>
    %c15_i32 = arith.constant 15 : i32
    %139 = vector.broadcast %c15_i32 : i32 to vector<32x1xi32>
    %140 = arith.cmpi eq, %132, %139 : vector<32x1xi32>
    %cst_49 = arith.constant 0.000000e+00 : bf16
    %141 = vector.broadcast %cst_49 : bf16 to vector<32x256xbf16>
    %142 = vector.shape_cast %140 : vector<32x1xi1> to vector<32x1xi1>
    %143 = vector.broadcast %142 : vector<32x1xi1> to vector<32x256xi1>
    %144 = arith.select %143, %141, %115 : vector<32x256xi1>, vector<32x256xbf16>
    %145 = tpu.concatenate %138, %110, %144 in 1 : vector<32x256xbf16>, vector<32x256xbf16>, vector<32x256xbf16> -> vector<32x768xbf16>
    %c0_50 = arith.constant 0 : index
    %c0_51 = arith.constant 0 : index
    %146 = vector.load %arg11[%c0_50, %c0_51] : memref<768x512xbf16, #tpu.memory_space<vmem>>, vector<768x512xbf16>
    %cst_52 = arith.constant dense<0.000000e+00> : vector<32x512xf32>
    %147 = tpu.matmul %145, %146, %cst_52 {dimension_numbers = #tpu.dot_dimension_numbers<[1], [0], [0], [1], [0, 0, 1, 1], [], []>} : vector<32x768xbf16>, vector<768x512xbf16>, vector<32x512xf32> -> vector<32x512xf32>
    %c0_53 = arith.constant 0 : index
    %c0_54 = arith.constant 0 : index
    %148 = vector.load %arg12[%c0_53, %c0_54] : memref<1x512xf32, #tpu.memory_space<vmem>>, vector<1x512xf32>
    %149 = vector.broadcast %148 : vector<1x512xf32> to vector<32x512xf32>
    %150 = arith.addf %147, %149 : vector<32x512xf32>
    %151 = vector.extract_strided_slice %150 {offsets = [0, 0], sizes = [32, 256], strides = [1, 1]} : vector<32x512xf32> to vector<32x256xf32>
    %152 = vector.extract_strided_slice %150 {offsets = [0, 256], sizes = [32, 256], strides = [1, 1]} : vector<32x512xf32> to vector<32x256xf32>
    %153 = tpu.concatenate %151, %152 in 0 : vector<32x256xf32>, vector<32x256xf32> -> vector<64x256xf32>
    %154 = arith.truncf %153 : vector<64x256xf32> to vector<64x256xbf16>
    %c0_55 = arith.constant 0 : index
    %c0_56 = arith.constant 0 : index
    %155 = vector.load %arg13[%c0_55, %c0_56] : memref<64x64xbf16, #tpu.memory_space<vmem>>, vector<64x64xbf16>
    %cst_57 = arith.constant dense<0.000000e+00> : vector<64x256xf32>
    %156 = tpu.matmul %155, %154, %cst_57 {dimension_numbers = #tpu.dot_dimension_numbers<[1], [0], [0], [1], [0, 0, 1, 1], [], []>} : vector<64x64xbf16>, vector<64x256xbf16>, vector<64x256xf32> -> vector<64x256xf32>
    %157 = arith.truncf %156 : vector<64x256xf32> to vector<64x256xbf16>
    %cst_58 = arith.constant 0.000000e+00 : bf16
    %158 = vector.broadcast %cst_58 : bf16 to vector<1x256xbf16>
    %159 = vector.extract_strided_slice %157 {offsets = [0, 0], sizes = [63, 256], strides = [1, 1]} : vector<64x256xbf16> to vector<63x256xbf16>
    %160 = tpu.concatenate %158, %159 in 0 : vector<1x256xbf16>, vector<63x256xbf16> -> vector<64x256xbf16>
    %161 = vector.extract_strided_slice %157 {offsets = [1, 0], sizes = [63, 256], strides = [1, 1]} : vector<64x256xbf16> to vector<63x256xbf16>
    %162 = tpu.concatenate %161, %158 in 0 : vector<63x256xbf16>, vector<1x256xbf16> -> vector<64x256xbf16>
    %163 = tpu.iota {dimensions = array<i32: 0>} : vector<64x1xi32>
    %c32_i32 = arith.constant 32 : i32
    %c0_i32_59 = arith.constant 0 : i32
    %164 = arith.cmpi eq, %c32_i32, %c0_i32_59 : i32
    %c1_i32_60 = arith.constant 1 : i32
    %165 = arith.select %164, %c1_i32_60, %c32_i32 : i32
    %166 = vector.broadcast %165 : i32 to vector<64x1xi32>
    %167 = arith.remsi %163, %166 : vector<64x1xi32>
    %c0_i32_61 = arith.constant 0 : i32
    %168 = vector.broadcast %c0_i32_61 : i32 to vector<64x1xi32>
    %169 = arith.cmpi ne, %167, %168 : vector<64x1xi32>
    %c0_i32_62 = arith.constant 0 : i32
    %170 = vector.broadcast %c0_i32_62 : i32 to vector<64x1xi32>
    %171 = arith.cmpi slt, %167, %170 : vector<64x1xi32>
    %c0_i32_63 = arith.constant 0 : i32
    %172 = arith.cmpi slt, %165, %c0_i32_63 : i32
    %173 = vector.broadcast %172 : i1 to vector<64x1xi1>
    %174 = vector.broadcast %173 : vector<64x1xi1> to vector<64x1xi1>
    %175 = arith.xori %171, %174 : vector<64x1xi1>
    %176 = arith.andi %175, %169 : vector<64x1xi1>
    %177 = vector.broadcast %165 : i32 to vector<64x1xi32>
    %178 = arith.addi %167, %177 : vector<64x1xi32>
    %179 = arith.select %176, %178, %167 : vector<64x1xi1>, vector<64x1xi32>
    %c0_i32_64 = arith.constant 0 : i32
    %180 = vector.broadcast %c0_i32_64 : i32 to vector<64x1xi32>
    %181 = arith.cmpi eq, %179, %180 : vector<64x1xi32>
    %cst_65 = arith.constant 0.000000e+00 : bf16
    %182 = vector.broadcast %cst_65 : bf16 to vector<64x256xbf16>
    %183 = vector.shape_cast %181 : vector<64x1xi1> to vector<64x1xi1>
    %184 = vector.broadcast %183 : vector<64x1xi1> to vector<64x256xi1>
    %185 = arith.select %184, %182, %160 : vector<64x256xi1>, vector<64x256xbf16>
    %c31_i32 = arith.constant 31 : i32
    %186 = vector.broadcast %c31_i32 : i32 to vector<64x1xi32>
    %187 = arith.cmpi eq, %179, %186 : vector<64x1xi32>
    %cst_66 = arith.constant 0.000000e+00 : bf16
    %188 = vector.broadcast %cst_66 : bf16 to vector<64x256xbf16>
    %189 = vector.shape_cast %187 : vector<64x1xi1> to vector<64x1xi1>
    %190 = vector.broadcast %189 : vector<64x1xi1> to vector<64x256xi1>
    %191 = arith.select %190, %188, %162 : vector<64x256xi1>, vector<64x256xbf16>
    %192 = tpu.concatenate %185, %157, %191 in 1 : vector<64x256xbf16>, vector<64x256xbf16>, vector<64x256xbf16> -> vector<64x768xbf16>
    %c0_67 = arith.constant 0 : index
    %c0_68 = arith.constant 0 : index
    %193 = vector.load %arg14[%c0_67, %c0_68] : memref<768x1024xbf16, #tpu.memory_space<vmem>>, vector<768x1024xbf16>
    %cst_69 = arith.constant dense<0.000000e+00> : vector<64x1024xf32>
    %194 = tpu.matmul %192, %193, %cst_69 {dimension_numbers = #tpu.dot_dimension_numbers<[1], [0], [0], [1], [0, 0, 1, 1], [], []>} : vector<64x768xbf16>, vector<768x1024xbf16>, vector<64x1024xf32> -> vector<64x1024xf32>
    %c0_70 = arith.constant 0 : index
    %c0_71 = arith.constant 0 : index
    %195 = vector.load %arg15[%c0_70, %c0_71] : memref<1x1024xf32, #tpu.memory_space<vmem>>, vector<1x1024xf32>
    %196 = vector.broadcast %195 : vector<1x1024xf32> to vector<64x1024xf32>
    %197 = arith.addf %194, %196 : vector<64x1024xf32>
    %198 = vector.extract_strided_slice %197 {offsets = [0, 0], sizes = [64, 512], strides = [1, 1]} : vector<64x1024xf32> to vector<64x512xf32>
    %199 = vector.extract_strided_slice %197 {offsets = [0, 512], sizes = [64, 512], strides = [1, 1]} : vector<64x1024xf32> to vector<64x512xf32>
    %200 = tpu.concatenate %198, %199 in 0 : vector<64x512xf32>, vector<64x512xf32> -> vector<128x512xf32>
    %201 = arith.truncf %200 : vector<128x512xf32> to vector<128x512xbf16>
    %c0_72 = arith.constant 0 : index
    %c0_73 = arith.constant 0 : index
    %202 = vector.load %arg16[%c0_72, %c0_73] : memref<128x128xbf16, #tpu.memory_space<vmem>>, vector<128x128xbf16>
    %cst_74 = arith.constant dense<0.000000e+00> : vector<128x512xf32>
    %203 = tpu.matmul %202, %201, %cst_74 {dimension_numbers = #tpu.dot_dimension_numbers<[1], [0], [0], [1], [0, 0, 1, 1], [], []>} : vector<128x128xbf16>, vector<128x512xbf16>, vector<128x512xf32> -> vector<128x512xf32>
    %204 = arith.truncf %203 : vector<128x512xf32> to vector<128x512xbf16>
    %cst_75 = arith.constant 0.000000e+00 : bf16
    %205 = vector.broadcast %cst_75 : bf16 to vector<1x512xbf16>
    %206 = vector.extract_strided_slice %204 {offsets = [0, 0], sizes = [127, 512], strides = [1, 1]} : vector<128x512xbf16> to vector<127x512xbf16>
    %207 = tpu.concatenate %205, %206 in 0 : vector<1x512xbf16>, vector<127x512xbf16> -> vector<128x512xbf16>
    %208 = vector.extract_strided_slice %204 {offsets = [1, 0], sizes = [127, 512], strides = [1, 1]} : vector<128x512xbf16> to vector<127x512xbf16>
    %209 = tpu.concatenate %208, %205 in 0 : vector<127x512xbf16>, vector<1x512xbf16> -> vector<128x512xbf16>
    %210 = tpu.iota {dimensions = array<i32: 0>} : vector<128x1xi32>
    %c64_i32 = arith.constant 64 : i32
    %c0_i32_76 = arith.constant 0 : i32
    %211 = arith.cmpi eq, %c64_i32, %c0_i32_76 : i32
    %c1_i32_77 = arith.constant 1 : i32
    %212 = arith.select %211, %c1_i32_77, %c64_i32 : i32
    %213 = vector.broadcast %212 : i32 to vector<128x1xi32>
    %214 = arith.remsi %210, %213 : vector<128x1xi32>
    %c0_i32_78 = arith.constant 0 : i32
    %215 = vector.broadcast %c0_i32_78 : i32 to vector<128x1xi32>
    %216 = arith.cmpi ne, %214, %215 : vector<128x1xi32>
    %c0_i32_79 = arith.constant 0 : i32
    %217 = vector.broadcast %c0_i32_79 : i32 to vector<128x1xi32>
    %218 = arith.cmpi slt, %214, %217 : vector<128x1xi32>
    %c0_i32_80 = arith.constant 0 : i32
    %219 = arith.cmpi slt, %212, %c0_i32_80 : i32
    %220 = vector.broadcast %219 : i1 to vector<128x1xi1>
    %221 = vector.broadcast %220 : vector<128x1xi1> to vector<128x1xi1>
    %222 = arith.xori %218, %221 : vector<128x1xi1>
    %223 = arith.andi %222, %216 : vector<128x1xi1>
    %224 = vector.broadcast %212 : i32 to vector<128x1xi32>
    %225 = arith.addi %214, %224 : vector<128x1xi32>
    %226 = arith.select %223, %225, %214 : vector<128x1xi1>, vector<128x1xi32>
    %c0_i32_81 = arith.constant 0 : i32
    %227 = vector.broadcast %c0_i32_81 : i32 to vector<128x1xi32>
    %228 = arith.cmpi eq, %226, %227 : vector<128x1xi32>
    %cst_82 = arith.constant 0.000000e+00 : bf16
    %229 = vector.broadcast %cst_82 : bf16 to vector<128x512xbf16>
    %230 = vector.shape_cast %228 : vector<128x1xi1> to vector<128x1xi1>
    %231 = vector.broadcast %230 : vector<128x1xi1> to vector<128x512xi1>
    %232 = arith.select %231, %229, %207 : vector<128x512xi1>, vector<128x512xbf16>
    %c63_i32 = arith.constant 63 : i32
    %233 = vector.broadcast %c63_i32 : i32 to vector<128x1xi32>
    %234 = arith.cmpi eq, %226, %233 : vector<128x1xi32>
    %cst_83 = arith.constant 0.000000e+00 : bf16
    %235 = vector.broadcast %cst_83 : bf16 to vector<128x512xbf16>
    %236 = vector.shape_cast %234 : vector<128x1xi1> to vector<128x1xi1>
    %237 = vector.broadcast %236 : vector<128x1xi1> to vector<128x512xi1>
    %238 = arith.select %237, %235, %209 : vector<128x512xi1>, vector<128x512xbf16>
    %239 = tpu.concatenate %232, %204, %238 in 1 : vector<128x512xbf16>, vector<128x512xbf16>, vector<128x512xbf16> -> vector<128x1536xbf16>
    %c0_84 = arith.constant 0 : index
    %c0_85 = arith.constant 0 : index
    %240 = vector.load %arg17[%c0_84, %c0_85] : memref<1536x256xbf16, #tpu.memory_space<vmem>>, vector<1536x256xbf16>
    %cst_86 = arith.constant dense<0.000000e+00> : vector<128x256xf32>
    %241 = tpu.matmul %239, %240, %cst_86 {dimension_numbers = #tpu.dot_dimension_numbers<[1], [0], [0], [1], [0, 0, 1, 1], [], []>} : vector<128x1536xbf16>, vector<1536x256xbf16>, vector<128x256xf32> -> vector<128x256xf32>
    %242 = math.tanh %241 : vector<128x256xf32>
    %243 = vector.extract_strided_slice %242 {offsets = [0, 0], sizes = [64, 256], strides = [1, 1]} : vector<128x256xf32> to vector<64x256xf32>
    %c0_87 = arith.constant 0 : index
    %c0_88 = arith.constant 0 : index
    %c0_89 = arith.constant 0 : index
    %244 = vector.load %arg18[%c0_87, %c0_88, %c0_89] : memref<2x64x256xf32, #tpu.memory_space<vmem>>, vector<1x64x256xf32>
    %245 = vector.shape_cast %244 : vector<1x64x256xf32> to vector<64x256xf32>
    %246 = vector.shape_cast %243 : vector<64x256xf32> to vector<1x64x256xf32>
    tpu.vector_store %arg18[%c0_87, %c0_88, %c0_89], %246 {strides = array<i32>} : memref<2x64x256xf32, #tpu.memory_space<vmem>>, vector<1x64x256xf32>,
    %247 = vector.extract_strided_slice %242 {offsets = [64, 0], sizes = [64, 256], strides = [1, 1]} : vector<128x256xf32> to vector<64x256xf32>
    %c1 = arith.constant 1 : index
    %c0_90 = arith.constant 0 : index
    %c0_91 = arith.constant 0 : index
    %248 = vector.load %arg18[%c1, %c0_90, %c0_91] : memref<2x64x256xf32, #tpu.memory_space<vmem>>, vector<1x64x256xf32>
    %249 = vector.shape_cast %248 : vector<1x64x256xf32> to vector<64x256xf32>
    %250 = vector.shape_cast %247 : vector<64x256xf32> to vector<1x64x256xf32>
    tpu.vector_store %arg18[%c1, %c0_90, %c0_91], %250 {strides = array<i32>} : memref<2x64x256xf32, #tpu.memory_space<vmem>>, vector<1x64x256xf32>,
    return
  }
  func.func @transform_0(%arg0: i32) -> (i32, i32, i32) {
    %c0_i32 = arith.constant 0 : i32
    %c0_i32_0 = arith.constant 0 : i32
    %c0_i32_1 = arith.constant 0 : i32
    return %arg0, %c0_i32, %c0_i32_0 : i32, i32, i32
  }
  func.func @transform_1(%arg0: i32) -> (i32, i32) {
    %c0_i32 = arith.constant 0 : i32
    %c0_i32_0 = arith.constant 0 : i32
    %c0_i32_1 = arith.constant 0 : i32
    return %c0_i32, %c0_i32_0 : i32, i32
  }
  func.func @transform_2(%arg0: i32) -> (i32, i32) {
    %c0_i32 = arith.constant 0 : i32
    %c0_i32_0 = arith.constant 0 : i32
    %c0_i32_1 = arith.constant 0 : i32
    return %c0_i32, %c0_i32_0 : i32, i32
  }
  func.func @transform_3(%arg0: i32) -> (i32, i32) {
    %c0_i32 = arith.constant 0 : i32
    %c0_i32_0 = arith.constant 0 : i32
    %c0_i32_1 = arith.constant 0 : i32
    return %c0_i32, %c0_i32_0 : i32, i32
  }
  func.func @transform_4(%arg0: i32) -> (i32, i32) {
    %c0_i32 = arith.constant 0 : i32
    %c0_i32_0 = arith.constant 0 : i32
    %c0_i32_1 = arith.constant 0 : i32
    return %c0_i32, %c0_i32_0 : i32, i32
  }
  func.func @transform_5(%arg0: i32) -> (i32, i32) {
    %c0_i32 = arith.constant 0 : i32
    %c0_i32_0 = arith.constant 0 : i32
    %c0_i32_1 = arith.constant 0 : i32
    return %c0_i32, %c0_i32_0 : i32, i32
  }
  func.func @transform_6(%arg0: i32) -> (i32, i32) {
    %c0_i32 = arith.constant 0 : i32
    %c0_i32_0 = arith.constant 0 : i32
    %c0_i32_1 = arith.constant 0 : i32
    return %c0_i32, %c0_i32_0 : i32, i32
  }
  func.func @transform_7(%arg0: i32) -> (i32, i32) {
    %c0_i32 = arith.constant 0 : i32
    %c0_i32_0 = arith.constant 0 : i32
    %c0_i32_1 = arith.constant 0 : i32
    return %c0_i32, %c0_i32_0 : i32, i32
  }
  func.func @transform_8(%arg0: i32) -> (i32, i32) {
    %c0_i32 = arith.constant 0 : i32
    %c0_i32_0 = arith.constant 0 : i32
    %c0_i32_1 = arith.constant 0 : i32
    return %c0_i32, %c0_i32_0 : i32, i32
  }
  func.func @transform_9(%arg0: i32) -> (i32, i32) {
    %c0_i32 = arith.constant 0 : i32
    %c0_i32_0 = arith.constant 0 : i32
    %c0_i32_1 = arith.constant 0 : i32
    return %c0_i32, %c0_i32_0 : i32, i32
  }
  func.func @transform_10(%arg0: i32) -> (i32, i32) {
    %c0_i32 = arith.constant 0 : i32
    %c0_i32_0 = arith.constant 0 : i32
    %c0_i32_1 = arith.constant 0 : i32
    return %c0_i32, %c0_i32_0 : i32, i32
  }
  func.func @transform_11(%arg0: i32) -> (i32, i32) {
    %c0_i32 = arith.constant 0 : i32
    %c0_i32_0 = arith.constant 0 : i32
    %c0_i32_1 = arith.constant 0 : i32
    return %c0_i32, %c0_i32_0 : i32, i32
  }
  func.func @transform_12(%arg0: i32) -> (i32, i32) {
    %c0_i32 = arith.constant 0 : i32
    %c0_i32_0 = arith.constant 0 : i32
    %c0_i32_1 = arith.constant 0 : i32
    return %c0_i32, %c0_i32_0 : i32, i32
  }
  func.func @transform_13(%arg0: i32) -> (i32, i32) {
    %c0_i32 = arith.constant 0 : i32
    %c0_i32_0 = arith.constant 0 : i32
    %c0_i32_1 = arith.constant 0 : i32
    return %c0_i32, %c0_i32_0 : i32, i32
  }
  func.func @transform_14(%arg0: i32) -> (i32, i32) {
    %c0_i32 = arith.constant 0 : i32
    %c0_i32_0 = arith.constant 0 : i32
    %c0_i32_1 = arith.constant 0 : i32
    return %c0_i32, %c0_i32_0 : i32, i32
  }
  func.func @transform_15(%arg0: i32) -> (i32, i32) {
    %c0_i32 = arith.constant 0 : i32
    %c0_i32_0 = arith.constant 0 : i32
    %c0_i32_1 = arith.constant 0 : i32
    return %c0_i32, %c0_i32_0 : i32, i32
  }
  func.func @transform_16(%arg0: i32) -> (i32, i32) {
    %c0_i32 = arith.constant 0 : i32
    %c0_i32_0 = arith.constant 0 : i32
    %c0_i32_1 = arith.constant 0 : i32
    return %c0_i32, %c0_i32_0 : i32, i32
  }
  func.func @transform_17(%arg0: i32) -> (i32, i32, i32) {
    %c0_i32 = arith.constant 0 : i32
    %c0_i32_0 = arith.constant 0 : i32
    %c0_i32_1 = arith.constant 0 : i32
    return %arg0, %c0_i32, %c0_i32_0 : i32, i32, i32
  }
}

</mosaic_0001>

<bundles_post_ra>
// kernel: generator_forward.1
= control target key start
LH: loop header
LB: loop body
LE: loop exit
PB: predicated region body
PF: predicated region fallthrough
CT: control target
= control target key end

     0   :  { %s19516_s0 = inlined_call_operand.hbm [shape: f32[4,1,8], index: 0, kind: input, shape index: {}]   ;;  %s19517_s1 = inlined_call_operand.hbm [shape: bf16[8,1024], index: 1, kind: input, shape index: {}]   ;;  %s19518_s2 = inlined_call_operand.hbm [shape: f32[1,1024], index: 2, kind: input, shape index: {}]   ;;  %s19519_s3 = inlined_call_operand.hbm [shape: bf16[8,8], index: 3, kind: input, shape index: {}]   ;;  %s19520_s4 = inlined_call_operand.hbm [shape: bf16[768,512], index: 4, kind: input, shape index: {}]   ;;  %s19521_s5 = inlined_call_operand.hbm [shape: f32[1,512], index: 5, kind: input, shape index: {}]   ;;  %s19522_s6 = inlined_call_operand.hbm [shape: bf16[16,16], index: 6, kind: input, shape index: {}]   ;;  %s19523_s7 = inlined_call_operand.hbm [shape: bf16[768,512], index: 7, kind: input, shape index: {}]   ;;  %s19524_s8 = inlined_call_operand.hbm [shape: f32[1,512], index: 8, kind: input, shape index: {}]   ;;  %s19525_s9 = inlined_call_operand.hbm [shape: bf16[32,32], index: 9, kind: input, shape index: {}]   ;;  %s19526_s10 = inlined_call_operand.hbm [shape: bf16[768,512], index: 10, kind: input, shape index: {}]   ;;  %s19527_s11 = inlined_call_operand.hbm [shape: f32[1,512], index: 11, kind: input, shape index: {}]   ;;  %s19528_s12 = inlined_call_operand.hbm [shape: bf16[64,64], index: 12, kind: input, shape index: {}]   ;;  %s19529_s13 = inlined_call_operand.hbm [shape: bf16[768,1024], index: 13, kind: input, shape index: {}]   ;;  %s19530_s14 = inlined_call_operand.hbm [shape: f32[1,1024], index: 14, kind: input, shape index: {}]   ;;  %s19531_s15 = inlined_call_operand.hbm [shape: bf16[128,128], index: 15, kind: input, shape index: {}]   ;;  %s19532_s16 = inlined_call_operand.hbm [shape: bf16[1536,256], index: 16, kind: input, shape index: {}]   ;;  %s19533_s17 = inlined_call_operand.vmem [shape: f32[4,64,256], index: 17, kind: output, shape index: {}]  }
   0x1   :  { %19635 = sst [smem:[#allocation94_spill]] %s19516_s0 }
   0x2   :  { %19636 = sst [smem:[#allocation95_spill]] %s19517_s1 }
   0x3   :  { %19637 = sst [smem:[#allocation96_spill]] %s19518_s2 }
   0x4   :  { %19638 = sst [smem:[#allocation97_spill]] %s19519_s3 }
   0x5   :  { %19639 = sst [smem:[#allocation98_spill]] %s19521_s5 }
   0x6   :  { %19640 = sst [smem:[#allocation99_spill]] %s19523_s7 }
   0x7   :  { %19641 = sst [smem:[#allocation100_spill]] %s19533_s17 }
   0x8   :  { %22 = vsyncpa [#allocation3], 0 }
   0x9   :  { %24 = vsyncpa [#allocation3 + $0x1], 0 }
   0xa   :  { %25 = vsyncpa [#allocation5], 0 }
   0xb   :  { %26 = vsyncpa [#allocation8], 0 }
   0xc   :  { %27 = vsyncpa [#allocation11], 0 }
   0xd   :  { %28 = vsyncpa [#allocation14], 0 }
   0xe   :  { %29 = vsyncpa [#allocation17], 0 }
   0xf   :  { %30 = vsyncpa [#allocation20], 0 }
  0x10   :  { %31 = vsyncpa [#allocation23], 0 }
  0x11   :  { %32 = vsyncpa [#allocation26], 0  ;;  %s17190_s24 = smov 0   ;;  %s17192_s25 = smov 0  }
  0x12   :  { %s17194_s26 = smov 0   ;;  %s17196_s27 = smov 0  }
  0x13 LB: > { %19642 = sst [smem:[#allocation37_spill]] %s17058_s24  ;;  %s17072_s28 = smov [#allocation4]   ;;  %s17070_s27 = sphi %s17196_s27, %s19891_s27   ;;  %s17066_s26 = sphi %s17194_s26, %s19890_s26   ;;  %s17062_s25 = sphi %s17192_s25, %s19889_s25   ;;  %s17058_s24 = sphi %s17190_s24, %s19888_s24  }
  0x14   : > { %19643 = sst [smem:[#allocation38_spill]] %s17062_s25  ;;  %s444_s29 = sshll.u32 %s17072_s28, 4  ;;  %s445_s29 = int_to_ptr.vmem [resolvable:$true] %s444_s29 }
  0x15   : > { %19644 = sst [smem:[#allocation39_spill]] %s17066_s26  ;;  %s19536_s0 = sadd.s32 4294967295, %s17070_s27  }
  0x16   : > { %p13008_p0 = scmp.ge.s32.totalorder %s17070_s27, 1  ;;  %p17214_p1 = scmp.eq.s32.totalorder %s19536_s0, 0 }
  0x17   : > { %p431_p2 = scmp.lt.s32.totalorder %s17070_s27, 3  ;;  %s17073_s19 = smov [#allocation7]  }
  0x18   : > { %s19645_s30 = scalar_select %p17214_p1, 1, 0 }
  0x19   : > { %p17219_p3 = pnand %p13008_p0, %p431_p2  ;;  %s466_s1 = sshll.u32 %s17073_s19, 4  ;;  %s17225_s1 = int_to_ptr.vmem [resolvable:$true] %s466_s1 }
  0x1a   : > { %19646 = sst [smem:[#allocation40_spill]] %s19645_s30  ;;  %s17074_s20 = smov [#allocation10]  }
  0x1b   : > { %s19647_s18 = scalar_select %p17219_p3, 1, 0 }
  0x1c   : > { %p15141_p4 = pneg %p17219_p3  ;;  %s490_s21 = sshll.u32 %s17074_s20, 4  ;;  %s17233_s21 = int_to_ptr.vmem [resolvable:$true] %s490_s21 }
  0x1d   : > { %19648 = sst [smem:[#allocation41_spill]] %s19647_s18  ;;  %s19650_s0 = sld [smem:[#allocation95_spill]] }
  0x1e   : > { %p17229_p5 = pnand %p15141_p4, %p17214_p1 }
  0x20   : > { %p17243_p7 = pneg %p17229_p5 }
  0x23   : > { %s16526_s17 = scalar_lea.hbm %s19650_s0, 512 }
  0x24   : > { %p16527_p6 = scmp.ne.s32.totalorder %s19650_s0, %s16526_s17  ;;  %p16533_p10 = scmp.lt.u32.totalorder %s16526_s17, %s19650_s0 }
  0x26   : > { %p16529_p8 = pnand %p17243_p7, %p16527_p6 }
  0x28   : > { %p16530_p9 = pneg %p16529_p8 }
  0x2a   : > { %p16535_p11 = pnand %p16533_p10, %p16530_p9 }
  0x2c   : > { %16538 = shalt.err (!%p16535_p11)
}
  0x2d   : > { %s16539_s23 = scalar_lea.vmem %s445_s29, 512  ;;  %p16547_p2 = scmp.lt.s32.totalorder %s445_s29, %s445_s29 }
  0x2e   : > { %p16540_p12 = scmp.ne.s32.totalorder %s445_s29, %s16539_s23  ;;  %p16548_p4 = scmp.lt.s32.totalorder %s16539_s23, %s16539_s23 }
  0x30   : > { %p16542_p13 = pnand %p16540_p12, %p17243_p7  ;;  %p16549_p3 = por %p16548_p4, %p16547_p2 }
  0x32   : > { %p16543_p0 = pneg %p16542_p13 }
  0x34   : > { %p16550_p1 = pnand %p16549_p3, %p16543_p0 }
  0x36   : > { %16553 = shalt.err (!%p16550_p1)
}
  0x37   : > { %15144 = dma.hbm_to_vmem [thread:$0]  (!%p17229_p5), %s19650_s0, 512, %s445_s29, [#allocation5]  }
  0x38   : > { %s19652_s3 = sld [smem:[#allocation97_spill]] }
  0x3e   : > { %s16554_s28 = scalar_lea.hbm %s19652_s3, 64 }
  0x3f   : > { %p16555_p6 = scmp.ne.s32.totalorder %s19652_s3, %s16554_s28  ;;  %p16561_p1 = scmp.lt.u32.totalorder %s16554_s28, %s19652_s3 }
  0x41   : > { %p16557_p8 = pnand %p16555_p6, %p17243_p7 }
  0x43   : > { %p16558_p9 = pneg %p16557_p8 }
  0x45   : > { %p16563_p3 = pnand %p16561_p1, %p16558_p9 }
  0x47   : > { %16566 = shalt.err (!%p16563_p3)
}
  0x48   : > { %s16567_s29 = scalar_lea.vmem %s17225_s1, 64  ;;  %p16575_p13 = scmp.lt.s32.totalorder %s17225_s1, %s17225_s1 }
  0x49   : > { %p16568_p10 = scmp.ne.s32.totalorder %s17225_s1, %s16567_s29  ;;  %p16576_p0 = scmp.lt.s32.totalorder %s16567_s29, %s16567_s29 }
  0x4b   : > { %p16570_p11 = pnand %p16568_p10, %p17243_p7  ;;  %p16577_p2 = por %p16576_p0, %p16575_p13 }
  0x4d   : > { %p16571_p12 = pneg %p16570_p11 }
  0x4f   : > { %p16578_p4 = pnand %p16577_p2, %p16571_p12 }
  0x51   : > { %16581 = shalt.err (!%p16578_p4)
}
  0x52   : > { %15150 = dma.hbm_to_vmem [thread:$0]  (!%p17229_p5), %s19652_s3, 64, %s17225_s1, [#allocation8]  }
  0x53   : > { %s19653_s5 = sld [smem:[#allocation98_spill]] }
  0x59   : > { %s16582_s17 = scalar_lea.hbm %s19653_s5, 64 }
  0x5a   : > { %p16583_p6 = scmp.ne.s32.totalorder %s19653_s5, %s16582_s17  ;;  %p16589_p1 = scmp.lt.u32.totalorder %s16582_s17, %s19653_s5 }
  0x5c   : > { %p16585_p8 = pnand %p16583_p6, %p17243_p7 }
  0x5e   : > { %p16586_p9 = pneg %p16585_p8 }
  0x60   : > { %p16591_p3 = pnand %p16589_p1, %p16586_p9 }
  0x62   : > { %16594 = shalt.err (!%p16591_p3)
}
  0x63   : > { %s16595_s1 = scalar_lea.vmem %s17233_s21, 64  ;;  %p16603_p13 = scmp.lt.s32.totalorder %s17233_s21, %s17233_s21 }
  0x64   : > { %p16596_p10 = scmp.ne.s32.totalorder %s17233_s21, %s16595_s1  ;;  %p16604_p0 = scmp.lt.s32.totalorder %s16595_s1, %s16595_s1 }
  0x66   : > { %p16598_p11 = pnand %p16596_p10, %p17243_p7  ;;  %p16605_p2 = por %p16604_p0, %p16603_p13 }
  0x68   : > { %p16599_p12 = pneg %p16598_p11 }
  0x6a   : > { %p16606_p4 = pnand %p16605_p2, %p16599_p12 }
  0x6c   : > { %16609 = shalt.err (!%p16606_p4)
}
  0x6d   : > { %15156 = dma.hbm_to_vmem [thread:$0]  (!%p17229_p5), %s19653_s5, 64, %s17233_s21, [#allocation11]  }
  0x6e   : > { %s17075_s26 = smov [#allocation13]   ;;  %s19654_s7 = sld [smem:[#allocation99_spill]] }
  0x6f   : > { %s513_s24 = sshll.u32 %s17075_s26, 4  ;;  %s514_s24 = int_to_ptr.vmem [resolvable:$true] %s513_s24 }
  0x74   : > { %s16610_s30 = scalar_lea.hbm %s19654_s7, 24576 }
  0x75   : > { %p16611_p6 = scmp.ne.s32.totalorder %s19654_s7, %s16610_s30  ;;  %p16617_p1 = scmp.lt.u32.totalorder %s16610_s30, %s19654_s7 }
  0x77   : > { %p16613_p8 = pnand %p16611_p6, %p17243_p7 }
  0x79   : > { %p16614_p9 = pneg %p16613_p8 }
  0x7b   : > { %p16619_p3 = pnand %p16617_p1, %p16614_p9 }
  0x7d   : > { %16622 = shalt.err (!%p16619_p3)
}
  0x7e   : > { %s16623_s21 = scalar_lea.vmem %s514_s24, 24576  ;;  %p16631_p13 = scmp.lt.s32.totalorder %s514_s24, %s514_s24 }
  0x7f   : > { %p16624_p10 = scmp.ne.s32.totalorder %s514_s24, %s16623_s21  ;;  %p16632_p0 = scmp.lt.s32.totalorder %s16623_s21, %s16623_s21 }
  0x81   : > { %p16626_p11 = pnand %p16624_p10, %p17243_p7  ;;  %p16633_p2 = por %p16632_p0, %p16631_p13 }
  0x83   : > { %p16627_p12 = pneg %p16626_p11 }
  0x85   : > { %p16634_p4 = pnand %p16633_p2, %p16627_p12 }
  0x87   : > { %16637 = shalt.err (!%p16634_p4)
}
  0x88   : > { %s19546_s29 = smov 256   ;;  %s19548_s25 = smov 16  }
  0x89   : > { %15162 = dma.hbm_to_vmem [thread:$0]  (!%p17229_p5), %s19654_s7, 24576, %s514_s24, [#allocation14], %s19546_s29, %s19546_s29, %s19548_s25  }
  0x8a   : > { %s17078_s17 = smov [#allocation16]   ;;  %s17079_s28 = smov [#allocation19]  }
  0x8b   : > { %s537_s30 = sshll.u32 %s17078_s17, 4  ;;  %s564_s20 = sshll.u32 %s17079_s28, 4  ;;  %s538_s30 = int_to_ptr.vmem [resolvable:$true] %s537_s30  ;;  %s17326_s20 = int_to_ptr.vmem [resolvable:$true] %s564_s20 }
  0x8c   : > { %s16638_s21 = scalar_lea.hbm %s19525_s9, 256 }
  0x8d   : > { %p16639_p6 = scmp.ne.s32.totalorder %s19525_s9, %s16638_s21  ;;  %p16645_p1 = scmp.lt.u32.totalorder %s16638_s21, %s19525_s9 }
  0x8f   : > { %p16641_p8 = pnand %p16639_p6, %p17243_p7 }
  0x91   : > { %p16642_p9 = pneg %p16641_p8 }
  0x93   : > { %p16647_p3 = pnand %p16645_p1, %p16642_p9 }
  0x95   : > { %16650 = shalt.err (!%p16647_p3)
}
  0x96   : > { %s16651_s18 = scalar_lea.vmem %s538_s30, 256  ;;  %p16659_p13 = scmp.lt.s32.totalorder %s538_s30, %s538_s30 }
  0x97   : > { %p16652_p10 = scmp.ne.s32.totalorder %s538_s30, %s16651_s18  ;;  %p16660_p0 = scmp.lt.s32.totalorder %s16651_s18, %s16651_s18 }
  0x99   : > { %p16654_p11 = pnand %p16652_p10, %p17243_p7  ;;  %p16661_p2 = por %p16660_p0, %p16659_p13 }
  0x9b   : > { %p16655_p12 = pneg %p16654_p11 }
  0x9d   : > { %p16662_p4 = pnand %p16661_p2, %p16655_p12 }
  0x9f   : > { %16665 = shalt.err (!%p16662_p4)
}
  0xa0   : > { %s19550_s3 = smov 64   ;;  %s19552_s0 = smov 4  }
  0xa1   : > { %15168 = dma.hbm_to_vmem [thread:$0]  (!%p17229_p5), %s19525_s9, 256, %s538_s30, [#allocation17], %s19550_s3, %s19550_s3, %s19552_s0  }
  0xa2   : > { %s16666_s21 = scalar_lea.hbm %s19527_s11, 64 }
  0xa3   : > { %p16667_p6 = scmp.ne.s32.totalorder %s19527_s11, %s16666_s21  ;;  %p16673_p1 = scmp.lt.u32.totalorder %s16666_s21, %s19527_s11 }
  0xa5   : > { %p16669_p8 = pnand %p16667_p6, %p17243_p7 }
  0xa7   : > { %p16670_p9 = pneg %p16669_p8 }
  0xa9   : > { %p16675_p3 = pnand %p16673_p1, %p16670_p9 }
  0xab   : > { %16678 = shalt.err (!%p16675_p3)
}
  0xac   : > { %s16679_s30 = scalar_lea.vmem %s17326_s20, 64  ;;  %p16687_p13 = scmp.lt.s32.totalorder %s17326_s20, %s17326_s20 }
  0xad   : > { %p16680_p10 = scmp.ne.s32.totalorder %s17326_s20, %s16679_s30  ;;  %p16688_p0 = scmp.lt.s32.totalorder %s16679_s30, %s16679_s30 }
  0xaf   : > { %p16682_p11 = pnand %p16680_p10, %p17243_p7  ;;  %p16689_p2 = por %p16688_p0, %p16687_p13 }
  0xb1   : > { %p16683_p12 = pneg %p16682_p11 }
  0xb3   : > { %p16690_p4 = pnand %p16689_p2, %p16683_p12 }
  0xb5   : > { %16693 = shalt.err (!%p16690_p4)
}
  0xb6   : > { %15174 = dma.hbm_to_vmem [thread:$0]  (!%p17229_p5), %s19527_s11, 64, %s17326_s20, [#allocation20]  }
  0xb7   : > { %s17082_s28 = smov [#allocation22]   ;;  %s16694_s26 = scalar_lea.hbm %s19529_s13, 49152 }
  0xb8   : > { %s587_s23 = sshll.u32 %s17082_s28, 4  ;;  %p16695_p6 = scmp.ne.s32.totalorder %s19529_s13, %s16694_s26  ;;  %s588_s23 = int_to_ptr.vmem [resolvable:$true] %s587_s23 }
  0xb9   : > { %p16701_p1 = scmp.lt.u32.totalorder %s16694_s26, %s19529_s13 }
  0xba   : > { %p16697_p8 = pnand %p16695_p6, %p17243_p7 }
  0xbc   : > { %p16698_p9 = pneg %p16697_p8 }
  0xbe   : > { %p16703_p3 = pnand %p16701_p1, %p16698_p9 }
  0xc0   : > { %16706 = shalt.err (!%p16703_p3)
}
  0xc1   : > { %s16707_s20 = scalar_lea.vmem %s588_s23, 49152  ;;  %p16715_p13 = scmp.lt.s32.totalorder %s588_s23, %s588_s23 }
  0xc2   : > { %p16708_p10 = scmp.ne.s32.totalorder %s588_s23, %s16707_s20  ;;  %p16716_p0 = scmp.lt.s32.totalorder %s16707_s20, %s16707_s20 }
  0xc4   : > { %p16710_p11 = pnand %p16708_p10, %p17243_p7  ;;  %p16717_p2 = por %p16716_p0, %p16715_p13 }
  0xc6   : > { %p16711_p12 = pneg %p16710_p11 }
  0xc8   : > { %p16718_p4 = pnand %p16717_p2, %p16711_p12 }
  0xca   : > { %16721 = shalt.err (!%p16718_p4)
}
  0xcb   : > { %s17083_s29 = smov 512   ;;  %s17084_s17 = smov 32  }
  0xcc   : > { %15180 = dma.hbm_to_vmem [thread:$0]  (!%p17229_p5), %s19529_s13, 49152, %s588_s23, [#allocation23], %s17083_s29, %s17083_s29, %s17084_s17  }
  0xcd   : > { %s17085_s1 = smov [#allocation25]   ;;  %s17086_s26 = smov [#allocation6]  }
  0xce   : > { %s611_s21 = sshll.u32 %s17085_s1, 4  ;;  %s455_s24 = sshll.u32 %s17086_s26, 4  ;;  %s612_s21 = int_to_ptr.vmem [resolvable:$true] %s611_s21  ;;  %s456_s24 = int_to_ptr.vmem [resolvable:$true] %s455_s24 }
  0xcf   : > { %s16722_s20 = scalar_lea.hbm %s19531_s15, 1024 }
  0xd0   : > { %p16723_p6 = scmp.ne.s32.totalorder %s19531_s15, %s16722_s20  ;;  %p16729_p1 = scmp.lt.u32.totalorder %s16722_s20, %s19531_s15 }
  0xd2   : > { %p16725_p8 = pnand %p16723_p6, %p17243_p7 }
  0xd4   : > { %p16726_p9 = pneg %p16725_p8 }
  0xd6   : > { %p16731_p3 = pnand %p16729_p1, %p16726_p9 }
  0xd8   : > { %16734 = shalt.err (!%p16731_p3)
}
  0xd9   : > { %s16735_s23 = scalar_lea.vmem %s612_s21, 1024  ;;  %p16743_p13 = scmp.lt.s32.totalorder %s612_s21, %s612_s21 }
  0xda   : > { %p16736_p10 = scmp.ne.s32.totalorder %s612_s21, %s16735_s23  ;;  %p16744_p0 = scmp.lt.s32.totalorder %s16735_s23, %s16735_s23 }
  0xdc   : > { %p16738_p11 = pnand %p16736_p10, %p17243_p7  ;;  %p16745_p2 = por %p16744_p0, %p16743_p13 }
  0xde   : > { %p16739_p12 = pneg %p16738_p11 }
  0xe0   : > { %p16746_p4 = pnand %p16745_p2, %p16739_p12 }
  0xe2   : > { %16749 = shalt.err (!%p16746_p4)
}
  0xe3   : > { %s19655_s3 = smov 4   ;;  %s19656_s0 = smov 64  }
  0xe4   : > { %15186 = dma.hbm_to_vmem [thread:$0]  (!%p17229_p5), %s19531_s15, 1024, %s612_s21, [#allocation26], %s19656_s0, %s19656_s0, %s19655_s3  }
  0xe5   : > { %s19657_s2 = sld [smem:[#allocation96_spill]] }
  0xeb   : > { %s16750_s25 = scalar_lea.hbm %s19657_s2, 128 }
  0xec   : > { %p16751_p6 = scmp.ne.s32.totalorder %s19657_s2, %s16750_s25  ;;  %p16757_p1 = scmp.lt.u32.totalorder %s16750_s25, %s19657_s2 }
  0xee   : > { %p16753_p8 = pnand %p16751_p6, %p17243_p7 }
  0xf0   : > { %p16754_p9 = pneg %p16753_p8 }
  0xf2   : > { %p16759_p3 = pnand %p16757_p1, %p16754_p9 }
  0xf4   : > { %16762 = shalt.err (!%p16759_p3)
}
  0xf5   : > { %s16763_s30 = scalar_lea.vmem %s456_s24, 128  ;;  %p16771_p13 = scmp.lt.s32.totalorder %s456_s24, %s456_s24 }
  0xf6   : > { %p16764_p10 = scmp.ne.s32.totalorder %s456_s24, %s16763_s30  ;;  %p16772_p0 = scmp.lt.s32.totalorder %s16763_s30, %s16763_s30 }
  0xf8   : > { %p16766_p11 = pnand %p16764_p10, %p17243_p7  ;;  %p16773_p2 = por %p16772_p0, %p16771_p13 }
  0xfa   : > { %p16767_p12 = pneg %p16766_p11 }
  0xfc   : > { %p16774_p4 = pnand %p16773_p2, %p16767_p12 }
  0xfe   : > { %16777 = shalt.err (!%p16774_p4)
}
  0xff   : > { %15147 = dma.hbm_to_vmem [thread:$0]  (!%p17229_p5), %s19657_s2, 128, %s456_s24, [#allocation5]  }
 0x100   : > { %s17087_s23 = smov [#allocation9]   ;;  %s17088_s7 = smov [#allocation12]  }
 0x101   : > { %s476_s5 = sshll.u32 %s17087_s23, 4  ;;  %s500_s29 = sshll.u32 %s17088_s7, 4  ;;  %s477_s5 = int_to_ptr.vmem [resolvable:$true] %s476_s5  ;;  %s501_s29 = int_to_ptr.vmem [resolvable:$true] %s500_s29 }
 0x102   : > { %s16778_s28 = scalar_lea.hbm %s19520_s4, 24576 }
 0x103   : > { %p16779_p6 = scmp.ne.s32.totalorder %s19520_s4, %s16778_s28  ;;  %p16785_p1 = scmp.lt.u32.totalorder %s16778_s28, %s19520_s4 }
 0x105   : > { %p16781_p8 = pnand %p16779_p6, %p17243_p7 }
 0x107   : > { %p16782_p9 = pneg %p16781_p8 }
 0x109   : > { %p16787_p3 = pnand %p16785_p1, %p16782_p9 }
 0x10b   : > { %16790 = shalt.err (!%p16787_p3)
}
 0x10c   : > { %s16791_s24 = scalar_lea.vmem %s477_s5, 24576  ;;  %p16799_p13 = scmp.lt.s32.totalorder %s477_s5, %s477_s5 }
 0x10d   : > { %p16792_p10 = scmp.ne.s32.totalorder %s477_s5, %s16791_s24  ;;  %p16800_p0 = scmp.lt.s32.totalorder %s16791_s24, %s16791_s24 }
 0x10f   : > { %p16794_p11 = pnand %p16792_p10, %p17243_p7  ;;  %p16801_p2 = por %p16800_p0, %p16799_p13 }
 0x111   : > { %p16795_p12 = pneg %p16794_p11 }
 0x113   : > { %p16802_p4 = pnand %p16801_p2, %p16795_p12 }
 0x115   : > { %16805 = shalt.err (!%p16802_p4)
}
 0x116   : > { %s19658_s21 = smov 16   ;;  %s19659_s20 = smov 256  }
 0x117   : > { %15153 = dma.hbm_to_vmem [thread:$0]  (!%p17229_p5), %s19520_s4, 24576, %s477_s5, [#allocation8], %s19659_s20, %s19659_s20, %s19658_s21  }
 0x118   : > { %s16806_s28 = scalar_lea.hbm %s19522_s6, 128 }
 0x119   : > { %p16807_p6 = scmp.ne.s32.totalorder %s19522_s6, %s16806_s28  ;;  %p16813_p1 = scmp.lt.u32.totalorder %s16806_s28, %s19522_s6 }
 0x11b   : > { %p16809_p8 = pnand %p16807_p6, %p17243_p7 }
 0x11d   : > { %p16810_p9 = pneg %p16809_p8 }
 0x11f   : > { %p16815_p3 = pnand %p16813_p1, %p16810_p9 }
 0x121   : > { %16818 = shalt.err (!%p16815_p3)
}
 0x122   : > { %s16819_s24 = scalar_lea.vmem %s501_s29, 128  ;;  %p16827_p13 = scmp.lt.s32.totalorder %s501_s29, %s501_s29 }
 0x123   : > { %p16820_p10 = scmp.ne.s32.totalorder %s501_s29, %s16819_s24  ;;  %p16828_p0 = scmp.lt.s32.totalorder %s16819_s24, %s16819_s24 }
 0x125   : > { %p16822_p11 = pnand %p16820_p10, %p17243_p7  ;;  %p16829_p2 = por %p16828_p0, %p16827_p13 }
 0x127   : > { %p16823_p12 = pneg %p16822_p11 }
 0x129   : > { %p16830_p4 = pnand %p16829_p2, %p16823_p12 }
 0x12b   : > { %16833 = shalt.err (!%p16830_p4)
}
 0x12c   : > { %15159 = dma.hbm_to_vmem [thread:$0]  (!%p17229_p5), %s19522_s6, 128, %s501_s29, [#allocation11], %s19656_s0, %s19656_s0, %s19655_s3  }
 0x12d   : > { %s17089_s7 = smov [#allocation15]   ;;  %s17090_s25 = smov [#allocation18]  }
 0x12e   : > { %s527_s17 = sshll.u32 %s17089_s7, 4  ;;  %s550_s28 = sshll.u32 %s17090_s25, 4  ;;  %s528_s17 = int_to_ptr.vmem [resolvable:$true] %s527_s17  ;;  %s551_s28 = int_to_ptr.vmem [resolvable:$true] %s550_s28 }
 0x12f   : > { %s16834_s18 = scalar_lea.hbm %s19524_s8, 64 }
 0x130   : > { %p16835_p6 = scmp.ne.s32.totalorder %s19524_s8, %s16834_s18  ;;  %p16841_p1 = scmp.lt.u32.totalorder %s16834_s18, %s19524_s8 }
 0x132   : > { %p16837_p8 = pnand %p16835_p6, %p17243_p7 }
 0x134   : > { %p16838_p9 = pneg %p16837_p8 }
 0x136   : > { %p16843_p3 = pnand %p16841_p1, %p16838_p9 }
 0x138   : > { %16846 = shalt.err (!%p16843_p3)
}
 0x139   : > { %s16847_s29 = scalar_lea.vmem %s528_s17, 64  ;;  %p16855_p13 = scmp.lt.s32.totalorder %s528_s17, %s528_s17 }
 0x13a   : > { %p16848_p10 = scmp.ne.s32.totalorder %s528_s17, %s16847_s29  ;;  %p16856_p0 = scmp.lt.s32.totalorder %s16847_s29, %s16847_s29 }
 0x13c   : > { %p16850_p11 = pnand %p16848_p10, %p17243_p7  ;;  %p16857_p2 = por %p16856_p0, %p16855_p13 }
 0x13e   : > { %p16851_p12 = pneg %p16850_p11 }
 0x140   : > { %p16858_p4 = pnand %p16857_p2, %p16851_p12 }
 0x142   : > { %16861 = shalt.err (!%p16858_p4)
}
 0x143   : > { %15165 = dma.hbm_to_vmem [thread:$0]  (!%p17229_p5), %s19524_s8, 64, %s528_s17, [#allocation14]  }
 0x144   : > { %s16862_s1 = scalar_lea.hbm %s19526_s10, 24576 }
 0x145   : > { %p16863_p6 = scmp.ne.s32.totalorder %s19526_s10, %s16862_s1  ;;  %p16869_p1 = scmp.lt.u32.totalorder %s16862_s1, %s19526_s10 }
 0x147   : > { %p16865_p8 = pnand %p16863_p6, %p17243_p7 }
 0x149   : > { %p16866_p9 = pneg %p16865_p8 }
 0x14b   : > { %p16871_p3 = pnand %p16869_p1, %p16866_p9 }
 0x14d   : > { %16874 = shalt.err (!%p16871_p3)
}
 0x14e   : > { %s16875_s5 = scalar_lea.vmem %s551_s28, 24576  ;;  %p16883_p13 = scmp.lt.s32.totalorder %s551_s28, %s551_s28 }
 0x14f   : > { %p16876_p10 = scmp.ne.s32.totalorder %s551_s28, %s16875_s5  ;;  %p16884_p0 = scmp.lt.s32.totalorder %s16875_s5, %s16875_s5 }
 0x151   : > { %p16878_p11 = pnand %p16876_p10, %p17243_p7  ;;  %p16885_p2 = por %p16884_p0, %p16883_p13 }
 0x153   : > { %p16879_p12 = pneg %p16878_p11 }
 0x155   : > { %p16886_p4 = pnand %p16885_p2, %p16879_p12 }
 0x157   : > { %16889 = shalt.err (!%p16886_p4)
}
 0x158   : > { %15171 = dma.hbm_to_vmem [thread:$0]  (!%p17229_p5), %s19526_s10, 24576, %s551_s28, [#allocation17], %s19659_s20, %s19659_s20, %s19658_s21  }
 0x159   : > { %s17091_s23 = smov [#allocation21]   ;;  %s17092_s2 = smov [#allocation24]  }
 0x15a   : > { %s574_s7 = sshll.u32 %s17091_s23, 4  ;;  %s601_s25 = sshll.u32 %s17092_s2, 4  ;;  %s575_s7 = int_to_ptr.vmem [resolvable:$true] %s574_s7  ;;  %s602_s25 = int_to_ptr.vmem [resolvable:$true] %s601_s25 }
 0x15b   : > { %s16890_s18 = scalar_lea.hbm %s19528_s12, 512 }
 0x15c   : > { %p16891_p6 = scmp.ne.s32.totalorder %s19528_s12, %s16890_s18  ;;  %p16897_p1 = scmp.lt.u32.totalorder %s16890_s18, %s19528_s12 }
 0x15e   : > { %p16893_p8 = pnand %p16891_p6, %p17243_p7 }
 0x160   : > { %p16894_p9 = pneg %p16893_p8 }
 0x162   : > { %p16899_p3 = pnand %p16897_p1, %p16894_p9 }
 0x164   : > { %16902 = shalt.err (!%p16899_p3)
}
 0x165   : > { %s16903_s20 = scalar_lea.vmem %s575_s7, 512  ;;  %p16911_p13 = scmp.lt.s32.totalorder %s575_s7, %s575_s7 }
 0x166   : > { %p16904_p10 = scmp.ne.s32.totalorder %s575_s7, %s16903_s20  ;;  %p16912_p0 = scmp.lt.s32.totalorder %s16903_s20, %s16903_s20 }
 0x168   : > { %p16906_p11 = pnand %p16904_p10, %p17243_p7  ;;  %p16913_p2 = por %p16912_p0, %p16911_p13 }
 0x16a   : > { %p16907_p12 = pneg %p16906_p11 }
 0x16c   : > { %p16914_p4 = pnand %p16913_p2, %p16907_p12 }
 0x16e   : > { %16917 = shalt.err (!%p16914_p4)
}
 0x16f   : > { %15177 = dma.hbm_to_vmem [thread:$0]  (!%p17229_p5), %s19528_s12, 512, %s575_s7, [#allocation20], %s19656_s0, %s19656_s0, %s19655_s3  }
 0x170   : > { %s16918_s1 = scalar_lea.hbm %s19530_s14, 128 }
 0x171   : > { %p16919_p6 = scmp.ne.s32.totalorder %s19530_s14, %s16918_s1  ;;  %p16925_p1 = scmp.lt.u32.totalorder %s16918_s1, %s19530_s14 }
 0x173   : > { %p16921_p8 = pnand %p16919_p6, %p17243_p7 }
 0x175   : > { %p16922_p9 = pneg %p16921_p8 }
 0x177   : > { %p16927_p3 = pnand %p16925_p1, %p16922_p9 }
 0x179   : > { %16930 = shalt.err (!%p16927_p3)
}
 0x17a   : > { %s16931_s5 = scalar_lea.vmem %s602_s25, 128  ;;  %p16939_p13 = scmp.lt.s32.totalorder %s602_s25, %s602_s25 }
 0x17b   : > { %p16932_p10 = scmp.ne.s32.totalorder %s602_s25, %s16931_s5  ;;  %p16940_p0 = scmp.lt.s32.totalorder %s16931_s5, %s16931_s5 }
 0x17d   : > { %p16934_p11 = pnand %p16932_p10, %p17243_p7  ;;  %p16941_p2 = por %p16940_p0, %p16939_p13 }
 0x17f   : > { %p16935_p12 = pneg %p16934_p11 }
 0x181   : > { %p16942_p4 = pnand %p16941_p2, %p16935_p12 }
 0x183   : > { %16945 = shalt.err (!%p16942_p4)
}
 0x184   : > { %15183 = dma.hbm_to_vmem [thread:$0]  (!%p17229_p5), %s19530_s14, 128, %s602_s25, [#allocation23]  }
 0x185   : > { %s17093_s7 = smov [#allocation27]   ;;  %s16946_s29 = scalar_lea.hbm %s19532_s16, 24576 }
 0x186   : > { %s624_s17 = sshll.u32 %s17093_s7, 4  ;;  %p16947_p6 = scmp.ne.s32.totalorder %s19532_s16, %s16946_s29  ;;  %s625_s17 = int_to_ptr.vmem [resolvable:$true] %s624_s17 }
 0x187   : > { %p16953_p1 = scmp.lt.u32.totalorder %s16946_s29, %s19532_s16 }
 0x188   : > { %p16949_p8 = pnand %p16947_p6, %p17243_p7 }
 0x18a   : > { %p16950_p9 = pneg %p16949_p8 }
 0x18c   : > { %p16955_p3 = pnand %p16953_p1, %p16950_p9 }
 0x18e   : > { %16958 = shalt.err (!%p16955_p3)
}
 0x18f   : > { %s16959_s25 = scalar_lea.vmem %s625_s17, 24576  ;;  %p16967_p13 = scmp.lt.s32.totalorder %s625_s17, %s625_s17 }
 0x190   : > { %p16960_p10 = scmp.ne.s32.totalorder %s625_s17, %s16959_s25  ;;  %p16968_p0 = scmp.lt.s32.totalorder %s16959_s25, %s16959_s25 }
 0x192   : > { %p16962_p11 = pnand %p16960_p10, %p17243_p7  ;;  %p16969_p2 = por %p16968_p0, %p16967_p13 }
 0x194   : > { %p16963_p12 = pneg %p16962_p11 }
 0x196   : > { %p16970_p4 = pnand %p16969_p2, %p16963_p12 }
 0x198   : > { %16973 = shalt.err (!%p16970_p4)
}
 0x199   : > { %s17094_s18 = smov 128   ;;  %s19660_s30 = sld [smem:[#allocation39_spill]] }
 0x19a   : > { %s19661_s24 = sld [smem:[#allocation38_spill]]  ;;  %s19662_s5 = sld [smem:[#allocation37_spill]] }
 0x19b   : > { %s19663_s19 = sld [smem:[#allocation40_spill]]  ;;  %s17095_s3 = smov 8  }
 0x19c   : > { %15189 = dma.hbm_to_vmem [thread:$0]  (!%p17229_p5), %s19532_s16, 24576, %s625_s17, [#allocation26], %s17094_s18, %s17094_s18, %s17095_s3  }
 0x19d   : > { %s17568_s20 = sadd.s32 1, %s17070_s27   ;;  %p53_p8 = scmp.eq.s32.totalorder %s17070_s27, 0 }
 0x19e   : > { %s42_s29 = ssub.s32 %s17070_s27, %s17568_s20  ;;  %p15210_p1 = scmp.lt.s32.totalorder %s17070_s27, 2 }
 0x19f   : > { %s45_s28 = sadd.s32 1, %s19660_s30  ;;  %p43_p6 = scmp.eq.s32.totalorder %s42_s29, 0 }
 0x1a0   : > { %p52_p7 = scmp.ne.s32.totalorder %s19660_s30, %s19661_s24  ;;  %p58_p9 = scmp.ne.s32.totalorder %s19661_s24, %s19662_s5 }
 0x1a1   : > { %s17580_s23 = scalar_select %p43_p6, %s19660_s30, %s45_s28  }
 0x1a2   : > { %p54_p3 = por %p53_p8, %p52_p7  ;;  %p19664_p10 = scmp.ne.s32.totalorder %s19663_s19, 0 }
 0x1a3   : > { %s638_s2 = sand.u32 1, %s19660_s30   ;;  %s14612_s17 = sshll.u32 %s17070_s27, 5 }
 0x1a4   : > { %p17584_p11 = por %p19664_p10, %p58_p9  ;;  %s13026_s1 = sshll.u32 %s638_s2, 1 }
 0x1a5   : > { %s19666_s18 = sld [smem:[#allocation94_spill]]  ;;  %s642_s24 = scalar_lea.vmem [#allocation2], %s13026_s1 }
 0x1a6   : > { %s649_s5 = sshll.u32 %s642_s24, 4  ;;  %p17595_p5 = pnand %p15210_p1, %p54_p3  ;;  %s17599_s5 = int_to_ptr.vmem [resolvable:$true] %s649_s5 }
 0x1a7   : > { %s17601_s30 = scalar_lea.sflag [#allocation3], %s638_s2 }
 0x1a8   : > { %p16976_p13 = pneg %p17595_p5 }
 0x1ab   : > { %s17593_s3 = scalar_lea.hbm %s19666_s18, %s14612_s17  ;;  %s16979_s29 = scalar_lea.hbm %s19666_s18, 64 }
 0x1ac   : > { %s16974_s0 = scalar_lea.hbm %s17593_s3, 32  ;;  %p16980_p4 = scmp.lt.u32.totalorder %s17593_s3, %s19666_s18 }
 0x1ad   : > { %p16975_p12 = scmp.ne.s32.totalorder %s17593_s3, %s16974_s0  ;;  %p16981_p7 = scmp.lt.u32.totalorder %s16979_s29, %s16974_s0 }
 0x1ae   : > { %p16983_p8 = scmp.lt.u32.totalorder %s16974_s0, %s17593_s3 }
 0x1af   : > { %p16977_p0 = pnand %p16976_p13, %p16975_p12  ;;  %p16982_p6 = por %p16981_p7, %p16980_p4 }
 0x1b1   : > { %p16978_p2 = pneg %p16977_p0  ;;  %p16984_p9 = por %p16983_p8, %p16982_p6 }
 0x1b3   : > { %p16985_p1 = pnand %p16984_p9, %p16978_p2 }
 0x1b5   : > { %16988 = shalt.err (!%p16985_p1)
}
 0x1b6   : > { %s16989_s2 = scalar_lea.vmem %s17599_s5, 32  ;;  %s17096_s26 = smov [#allocation2]  }
 0x1b7   : > { %p16990_p3 = scmp.ne.s32.totalorder %s17599_s5, %s16989_s2  ;;  %s16994_s25 = sshll.u32 %s17096_s26, 4  ;;  %s16995_s25 = int_to_ptr.vmem [resolvable:$false] %s16994_s25 }
 0x1b8   : > { %s16996_s24 = scalar_lea.vmem %s16995_s25, 64  ;;  %p16997_p0 = scmp.lt.s32.totalorder %s17599_s5, %s16995_s25 }
 0x1b9   : > { %p16992_p10 = pnand %p16990_p3, %p16976_p13  ;;  %p16998_p4 = scmp.lt.s32.totalorder %s16996_s24, %s16989_s2 }
 0x1bb   : > { %p16993_p12 = pneg %p16992_p10  ;;  %p16999_p7 = por %p16998_p4, %p16997_p0 }
 0x1bd   : > { %p17000_p6 = pnand %p16999_p7, %p16993_p12 }
 0x1bf   : > { %17003 = shalt.err (!%p17000_p6)
}
 0x1c0   : > { %s17097_s0 = smov 1   ;;  %s19668_s7 = sld [smem:[#allocation41_spill]] }
 0x1c1   : > { %15193 = dma.hbm_to_vmem [thread:$0]  (!%p17595_p5), %s17593_s3, 32, %s17599_s5, %s17601_s30, %s19658_s21, %s19658_s21, %s17097_s0  }
 0x1c6   : > { %p19669_p13 = scmp.ne.s32.totalorder %s19668_s7, 0 }
 0x1c8   : > { %661 = sbr.rel (%p19669_p13) target bundleno = 4300 (0x10cc), region = 88 }
 0x1cf   : > { %s19670_s28 = sld [smem:[#allocation38_spill]] }
 0x1d5   : > { %s663_s29 = sand.u32 1, %s19670_s28  }
 0x1d6   : > { %s17634_s17 = sshll.u32 %s663_s29, 1  ;;  %s664_s1 = scalar_lea.sflag [#allocation3], %s663_s29 }
 0x1d7   : > { %s667_s2 = scalar_lea.vmem [#allocation2], %s17634_s17 }
 0x1d8   : > { %17021 = dma.done.wait (%p17584_p11), %s664_s1, 32  }
 0x1d9   : > { %17023 = vsyncadd (%p17584_p11), %s664_s1, 4294967264  ;;  %s19671_s19 = sld [smem:[#allocation40_spill]] }
 0x1df   : > { %p19672_p2 = scmp.ne.s32.totalorder %s19671_s19, 0 }
 0x1e1   : > { %17025 = dma.done.wait (%p19672_p2), [#allocation5], 640  }
 0x1e2   : > { %17027 = vsyncadd (%p19672_p2), [#allocation5], 4294966656 }
 0x1e3   : > { %17029 = dma.done.wait (%p19672_p2), [#allocation8], 24640  }
 0x1e4   : > { %17031 = vsyncadd (%p19672_p2), [#allocation8], 4294942656 }
 0x1e5   : > { %17033 = dma.done.wait (%p19672_p2), [#allocation11], 192  }
 0x1e6   : > { %17035 = vsyncadd (%p19672_p2), [#allocation11], 4294967104 }
 0x1e7   : > { %17037 = dma.done.wait (%p19672_p2), [#allocation14], 24640  }
 0x1e8   : > { %17039 = vsyncadd (%p19672_p2), [#allocation14], 4294942656 }
 0x1e9   : > { %17041 = dma.done.wait (%p19672_p2), [#allocation17], 24832  }
 0x1ea   : > { %17043 = vsyncadd (%p19672_p2), [#allocation17], 4294942464 }
 0x1eb   : > { %17045 = dma.done.wait (%p19672_p2), [#allocation20], 576  }
 0x1ec   : > { %17047 = vsyncadd (%p19672_p2), [#allocation20], 4294966720 }
 0x1ed   : > { %17049 = dma.done.wait (%p19672_p2), [#allocation23], 49280  }
 0x1ee   : > { %17051 = vsyncadd (%p19672_p2), [#allocation23], 4294918016 }
 0x1ef   : > { %17053 = dma.done.wait (%p19672_p2), [#allocation26], 25600  }
 0x1f0   : > { %17055 = vsyncadd (%p19672_p2), [#allocation26], 4294941696  ;;  %v19554_v0 = vmov 0   ;;  %v798_v1 = vld [vmem:[#allocation4] sm:$0xff]  ;;  %vm876_vm0 = vcmask 1043456   ;;  %v799_v2 = vld [vmem:[#allocation4 + $0x8] sm:$0xff]  ;;  %v804_v26 = vlaneseq }
 0x1f1   : > { %933 = vmatprep.mubr.bf16.mxu0 %v19554_v0  ;;  %974 = vmatprep.mubr.bf16.mxu1 %v19554_v0  ;;  %v794_v3 = vld [vmem:[%s667_s2] sm:$0x1]  ;;  %v13051_v4 = vcombine.high %v798_v1, %v798_v1  ;;  %v13053_v5 = vcombine.high %v799_v2, %v799_v2  ;;  %v13050_v6 = vcombine.low %v798_v1, %v798_v1  ;;  %v795_v8 = vld [vmem:[%s667_s2 + $0x1] sm:$0x1]  ;;  %v800_v9 = vld [vmem:[#allocation4 + $0x10] sm:$0xff]  ;;  %vm849_vm1 = vcmask 1041409  }
 0x1f2   : > { %v13052_v7 = vcombine.low %v799_v2, %v799_v2  ;;  %v801_v10 = vld [vmem:[#allocation4 + $0x18] sm:$0xff]  ;;  %v796_v11 = vpack.c.bf16 %v794_v3, %v794_v3  ;;  %v797_v12 = vpack.c.bf16 %v795_v8, %v795_v8  ;;  %v13055_v13 = vcombine.high %v800_v9, %v800_v9  ;;  %v6794_v28 = vld [vmem:[#allocation24] sm:$0xff]  ;;  %v802_v2 = vld [vmem:[#allocation6] sm:$0xff]  ;;  %s19886_s21 = sadd.s32 4294967295, %s17070_s27   ;;  %s19887_s26 = sld [smem:[#allocation100_spill]] }
 0x1f3   : > { %v13057_v14 = vcombine.high %v801_v10, %v801_v10  ;;  %13058 = vmatprep.subr.msk.bf16.mxu0 %vm876_vm0, %v13051_v4  ;;  %13060 = vmatprep.subr.msk.bf16.mxu1 %vm876_vm0, %v13053_v5  ;;  %v878_v15 = vsel %vm876_vm0, %v13050_v6, 0  ;;  %v13054_v19 = vcombine.low %v800_v9, %v800_v9  ;;  %v13056_v20 = vcombine.low %v801_v10, %v801_v10  ;;  %v15294_v37 = vld [vmem:[#allocation9] ss:$16 sps:$4 sm:$0xff]   ;;  %v15296_v38 = vld [vmem:[#allocation9 + $0x4] ss:$16 sps:$4 sm:$0xff]   ;;  %s13047_s22 = sshll.u32 %s19886_s21, 1 }
 0x1f4   : > { %v884_v16 = vsel %vm876_vm0, %v13052_v7, 0  ;;  %902 = vmatpush1.bf16.msra.mxu0 %v878_v15  ;;  %v846_v17 = vunpack.c.l.b16 %v796_v11  ;;  %v847_v18 = vunpack.c.l.b16 %v797_v12  ;;  %vm872_vm2 = vcmask 64512   ;;  %v15299_v39 = vld [vmem:[#allocation9 + $0x24] ss:$16 sps:$4 sm:$0xff]   ;;  %v15297_v40 = vld [vmem:[#allocation9 + $0x20] ss:$16 sps:$4 sm:$0xff]  }
 0x1f5   : > { %943 = vmatpush1.bf16.msra.mxu1 %v884_v16  ;;  %13062 = vmatprep.subr.msk.bf16.mxu0 %vm876_vm0, %v13055_v13  ;;  %v890_v24 = vsel %vm876_vm0, %v13054_v19, 0  ;;  %v896_v25 = vsel %vm876_vm0, %v13056_v20, 0  ;;  %v17690_v27 = vshrl.u32 %v804_v26, 7  ;;  %v15302_v41 = vld [vmem:[#allocation9 + $0x44] ss:$16 sps:$4 sm:$0xff]   ;;  %vm1083_vm3 = vcmask 1041408  }
 0x1f6   : > { %13064 = vmatprep.subr.msk.bf16.mxu1 %vm876_vm0, %v13057_v14  ;;  %v848_v21 = vrot.slane %v847_v18, 7  ;;  %v15300_v42 = vld [vmem:[#allocation9 + $0x40] ss:$16 sps:$4 sm:$0xff]   ;;  %v15305_v43 = vld [vmem:[#allocation9 + $0x64] ss:$16 sps:$4 sm:$0xff]   ;;  %vm1088_vm4 = vcmask 1045504  }
 0x1f7   : > { %19673 = vst [vmem:[#allocation42_spill] sm:$0xff] %v17690_v27  ;;  %v822_v29 = vsub.s32 4, %v17690_v27  ;;  %v830_v30 = vsub.s32 6, %v17690_v27  ;;  %v826_v31 = vsub.s32 5, %v17690_v27  ;;  %v834_v35 = vsub.s32 7, %v17690_v27  ;;  %p785_p11 = scmp.lt.s32.totalorder %s13047_s22, 3 }
 0x1f8   : > { %v850_v22 = vsel %vm849_vm1, %v848_v21, %v846_v17  ;;  %v15303_v44 = vld [vmem:[#allocation9 + $0x60] ss:$16 sps:$4 sm:$0xff]   ;;  %v15308_v45 = vld [vmem:[#allocation9 + $0x84] ss:$16 sps:$4 sm:$0xff]   ;;  %v17713_v3 = vsub.s32 2, %v17690_v27  ;;  %v17716_v4 = vsub.s32 3, %v17690_v27 }
 0x1f9   : > { %v851_v23 = vpack.c.b16 %v850_v22, %v850_v22  ;;  %v17697_v32 = vrot.slane %v6794_v28, %v822_v29  ;;  %v17701_v33 = vrot.slane %v6794_v28, %v830_v30  ;;  %v17705_v34 = vrot.slane %v6794_v28, %v826_v31  ;;  %v15306_v46 = vld [vmem:[#allocation9 + $0x80] ss:$16 sps:$4 sm:$0xff]   ;;  %v15311_v47 = vld [vmem:[#allocation9 + $0xa4] ss:$16 sps:$4 sm:$0xff]   ;;  %s19893_s22 = smov (!%p785_p11, %s13047_s22), 3 }
 0x1fa   : > { %v17710_v36 = vrot.slane %v6794_v28, %v834_v35  ;;  %v15309_v48 = vld [vmem:[#allocation9 + $0xa0] ss:$16 sps:$4 sm:$0xff]   ;;  %v15314_v49 = vld [vmem:[#allocation9 + $0xc4] ss:$16 sps:$4 sm:$0xff]   ;;  %v17719_v5 = vsub.s32 0, %v17690_v27  ;;  %v17722_v6 = vsub.s32 1, %v17690_v27  ;;  %v815_v7 = vrot.slane %v802_v2, %v17713_v3 }
 0x1fb   : > { %13059 = vmatmul.mubr.msk.bf16.vlgmr.msra.gmra.mrb[0].mxu0 %vm872_vm2, %v851_v23  ;;  %13061 = vmatmul.mubr.msk.bf16.vlgmr.msra.gmra.mrb[0].mxu1 %vm872_vm2, %v851_v23  ;;  %19674 = vst [vmem:[#allocation43_spill] sm:$0xff] %v17705_v34  ;;  %v15312_v50 = vld [vmem:[#allocation9 + $0xc0] ss:$16 sps:$4 sm:$0xff]   ;;  %v15317_v51 = vld [vmem:[#allocation9 + $0xe4] ss:$16 sps:$4 sm:$0xff]   ;;  %v819_v8 = vrot.slane %v802_v2, %v17716_v4  ;;  %v823_v26 = vrot.slane %v802_v2, %v822_v29  ;;  %vm1162_vm7 = vcmask 1040384  }
 0x1fc   : > { %984 = vmatpush1.bf16.msra.mxu0 %v890_v24  ;;  %1025 = vmatpush1.bf16.msra.mxu1 %v896_v25  ;;  %19675 = vst [vmem:[#allocation44_spill] sm:$0xff] %v17710_v36  ;;  %v15315_v52 = vld [vmem:[#allocation9 + $0xe0] ss:$16 sps:$4 sm:$0xff]   ;;  %v15320_v53 = vld [vmem:[#allocation9 + $0x104] ss:$16 sps:$4 sm:$0xff]   ;;  %v807_v9 = vrot.slane %v802_v2, %v17719_v5  ;;  %v811_v12 = vrot.slane %v802_v2, %v17722_v6  ;;  %s14613_s3 = sshll.u32 %s19893_s22, 7 }
 0x1fd   : > { %1015 = vmatprep.mubr.bf16.mxu0 %v19554_v0  ;;  %1056 = vmatprep.mubr.bf16.mxu1 %v19554_v0  ;;  %v15318_v54 = vld [vmem:[#allocation9 + $0x100] ss:$16 sps:$4 sm:$0xff]   ;;  %v15323_v55 = vld [vmem:[#allocation9 + $0x124] ss:$16 sps:$4 sm:$0xff]   ;;  %v831_v28 = vrot.slane %v802_v2, %v830_v30  ;;  %vm1163_vm8 = vsmask.f32 256  ;;  %s19469_s25 = scalar_lea.vmem %s19887_s26, %s14613_s3 }
 0x1fe   : > { %2386 = vmatprep.subr.bf16.mxu1 %v15296_v38  ;;  %v15321_v56 = vld [vmem:[#allocation9 + $0x120] ss:$16 sps:$4 sm:$0xff]   ;;  %v15326_v57 = vld [vmem:[#allocation9 + $0x144] ss:$16 sps:$4 sm:$0xff]   ;;  %v827_v38 = vrot.slane %v802_v2, %v826_v31  ;;  %vm17754_vm9 = vmand %vm1162_vm7, %vm1163_vm8  ;;  %vm1174_vm13 = vsmask.f32 3328 }
 0x1ff   : > { %v15324_v58 = vld [vmem:[#allocation9 + $0x140] ss:$16 sps:$4 sm:$0xff]   ;;  %v15329_v59 = vld [vmem:[#allocation9 + $0x164] ss:$16 sps:$4 sm:$0xff]   ;;  %vm17785_vm14 = vmand %vm876_vm0, %vm1174_vm13  ;;  %vm2715_vm13 = vsmask.f32 7424 }
 0x200   : > { %v15327_v60 = vld [vmem:[#allocation9 + $0x160] ss:$16 sps:$4 sm:$0xff]   ;;  %v15332_v61 = vld [vmem:[#allocation9 + $0x184] ss:$16 sps:$4 sm:$0xff]  }
 0x201   : > { %v15330_v62 = vld [vmem:[#allocation9 + $0x180] ss:$16 sps:$4 sm:$0xff]   ;;  %v15335_v63 = vld [vmem:[#allocation9 + $0x1a4] ss:$16 sps:$4 sm:$0xff]  }
 0x202   : > { %v15333_v1 = vld [vmem:[#allocation9 + $0x1a0] ss:$16 sps:$4 sm:$0xff]  }
 0x203   : > { %13063 = vmatmul.mubr.msk.bf16.vlgmr.msra.gmra.mrb[4].mxu0 %vm872_vm2, %v851_v23  ;;  %13065 = vmatmul.mubr.msk.bf16.vlgmr.msra.gmra.mrb[4].mxu1 %vm872_vm2, %v851_v23 }
 0x204   : > { %1135 = vmatprep.mubr.bf16.mxu0 %v19554_v0  ;;  %2387 = vmatpush1.bf16.msra.mxu1 %v15294_v37 }
 0x205   : > { %2388 = vmatprep.subr.bf16.mxu1 %v15299_v39  ;;  %v835_v39 = vrot.slane %v802_v2, %v834_v35  ;;  %v1184_v2 = vand.u32 3, %v17690_v27 }
 0x207   : > { %vm1192_vm5 = vcmp.eq.s32.totalorder %v1184_v2, 0  ;;  %vm1202_vm11 = vcmp.eq.s32.totalorder %v1184_v2, 3  ;;  %v15459_v2 = vld [vmem:[#allocation9 + $0xe8] ss:$16 sps:$4 sm:$0xff]  }
 0x208   : > { %2389 = vmatpush1.bf16.msra.mxu1 %v15297_v40  ;;  %vm1195_vm6 = vmpackc.low %vm1192_vm5, %vm1192_vm5 }
 0x209   : > { %2390 = vmatprep.subr.bf16.mxu1 %v15302_v41  ;;  %vm1205_vm12 = vmpackc.low %vm1202_vm11, %vm1202_vm11 }
 0x20c   : > { %2391 = vmatpush1.bf16.msra.mxu1 %v15300_v42 }
 0x20d   : > { %2392 = vmatprep.subr.bf16.mxu1 %v15305_v43 }
 0x210   : > { %2393 = vmatpush1.bf16.msra.mxu1 %v15303_v44 }
 0x211   : > { %2394 = vmatprep.subr.bf16.mxu1 %v15308_v45 }
 0x214   : > { %2395 = vmatpush1.bf16.msra.mxu1 %v15306_v46 }
 0x215   : > { %2396 = vmatprep.subr.bf16.mxu1 %v15311_v47 }
 0x218   : > { %2397 = vmatpush1.bf16.msra.mxu1 %v15309_v48 }
 0x219   : > { %2398 = vmatprep.subr.bf16.mxu1 %v15314_v49 }
 0x21c   : > { %2399 = vmatpush1.bf16.msra.mxu1 %v15312_v50 }
 0x21d   : > { %2400 = vmatprep.subr.bf16.mxu1 %v15317_v51 }
 0x220   : > { %2401 = vmatpush1.bf16.msra.mxu1 %v15315_v52 }
 0x221   : > { %2402 = vmatprep.subr.bf16.mxu1 %v15320_v53 }
 0x224   : > { %2403 = vmatpush1.bf16.msra.mxu1 %v15318_v54 }
 0x225   : > { %2404 = vmatprep.subr.bf16.mxu1 %v15323_v55 }
 0x228   : > { %2405 = vmatpush1.bf16.msra.mxu1 %v15321_v56 }
 0x229   : > { %2406 = vmatprep.subr.bf16.mxu1 %v15326_v57 }
 0x22c   : > { %2407 = vmatpush1.bf16.msra.mxu1 %v15324_v58 }
 0x22d   : > { %2408 = vmatprep.subr.bf16.mxu1 %v15329_v59  ;;  %v1093_v59 = vld [vmem:[#allocation7] sm:$0xf] }
 0x230   : > { %2409 = vmatpush1.bf16.msra.mxu1 %v15327_v60  ;;  %v15338_v60 = vld [vmem:[#allocation9 + $0x1c4] ss:$16 sps:$4 sm:$0xff]  }
 0x231   : > { %2410 = vmatprep.subr.bf16.mxu1 %v15332_v61  ;;  %v15336_v61 = vld [vmem:[#allocation9 + $0x1c0] ss:$16 sps:$4 sm:$0xff]  }
 0x234   : > { %2411 = vmatpush1.bf16.msra.mxu1 %v15330_v62  ;;  %v15339_v62 = vld [vmem:[#allocation9 + $0x1e0] ss:$16 sps:$4 sm:$0xff]  }
 0x235   : > { %2412 = vmatprep.subr.bf16.mxu1 %v15335_v63  ;;  %v15341_v63 = vld [vmem:[#allocation9 + $0x1e4] ss:$16 sps:$4 sm:$0xff]  }
 0x238   : > { %2413 = vmatpush1.bf16.msra.mxu1 %v15333_v1  ;;  %v15344_v1 = vld [vmem:[#allocation9 + $0x204] ss:$16 sps:$4 sm:$0xff]  }
 0x239   : > { %2414 = vmatprep.subr.bf16.mxu1 %v15338_v60  ;;  %v15378_v60 = vld [vmem:[#allocation9 + $0x380] ss:$16 sps:$4 sm:$0xff]  }
 0x23c   : > { %2415 = vmatpush1.bf16.msra.mxu1 %v15336_v61  ;;  %v15383_v61 = vld [vmem:[#allocation9 + $0x3a4] ss:$16 sps:$4 sm:$0xff]  }
 0x23d   : > { %2416 = vmatprep.subr.bf16.mxu1 %v15341_v63  ;;  %v15386_v63 = vld [vmem:[#allocation9 + $0x3c4] ss:$16 sps:$4 sm:$0xff]  }
 0x240   : > { %2417 = vmatpush1.bf16.msra.mxu1 %v15339_v62  ;;  %v15381_v62 = vld [vmem:[#allocation9 + $0x3a0] ss:$16 sps:$4 sm:$0xff]  }
 0x241   : > { %2427 = vmatprep.subr.bf16.mxu1 %v15344_v1  ;;  %v15384_v1 = vld [vmem:[#allocation9 + $0x3c0] ss:$16 sps:$4 sm:$0xff]  }
 0x2ce   : > { %v935_v10 = vpop.f32.mrb[0].mxu0  ;;  %v976_v11 = vpop.f32.mrb[0].mxu1 }
 0x2cf   : > { %v977_v13 = vadd.f32 %v976_v11, %v815_v7  ;;  %v937_v14 = vpop.f32.mrb[1].mxu0  ;;  %v978_v15 = vpop.f32.mrb[1].mxu1  ;;  %v936_v19 = vadd.f32 %v935_v10, %v807_v9  ;;  %v1196_v10 = vsel %vm1195_vm6, 65537, %v19554_v0 }
 0x2d0   : > { %v979_v16 = vadd.f32 %v978_v15, %v819_v8  ;;  %v939_v17 = vpop.f32.mrb[2].mxu0  ;;  %v980_v18 = vpop.f32.mrb[2].mxu1  ;;  %v938_v23 = vadd.f32 %v937_v14, %v811_v12 }
 0x2d1   : > { %v1067_v20 = vrot.slane %v977_v13, 6  ;;  %v940_v21 = vpop.f32.mrb[3].mxu0  ;;  %v981_v22 = vpop.f32.mrb[3].mxu1  ;;  %v13068_v18 = vcombine.low %v1196_v10, %v1196_v10  ;;  %v15387_v10 = vld [vmem:[#allocation9 + $0x3e0] ss:$16 sps:$4 sm:$0xff]  }
 0x2d2   : > { %v1068_v24 = vrot.slane %v979_v16, 6 }
 0x2d3   : > { %v1084_v25 = vsel %vm1083_vm3, %v936_v19, %v1067_v20  ;;  %vm17760_vm10 = vcmp.eq.s16.totalorder %v13068_v18, 0  ;;  %v15393_v18 = vld [vmem:[#allocation9 + $0x420] ss:$16 sps:$4 sm:$0xff]  }
 0x2d4   : > { %v1085_v37 = vsel %vm1083_vm3, %v938_v23, %v1068_v24  ;;  %v19676_v23 = vmov 0 }
 0x2d5   : > { %v19677_v23 = vsel %vm17754_vm9, 4294967295, %v19676_v23 }
 0x2d6   : > { %v1017_v40 = vpop.f32.mrb[4].mxu0  ;;  %v1058_v41 = vpop.f32.mrb[4].mxu1  ;;  %19678 = vst [vmem:[#allocation45_spill] sm:$0xff] %v19677_v23 }
 0x2d7   : > { %v1018_v42 = vadd.f32 %v1017_v40, %v823_v26  ;;  %v1059_v43 = vadd.f32 %v1058_v41, %v831_v28  ;;  %v1019_v44 = vpop.f32.mrb[5].mxu0  ;;  %v1060_v45 = vpop.f32.mrb[5].mxu1  ;;  %v15347_v40 = vld [vmem:[#allocation9 + $0x224] ss:$16 sps:$4 sm:$0xff]   ;;  %v15501_v28 = vld [vmem:[#allocation9 + $0x2a8] ss:$16 sps:$4 sm:$0xff]  }
 0x2d8   : > { %v1020_v46 = vadd.f32 %v1019_v44, %v827_v38  ;;  %v1061_v47 = vadd.f32 %v1060_v45, %v835_v39  ;;  %v1021_v29 = vpop.f32.mrb[6].mxu0  ;;  %v1062_v48 = vpop.f32.mrb[6].mxu1  ;;  %v15342_v38 = vld [vmem:[#allocation9 + $0x200] ss:$16 sps:$4 sm:$0xff]   ;;  %v15353_v45 = vld [vmem:[#allocation9 + $0x264] ss:$16 sps:$4 sm:$0xff]  }
 0x2d9   : > { %v1073_v49 = vrot.slane %v1018_v42, 4  ;;  %v1079_v30 = vrot.slane %v1059_v43, 2  ;;  %v1022_v50 = vpop.f32.mrb[7].mxu0  ;;  %v1063_v51 = vpop.f32.mrb[7].mxu1  ;;  %v15345_v42 = vld [vmem:[#allocation9 + $0x220] ss:$16 sps:$4 sm:$0xff]  }
 0x2da   : > { %v1074_v52 = vrot.slane %v1020_v46, 4  ;;  %v1080_v31 = vrot.slane %v1061_v47, 2  ;;  %v15350_v43 = vld [vmem:[#allocation9 + $0x244] ss:$16 sps:$4 sm:$0xff]   ;;  %v15348_v44 = vld [vmem:[#allocation9 + $0x240] ss:$16 sps:$4 sm:$0xff]  }
 0x2db   : > { %v1086_v53 = vsel %vm876_vm0, %v1084_v25, %v1073_v49  ;;  %v15351_v46 = vld [vmem:[#allocation9 + $0x260] ss:$16 sps:$4 sm:$0xff]   ;;  %v15356_v47 = vld [vmem:[#allocation9 + $0x284] ss:$16 sps:$4 sm:$0xff]  }
 0x2dc   : > { %v1089_v35 = vsel %vm1088_vm4, %v1086_v53, %v1079_v30  ;;  %v1087_v54 = vsel %vm876_vm0, %v1085_v37, %v1074_v52  ;;  %v15354_v29 = vld [vmem:[#allocation9 + $0x280] ss:$16 sps:$4 sm:$0xff]   ;;  %v15359_v48 = vld [vmem:[#allocation9 + $0x2a4] ss:$16 sps:$4 sm:$0xff]  }
 0x2dd   : > { %v1090_v55 = vsel %vm1088_vm4, %v1087_v54, %v1080_v31  ;;  %v1091_v56 = vpack.c.bf16 %v1089_v35, %v1089_v35  ;;  %v15357_v49 = vld [vmem:[#allocation9 + $0x2a0] ss:$16 sps:$4 sm:$0xff]   ;;  %v15362_v30 = vld [vmem:[#allocation9 + $0x2c4] ss:$16 sps:$4 sm:$0xff]  }
 0x2de   : > { %v1092_v57 = vpack.c.bf16 %v1090_v55, %v1090_v55  ;;  %v15360_v50 = vld [vmem:[#allocation9 + $0x2c0] ss:$16 sps:$4 sm:$0xff]   ;;  %v15365_v51 = vld [vmem:[#allocation9 + $0x2e4] ss:$16 sps:$4 sm:$0xff]  }
 0x2df   : > { %v1098_v58 = vsel %vm876_vm0, %v1091_v56, 0  ;;  %v15363_v52 = vld [vmem:[#allocation9 + $0x2e0] ss:$16 sps:$4 sm:$0xff]   ;;  %v15368_v31 = vld [vmem:[#allocation9 + $0x304] ss:$16 sps:$4 sm:$0xff]  }
 0x2e0   : > { %13066 = vmatprep.subr.msk.bf16.mxu0 %vm876_vm0, %v1092_v57  ;;  %v15366_v53 = vld [vmem:[#allocation9 + $0x300] ss:$16 sps:$4 sm:$0xff]   ;;  %v15371_v35 = vld [vmem:[#allocation9 + $0x324] ss:$16 sps:$4 sm:$0xff]   ;;  %vm2641_vm0 = vcmask 130048  }
 0x2e1   : > { %1104 = vmatpush1.bf16.msra.mxu0 %v1098_v58  ;;  %v15369_v54 = vld [vmem:[#allocation9 + $0x320] ss:$16 sps:$4 sm:$0xff]   ;;  %v15374_v55 = vld [vmem:[#allocation9 + $0x344] ss:$16 sps:$4 sm:$0xff]  }
 0x2e2   : > { %v15372_v56 = vld [vmem:[#allocation9 + $0x340] ss:$16 sps:$4 sm:$0xff]   ;;  %v15377_v57 = vld [vmem:[#allocation9 + $0x364] ss:$16 sps:$4 sm:$0xff]  }
 0x2e3   : > { %v15375_v58 = vld [vmem:[#allocation9 + $0x360] ss:$16 sps:$4 sm:$0xff]  }
 0x2e4   : > { %13067 = vmatmul.mubr.msk.bf16.vlgmr.msra.gmra.mrb[8].mxu0 %vm872_vm2, %v1093_v59  ;;  %v15380_v59 = vld [vmem:[#allocation9 + $0x384] ss:$16 sps:$4 sm:$0xff]  }
 0x3b7   : > { %v1137_v7 = vpop.f32.mrb[8].mxu0 }
 0x3b8   : > { %v17744_v8 = vpack.c.bf16 %v1137_v7, %v1137_v7  ;;  %v1139_v9 = vpop.f32.mrb[9].mxu0  ;;  %v15389_v7 = vld [vmem:[#allocation9 + $0x3e4] ss:$16 sps:$4 sm:$0xff]  }
 0x3b9   : > { %v17747_v11 = vpack.c.bf16 %v1139_v9, %v1139_v9  ;;  %v1141_v12 = vpop.f32.mrb[10].mxu0  ;;  %v1206_v9 = vsel %vm1205_vm12, 65537, %v19554_v0  ;;  %vm2714_vm12 = vcmask 1047552  }
 0x3ba   : > { %v1147_v13 = vshrl.u32 %v17744_v8, 16  ;;  %v1150_v14 = vshll.u32 %v17744_v8, 16  ;;  %v1142_v15 = vpop.f32.mrb[11].mxu0  ;;  %v15392_v12 = vld [vmem:[#allocation9 + $0x404] ss:$16 sps:$4 sm:$0xff]  }
 0x3bb   : > { %v1154_v16 = vshrl.u32 %v17747_v11, 16  ;;  %v1157_v17 = vshll.u32 %v17747_v11, 16  ;;  %v15603_v15 = vld [vmem:[#allocation13 + $0x64] ss:$16 sps:$4 sm:$0xff]  }
 0x3bc   : > { %v1149_v19 = vrot.slane %v1147_v13, 7  ;;  %v1167_v20 = vrot.slane %v1150_v14, 1 }
 0x3bd   : > { %v1156_v21 = vrot.slane %v1154_v16, 7  ;;  %v1169_v22 = vrot.slane %v1157_v17, 1 }
 0x3be   : > { %v1152_v24 = vor.u32 %v1150_v14, %v1149_v19  ;;  %v17758_v25 = vor.u32 %v1167_v20, %v1147_v13  ;;  %v13069_v13 = vcombine.low %v1206_v9, %v1206_v9  ;;  %v15390_v14 = vld [vmem:[#allocation9 + $0x400] ss:$16 sps:$4 sm:$0xff]   ;;  %v15398_v19 = vld [vmem:[#allocation9 + $0x444] ss:$16 sps:$4 sm:$0xff]   ;;  %v15450_v9 = vld [vmem:[#allocation9 + $0x88] ss:$16 sps:$4 sm:$0xff]  }
 0x3bf   : > { %v1159_v26 = vor.u32 %v1157_v17, %v1156_v21  ;;  %v17764_v37 = vor.u32 %v1169_v22, %v1154_v16  ;;  %v15395_v16 = vld [vmem:[#allocation9 + $0x424] ss:$16 sps:$4 sm:$0xff]   ;;  %v15396_v20 = vld [vmem:[#allocation9 + $0x440] ss:$16 sps:$4 sm:$0xff]  }
 0x3c0   : > { %v17775_v41 = vsel %vm17754_vm9, 0, %v1152_v24  ;;  %vm17789_vm15 = vcmp.eq.s16.totalorder %v13069_v13, 0  ;;  %v15401_v21 = vld [vmem:[#allocation9 + $0x464] ss:$16 sps:$4 sm:$0xff]   ;;  %v15399_v22 = vld [vmem:[#allocation9 + $0x460] ss:$16 sps:$4 sm:$0xff]  }
 0x3c1   : > { %v17768_v39 = vsel %vm17754_vm9, 0, %v1159_v26  ;;  %v17797_v17 = vsel %vm17785_vm14, %v17764_v37, 0  ;;  %v15404_v24 = vld [vmem:[#allocation9 + $0x484] ss:$16 sps:$4 sm:$0xff]   ;;  %v15402_v26 = vld [vmem:[#allocation9 + $0x480] ss:$16 sps:$4 sm:$0xff]  }
 0x3c2   : > { %13263 = vmatprep.mubr.msk.bf16.mxu1 %vm17760_vm10, %v17768_v39  ;;  %v15407_v37 = vld [vmem:[#allocation9 + $0x4a4] ss:$16 sps:$4 sm:$0xff]   ;;  %v15458_v13 = vld [vmem:[#allocation9 + $0xcc] ss:$16 sps:$4 sm:$0xff]  }
 0x3c3   : > { %13265 = vmatmul.mubr.msk.bf16.vlgmr.msra.gmra.mrb[8].mxu1 %vm17760_vm10, %v17775_v41 }
 0x3c4   : > { %2428 = vmatpush1.bf16.msra.mxu1 %v15342_v38  ;;  %2459 = vmatprep.mubr.bf16.mxu1 %v17747_v11  ;;  %v15405_v38 = vld [vmem:[#allocation9 + $0x4a0] ss:$16 sps:$4 sm:$0xff]  }
 0x3c5   : > { %2429 = vmatprep.subr.bf16.mxu1 %v15347_v40  ;;  %v15410_v40 = vld [vmem:[#allocation9 + $0x4c4] ss:$16 sps:$4 sm:$0xff]  }
 0x3c8   : > { %2430 = vmatpush1.bf16.msra.mxu1 %v15345_v42  ;;  %v15408_v42 = vld [vmem:[#allocation9 + $0x4c0] ss:$16 sps:$4 sm:$0xff]  }
 0x3c9   : > { %2431 = vmatprep.subr.bf16.mxu1 %v15350_v43  ;;  %v15413_v43 = vld [vmem:[#allocation9 + $0x4e4] ss:$16 sps:$4 sm:$0xff]  }
 0x3cc   : > { %2432 = vmatpush1.bf16.msra.mxu1 %v15348_v44  ;;  %v15411_v44 = vld [vmem:[#allocation9 + $0x4e0] ss:$16 sps:$4 sm:$0xff]  }
 0x3cd   : > { %2433 = vmatprep.subr.bf16.mxu1 %v15353_v45  ;;  %v15416_v45 = vld [vmem:[#allocation9 + $0x504] ss:$16 sps:$4 sm:$0xff]  }
 0x3d0   : > { %2434 = vmatpush1.bf16.msra.mxu1 %v15351_v46  ;;  %v15414_v46 = vld [vmem:[#allocation9 + $0x500] ss:$16 sps:$4 sm:$0xff]  }
 0x3d1   : > { %2435 = vmatprep.subr.bf16.mxu1 %v15356_v47  ;;  %v15419_v47 = vld [vmem:[#allocation9 + $0x524] ss:$16 sps:$4 sm:$0xff]  }
 0x3d4   : > { %2436 = vmatpush1.bf16.msra.mxu1 %v15354_v29  ;;  %v15417_v29 = vld [vmem:[#allocation9 + $0x520] ss:$16 sps:$4 sm:$0xff]  }
 0x3d5   : > { %2437 = vmatprep.subr.bf16.mxu1 %v15359_v48  ;;  %v15422_v48 = vld [vmem:[#allocation9 + $0x544] ss:$16 sps:$4 sm:$0xff]  }
 0x3d8   : > { %2438 = vmatpush1.bf16.msra.mxu1 %v15357_v49  ;;  %v15420_v49 = vld [vmem:[#allocation9 + $0x540] ss:$16 sps:$4 sm:$0xff]  }
 0x3d9   : > { %2439 = vmatprep.subr.bf16.mxu1 %v15362_v30  ;;  %v15425_v30 = vld [vmem:[#allocation9 + $0x564] ss:$16 sps:$4 sm:$0xff]  }
 0x3dc   : > { %2440 = vmatpush1.bf16.msra.mxu1 %v15360_v50  ;;  %v15423_v50 = vld [vmem:[#allocation9 + $0x560] ss:$16 sps:$4 sm:$0xff]  }
 0x3dd   : > { %2441 = vmatprep.subr.bf16.mxu1 %v15365_v51  ;;  %v15428_v51 = vld [vmem:[#allocation9 + $0x584] ss:$16 sps:$4 sm:$0xff]  }
 0x3e0   : > { %2442 = vmatpush1.bf16.msra.mxu1 %v15363_v52  ;;  %v15426_v52 = vld [vmem:[#allocation9 + $0x580] ss:$16 sps:$4 sm:$0xff]  }
 0x3e1   : > { %2443 = vmatprep.subr.bf16.mxu1 %v15368_v31  ;;  %v15431_v31 = vld [vmem:[#allocation9 + $0x5a4] ss:$16 sps:$4 sm:$0xff]  }
 0x3e4   : > { %2444 = vmatpush1.bf16.msra.mxu1 %v15366_v53  ;;  %v15429_v53 = vld [vmem:[#allocation9 + $0x5a0] ss:$16 sps:$4 sm:$0xff]  }
 0x3e5   : > { %2445 = vmatprep.subr.bf16.mxu1 %v15371_v35  ;;  %v15434_v35 = vld [vmem:[#allocation9 + $0x5c4] ss:$16 sps:$4 sm:$0xff]  }
 0x3e8   : > { %2446 = vmatpush1.bf16.msra.mxu1 %v15369_v54  ;;  %v15432_v54 = vld [vmem:[#allocation9 + $0x5c0] ss:$16 sps:$4 sm:$0xff]  }
 0x3e9   : > { %2447 = vmatprep.subr.bf16.mxu1 %v15374_v55  ;;  %v15437_v55 = vld [vmem:[#allocation9 + $0x5e4] ss:$16 sps:$4 sm:$0xff]  }
 0x3ec   : > { %2448 = vmatpush1.bf16.msra.mxu1 %v15372_v56  ;;  %v15435_v56 = vld [vmem:[#allocation9 + $0x5e0] ss:$16 sps:$4 sm:$0xff]  }
 0x3ed   : > { %2449 = vmatprep.subr.bf16.mxu1 %v15377_v57  ;;  %v15440_v57 = vld [vmem:[#allocation9 + $0xc] ss:$16 sps:$4 sm:$0xff]  }
 0x3f0   : > { %2450 = vmatpush1.bf16.msra.mxu1 %v15375_v58  ;;  %v15438_v58 = vld [vmem:[#allocation9 + $0x8] ss:$16 sps:$4 sm:$0xff]  }
 0x3f1   : > { %2451 = vmatprep.subr.bf16.mxu1 %v15380_v59  ;;  %v15443_v59 = vld [vmem:[#allocation9 + $0x2c] ss:$16 sps:$4 sm:$0xff]  }
 0x3f4   : > { %2452 = vmatpush1.bf16.msra.mxu1 %v15378_v60  ;;  %v17805_v60 = vsel %vm17785_vm14, %v17758_v25, 0  ;;  %v15452_v25 = vld [vmem:[#allocation9 + $0x8c] ss:$16 sps:$4 sm:$0xff]   ;;  %vm17876_vm14 = vmand %vm2714_vm12, %vm2715_vm13 }
 0x3f5   : > { %2453 = vmatprep.subr.bf16.mxu1 %v15383_v61  ;;  %v15441_v61 = vld [vmem:[#allocation9 + $0x28] ss:$16 sps:$4 sm:$0xff]  }
 0x3f8   : > { %2454 = vmatpush1.bf16.msra.mxu1 %v15381_v62  ;;  %v15446_v62 = vld [vmem:[#allocation9 + $0x4c] ss:$16 sps:$4 sm:$0xff]  }
 0x3f9   : > { %2455 = vmatprep.subr.bf16.mxu1 %v15386_v63  ;;  %v15444_v63 = vld [vmem:[#allocation9 + $0x48] ss:$16 sps:$4 sm:$0xff]  }
 0x3fc   : > { %2456 = vmatpush1.bf16.msra.mxu1 %v15384_v1  ;;  %v15449_v1 = vld [vmem:[#allocation9 + $0x6c] ss:$16 sps:$4 sm:$0xff]  }
 0x3fd   : > { %2457 = vmatprep.subr.bf16.mxu1 %v15389_v7  ;;  %v15447_v7 = vld [vmem:[#allocation9 + $0x68] ss:$16 sps:$4 sm:$0xff]  }
 0x400   : > { %2458 = vmatpush1.bf16.msra.mxu1 %v15387_v10  ;;  %v15455_v10 = vld [vmem:[#allocation9 + $0xac] ss:$16 sps:$4 sm:$0xff]  }
 0x401   : > { %2468 = vmatprep.subr.bf16.mxu1 %v15392_v12  ;;  %v15453_v12 = vld [vmem:[#allocation9 + $0xa8] ss:$16 sps:$4 sm:$0xff]  }
 0x403   : > { %2460 = vmatmul.mubr.bf16.vlgmr.msra.gmra.mrb[8].mxu1 %v17744_v8 }
 0x404   : > { %2469 = vmatpush1.bf16.msra.mxu1 %v15390_v14  ;;  %13267 = vmatprep.mubr.msk.bf16.mxu1 %vm17789_vm15, %v17797_v17  ;;  %v15461_v14 = vld [vmem:[#allocation9 + $0xec] ss:$16 sps:$4 sm:$0xff]  }
 0x405   : > { %2470 = vmatprep.subr.bf16.mxu1 %v15395_v16  ;;  %v15464_v16 = vld [vmem:[#allocation9 + $0x10c] ss:$16 sps:$4 sm:$0xff]  }
 0x408   : > { %2471 = vmatpush1.bf16.msra.mxu1 %v15393_v18  ;;  %v15462_v18 = vld [vmem:[#allocation9 + $0x108] ss:$16 sps:$4 sm:$0xff]  }
 0x409   : > { %2472 = vmatprep.subr.bf16.mxu1 %v15398_v19  ;;  %v15467_v19 = vld [vmem:[#allocation9 + $0x12c] ss:$16 sps:$4 sm:$0xff]  }
 0x40c   : > { %2473 = vmatpush1.bf16.msra.mxu1 %v15396_v20  ;;  %v15465_v20 = vld [vmem:[#allocation9 + $0x128] ss:$16 sps:$4 sm:$0xff]  }
 0x40d   : > { %2474 = vmatprep.subr.bf16.mxu1 %v15401_v21  ;;  %v15470_v21 = vld [vmem:[#allocation9 + $0x14c] ss:$16 sps:$4 sm:$0xff]  }
 0x410   : > { %2475 = vmatpush1.bf16.msra.mxu1 %v15399_v22  ;;  %v15468_v22 = vld [vmem:[#allocation9 + $0x148] ss:$16 sps:$4 sm:$0xff]  }
 0x411   : > { %2476 = vmatprep.subr.bf16.mxu1 %v15404_v24  ;;  %v15473_v24 = vld [vmem:[#allocation9 + $0x16c] ss:$16 sps:$4 sm:$0xff]  }
 0x414   : > { %2477 = vmatpush1.bf16.msra.mxu1 %v15402_v26  ;;  %v15471_v26 = vld [vmem:[#allocation9 + $0x168] ss:$16 sps:$4 sm:$0xff]  }
 0x415   : > { %2478 = vmatprep.subr.bf16.mxu1 %v15407_v37  ;;  %v15476_v37 = vld [vmem:[#allocation9 + $0x18c] ss:$16 sps:$4 sm:$0xff]  }
 0x418   : > { %2479 = vmatpush1.bf16.msra.mxu1 %v15405_v38  ;;  %v15474_v38 = vld [vmem:[#allocation9 + $0x188] ss:$16 sps:$4 sm:$0xff]  }
 0x419   : > { %2480 = vmatprep.subr.bf16.mxu1 %v15410_v40  ;;  %v15479_v40 = vld [vmem:[#allocation9 + $0x1ac] ss:$16 sps:$4 sm:$0xff]  }
 0x41c   : > { %2481 = vmatpush1.bf16.msra.mxu1 %v15408_v42  ;;  %v15477_v42 = vld [vmem:[#allocation9 + $0x1a8] ss:$16 sps:$4 sm:$0xff]  }
 0x41d   : > { %2482 = vmatprep.subr.bf16.mxu1 %v15413_v43  ;;  %v15482_v43 = vld [vmem:[#allocation9 + $0x1cc] ss:$16 sps:$4 sm:$0xff]  }
 0x420   : > { %2483 = vmatpush1.bf16.msra.mxu1 %v15411_v44  ;;  %v15480_v44 = vld [vmem:[#allocation9 + $0x1c8] ss:$16 sps:$4 sm:$0xff]  }
 0x421   : > { %2484 = vmatprep.subr.bf16.mxu1 %v15416_v45  ;;  %v15485_v45 = vld [vmem:[#allocation9 + $0x1ec] ss:$16 sps:$4 sm:$0xff]  }
 0x424   : > { %2485 = vmatpush1.bf16.msra.mxu1 %v15414_v46  ;;  %v15483_v46 = vld [vmem:[#allocation9 + $0x1e8] ss:$16 sps:$4 sm:$0xff]  }
 0x425   : > { %2486 = vmatprep.subr.bf16.mxu1 %v15419_v47  ;;  %v15488_v47 = vld [vmem:[#allocation9 + $0x20c] ss:$16 sps:$4 sm:$0xff]  }
 0x428   : > { %2487 = vmatpush1.bf16.msra.mxu1 %v15417_v29  ;;  %v15486_v29 = vld [vmem:[#allocation9 + $0x208] ss:$16 sps:$4 sm:$0xff]  }
 0x429   : > { %2488 = vmatprep.subr.bf16.mxu1 %v15422_v48  ;;  %v15491_v48 = vld [vmem:[#allocation9 + $0x22c] ss:$16 sps:$4 sm:$0xff]  }
 0x42c   : > { %2489 = vmatpush1.bf16.msra.mxu1 %v15420_v49  ;;  %v15489_v49 = vld [vmem:[#allocation9 + $0x228] ss:$16 sps:$4 sm:$0xff]  }
 0x42d   : > { %2490 = vmatprep.subr.bf16.mxu1 %v15425_v30  ;;  %v15494_v30 = vld [vmem:[#allocation9 + $0x24c] ss:$16 sps:$4 sm:$0xff]  }
 0x430   : > { %2491 = vmatpush1.bf16.msra.mxu1 %v15423_v50  ;;  %v15492_v50 = vld [vmem:[#allocation9 + $0x248] ss:$16 sps:$4 sm:$0xff]  }
 0x431   : > { %2492 = vmatprep.subr.bf16.mxu1 %v15428_v51  ;;  %v15497_v51 = vld [vmem:[#allocation9 + $0x26c] ss:$16 sps:$4 sm:$0xff]  }
 0x434   : > { %2493 = vmatpush1.bf16.msra.mxu1 %v15426_v52  ;;  %v15495_v52 = vld [vmem:[#allocation9 + $0x268] ss:$16 sps:$4 sm:$0xff]  }
 0x435   : > { %2494 = vmatprep.subr.bf16.mxu1 %v15431_v31  ;;  %v15500_v31 = vld [vmem:[#allocation9 + $0x28c] ss:$16 sps:$4 sm:$0xff]  }
 0x438   : > { %2495 = vmatpush1.bf16.msra.mxu1 %v15429_v53  ;;  %v15498_v53 = vld [vmem:[#allocation9 + $0x288] ss:$16 sps:$4 sm:$0xff]  }
 0x439   : > { %2496 = vmatprep.subr.bf16.mxu1 %v15434_v35  ;;  %v15503_v35 = vld [vmem:[#allocation9 + $0x2ac] ss:$16 sps:$4 sm:$0xff]  }
 0x43c   : > { %2497 = vmatpush1.bf16.msra.mxu1 %v15432_v54  ;;  %v15509_v54 = vld [vmem:[#allocation9 + $0x2ec] ss:$16 sps:$4 sm:$0xff]  }
 0x43d   : > { %2498 = vmatprep.subr.bf16.mxu1 %v15437_v55  ;;  %v15507_v55 = vld [vmem:[#allocation9 + $0x2e8] ss:$16 sps:$4 sm:$0xff]  }
 0x440   : > { %2499 = vmatpush1.bf16.msra.mxu1 %v15435_v56  ;;  %v15512_v56 = vld [vmem:[#allocation9 + $0x30c] ss:$16 sps:$4 sm:$0xff]  }
 0x441   : > { %2509 = vmatprep.subr.bf16.mxu1 %v15440_v57  ;;  %v15510_v57 = vld [vmem:[#allocation9 + $0x308] ss:$16 sps:$4 sm:$0xff]  }
 0x443   : > { %13269 = vmatmul.mubr.msk.bf16.vlgmr.msra.gmra.mrb[8].mxu1 %vm17789_vm15, %v17805_v60 }
 0x444   : > { %2510 = vmatpush1.bf16.msra.mxu1 %v15438_v58  ;;  %13271 = vmatprep.mubr.msk.bf16.mxu1 %vm17760_vm10, %v17768_v39  ;;  %v15456_v39 = vld [vmem:[#allocation9 + $0xc8] ss:$16 sps:$4 sm:$0xff]   ;;  %v15515_v58 = vld [vmem:[#allocation9 + $0x32c] ss:$16 sps:$4 sm:$0xff]  }
 0x445   : > { %2511 = vmatprep.subr.bf16.mxu1 %v15443_v59  ;;  %v15513_v59 = vld [vmem:[#allocation9 + $0x328] ss:$16 sps:$4 sm:$0xff]  }
 0x448   : > { %2512 = vmatpush1.bf16.msra.mxu1 %v15441_v61  ;;  %v15518_v61 = vld [vmem:[#allocation9 + $0x34c] ss:$16 sps:$4 sm:$0xff]  }
 0x449   : > { %2513 = vmatprep.subr.bf16.mxu1 %v15446_v62  ;;  %v15516_v62 = vld [vmem:[#allocation9 + $0x348] ss:$16 sps:$4 sm:$0xff]  }
 0x44c   : > { %2514 = vmatpush1.bf16.msra.mxu1 %v15444_v63  ;;  %v15521_v63 = vld [vmem:[#allocation9 + $0x36c] ss:$16 sps:$4 sm:$0xff]  }
 0x44d   : > { %2515 = vmatprep.subr.bf16.mxu1 %v15449_v1  ;;  %v15519_v1 = vld [vmem:[#allocation9 + $0x368] ss:$16 sps:$4 sm:$0xff]  }
 0x450   : > { %2516 = vmatpush1.bf16.msra.mxu1 %v15447_v7  ;;  %v15524_v7 = vld [vmem:[#allocation9 + $0x38c] ss:$16 sps:$4 sm:$0xff]  }
 0x451   : > { %2517 = vmatprep.subr.bf16.mxu1 %v15452_v25  ;;  %v15522_v25 = vld [vmem:[#allocation9 + $0x388] ss:$16 sps:$4 sm:$0xff]  }
 0x454   : > { %2518 = vmatpush1.bf16.msra.mxu1 %v15450_v9  ;;  %v15527_v9 = vld [vmem:[#allocation9 + $0x3ac] ss:$16 sps:$4 sm:$0xff]  }
 0x455   : > { %2519 = vmatprep.subr.bf16.mxu1 %v15455_v10  ;;  %v15525_v10 = vld [vmem:[#allocation9 + $0x3a8] ss:$16 sps:$4 sm:$0xff]  }
 0x458   : > { %2520 = vmatpush1.bf16.msra.mxu1 %v15453_v12  ;;  %v15530_v12 = vld [vmem:[#allocation9 + $0x3cc] ss:$16 sps:$4 sm:$0xff]  }
 0x459   : > { %2521 = vmatprep.subr.bf16.mxu1 %v15458_v13  ;;  %v15528_v13 = vld [vmem:[#allocation9 + $0x3c8] ss:$16 sps:$4 sm:$0xff]  }
 0x45c   : > { %2522 = vmatpush1.bf16.msra.mxu1 %v15456_v39  ;;  %v15533_v39 = vld [vmem:[#allocation9 + $0x3ec] ss:$16 sps:$4 sm:$0xff]  }
 0x45d   : > { %2523 = vmatprep.subr.bf16.mxu1 %v15461_v14  ;;  %v15531_v14 = vld [vmem:[#allocation9 + $0x3e8] ss:$16 sps:$4 sm:$0xff]  }
 0x460   : > { %2524 = vmatpush1.bf16.msra.mxu1 %v15459_v2  ;;  %v15536_v2 = vld [vmem:[#allocation9 + $0x40c] ss:$16 sps:$4 sm:$0xff]  }
 0x461   : > { %2525 = vmatprep.subr.bf16.mxu1 %v15464_v16  ;;  %v15534_v16 = vld [vmem:[#allocation9 + $0x408] ss:$16 sps:$4 sm:$0xff]  }
 0x464   : > { %2526 = vmatpush1.bf16.msra.mxu1 %v15462_v18  ;;  %v15539_v18 = vld [vmem:[#allocation9 + $0x42c] ss:$16 sps:$4 sm:$0xff]  }
 0x465   : > { %2527 = vmatprep.subr.bf16.mxu1 %v15467_v19  ;;  %v15537_v19 = vld [vmem:[#allocation9 + $0x428] ss:$16 sps:$4 sm:$0xff]  }
 0x468   : > { %2528 = vmatpush1.bf16.msra.mxu1 %v15465_v20  ;;  %v15542_v20 = vld [vmem:[#allocation9 + $0x44c] ss:$16 sps:$4 sm:$0xff]  }
 0x469   : > { %2529 = vmatprep.subr.bf16.mxu1 %v15470_v21  ;;  %v15540_v21 = vld [vmem:[#allocation9 + $0x448] ss:$16 sps:$4 sm:$0xff]  }
 0x46c   : > { %2530 = vmatpush1.bf16.msra.mxu1 %v15468_v22  ;;  %v15545_v22 = vld [vmem:[#allocation9 + $0x46c] ss:$16 sps:$4 sm:$0xff]  }
 0x46d   : > { %2531 = vmatprep.subr.bf16.mxu1 %v15473_v24  ;;  %v15543_v24 = vld [vmem:[#allocation9 + $0x468] ss:$16 sps:$4 sm:$0xff]  }
 0x470   : > { %2532 = vmatpush1.bf16.msra.mxu1 %v15471_v26  ;;  %v15548_v26 = vld [vmem:[#allocation9 + $0x48c] ss:$16 sps:$4 sm:$0xff]  }
 0x471   : > { %2533 = vmatprep.subr.bf16.mxu1 %v15476_v37  ;;  %v15546_v37 = vld [vmem:[#allocation9 + $0x488] ss:$16 sps:$4 sm:$0xff]  }
 0x474   : > { %2534 = vmatpush1.bf16.msra.mxu1 %v15474_v38  ;;  %v15549_v38 = vld [vmem:[#allocation9 + $0x4a8] ss:$16 sps:$4 sm:$0xff]  }
 0x475   : > { %2535 = vmatprep.subr.bf16.mxu1 %v15479_v40  ;;  %v15554_v40 = vld [vmem:[#allocation9 + $0x4cc] ss:$16 sps:$4 sm:$0xff]  }
 0x478   : > { %2536 = vmatpush1.bf16.msra.mxu1 %v15477_v42  ;;  %v15557_v42 = vld [vmem:[#allocation9 + $0x4ec] ss:$16 sps:$4 sm:$0xff]  }
 0x479   : > { %2537 = vmatprep.subr.bf16.mxu1 %v15482_v43  ;;  %v15555_v43 = vld [vmem:[#allocation9 + $0x4e8] ss:$16 sps:$4 sm:$0xff]  }
 0x47c   : > { %2538 = vmatpush1.bf16.msra.mxu1 %v15480_v44  ;;  %v15560_v44 = vld [vmem:[#allocation9 + $0x50c] ss:$16 sps:$4 sm:$0xff]  }
 0x47d   : > { %2539 = vmatprep.subr.bf16.mxu1 %v15485_v45  ;;  %v15558_v45 = vld [vmem:[#allocation9 + $0x508] ss:$16 sps:$4 sm:$0xff]  }
 0x480   : > { %2540 = vmatpush1.bf16.msra.mxu1 %v15483_v46  ;;  %v15563_v46 = vld [vmem:[#allocation9 + $0x52c] ss:$16 sps:$4 sm:$0xff]  }
 0x481   : > { %2550 = vmatprep.subr.bf16.mxu1 %v15488_v47  ;;  %v15561_v47 = vld [vmem:[#allocation9 + $0x528] ss:$16 sps:$4 sm:$0xff]  }
 0x483   : > { %13273 = vmatmul.mubr.msk.bf16.vlgmr.msra.gmra.mrb[12].mxu1 %vm17760_vm10, %v17775_v41  ;;  %v15506_v41 = vld [vmem:[#allocation9 + $0x2cc] ss:$16 sps:$4 sm:$0xff]  }
 0x484   : > { %2551 = vmatpush1.bf16.msra.mxu1 %v15486_v29  ;;  %2582 = vmatprep.mubr.bf16.mxu1 %v17747_v11  ;;  %v15504_v11 = vld [vmem:[#allocation9 + $0x2c8] ss:$16 sps:$4 sm:$0xff]   ;;  %v15566_v29 = vld [vmem:[#allocation9 + $0x54c] ss:$16 sps:$4 sm:$0xff]  }
 0x485   : > { %2552 = vmatprep.subr.bf16.mxu1 %v15491_v48  ;;  %v15564_v48 = vld [vmem:[#allocation9 + $0x548] ss:$16 sps:$4 sm:$0xff]  }
 0x488   : > { %2553 = vmatpush1.bf16.msra.mxu1 %v15489_v49  ;;  %v15569_v49 = vld [vmem:[#allocation9 + $0x56c] ss:$16 sps:$4 sm:$0xff]  }
 0x489   : > { %2554 = vmatprep.subr.bf16.mxu1 %v15494_v30  ;;  %v15567_v30 = vld [vmem:[#allocation9 + $0x568] ss:$16 sps:$4 sm:$0xff]  }
 0x48c   : > { %2555 = vmatpush1.bf16.msra.mxu1 %v15492_v50  ;;  %v15572_v50 = vld [vmem:[#allocation9 + $0x58c] ss:$16 sps:$4 sm:$0xff]  }
 0x48d   : > { %2556 = vmatprep.subr.bf16.mxu1 %v15497_v51  ;;  %v15570_v51 = vld [vmem:[#allocation9 + $0x588] ss:$16 sps:$4 sm:$0xff]  }
 0x490   : > { %2557 = vmatpush1.bf16.msra.mxu1 %v15495_v52  ;;  %v15575_v52 = vld [vmem:[#allocation9 + $0x5ac] ss:$16 sps:$4 sm:$0xff]  }
 0x491   : > { %2558 = vmatprep.subr.bf16.mxu1 %v15500_v31  ;;  %v15573_v31 = vld [vmem:[#allocation9 + $0x5a8] ss:$16 sps:$4 sm:$0xff]  }
 0x494   : > { %2559 = vmatpush1.bf16.msra.mxu1 %v15498_v53  ;;  %v15578_v53 = vld [vmem:[#allocation9 + $0x5cc] ss:$16 sps:$4 sm:$0xff]  }
 0x495   : > { %2560 = vmatprep.subr.bf16.mxu1 %v15503_v35  ;;  %v15576_v35 = vld [vmem:[#allocation9 + $0x5c8] ss:$16 sps:$4 sm:$0xff]  }
 0x498   : > { %2561 = vmatpush1.bf16.msra.mxu1 %v15501_v28  ;;  %v15581_v28 = vld [vmem:[#allocation9 + $0x5ec] ss:$16 sps:$4 sm:$0xff]  }
 0x499   : > { %2562 = vmatprep.subr.bf16.mxu1 %v15506_v41  ;;  %v15579_v41 = vld [vmem:[#allocation9 + $0x5e8] ss:$16 sps:$4 sm:$0xff]  }
 0x49c   : > { %2563 = vmatpush1.bf16.msra.mxu1 %v15504_v11 }
 0x49d   : > { %2564 = vmatprep.subr.bf16.mxu1 %v15509_v54 }
 0x4a0   : > { %2565 = vmatpush1.bf16.msra.mxu1 %v15507_v55 }
 0x4a1   : > { %2566 = vmatprep.subr.bf16.mxu1 %v15512_v56 }
 0x4a4   : > { %2567 = vmatpush1.bf16.msra.mxu1 %v15510_v57  ;;  %v15583_v57 = vld [vmem:[#allocation13] ss:$16 sps:$4 sm:$0xff]  }
 0x4a5   : > { %2568 = vmatprep.subr.bf16.mxu1 %v15515_v58  ;;  %v15585_v58 = vld [vmem:[#allocation13 + $0x4] ss:$16 sps:$4 sm:$0xff]  }
 0x4a6   : > { %3950 = vmatprep.subr.bf16.mxu0 %v15585_v58  ;;  %v15624_v58 = vld [vmem:[#allocation13 + $0xcc] ss:$16 sps:$4 sm:$0xff]  }
 0x4a7   : > { %3951 = vmatpush1.bf16.msra.mxu0 %v15583_v57  ;;  %v15616_v57 = vld [vmem:[#allocation13 + $0xa8] ss:$16 sps:$4 sm:$0xff]  }
 0x4a8   : > { %2569 = vmatpush1.bf16.msra.mxu1 %v15513_v59  ;;  %v15591_v59 = vld [vmem:[#allocation13 + $0x24] ss:$16 sps:$4 sm:$0xff]  }
 0x4a9   : > { %2570 = vmatprep.subr.bf16.mxu1 %v15518_v61  ;;  %v15589_v61 = vld [vmem:[#allocation13 + $0x20] ss:$16 sps:$4 sm:$0xff]   ;;  %3952 = vmatprep.subr.bf16.mxu0 %v15591_v59  ;;  %v15622_v59 = vld [vmem:[#allocation13 + $0xc8] ss:$16 sps:$4 sm:$0xff]  }
 0x4ab   : > { %3953 = vmatpush1.bf16.msra.mxu0 %v15589_v61  ;;  %v15630_v61 = vld [vmem:[#allocation13 + $0xec] ss:$16 sps:$4 sm:$0xff]  }
 0x4ac   : > { %2571 = vmatpush1.bf16.msra.mxu1 %v15516_v62  ;;  %v15597_v62 = vld [vmem:[#allocation13 + $0x44] ss:$16 sps:$4 sm:$0xff]  }
 0x4ad   : > { %2572 = vmatprep.subr.bf16.mxu1 %v15521_v63  ;;  %v15595_v63 = vld [vmem:[#allocation13 + $0x40] ss:$16 sps:$4 sm:$0xff]   ;;  %3954 = vmatprep.subr.bf16.mxu0 %v15597_v62  ;;  %v15628_v62 = vld [vmem:[#allocation13 + $0xe8] ss:$16 sps:$4 sm:$0xff]  }
 0x4af   : > { %3955 = vmatpush1.bf16.msra.mxu0 %v15595_v63  ;;  %v15636_v63 = vld [vmem:[#allocation13 + $0x10c] ss:$16 sps:$4 sm:$0xff]  }
 0x4b0   : > { %2573 = vmatpush1.bf16.msra.mxu1 %v15519_v1  ;;  %3956 = vmatprep.subr.bf16.mxu0 %v15603_v15  ;;  %v15609_v1 = vld [vmem:[#allocation13 + $0x84] ss:$16 sps:$4 sm:$0xff]   ;;  %v15634_v15 = vld [vmem:[#allocation13 + $0x108] ss:$16 sps:$4 sm:$0xff]  }
 0x4b1   : > { %2574 = vmatprep.subr.bf16.mxu1 %v15524_v7  ;;  %v15607_v7 = vld [vmem:[#allocation13 + $0x80] ss:$16 sps:$4 sm:$0xff]  }
 0x4b4   : > { %2575 = vmatpush1.bf16.msra.mxu1 %v15522_v25  ;;  %v15615_v25 = vld [vmem:[#allocation13 + $0xa4] ss:$16 sps:$4 sm:$0xff]  }
 0x4b5   : > { %2576 = vmatprep.subr.bf16.mxu1 %v15527_v9  ;;  %v15613_v9 = vld [vmem:[#allocation13 + $0xa0] ss:$16 sps:$4 sm:$0xff]  }
 0x4b8   : > { %2577 = vmatpush1.bf16.msra.mxu1 %v15525_v10  ;;  %v15621_v10 = vld [vmem:[#allocation13 + $0xc4] ss:$16 sps:$4 sm:$0xff]  }
 0x4b9   : > { %2578 = vmatprep.subr.bf16.mxu1 %v15530_v12  ;;  %v15619_v12 = vld [vmem:[#allocation13 + $0xc0] ss:$16 sps:$4 sm:$0xff]  }
 0x4bc   : > { %2579 = vmatpush1.bf16.msra.mxu1 %v15528_v13  ;;  %v15627_v13 = vld [vmem:[#allocation13 + $0xe4] ss:$16 sps:$4 sm:$0xff]  }
 0x4bd   : > { %2580 = vmatprep.subr.bf16.mxu1 %v15533_v39  ;;  %v15625_v39 = vld [vmem:[#allocation13 + $0xe0] ss:$16 sps:$4 sm:$0xff]  }
 0x4c0   : > { %2581 = vmatpush1.bf16.msra.mxu1 %v15531_v14  ;;  %v15633_v14 = vld [vmem:[#allocation13 + $0x104] ss:$16 sps:$4 sm:$0xff]  }
 0x4c1   : > { %2591 = vmatprep.subr.bf16.mxu1 %v15536_v2  ;;  %v15631_v2 = vld [vmem:[#allocation13 + $0x100] ss:$16 sps:$4 sm:$0xff]  }
 0x4c3   : > { %2583 = vmatmul.mubr.bf16.vlgmr.msra.gmra.mrb[12].mxu1 %v17744_v8  ;;  %v15551_v8 = vld [vmem:[#allocation9 + $0x4ac] ss:$16 sps:$4 sm:$0xff]  }
 0x4c4   : > { %2592 = vmatpush1.bf16.msra.mxu1 %v15534_v16  ;;  %13275 = vmatprep.mubr.msk.bf16.mxu1 %vm17789_vm15, %v17797_v17  ;;  %v15552_v17 = vld [vmem:[#allocation9 + $0x4c8] ss:$16 sps:$4 sm:$0xff]   ;;  %v15639_v16 = vld [vmem:[#allocation13 + $0x124] ss:$16 sps:$4 sm:$0xff]  }
 0x4c5   : > { %2593 = vmatprep.subr.bf16.mxu1 %v15539_v18  ;;  %v15637_v18 = vld [vmem:[#allocation13 + $0x120] ss:$16 sps:$4 sm:$0xff]  }
 0x4c8   : > { %2594 = vmatpush1.bf16.msra.mxu1 %v15537_v19  ;;  %v15645_v19 = vld [vmem:[#allocation13 + $0x144] ss:$16 sps:$4 sm:$0xff]  }
 0x4c9   : > { %2595 = vmatprep.subr.bf16.mxu1 %v15542_v20  ;;  %v15643_v20 = vld [vmem:[#allocation13 + $0x140] ss:$16 sps:$4 sm:$0xff]  }
 0x4cc   : > { %2596 = vmatpush1.bf16.msra.mxu1 %v15540_v21  ;;  %v15651_v21 = vld [vmem:[#allocation13 + $0x164] ss:$16 sps:$4 sm:$0xff]  }
 0x4cd   : > { %2597 = vmatprep.subr.bf16.mxu1 %v15545_v22  ;;  %v15649_v22 = vld [vmem:[#allocation13 + $0x160] ss:$16 sps:$4 sm:$0xff]  }
 0x4d0   : > { %2598 = vmatpush1.bf16.msra.mxu1 %v15543_v24  ;;  %v15657_v24 = vld [vmem:[#allocation13 + $0x184] ss:$16 sps:$4 sm:$0xff]  }
 0x4d1   : > { %2599 = vmatprep.subr.bf16.mxu1 %v15548_v26  ;;  %v15655_v26 = vld [vmem:[#allocation13 + $0x180] ss:$16 sps:$4 sm:$0xff]  }
 0x4d4   : > { %2600 = vmatpush1.bf16.msra.mxu1 %v15546_v37  ;;  %v1404_v37 = vld [vmem:[#allocation10] sm:$0xf] }
 0x4d5   : > { %2601 = vmatprep.subr.bf16.mxu1 %v15551_v8  ;;  %v1409_v8 = vrot.slane %v1404_v37, %v17719_v5 }
 0x4d8   : > { %2602 = vmatpush1.bf16.msra.mxu1 %v15549_v38  ;;  %v1417_v38 = vrot.slane %v1404_v37, %v17713_v3 }
 0x4d9   : > { %2603 = vmatprep.subr.bf16.mxu1 %v15554_v40  ;;  %v1413_v40 = vrot.slane %v1404_v37, %v17722_v6 }
 0x4dc   : > { %2604 = vmatpush1.bf16.msra.mxu1 %v15552_v17  ;;  %v1421_v17 = vrot.slane %v1404_v37, %v17716_v4  ;;  %v15678_v37 = vld [vmem:[#allocation13 + $0x1ec] ss:$16 sps:$4 sm:$0xff]  }
 0x4dd   : > { %2605 = vmatprep.subr.bf16.mxu1 %v15557_v42 }
 0x4e0   : > { %2606 = vmatpush1.bf16.msra.mxu1 %v15555_v43 }
 0x4e1   : > { %2607 = vmatprep.subr.bf16.mxu1 %v15560_v44 }
 0x4e4   : > { %2608 = vmatpush1.bf16.msra.mxu1 %v15558_v45 }
 0x4e5   : > { %2609 = vmatprep.subr.bf16.mxu1 %v15563_v46 }
 0x4e8   : > { %2610 = vmatpush1.bf16.msra.mxu1 %v15561_v47 }
 0x4e9   : > { %2611 = vmatprep.subr.bf16.mxu1 %v15566_v29 }
 0x4ec   : > { %2612 = vmatpush1.bf16.msra.mxu1 %v15564_v48 }
 0x4ed   : > { %2613 = vmatprep.subr.bf16.mxu1 %v15569_v49 }
 0x4f0   : > { %2614 = vmatpush1.bf16.msra.mxu1 %v15567_v30 }
 0x4f1   : > { %2615 = vmatprep.subr.bf16.mxu1 %v15572_v50  ;;  %v15588_v50 = vld [vmem:[#allocation13 + $0xc] ss:$16 sps:$4 sm:$0xff]  }
 0x4f4   : > { %2616 = vmatpush1.bf16.msra.mxu1 %v15570_v51  ;;  %v15582_v51 = vld [vmem:[#allocation12] sm:$0xff]  }
 0x4f5   : > { %2617 = vmatprep.subr.bf16.mxu1 %v15575_v52  ;;  %v15586_v52 = vld [vmem:[#allocation13 + $0x8] ss:$16 sps:$4 sm:$0xff]  }
 0x4f8   : > { %2618 = vmatpush1.bf16.msra.mxu1 %v15573_v31  ;;  %v15594_v31 = vld [vmem:[#allocation13 + $0x2c] ss:$16 sps:$4 sm:$0xff]  }
 0x4f9   : > { %2619 = vmatprep.subr.bf16.mxu1 %v15578_v53  ;;  %v15592_v53 = vld [vmem:[#allocation13 + $0x28] ss:$16 sps:$4 sm:$0xff]  }
 0x4fc   : > { %2620 = vmatpush1.bf16.msra.mxu1 %v15576_v35  ;;  %v15600_v35 = vld [vmem:[#allocation13 + $0x4c] ss:$16 sps:$4 sm:$0xff]  }
 0x4fd   : > { %2621 = vmatprep.subr.bf16.mxu1 %v15581_v28  ;;  %v15598_v28 = vld [vmem:[#allocation13 + $0x48] ss:$16 sps:$4 sm:$0xff]  }
 0x500   : > { %2622 = vmatpush1.bf16.msra.mxu1 %v15579_v41  ;;  %v15606_v41 = vld [vmem:[#allocation13 + $0x6c] ss:$16 sps:$4 sm:$0xff]  }
 0x503   : > { %13277 = vmatmul.mubr.msk.bf16.vlgmr.msra.gmra.mrb[12].mxu1 %vm17789_vm15, %v17805_v60  ;;  %v15601_v60 = vld [vmem:[#allocation13 + $0x60] ss:$16 sps:$4 sm:$0xff]  }
 0x504   : > { %2677 = vmatprep.mubr.bf16.mxu1 %v19554_v0  ;;  %3957 = vmatpush1.bf16.msra.mxu0 %v15601_v60  ;;  %v15642_v60 = vld [vmem:[#allocation13 + $0x12c] ss:$16 sps:$4 sm:$0xff]  }
 0x505   : > { %3958 = vmatprep.subr.bf16.mxu0 %v15609_v1  ;;  %v15640_v1 = vld [vmem:[#allocation13 + $0x128] ss:$16 sps:$4 sm:$0xff]  }
 0x508   : > { %3959 = vmatpush1.bf16.msra.mxu0 %v15607_v7  ;;  %v15648_v7 = vld [vmem:[#allocation13 + $0x14c] ss:$16 sps:$4 sm:$0xff]  }
 0x509   : > { %3960 = vmatprep.subr.bf16.mxu0 %v15615_v25  ;;  %v15646_v25 = vld [vmem:[#allocation13 + $0x148] ss:$16 sps:$4 sm:$0xff]  }
 0x50c   : > { %3961 = vmatpush1.bf16.msra.mxu0 %v15613_v9  ;;  %v15654_v9 = vld [vmem:[#allocation13 + $0x16c] ss:$16 sps:$4 sm:$0xff]  }
 0x50d   : > { %3962 = vmatprep.subr.bf16.mxu0 %v15621_v10  ;;  %v15652_v10 = vld [vmem:[#allocation13 + $0x168] ss:$16 sps:$4 sm:$0xff]  }
 0x510   : > { %3963 = vmatpush1.bf16.msra.mxu0 %v15619_v12  ;;  %v15660_v12 = vld [vmem:[#allocation13 + $0x18c] ss:$16 sps:$4 sm:$0xff]  }
 0x511   : > { %3964 = vmatprep.subr.bf16.mxu0 %v15627_v13  ;;  %v15658_v13 = vld [vmem:[#allocation13 + $0x188] ss:$16 sps:$4 sm:$0xff]  }
 0x514   : > { %3965 = vmatpush1.bf16.msra.mxu0 %v15625_v39  ;;  %v15663_v39 = vld [vmem:[#allocation13 + $0x1a4] ss:$16 sps:$4 sm:$0xff]  }
 0x515   : > { %3966 = vmatprep.subr.bf16.mxu0 %v15633_v14  ;;  %v15666_v14 = vld [vmem:[#allocation13 + $0x1ac] ss:$16 sps:$4 sm:$0xff]  }
 0x516   : > { %v2502_v11 = vpop.f32.mrb[8].mxu1 }
 0x517   : > { %v17825_v54 = vpop.f32.mrb[9].mxu1  ;;  %v14631_v43 = vadd.f32 %v2502_v11, %v1409_v8  ;;  %v15604_v11 = vld [vmem:[#allocation13 + $0x68] ss:$16 sps:$4 sm:$0xff]   ;;  %v15681_v8 = vld [vmem:[#allocation13 + $0x204] ss:$16 sps:$4 sm:$0xff]  }
 0x518   : > { %v2506_v55 = vpop.f32.mrb[10].mxu1  ;;  %3967 = vmatpush1.bf16.msra.mxu0 %v15631_v2  ;;  %v14632_v46 = vadd.f32 %v17825_v54, %v1413_v40  ;;  %v15612_v54 = vld [vmem:[#allocation13 + $0x8c] ss:$16 sps:$4 sm:$0xff]   ;;  %v15661_v2 = vld [vmem:[#allocation13 + $0x1a0] ss:$16 sps:$4 sm:$0xff]   ;;  %v17833_v40 = vadd.s32 8, %v17690_v27 }
 0x519   : > { %v2507_v56 = vpop.f32.mrb[11].mxu1  ;;  %3968 = vmatprep.subr.bf16.mxu0 %v15639_v16  ;;  %v15610_v55 = vld [vmem:[#allocation13 + $0x88] ss:$16 sps:$4 sm:$0xff]  }
 0x51a   : > { %v15618_v56 = vld [vmem:[#allocation13 + $0xac] ss:$16 sps:$4 sm:$0xff]   ;;  %v15664_v16 = vld [vmem:[#allocation13 + $0x1a8] ss:$16 sps:$4 sm:$0xff]  }
 0x51c   : > { %3969 = vmatpush1.bf16.msra.mxu0 %v15637_v18  ;;  %v15669_v18 = vld [vmem:[#allocation13 + $0x1c4] ss:$16 sps:$4 sm:$0xff]  }
 0x51d   : > { %3970 = vmatprep.subr.bf16.mxu0 %v15645_v19  ;;  %v15672_v19 = vld [vmem:[#allocation13 + $0x1cc] ss:$16 sps:$4 sm:$0xff]  }
 0x520   : > { %3971 = vmatpush1.bf16.msra.mxu0 %v15643_v20  ;;  %v15667_v20 = vld [vmem:[#allocation13 + $0x1c0] ss:$16 sps:$4 sm:$0xff]  }
 0x521   : > { %3972 = vmatprep.subr.bf16.mxu0 %v15651_v21  ;;  %v15670_v21 = vld [vmem:[#allocation13 + $0x1c8] ss:$16 sps:$4 sm:$0xff]  }
 0x524   : > { %3973 = vmatpush1.bf16.msra.mxu0 %v15649_v22  ;;  %v15673_v22 = vld [vmem:[#allocation13 + $0x1e0] ss:$16 sps:$4 sm:$0xff]  }
 0x525   : > { %3974 = vmatprep.subr.bf16.mxu0 %v15657_v24  ;;  %v15675_v24 = vld [vmem:[#allocation13 + $0x1e4] ss:$16 sps:$4 sm:$0xff]  }
 0x528   : > { %3975 = vmatpush1.bf16.msra.mxu0 %v15655_v26  ;;  %v15676_v26 = vld [vmem:[#allocation13 + $0x1e8] ss:$16 sps:$4 sm:$0xff]  }
 0x529   : > { %3976 = vmatprep.subr.bf16.mxu0 %v15663_v39  ;;  %v15700_v39 = vld [vmem:[#allocation13 + $0x268] ss:$16 sps:$4 sm:$0xff]  }
 0x52c   : > { %3977 = vmatpush1.bf16.msra.mxu0 %v15661_v2  ;;  %v15708_v2 = vld [vmem:[#allocation13 + $0x28c] ss:$16 sps:$4 sm:$0xff]  }
 0x52d   : > { %3978 = vmatprep.subr.bf16.mxu0 %v15669_v18  ;;  %v15706_v18 = vld [vmem:[#allocation13 + $0x288] ss:$16 sps:$4 sm:$0xff]  }
 0x530   : > { %3979 = vmatpush1.bf16.msra.mxu0 %v15667_v20  ;;  %v15714_v20 = vld [vmem:[#allocation13 + $0x2ac] ss:$16 sps:$4 sm:$0xff]  }
 0x531   : > { %3980 = vmatprep.subr.bf16.mxu0 %v15675_v24  ;;  %v15717_v24 = vld [vmem:[#allocation13 + $0x2c4] ss:$16 sps:$4 sm:$0xff]  }
 0x534   : > { %3981 = vmatpush1.bf16.msra.mxu0 %v15673_v22  ;;  %v15712_v22 = vld [vmem:[#allocation13 + $0x2a8] ss:$16 sps:$4 sm:$0xff]  }
 0x535   : > { %3993 = vmatprep.subr.bf16.mxu0 %v15681_v8  ;;  %v15718_v8 = vld [vmem:[#allocation13 + $0x2c8] ss:$16 sps:$4 sm:$0xff]  }
 0x5d6   : > { %v2625_v42 = vpop.f32.mrb[12].mxu1 }
 0x5d7   : > { %v14633_v44 = vadd.f32 %v2625_v42, %v1417_v38  ;;  %v2627_v45 = vpop.f32.mrb[13].mxu1  ;;  %v15684_v38 = vld [vmem:[#allocation13 + $0x20c] ss:$16 sps:$4 sm:$0xff]   ;;  %v2731_v42 = vand.u32 7, %v17833_v40 }
 0x5d8   : > { %v14634_v47 = vadd.f32 %v2627_v45, %v1421_v17  ;;  %v2629_v29 = vpop.f32.mrb[14].mxu1  ;;  %v2724_v17 = vand.u32 7, %v17690_v27 }
 0x5d9   : > { %v2632_v48 = vpack.c.bf16 %v14633_v44, %v14631_v43  ;;  %v2630_v49 = vpop.f32.mrb[15].mxu1  ;;  %vm2745_vm2 = vcmp.eq.s32.totalorder %v2731_v42, 0  ;;  %vm17863_vm7 = vcmp.eq.s32.totalorder %v2731_v42, 7  ;;  %v15771_v42 = vld [vmem:[#allocation13 + $0x3e4] ss:$16 sps:$4 sm:$0xff]  }
 0x5da   : > { %v2633_v30 = vpack.c.bf16 %v14634_v47, %v14632_v46  ;;  %vm2744_vm1 = vcmp.eq.s32.totalorder %v2724_v17, 0  ;;  %vm2751_vm4 = vmpackc.low %vm2745_vm2, %vm2745_vm2  ;;  %vm17857_vm6 = vcmp.eq.s32.totalorder %v2724_v17, 7  ;;  %v15763_v17 = vld [vmem:[#allocation13 + $0x3c0] ss:$16 sps:$4 sm:$0xff]  }
 0x5db   : > { %vm2750_vm3 = vmpackc.low %vm2744_vm1, %vm2744_vm1 }
 0x5dc   : > { %2645 = vmatprep.subr.bf16.mxu1 %v2633_v30  ;;  %v2752_v29 = vsel %vm2750_vm3, 65537, %v19554_v0  ;;  %vm2766_vm10 = vmpackc.low %vm17857_vm6, %vm17857_vm6  ;;  %vm17099_vm3 = vmmov 0  }
 0x5dd   : > { %2646 = vmatpush1.bf16.msra.mxu1 %v2632_v48  ;;  %v2753_v48 = vsel %vm2751_vm4, 65537, %v19554_v0  ;;  %vm2767_vm11 = vmpackc.low %vm17863_vm7, %vm17863_vm7 }
 0x5de   : > { %4079 = vmatprep.subr.bf16.mxu1 %v15588_v50  ;;  %vm4405_vm4 = vmpackc.low %vm17099_vm3, %vm17099_vm3  ;;  %vm5984_vm3 = vcmask 523264  }
 0x5e0   : > { %13279 = vmatmul.mubr.msk.bf16.vlgmr.msra.gmra.mrb[16].mxu1 %vm2641_vm0, %v15582_v51  ;;  %vm4226_vm0 = vcmask 261120  }
 0x5e1   : > { %4080 = vmatpush1.bf16.msra.mxu1 %v15586_v52 }
 0x5e2   : > { %4081 = vmatprep.subr.bf16.mxu1 %v15594_v31  ;;  %v13280_v31 = vcombine.low %v2752_v29, %v2753_v48  ;;  %v15732_v29 = vld [vmem:[#allocation13 + $0x30c] ss:$16 sps:$4 sm:$0xff]   ;;  %v15727_v48 = vld [vmem:[#allocation13 + $0x300] ss:$16 sps:$4 sm:$0xff]  }
 0x5e4   : > { %vm14616_vm5 = vcmp.eq.s16.totalorder %v13280_v31, 0  ;;  %v15741_v31 = vld [vmem:[#allocation13 + $0x344] ss:$16 sps:$4 sm:$0xff]  }
 0x5e5   : > { %4082 = vmatpush1.bf16.msra.mxu1 %v15592_v53 }
 0x5e6   : > { %4083 = vmatprep.subr.bf16.mxu1 %v15600_v35 }
 0x5e9   : > { %4084 = vmatpush1.bf16.msra.mxu1 %v15598_v28 }
 0x5ea   : > { %4085 = vmatprep.subr.bf16.mxu1 %v15606_v41 }
 0x5ed   : > { %4086 = vmatpush1.bf16.msra.mxu1 %v15604_v11 }
 0x5ee   : > { %4087 = vmatprep.subr.bf16.mxu1 %v15612_v54 }
 0x5f1   : > { %4088 = vmatpush1.bf16.msra.mxu1 %v15610_v55 }
 0x5f2   : > { %4089 = vmatprep.subr.bf16.mxu1 %v15618_v56 }
 0x5f5   : > { %4090 = vmatpush1.bf16.msra.mxu1 %v15616_v57  ;;  %v15679_v57 = vld [vmem:[#allocation13 + $0x200] ss:$16 sps:$4 sm:$0xff]  }
 0x5f6   : > { %4091 = vmatprep.subr.bf16.mxu1 %v15624_v58  ;;  %v15682_v58 = vld [vmem:[#allocation13 + $0x208] ss:$16 sps:$4 sm:$0xff]  }
 0x5f9   : > { %4092 = vmatpush1.bf16.msra.mxu1 %v15622_v59 }
 0x5fa   : > { %4093 = vmatprep.subr.bf16.mxu1 %v15630_v61 }
 0x5fd   : > { %4094 = vmatpush1.bf16.msra.mxu1 %v15628_v62  ;;  %v15687_v62 = vld [vmem:[#allocation13 + $0x224] ss:$16 sps:$4 sm:$0xff]  }
 0x5fe   : > { %4095 = vmatprep.subr.bf16.mxu1 %v15636_v63  ;;  %v15690_v63 = vld [vmem:[#allocation13 + $0x22c] ss:$16 sps:$4 sm:$0xff]  }
 0x601   : > { %4096 = vmatpush1.bf16.msra.mxu1 %v15634_v15  ;;  %v15685_v15 = vld [vmem:[#allocation13 + $0x220] ss:$16 sps:$4 sm:$0xff]  }
 0x602   : > { %4097 = vmatprep.subr.bf16.mxu1 %v15642_v60  ;;  %v15688_v60 = vld [vmem:[#allocation13 + $0x228] ss:$16 sps:$4 sm:$0xff]  }
 0x605   : > { %4098 = vmatpush1.bf16.msra.mxu1 %v15640_v1  ;;  %v15693_v1 = vld [vmem:[#allocation13 + $0x244] ss:$16 sps:$4 sm:$0xff]  }
 0x606   : > { %4099 = vmatprep.subr.bf16.mxu1 %v15648_v7  ;;  %v15696_v7 = vld [vmem:[#allocation13 + $0x24c] ss:$16 sps:$4 sm:$0xff]  }
 0x609   : > { %4100 = vmatpush1.bf16.msra.mxu1 %v15646_v25  ;;  %v15691_v25 = vld [vmem:[#allocation13 + $0x240] ss:$16 sps:$4 sm:$0xff]  }
 0x60a   : > { %4101 = vmatprep.subr.bf16.mxu1 %v15654_v9  ;;  %v15694_v9 = vld [vmem:[#allocation13 + $0x248] ss:$16 sps:$4 sm:$0xff]  }
 0x60d   : > { %4102 = vmatpush1.bf16.msra.mxu1 %v15652_v10  ;;  %v15699_v10 = vld [vmem:[#allocation13 + $0x264] ss:$16 sps:$4 sm:$0xff]  }
 0x60e   : > { %4103 = vmatprep.subr.bf16.mxu1 %v15660_v12  ;;  %v15702_v12 = vld [vmem:[#allocation13 + $0x26c] ss:$16 sps:$4 sm:$0xff]  }
 0x611   : > { %4104 = vmatpush1.bf16.msra.mxu1 %v15658_v13  ;;  %v15697_v13 = vld [vmem:[#allocation13 + $0x260] ss:$16 sps:$4 sm:$0xff]  }
 0x612   : > { %4105 = vmatprep.subr.bf16.mxu1 %v15666_v14  ;;  %v15705_v14 = vld [vmem:[#allocation13 + $0x284] ss:$16 sps:$4 sm:$0xff]  }
 0x615   : > { %4106 = vmatpush1.bf16.msra.mxu1 %v15664_v16  ;;  %v15703_v16 = vld [vmem:[#allocation13 + $0x280] ss:$16 sps:$4 sm:$0xff]  }
 0x616   : > { %4107 = vmatprep.subr.bf16.mxu1 %v15672_v19  ;;  %v15711_v19 = vld [vmem:[#allocation13 + $0x2a4] ss:$16 sps:$4 sm:$0xff]  }
 0x619   : > { %4108 = vmatpush1.bf16.msra.mxu1 %v15670_v21  ;;  %v15709_v21 = vld [vmem:[#allocation13 + $0x2a0] ss:$16 sps:$4 sm:$0xff]  }
 0x61a   : > { %4109 = vmatprep.subr.bf16.mxu1 %v15678_v37  ;;  %v15715_v37 = vld [vmem:[#allocation13 + $0x2c0] ss:$16 sps:$4 sm:$0xff]  }
 0x61d   : > { %4110 = vmatpush1.bf16.msra.mxu1 %v15676_v26  ;;  %v15720_v26 = vld [vmem:[#allocation13 + $0x2cc] ss:$16 sps:$4 sm:$0xff]  }
 0x61e   : > { %4122 = vmatprep.subr.bf16.mxu1 %v15684_v38  ;;  %v15723_v38 = vld [vmem:[#allocation13 + $0x2e4] ss:$16 sps:$4 sm:$0xff]  }
 0x6b3   : > { %v2679_v43 = vpop.f32.mrb[16].mxu1 }
 0x6b4   : > { %v2681_v44 = vpop.f32.mrb[17].mxu1 }
 0x6b5   : > { %v2683_v45 = vpop.f32.mrb[18].mxu1 }
 0x6b6   : > { %v17841_v46 = vpack.c.bf16 %v2683_v45, %v2679_v43  ;;  %v2685_v47 = vpop.f32.mrb[19].mxu1  ;;  %v15726_v43 = vld [vmem:[#allocation13 + $0x2ec] ss:$16 sps:$4 sm:$0xff]   ;;  %v15724_v45 = vld [vmem:[#allocation13 + $0x2e8] ss:$16 sps:$4 sm:$0xff]  }
 0x6b7   : > { %v2689_v49 = vpack.c.bf16 %v2685_v47, %v2681_v44  ;;  %v15721_v44 = vld [vmem:[#allocation13 + $0x2e0] ss:$16 sps:$4 sm:$0xff]   ;;  %v15729_v47 = vld [vmem:[#allocation13 + $0x304] ss:$16 sps:$4 sm:$0xff]  }
 0x6b8   : > { %v2691_v30 = vshrl.u32 %v17841_v46, 16  ;;  %v2694_v50 = vshll.u32 %v17841_v46, 16 }
 0x6b9   : > { %v2698_v51 = vshrl.u32 %v2689_v49, 16  ;;  %v2701_v52 = vshll.u32 %v2689_v49, 16 }
 0x6ba   : > { %v2693_v53 = vrot.slane %v2691_v30, 7  ;;  %v2708_v35 = vrot.slane %v2694_v50, 1 }
 0x6bb   : > { %v2700_v28 = vrot.slane %v2698_v51, 7  ;;  %v2710_v41 = vrot.slane %v2701_v52, 1 }
 0x6bc   : > { %v2696_v11 = vor.u32 %v2694_v50, %v2693_v53  ;;  %v17847_v54 = vor.u32 %v2708_v35, %v2691_v30  ;;  %v15735_v30 = vld [vmem:[#allocation13 + $0x324] ss:$16 sps:$4 sm:$0xff]   ;;  %v15738_v50 = vld [vmem:[#allocation13 + $0x32c] ss:$16 sps:$4 sm:$0xff]   ;;  %v15739_v35 = vld [vmem:[#allocation13 + $0x340] ss:$16 sps:$4 sm:$0xff]  }
 0x6bd   : > { %v2703_v55 = vor.u32 %v2701_v52, %v2700_v28  ;;  %v17849_v56 = vor.u32 %v2710_v41, %v2698_v51  ;;  %v15733_v51 = vld [vmem:[#allocation13 + $0x320] ss:$16 sps:$4 sm:$0xff]   ;;  %v15736_v52 = vld [vmem:[#allocation13 + $0x328] ss:$16 sps:$4 sm:$0xff]   ;;  %v15744_v53 = vld [vmem:[#allocation13 + $0x34c] ss:$16 sps:$4 sm:$0xff]  }
 0x6be   : > { %v2706_v61 = vsel %vm17754_vm9, 0, %v2696_v11  ;;  %v15742_v28 = vld [vmem:[#allocation13 + $0x348] ss:$16 sps:$4 sm:$0xff]   ;;  %v15747_v41 = vld [vmem:[#allocation13 + $0x364] ss:$16 sps:$4 sm:$0xff]  }
 0x6bf   : > { %v2707_v59 = vsel %vm17754_vm9, 0, %v2703_v55  ;;  %v15750_v11 = vld [vmem:[#allocation13 + $0x36c] ss:$16 sps:$4 sm:$0xff]   ;;  %v15745_v55 = vld [vmem:[#allocation13 + $0x360] ss:$16 sps:$4 sm:$0xff]  }
 0x6c0   : > { %13475 = vmatprep.mubr.msk.bf16.mxu0 %vm14616_vm5, %v2707_v59  ;;  %13483 = vmatprep.mubr.msk.bf16.mxu1 %vm14616_vm5, %v2707_v59  ;;  %v15756_v59 = vld [vmem:[#allocation13 + $0x38c] ss:$16 sps:$4 sm:$0xff]  }
 0x6c1   : > { %13477 = vmatmul.mubr.msk.bf16.vlgmr.msra.gmra.mrb[12].mxu0 %vm14616_vm5, %v2706_v61  ;;  %13485 = vmatmul.mubr.msk.bf16.vlgmr.msra.gmra.mrb[20].mxu1 %vm14616_vm5, %v2706_v61  ;;  %v15751_v61 = vld [vmem:[#allocation13 + $0x380] ss:$16 sps:$4 sm:$0xff]  }
 0x6c2   : > { %3994 = vmatpush1.bf16.msra.mxu0 %v15679_v57  ;;  %4123 = vmatpush1.bf16.msra.mxu1 %v15682_v58  ;;  %v15748_v57 = vld [vmem:[#allocation13 + $0x368] ss:$16 sps:$4 sm:$0xff]   ;;  %v15753_v58 = vld [vmem:[#allocation13 + $0x384] ss:$16 sps:$4 sm:$0xff]  }
 0x6c3   : > { %4025 = vmatprep.mubr.bf16.mxu0 %v2689_v49  ;;  %4154 = vmatprep.mubr.bf16.mxu1 %v2689_v49  ;;  %v15730_v49 = vld [vmem:[#allocation13 + $0x308] ss:$16 sps:$4 sm:$0xff]  }
 0x6c4   : > { %3995 = vmatprep.subr.bf16.mxu0 %v15687_v62  ;;  %4124 = vmatprep.subr.bf16.mxu1 %v15690_v63  ;;  %v15754_v62 = vld [vmem:[#allocation13 + $0x388] ss:$16 sps:$4 sm:$0xff]   ;;  %v15759_v63 = vld [vmem:[#allocation13 + $0x3a4] ss:$16 sps:$4 sm:$0xff]  }
 0x6c6   : > { %3996 = vmatpush1.bf16.msra.mxu0 %v15685_v15  ;;  %4125 = vmatpush1.bf16.msra.mxu1 %v15688_v60  ;;  %v15762_v15 = vld [vmem:[#allocation13 + $0x3ac] ss:$16 sps:$4 sm:$0xff]  }
 0x6c7   : > { %3997 = vmatprep.subr.bf16.mxu0 %v15693_v1  ;;  %4126 = vmatprep.subr.bf16.mxu1 %v15696_v7  ;;  %v15757_v1 = vld [vmem:[#allocation13 + $0x3a0] ss:$16 sps:$4 sm:$0xff]   ;;  %v15760_v7 = vld [vmem:[#allocation13 + $0x3a8] ss:$16 sps:$4 sm:$0xff]   ;;  %v15828_v60 = vld [vmem:[#allocation13 + $0x50c] ss:$16 sps:$4 sm:$0xff]  }
 0x6ca   : > { %3998 = vmatpush1.bf16.msra.mxu0 %v15691_v25  ;;  %4127 = vmatpush1.bf16.msra.mxu1 %v15694_v9  ;;  %v15765_v9 = vld [vmem:[#allocation13 + $0x3c4] ss:$16 sps:$4 sm:$0xff]  }
 0x6cb   : > { %3999 = vmatprep.subr.bf16.mxu0 %v15699_v10  ;;  %4128 = vmatprep.subr.bf16.mxu1 %v15702_v12  ;;  %v15768_v10 = vld [vmem:[#allocation13 + $0x3cc] ss:$16 sps:$4 sm:$0xff]   ;;  %v15766_v12 = vld [vmem:[#allocation13 + $0x3c8] ss:$16 sps:$4 sm:$0xff]   ;;  %v15831_v25 = vld [vmem:[#allocation13 + $0x524] ss:$16 sps:$4 sm:$0xff]  }
 0x6ce   : > { %4000 = vmatpush1.bf16.msra.mxu0 %v15697_v13  ;;  %4129 = vmatpush1.bf16.msra.mxu1 %v15700_v39  ;;  %v15774_v13 = vld [vmem:[#allocation13 + $0x3ec] ss:$16 sps:$4 sm:$0xff]   ;;  %v2768_v39 = vsel %vm2766_vm10, 65537, %v19554_v0 }
 0x6cf   : > { %4001 = vmatprep.subr.bf16.mxu0 %v15705_v14  ;;  %4130 = vmatprep.subr.bf16.mxu1 %v15708_v2  ;;  %v2769_v14 = vsel %vm2767_vm11, 65537, %v19554_v0  ;;  %v15769_v2 = vld [vmem:[#allocation13 + $0x3e0] ss:$16 sps:$4 sm:$0xff]  }
 0x6d2   : > { %4002 = vmatpush1.bf16.msra.mxu0 %v15703_v16  ;;  %4131 = vmatpush1.bf16.msra.mxu1 %v15706_v18  ;;  %v15772_v16 = vld [vmem:[#allocation13 + $0x3e8] ss:$16 sps:$4 sm:$0xff]   ;;  %v15777_v18 = vld [vmem:[#allocation13 + $0x404] ss:$16 sps:$4 sm:$0xff]  }
 0x6d3   : > { %4003 = vmatprep.subr.bf16.mxu0 %v15711_v19  ;;  %4132 = vmatprep.subr.bf16.mxu1 %v15714_v20  ;;  %v15780_v19 = vld [vmem:[#allocation13 + $0x40c] ss:$16 sps:$4 sm:$0xff]   ;;  %v13281_v20 = vcombine.low %v2768_v39, %v2769_v14  ;;  %v15838_v39 = vld [vmem:[#allocation13 + $0x548] ss:$16 sps:$4 sm:$0xff]   ;;  %v15843_v14 = vld [vmem:[#allocation13 + $0x564] ss:$16 sps:$4 sm:$0xff]  }
 0x6d5   : > { %vm17880_vm15 = vcmp.eq.s16.totalorder %v13281_v20, 0  ;;  %v15852_v20 = vld [vmem:[#allocation13 + $0x58c] ss:$16 sps:$4 sm:$0xff]  }
 0x6d6   : > { %4004 = vmatpush1.bf16.msra.mxu0 %v15709_v21  ;;  %4133 = vmatpush1.bf16.msra.mxu1 %v15712_v22  ;;  %v15775_v21 = vld [vmem:[#allocation13 + $0x400] ss:$16 sps:$4 sm:$0xff]   ;;  %v19689_v22 = vmov 0 }
 0x6d7   : > { %4005 = vmatprep.subr.bf16.mxu0 %v15717_v24  ;;  %4134 = vmatprep.subr.bf16.mxu1 %v15720_v26  ;;  %v19690_v22 = vsel %vm17876_vm14, 4294967295, %v19689_v22  ;;  %v15778_v24 = vld [vmem:[#allocation13 + $0x408] ss:$16 sps:$4 sm:$0xff]   ;;  %v15897_v26 = vld [vmem:[#allocation18 + $0x80] ss:$16 sps:$4 sm:$0xff]  }
 0x6d8   : > { %19691 = vst [vmem:[#allocation46_spill] sm:$0xff] %v19690_v22 }
 0x6da   : > { %4006 = vmatpush1.bf16.msra.mxu0 %v15715_v37  ;;  %4135 = vmatpush1.bf16.msra.mxu1 %v15718_v8  ;;  %v15783_v37 = vld [vmem:[#allocation13 + $0x424] ss:$16 sps:$4 sm:$0xff]   ;;  %v15786_v8 = vld [vmem:[#allocation13 + $0x42c] ss:$16 sps:$4 sm:$0xff]  }
 0x6db   : > { %4007 = vmatprep.subr.bf16.mxu0 %v15723_v38  ;;  %4136 = vmatprep.subr.bf16.mxu1 %v15726_v43  ;;  %v2718_v38 = vsel %vm17876_vm14, %v17849_v56, 0  ;;  %v15781_v43 = vld [vmem:[#allocation13 + $0x420] ss:$16 sps:$4 sm:$0xff]   ;;  %v15795_v56 = vld [vmem:[#allocation13 + $0x464] ss:$16 sps:$4 sm:$0xff]  }
 0x6de   : > { %4008 = vmatpush1.bf16.msra.mxu0 %v15721_v44  ;;  %4137 = vmatpush1.bf16.msra.mxu1 %v15724_v45  ;;  %v15784_v44 = vld [vmem:[#allocation13 + $0x428] ss:$16 sps:$4 sm:$0xff]   ;;  %v15789_v45 = vld [vmem:[#allocation13 + $0x444] ss:$16 sps:$4 sm:$0xff]  }
 0x6df   : > { %4009 = vmatprep.subr.bf16.mxu0 %v15729_v47  ;;  %4138 = vmatprep.subr.bf16.mxu1 %v15732_v29  ;;  %v15792_v47 = vld [vmem:[#allocation13 + $0x44c] ss:$16 sps:$4 sm:$0xff]   ;;  %v15790_v29 = vld [vmem:[#allocation13 + $0x448] ss:$16 sps:$4 sm:$0xff]  }
 0x6e2   : > { %4010 = vmatpush1.bf16.msra.mxu0 %v15727_v48  ;;  %4139 = vmatpush1.bf16.msra.mxu1 %v15730_v49  ;;  %v15798_v48 = vld [vmem:[#allocation13 + $0x46c] ss:$16 sps:$4 sm:$0xff]   ;;  %v15793_v49 = vld [vmem:[#allocation13 + $0x460] ss:$16 sps:$4 sm:$0xff]  }
 0x6e3   : > { %4011 = vmatprep.subr.bf16.mxu0 %v15735_v30  ;;  %4140 = vmatprep.subr.bf16.mxu1 %v15738_v50  ;;  %v15796_v30 = vld [vmem:[#allocation13 + $0x468] ss:$16 sps:$4 sm:$0xff]   ;;  %v15801_v50 = vld [vmem:[#allocation13 + $0x484] ss:$16 sps:$4 sm:$0xff]  }
 0x6e6   : > { %4012 = vmatpush1.bf16.msra.mxu0 %v15733_v51  ;;  %4141 = vmatpush1.bf16.msra.mxu1 %v15736_v52  ;;  %v15804_v51 = vld [vmem:[#allocation13 + $0x48c] ss:$16 sps:$4 sm:$0xff]   ;;  %v15799_v52 = vld [vmem:[#allocation13 + $0x480] ss:$16 sps:$4 sm:$0xff]  }
 0x6e7   : > { %4013 = vmatprep.subr.bf16.mxu0 %v15741_v31  ;;  %4142 = vmatprep.subr.bf16.mxu1 %v15744_v53  ;;  %v15802_v31 = vld [vmem:[#allocation13 + $0x488] ss:$16 sps:$4 sm:$0xff]   ;;  %v15807_v53 = vld [vmem:[#allocation13 + $0x4a4] ss:$16 sps:$4 sm:$0xff]  }
 0x6ea   : > { %4014 = vmatpush1.bf16.msra.mxu0 %v15739_v35  ;;  %4143 = vmatpush1.bf16.msra.mxu1 %v15742_v28  ;;  %v15810_v35 = vld [vmem:[#allocation13 + $0x4ac] ss:$16 sps:$4 sm:$0xff]   ;;  %v15805_v28 = vld [vmem:[#allocation13 + $0x4a0] ss:$16 sps:$4 sm:$0xff]  }
 0x6eb   : > { %4015 = vmatprep.subr.bf16.mxu0 %v15747_v41  ;;  %4144 = vmatprep.subr.bf16.mxu1 %v15750_v11  ;;  %v15808_v41 = vld [vmem:[#allocation13 + $0x4a8] ss:$16 sps:$4 sm:$0xff]   ;;  %v15813_v11 = vld [vmem:[#allocation13 + $0x4c4] ss:$16 sps:$4 sm:$0xff]  }
 0x6ee   : > { %4016 = vmatpush1.bf16.msra.mxu0 %v15745_v55  ;;  %4145 = vmatpush1.bf16.msra.mxu1 %v15748_v57  ;;  %v15816_v55 = vld [vmem:[#allocation13 + $0x4cc] ss:$16 sps:$4 sm:$0xff]   ;;  %v15811_v57 = vld [vmem:[#allocation13 + $0x4c0] ss:$16 sps:$4 sm:$0xff]  }
 0x6ef   : > { %4017 = vmatprep.subr.bf16.mxu0 %v15753_v58  ;;  %4146 = vmatprep.subr.bf16.mxu1 %v15756_v59  ;;  %v15814_v58 = vld [vmem:[#allocation13 + $0x4c8] ss:$16 sps:$4 sm:$0xff]   ;;  %v15819_v59 = vld [vmem:[#allocation13 + $0x4e4] ss:$16 sps:$4 sm:$0xff]  }
 0x6f2   : > { %4018 = vmatpush1.bf16.msra.mxu0 %v15751_v61  ;;  %4147 = vmatpush1.bf16.msra.mxu1 %v15754_v62  ;;  %v15822_v61 = vld [vmem:[#allocation13 + $0x4ec] ss:$16 sps:$4 sm:$0xff]   ;;  %v15817_v62 = vld [vmem:[#allocation13 + $0x4e0] ss:$16 sps:$4 sm:$0xff]  }
 0x6f3   : > { %4019 = vmatprep.subr.bf16.mxu0 %v15759_v63  ;;  %4148 = vmatprep.subr.bf16.mxu1 %v15762_v15  ;;  %v15820_v63 = vld [vmem:[#allocation13 + $0x4e8] ss:$16 sps:$4 sm:$0xff]   ;;  %v15825_v15 = vld [vmem:[#allocation13 + $0x504] ss:$16 sps:$4 sm:$0xff]  }
 0x6f6   : > { %4020 = vmatpush1.bf16.msra.mxu0 %v15757_v1  ;;  %4149 = vmatpush1.bf16.msra.mxu1 %v15760_v7  ;;  %v15823_v1 = vld [vmem:[#allocation13 + $0x500] ss:$16 sps:$4 sm:$0xff]   ;;  %v15826_v7 = vld [vmem:[#allocation13 + $0x508] ss:$16 sps:$4 sm:$0xff]  }
 0x6f7   : > { %4021 = vmatprep.subr.bf16.mxu0 %v15765_v9  ;;  %4150 = vmatprep.subr.bf16.mxu1 %v15768_v10  ;;  %v15834_v9 = vld [vmem:[#allocation13 + $0x52c] ss:$16 sps:$4 sm:$0xff]   ;;  %v15829_v10 = vld [vmem:[#allocation13 + $0x520] ss:$16 sps:$4 sm:$0xff]  }
 0x6fa   : > { %4022 = vmatpush1.bf16.msra.mxu0 %v15763_v17  ;;  %4151 = vmatpush1.bf16.msra.mxu1 %v15766_v12  ;;  %v15832_v17 = vld [vmem:[#allocation13 + $0x528] ss:$16 sps:$4 sm:$0xff]   ;;  %v15837_v12 = vld [vmem:[#allocation13 + $0x544] ss:$16 sps:$4 sm:$0xff]  }
 0x6fb   : > { %4023 = vmatprep.subr.bf16.mxu0 %v15771_v42  ;;  %4152 = vmatprep.subr.bf16.mxu1 %v15774_v13  ;;  %v15840_v42 = vld [vmem:[#allocation13 + $0x54c] ss:$16 sps:$4 sm:$0xff]   ;;  %v15835_v13 = vld [vmem:[#allocation13 + $0x540] ss:$16 sps:$4 sm:$0xff]  }
 0x6fe   : > { %4024 = vmatpush1.bf16.msra.mxu0 %v15769_v2  ;;  %4153 = vmatpush1.bf16.msra.mxu1 %v15772_v16  ;;  %v15846_v2 = vld [vmem:[#allocation13 + $0x56c] ss:$16 sps:$4 sm:$0xff]   ;;  %v15841_v16 = vld [vmem:[#allocation13 + $0x560] ss:$16 sps:$4 sm:$0xff]  }
 0x6ff   : > { %4036 = vmatprep.subr.bf16.mxu0 %v15777_v18  ;;  %4165 = vmatprep.subr.bf16.mxu1 %v15780_v19  ;;  %v15844_v18 = vld [vmem:[#allocation13 + $0x568] ss:$16 sps:$4 sm:$0xff]   ;;  %v15849_v19 = vld [vmem:[#allocation13 + $0x584] ss:$16 sps:$4 sm:$0xff]  }
 0x701   : > { %4026 = vmatmul.mubr.bf16.vlgmr.msra.gmra.mrb[12].mxu0 %v17841_v46  ;;  %4155 = vmatmul.mubr.bf16.vlgmr.msra.gmra.mrb[20].mxu1 %v17841_v46  ;;  %v15787_v46 = vld [vmem:[#allocation13 + $0x440] ss:$16 sps:$4 sm:$0xff]  }
 0x702   : > { %4037 = vmatpush1.bf16.msra.mxu0 %v15775_v21  ;;  %13479 = vmatprep.mubr.msk.bf16.mxu0 %vm17880_vm15, %v2718_v38  ;;  %v15847_v21 = vld [vmem:[#allocation13 + $0x580] ss:$16 sps:$4 sm:$0xff]  }
 0x703   : > { %4166 = vmatpush1.bf16.msra.mxu1 %v15778_v24  ;;  %13487 = vmatprep.mubr.msk.bf16.mxu1 %vm17880_vm15, %v2718_v38  ;;  %v15850_v24 = vld [vmem:[#allocation13 + $0x588] ss:$16 sps:$4 sm:$0xff]   ;;  %v15853_v38 = vld [vmem:[#allocation13 + $0x5a0] ss:$16 sps:$4 sm:$0xff]  }
 0x704   : > { %4038 = vmatprep.subr.bf16.mxu0 %v15783_v37  ;;  %4167 = vmatprep.subr.bf16.mxu1 %v15786_v8  ;;  %v15855_v37 = vld [vmem:[#allocation13 + $0x5a4] ss:$16 sps:$4 sm:$0xff]   ;;  %v15858_v8 = vld [vmem:[#allocation13 + $0x5ac] ss:$16 sps:$4 sm:$0xff]  }
 0x706   : > { %4039 = vmatpush1.bf16.msra.mxu0 %v15781_v43  ;;  %v15856_v43 = vld [vmem:[#allocation13 + $0x5a8] ss:$16 sps:$4 sm:$0xff]  }
 0x707   : > { %4168 = vmatpush1.bf16.msra.mxu1 %v15784_v44  ;;  %4040 = vmatprep.subr.bf16.mxu0 %v15789_v45  ;;  %v15861_v44 = vld [vmem:[#allocation13 + $0x5c4] ss:$16 sps:$4 sm:$0xff]   ;;  %v15864_v45 = vld [vmem:[#allocation13 + $0x5cc] ss:$16 sps:$4 sm:$0xff]  }
 0x708   : > { %4169 = vmatprep.subr.bf16.mxu1 %v15792_v47  ;;  %v15859_v47 = vld [vmem:[#allocation13 + $0x5c0] ss:$16 sps:$4 sm:$0xff]  }
 0x70a   : > { %4041 = vmatpush1.bf16.msra.mxu0 %v15787_v46  ;;  %v15862_v46 = vld [vmem:[#allocation13 + $0x5c8] ss:$16 sps:$4 sm:$0xff]  }
 0x70b   : > { %4170 = vmatpush1.bf16.msra.mxu1 %v15790_v29  ;;  %4042 = vmatprep.subr.bf16.mxu0 %v15795_v56  ;;  %v15867_v29 = vld [vmem:[#allocation13 + $0x5e4] ss:$16 sps:$4 sm:$0xff]   ;;  %v15870_v56 = vld [vmem:[#allocation13 + $0x5ec] ss:$16 sps:$4 sm:$0xff]  }
 0x70c   : > { %4171 = vmatprep.subr.bf16.mxu1 %v15798_v48  ;;  %v15865_v48 = vld [vmem:[#allocation13 + $0x5e0] ss:$16 sps:$4 sm:$0xff]  }
 0x70e   : > { %4043 = vmatpush1.bf16.msra.mxu0 %v15793_v49  ;;  %v15868_v49 = vld [vmem:[#allocation13 + $0x5e8] ss:$16 sps:$4 sm:$0xff]  }
 0x70f   : > { %4172 = vmatpush1.bf16.msra.mxu1 %v15796_v30  ;;  %4044 = vmatprep.subr.bf16.mxu0 %v15801_v50  ;;  %v2717_v30 = vsel %vm17876_vm14, %v17847_v54, 0  ;;  %v15873_v50 = vld [vmem:[#allocation18] ss:$16 sps:$4 sm:$0xff]   ;;  %v15893_v54 = vld [vmem:[#allocation18 + $0x64] ss:$16 sps:$4 sm:$0xff]  }
 0x710   : > { %4173 = vmatprep.subr.bf16.mxu1 %v15804_v51  ;;  %v15875_v51 = vld [vmem:[#allocation18 + $0x4] ss:$16 sps:$4 sm:$0xff]  }
 0x712   : > { %4045 = vmatpush1.bf16.msra.mxu0 %v15799_v52  ;;  %v15881_v52 = vld [vmem:[#allocation18 + $0x24] ss:$16 sps:$4 sm:$0xff]  }
 0x713   : > { %4174 = vmatpush1.bf16.msra.mxu1 %v15802_v31  ;;  %4046 = vmatprep.subr.bf16.mxu0 %v15807_v53  ;;  %v15879_v31 = vld [vmem:[#allocation18 + $0x20] ss:$16 sps:$4 sm:$0xff]   ;;  %v15887_v53 = vld [vmem:[#allocation18 + $0x44] ss:$16 sps:$4 sm:$0xff]  }
 0x714   : > { %4175 = vmatprep.subr.bf16.mxu1 %v15810_v35  ;;  %v15885_v35 = vld [vmem:[#allocation18 + $0x40] ss:$16 sps:$4 sm:$0xff]  }
 0x716   : > { %4047 = vmatpush1.bf16.msra.mxu0 %v15805_v28  ;;  %v15891_v28 = vld [vmem:[#allocation18 + $0x60] ss:$16 sps:$4 sm:$0xff]  }
 0x717   : > { %4176 = vmatpush1.bf16.msra.mxu1 %v15808_v41  ;;  %4048 = vmatprep.subr.bf16.mxu0 %v15813_v11  ;;  %v15899_v41 = vld [vmem:[#allocation18 + $0x84] ss:$16 sps:$4 sm:$0xff]  }
 0x718   : > { %4177 = vmatprep.subr.bf16.mxu1 %v15816_v55  ;;  %v15905_v11 = vld [vmem:[#allocation18 + $0xa4] ss:$16 sps:$4 sm:$0xff]   ;;  %v15903_v55 = vld [vmem:[#allocation18 + $0xa0] ss:$16 sps:$4 sm:$0xff]  }
 0x71a   : > { %4049 = vmatpush1.bf16.msra.mxu0 %v15811_v57  ;;  %v15911_v57 = vld [vmem:[#allocation18 + $0xc4] ss:$16 sps:$4 sm:$0xff]  }
 0x71b   : > { %4178 = vmatpush1.bf16.msra.mxu1 %v15814_v58  ;;  %4050 = vmatprep.subr.bf16.mxu0 %v15819_v59  ;;  %v15909_v58 = vld [vmem:[#allocation18 + $0xc0] ss:$16 sps:$4 sm:$0xff]   ;;  %v15917_v59 = vld [vmem:[#allocation18 + $0xe4] ss:$16 sps:$4 sm:$0xff]  }
 0x71c   : > { %4179 = vmatprep.subr.bf16.mxu1 %v15822_v61  ;;  %v15915_v61 = vld [vmem:[#allocation18 + $0xe0] ss:$16 sps:$4 sm:$0xff]  }
 0x71e   : > { %4051 = vmatpush1.bf16.msra.mxu0 %v15817_v62  ;;  %v15923_v62 = vld [vmem:[#allocation18 + $0x104] ss:$16 sps:$4 sm:$0xff]  }
 0x71f   : > { %4180 = vmatpush1.bf16.msra.mxu1 %v15820_v63  ;;  %4052 = vmatprep.subr.bf16.mxu0 %v15825_v15  ;;  %v15921_v63 = vld [vmem:[#allocation18 + $0x100] ss:$16 sps:$4 sm:$0xff]   ;;  %v15929_v15 = vld [vmem:[#allocation18 + $0x124] ss:$16 sps:$4 sm:$0xff]  }
 0x720   : > { %4181 = vmatprep.subr.bf16.mxu1 %v15828_v60  ;;  %v15927_v60 = vld [vmem:[#allocation18 + $0x120] ss:$16 sps:$4 sm:$0xff]  }
 0x722   : > { %4053 = vmatpush1.bf16.msra.mxu0 %v15823_v1  ;;  %v15935_v1 = vld [vmem:[#allocation18 + $0x144] ss:$16 sps:$4 sm:$0xff]  }
 0x723   : > { %4182 = vmatpush1.bf16.msra.mxu1 %v15826_v7  ;;  %4054 = vmatprep.subr.bf16.mxu0 %v15831_v25  ;;  %v15933_v7 = vld [vmem:[#allocation18 + $0x140] ss:$16 sps:$4 sm:$0xff]   ;;  %v15941_v25 = vld [vmem:[#allocation18 + $0x164] ss:$16 sps:$4 sm:$0xff]  }
 0x724   : > { %4183 = vmatprep.subr.bf16.mxu1 %v15834_v9  ;;  %v15939_v9 = vld [vmem:[#allocation18 + $0x160] ss:$16 sps:$4 sm:$0xff]  }
 0x726   : > { %4055 = vmatpush1.bf16.msra.mxu0 %v15829_v10  ;;  %v15947_v10 = vld [vmem:[#allocation18 + $0x184] ss:$16 sps:$4 sm:$0xff]  }
 0x727   : > { %4184 = vmatpush1.bf16.msra.mxu1 %v15832_v17  ;;  %4056 = vmatprep.subr.bf16.mxu0 %v15837_v12  ;;  %v15945_v17 = vld [vmem:[#allocation18 + $0x180] ss:$16 sps:$4 sm:$0xff]   ;;  %v2968_v12 = vld [vmem:[#allocation15] sm:$0xf] }
 0x728   : > { %4185 = vmatprep.subr.bf16.mxu1 %v15840_v42  ;;  %v2973_v42 = vrot.slane %v2968_v12, %v17719_v5 }
 0x72a   : > { %4057 = vmatpush1.bf16.msra.mxu0 %v15835_v13 }
 0x72b   : > { %4186 = vmatpush1.bf16.msra.mxu1 %v15838_v39  ;;  %4058 = vmatprep.subr.bf16.mxu0 %v15843_v14  ;;  %v2981_v39 = vrot.slane %v2968_v12, %v17713_v3  ;;  %v2977_v14 = vrot.slane %v2968_v12, %v17722_v6 }
 0x72c   : > { %4187 = vmatprep.subr.bf16.mxu1 %v15846_v2 }
 0x72e   : > { %4059 = vmatpush1.bf16.msra.mxu0 %v15841_v16 }
 0x72f   : > { %4188 = vmatpush1.bf16.msra.mxu1 %v15844_v18  ;;  %4060 = vmatprep.subr.bf16.mxu0 %v15849_v19  ;;  %v2985_v18 = vrot.slane %v2968_v12, %v17716_v4  ;;  %v15950_v12 = vld [vmem:[#allocation18 + $0x18c] ss:$16 sps:$4 sm:$0xff]  }
 0x730   : > { %4189 = vmatprep.subr.bf16.mxu1 %v15852_v20 }
 0x732   : > { %4061 = vmatpush1.bf16.msra.mxu0 %v15847_v21 }
 0x733   : > { %4190 = vmatpush1.bf16.msra.mxu1 %v15850_v24  ;;  %4062 = vmatprep.subr.bf16.mxu0 %v15855_v37 }
 0x734   : > { %4191 = vmatprep.subr.bf16.mxu1 %v15858_v8 }
 0x736   : > { %4063 = vmatpush1.bf16.msra.mxu0 %v15853_v38 }
 0x737   : > { %4192 = vmatpush1.bf16.msra.mxu1 %v15856_v43  ;;  %4064 = vmatprep.subr.bf16.mxu0 %v15861_v44 }
 0x738   : > { %4193 = vmatprep.subr.bf16.mxu1 %v15864_v45 }
 0x73a   : > { %4065 = vmatpush1.bf16.msra.mxu0 %v15859_v47 }
 0x73b   : > { %4194 = vmatpush1.bf16.msra.mxu1 %v15862_v46  ;;  %4066 = vmatprep.subr.bf16.mxu0 %v15867_v29 }
 0x73c   : > { %4195 = vmatprep.subr.bf16.mxu1 %v15870_v56 }
 0x73e   : > { %4067 = vmatpush1.bf16.msra.mxu0 %v15865_v48 }
 0x73f   : > { %4196 = vmatpush1.bf16.msra.mxu1 %v15868_v49 }
 0x740   : > { %5630 = vmatprep.subr.bf16.mxu1 %v15875_v51  ;;  %v15871_v51 = vld [vmem:[#allocation16] sm:$0xff]  }
 0x741   : > { %13481 = vmatmul.mubr.msk.bf16.vlgmr.msra.gmra.mrb[12].mxu0 %vm17880_vm15, %v2717_v30 }
 0x742   : > { %13489 = vmatmul.mubr.msk.bf16.vlgmr.msra.gmra.mrb[20].mxu1 %vm17880_vm15, %v2717_v30  ;;  %4265 = vmatprep.mubr.bf16.mxu0 %v19554_v0 }
 0x743   : > { %5631 = vmatpush1.bf16.msra.mxu1 %v15873_v50  ;;  %v15878_v50 = vld [vmem:[#allocation18 + $0xc] ss:$16 sps:$4 sm:$0xff]  }
 0x744   : > { %5632 = vmatprep.subr.bf16.mxu1 %v15881_v52  ;;  %v15876_v52 = vld [vmem:[#allocation18 + $0x8] ss:$16 sps:$4 sm:$0xff]  }
 0x747   : > { %5633 = vmatpush1.bf16.msra.mxu1 %v15879_v31  ;;  %v15884_v31 = vld [vmem:[#allocation18 + $0x2c] ss:$16 sps:$4 sm:$0xff]  }
 0x748   : > { %5634 = vmatprep.subr.bf16.mxu1 %v15887_v53  ;;  %v15882_v53 = vld [vmem:[#allocation18 + $0x28] ss:$16 sps:$4 sm:$0xff]  }
 0x74b   : > { %5635 = vmatpush1.bf16.msra.mxu1 %v15885_v35  ;;  %v15890_v35 = vld [vmem:[#allocation18 + $0x4c] ss:$16 sps:$4 sm:$0xff]  }
 0x74c   : > { %5636 = vmatprep.subr.bf16.mxu1 %v15893_v54  ;;  %v15872_v54 = vld [vmem:[#allocation16 + $0x8] sm:$0xff]  }
 0x74f   : > { %5637 = vmatpush1.bf16.msra.mxu1 %v15891_v28  ;;  %v15888_v28 = vld [vmem:[#allocation18 + $0x48] ss:$16 sps:$4 sm:$0xff]  }
 0x750   : > { %5638 = vmatprep.subr.bf16.mxu1 %v15899_v41  ;;  %v15896_v41 = vld [vmem:[#allocation18 + $0x6c] ss:$16 sps:$4 sm:$0xff]  }
 0x753   : > { %5639 = vmatpush1.bf16.msra.mxu1 %v15897_v26  ;;  %v15894_v26 = vld [vmem:[#allocation18 + $0x68] ss:$16 sps:$4 sm:$0xff]  }
 0x754   : > { %5640 = vmatprep.subr.bf16.mxu1 %v15905_v11  ;;  %v15902_v11 = vld [vmem:[#allocation18 + $0x8c] ss:$16 sps:$4 sm:$0xff]  }
 0x757   : > { %5641 = vmatpush1.bf16.msra.mxu1 %v15903_v55  ;;  %v15900_v55 = vld [vmem:[#allocation18 + $0x88] ss:$16 sps:$4 sm:$0xff]  }
 0x758   : > { %5642 = vmatprep.subr.bf16.mxu1 %v15911_v57  ;;  %v15908_v57 = vld [vmem:[#allocation18 + $0xac] ss:$16 sps:$4 sm:$0xff]  }
 0x75b   : > { %5643 = vmatpush1.bf16.msra.mxu1 %v15909_v58  ;;  %v15906_v58 = vld [vmem:[#allocation18 + $0xa8] ss:$16 sps:$4 sm:$0xff]  }
 0x75c   : > { %5644 = vmatprep.subr.bf16.mxu1 %v15917_v59  ;;  %v15914_v59 = vld [vmem:[#allocation18 + $0xcc] ss:$16 sps:$4 sm:$0xff]  }
 0x75f   : > { %5645 = vmatpush1.bf16.msra.mxu1 %v15915_v61  ;;  %v15912_v61 = vld [vmem:[#allocation18 + $0xc8] ss:$16 sps:$4 sm:$0xff]  }
 0x760   : > { %5646 = vmatprep.subr.bf16.mxu1 %v15923_v62  ;;  %v15920_v62 = vld [vmem:[#allocation18 + $0xec] ss:$16 sps:$4 sm:$0xff]  }
 0x763   : > { %5647 = vmatpush1.bf16.msra.mxu1 %v15921_v63  ;;  %v15918_v63 = vld [vmem:[#allocation18 + $0xe8] ss:$16 sps:$4 sm:$0xff]  }
 0x764   : > { %5648 = vmatprep.subr.bf16.mxu1 %v15929_v15  ;;  %v15926_v15 = vld [vmem:[#allocation18 + $0x10c] ss:$16 sps:$4 sm:$0xff]  }
 0x767   : > { %5649 = vmatpush1.bf16.msra.mxu1 %v15927_v60  ;;  %v15924_v60 = vld [vmem:[#allocation18 + $0x108] ss:$16 sps:$4 sm:$0xff]  }
 0x768   : > { %5650 = vmatprep.subr.bf16.mxu1 %v15935_v1  ;;  %v15932_v1 = vld [vmem:[#allocation18 + $0x12c] ss:$16 sps:$4 sm:$0xff]  }
 0x76b   : > { %5651 = vmatpush1.bf16.msra.mxu1 %v15933_v7  ;;  %v15930_v7 = vld [vmem:[#allocation18 + $0x128] ss:$16 sps:$4 sm:$0xff]  }
 0x76c   : > { %5652 = vmatprep.subr.bf16.mxu1 %v15941_v25  ;;  %v15938_v25 = vld [vmem:[#allocation18 + $0x14c] ss:$16 sps:$4 sm:$0xff]  }
 0x76f   : > { %5653 = vmatpush1.bf16.msra.mxu1 %v15939_v9  ;;  %v15936_v9 = vld [vmem:[#allocation18 + $0x148] ss:$16 sps:$4 sm:$0xff]  }
 0x770   : > { %5654 = vmatprep.subr.bf16.mxu1 %v15947_v10  ;;  %v15944_v10 = vld [vmem:[#allocation18 + $0x16c] ss:$16 sps:$4 sm:$0xff]  }
 0x773   : > { %5655 = vmatpush1.bf16.msra.mxu1 %v15945_v17  ;;  %v15942_v17 = vld [vmem:[#allocation18 + $0x168] ss:$16 sps:$4 sm:$0xff]  }
 0x814   : > { %v4070_v13 = vpop.f32.mrb[12].mxu0 }
 0x815   : > { %v4199_v2 = vpop.f32.mrb[20].mxu1  ;;  %v4072_v16 = vpop.f32.mrb[13].mxu0  ;;  %v14635_v21 = vadd.f32 %v4070_v13, %v2973_v42  ;;  %v15953_v13 = vld [vmem:[#allocation18 + $0x1a4] ss:$16 sps:$4 sm:$0xff]  }
 0x816   : > { %v4201_v19 = vpop.f32.mrb[21].mxu1  ;;  %v4074_v20 = vpop.f32.mrb[14].mxu0  ;;  %v14639_v38 = vadd.f32 %v4199_v2, %v2981_v39  ;;  %v14636_v43 = vadd.f32 %v4072_v16, %v2977_v14  ;;  %v15954_v2 = vld [vmem:[#allocation18 + $0x1a8] ss:$16 sps:$4 sm:$0xff]   ;;  %5656 = vmatprep.subr.bf16.mxu1 %v15953_v13  ;;  %v15959_v16 = vld [vmem:[#allocation18 + $0x1c4] ss:$16 sps:$4 sm:$0xff]  }
 0x817   : > { %v14637_v24 = vadd.f32 %v4074_v20, %v2973_v42  ;;  %v4203_v37 = vpop.f32.mrb[22].mxu1  ;;  %v4076_v8 = vpop.f32.mrb[15].mxu0  ;;  %v14640_v46 = vadd.f32 %v4201_v19, %v2985_v18  ;;  %v15948_v42 = vld [vmem:[#allocation18 + $0x188] ss:$16 sps:$4 sm:$0xff]   ;;  %v15957_v19 = vld [vmem:[#allocation18 + $0x1c0] ss:$16 sps:$4 sm:$0xff]  }
 0x818   : > { %v14641_v44 = vadd.f32 %v4203_v37, %v2981_v39  ;;  %v14638_v45 = vadd.f32 %v4076_v8, %v2977_v14  ;;  %v4205_v47 = vpop.f32.mrb[23].mxu1  ;;  %v15956_v39 = vld [vmem:[#allocation18 + $0x1ac] ss:$16 sps:$4 sm:$0xff]   ;;  %v15951_v14 = vld [vmem:[#allocation18 + $0x1a0] ss:$16 sps:$4 sm:$0xff]  }
 0x819   : > { %v4208_v29 = vpack.c.bf16 %v14637_v24, %v14635_v21  ;;  %v14642_v56 = vadd.f32 %v4205_v47, %v2985_v18  ;;  %5657 = vmatpush1.bf16.msra.mxu1 %v15951_v14  ;;  %v15962_v18 = vld [vmem:[#allocation18 + $0x1cc] ss:$16 sps:$4 sm:$0xff]   ;;  %v15960_v20 = vld [vmem:[#allocation18 + $0x1c8] ss:$16 sps:$4 sm:$0xff]   ;;  %v15965_v21 = vld [vmem:[#allocation18 + $0x1e4] ss:$16 sps:$4 sm:$0xff]  }
 0x81a   : > { %v4210_v48 = vpack.c.bf16 %v14641_v44, %v14639_v38  ;;  %v4209_v49 = vpack.c.bf16 %v14638_v45, %v14636_v43  ;;  %5658 = vmatprep.subr.bf16.mxu1 %v15959_v16  ;;  %v15968_v24 = vld [vmem:[#allocation18 + $0x1ec] ss:$16 sps:$4 sm:$0xff]   ;;  %v15963_v37 = vld [vmem:[#allocation18 + $0x1e0] ss:$16 sps:$4 sm:$0xff]   ;;  %v15966_v8 = vld [vmem:[#allocation18 + $0x1e8] ss:$16 sps:$4 sm:$0xff]  }
 0x81b   : > { %v4211_v30 = vpack.c.bf16 %v14642_v56, %v14640_v46  ;;  %v15971_v38 = vld [vmem:[#allocation18 + $0x204] ss:$16 sps:$4 sm:$0xff]   ;;  %v15974_v43 = vld [vmem:[#allocation18 + $0x20c] ss:$16 sps:$4 sm:$0xff]   ;;  %v4348_v44 = vand.u32 15, %v17690_v27  ;;  %v4342_v45 = vadd.s32 16, %v17690_v27 }
 0x81c   : > { %4233 = vmatprep.subr.bf16.mxu0 %v4209_v49  ;;  %v15980_v13 = vld [vmem:[#allocation18 + $0x22c] ss:$16 sps:$4 sm:$0xff]  }
 0x81d   : > { %4234 = vmatpush1.bf16.msra.mxu0 %v4208_v29  ;;  %5659 = vmatpush1.bf16.msra.mxu1 %v15957_v19  ;;  %vm4392_vm1 = vcmp.eq.s32.totalorder %v4348_v44, 0  ;;  %v4362_v29 = vand.u32 15, %v4342_v45 }
 0x81e   : > { %4235 = vmatprep.subr.bf16.mxu0 %v4211_v30  ;;  %5660 = vmatprep.subr.bf16.mxu1 %v15965_v21  ;;  %vm4404_vm2 = vmpackc.low %vm4392_vm1, %vm4392_vm1  ;;  %v15975_v21 = vld [vmem:[#allocation18 + $0x220] ss:$16 sps:$4 sm:$0xff]  }
 0x81f   : > { %v4408_v30 = vsel %vm4404_vm2, 65537, %v19554_v0  ;;  %vm17918_vm5 = vcmp.eq.s32.totalorder %v4362_v29, 0 }
 0x820   : > { %vm4406_vm6 = vmpackc.low %vm17918_vm5, %vm17918_vm5 }
 0x821   : > { %4236 = vmatpush1.bf16.msra.mxu0 %v4210_v48  ;;  %5661 = vmatpush1.bf16.msra.mxu1 %v15963_v37 }
 0x822   : > { %5789 = vmatprep.subr.bf16.mxu0 %v15878_v50  ;;  %5683 = vmatprep.subr.bf16.mxu1 %v15971_v38  ;;  %v17912_v50 = vsel %vm4405_vm4, 65537, %v19554_v0  ;;  %v15983_v38 = vld [vmem:[#allocation18 + $0x244] ss:$16 sps:$4 sm:$0xff]  }
 0x823   : > { %19694 = vst [vmem:[#allocation47_spill] sm:$0xff] %v17912_v50 }
 0x824   : > { %13492 = vmatmul.mubr.msk.bf16.vlgmr.msra.gmra.mrb[16].mxu0 %vm4226_vm0, %v15871_v51 }
 0x825   : > { %4275 = vmatprep.mubr.bf16.mxu0 %v19554_v0  ;;  %5790 = vmatpush1.bf16.msra.mxu0 %v15876_v52 }
 0x826   : > { %5791 = vmatprep.subr.bf16.mxu0 %v15884_v31 }
 0x829   : > { %5792 = vmatpush1.bf16.msra.mxu0 %v15882_v53 }
 0x82a   : > { %5793 = vmatprep.subr.bf16.mxu0 %v15890_v35 }
 0x82c   : > { %13493 = vmatmul.mubr.msk.bf16.gmra.mrb[20].mxu0 %vm4226_vm0, %v15872_v54 }
 0x82d   : > { %5794 = vmatpush1.bf16.msra.mxu0 %v15888_v28  ;;  %v13494_v28 = vcombine.low %v4408_v30, %v17912_v50 }
 0x82e   : > { %5795 = vmatprep.subr.bf16.mxu0 %v15896_v41 }
 0x82f   : > { %vm17928_vm7 = vcmp.eq.s16.totalorder %v13494_v28, 0  ;;  %v15992_v28 = vld [vmem:[#allocation18 + $0x26c] ss:$16 sps:$4 sm:$0xff]  }
 0x831   : > { %5796 = vmatpush1.bf16.msra.mxu0 %v15894_v26 }
 0x832   : > { %5797 = vmatprep.subr.bf16.mxu0 %v15902_v11 }
 0x835   : > { %5798 = vmatpush1.bf16.msra.mxu0 %v15900_v55 }
 0x836   : > { %5799 = vmatprep.subr.bf16.mxu0 %v15908_v57 }
 0x839   : > { %5800 = vmatpush1.bf16.msra.mxu0 %v15906_v58 }
 0x83a   : > { %5801 = vmatprep.subr.bf16.mxu0 %v15914_v59 }
 0x83d   : > { %5802 = vmatpush1.bf16.msra.mxu0 %v15912_v61 }
 0x83e   : > { %5803 = vmatprep.subr.bf16.mxu0 %v15920_v62 }
 0x841   : > { %5804 = vmatpush1.bf16.msra.mxu0 %v15918_v63 }
 0x842   : > { %5805 = vmatprep.subr.bf16.mxu0 %v15926_v15  ;;  %v16007_v15 = vld [vmem:[#allocation18 + $0x2c4] ss:$16 sps:$4 sm:$0xff]  }
 0x845   : > { %5806 = vmatpush1.bf16.msra.mxu0 %v15924_v60 }
 0x846   : > { %5807 = vmatprep.subr.bf16.mxu0 %v15932_v1 }
 0x849   : > { %5808 = vmatpush1.bf16.msra.mxu0 %v15930_v7 }
 0x84a   : > { %5809 = vmatprep.subr.bf16.mxu0 %v15938_v25  ;;  %v15969_v25 = vld [vmem:[#allocation18 + $0x200] ss:$16 sps:$4 sm:$0xff]  }
 0x84d   : > { %5810 = vmatpush1.bf16.msra.mxu0 %v15936_v9  ;;  %v15972_v9 = vld [vmem:[#allocation18 + $0x208] ss:$16 sps:$4 sm:$0xff]  }
 0x84e   : > { %5811 = vmatprep.subr.bf16.mxu0 %v15944_v10  ;;  %v4410_v10 = vsel %vm4406_vm6, 65537, %v19554_v0 }
 0x84f   : > { %v13495_v19 = vcombine.low %v4410_v10, %v17912_v50  ;;  %v16011_v10 = vld [vmem:[#allocation18 + $0x2e0] ss:$16 sps:$4 sm:$0xff]  }
 0x851   : > { %5812 = vmatpush1.bf16.msra.mxu0 %v15942_v17  ;;  %vm17959_vm10 = vcmp.eq.s16.totalorder %v13495_v19, 0  ;;  %v16026_v19 = vld [vmem:[#allocation18 + $0x328] ss:$16 sps:$4 sm:$0xff]  }
 0x852   : > { %5813 = vmatprep.subr.bf16.mxu0 %v15950_v12 }
 0x855   : > { %5814 = vmatpush1.bf16.msra.mxu0 %v15948_v42  ;;  %v15977_v42 = vld [vmem:[#allocation18 + $0x224] ss:$16 sps:$4 sm:$0xff]  }
 0x856   : > { %5815 = vmatprep.subr.bf16.mxu0 %v15956_v39 }
 0x859   : > { %5816 = vmatpush1.bf16.msra.mxu0 %v15954_v2 }
 0x85a   : > { %5817 = vmatprep.subr.bf16.mxu0 %v15962_v18 }
 0x85d   : > { %5818 = vmatpush1.bf16.msra.mxu0 %v15960_v20 }
 0x85e   : > { %5819 = vmatprep.subr.bf16.mxu0 %v15968_v24  ;;  %v15978_v24 = vld [vmem:[#allocation18 + $0x228] ss:$16 sps:$4 sm:$0xff]  }
 0x861   : > { %5820 = vmatpush1.bf16.msra.mxu0 %v15966_v8 }
 0x862   : > { %5842 = vmatprep.subr.bf16.mxu0 %v15974_v43  ;;  %v15986_v43 = vld [vmem:[#allocation18 + $0x24c] ss:$16 sps:$4 sm:$0xff]  }
 0x8f7   : > { %v4267_v47 = vpop.f32.mrb[16].mxu0 }
 0x8f8   : > { %v4269_v46 = vpop.f32.mrb[17].mxu0 }
 0x8f9   : > { %v4271_v56 = vpop.f32.mrb[18].mxu0 }
 0x8fa   : > { %v17908_v48 = vpack.c.bf16 %v4271_v56, %v4267_v47  ;;  %v4273_v49 = vpop.f32.mrb[19].mxu0  ;;  %v16041_v56 = vld [vmem:[#allocation18 + $0x380] ss:$16 sps:$4 sm:$0xff]  }
 0x8fb   : > { %v17914_v51 = vpack.c.bf16 %v4273_v49, %v4269_v46 }
 0x8fc   : > { %v4291_v52 = vshrl.u32 %v17908_v48, 16  ;;  %v4294_v31 = vshll.u32 %v17908_v48, 16 }
 0x8fd   : > { %v4298_v35 = vshrl.u32 %v17914_v51, 16  ;;  %v4301_v54 = vshll.u32 %v17914_v51, 16 }
 0x8fe   : > { %v4326_v41 = vrot.slane %v4294_v31, 1  ;;  %v4293_v26 = vrot.slane %v4291_v52, 7 }
 0x8ff   : > { %v4277_v11 = vpop.f32.mrb[20].mxu0  ;;  %v4300_v55 = vrot.slane %v4298_v35, 7  ;;  %v4330_v57 = vrot.slane %v4301_v54, 1 }
 0x900   : > { %v4327_v58 = vor.u32 %v4326_v41, %v4291_v52  ;;  %v4279_v59 = vpop.f32.mrb[21].mxu0  ;;  %v4296_v61 = vor.u32 %v4294_v31, %v4293_v26  ;;  %v15981_v52 = vld [vmem:[#allocation18 + $0x240] ss:$16 sps:$4 sm:$0xff]   ;;  %v15984_v31 = vld [vmem:[#allocation18 + $0x248] ss:$16 sps:$4 sm:$0xff]  }
 0x901   : > { %v4281_v62 = vpop.f32.mrb[22].mxu0  ;;  %v4303_v63 = vor.u32 %v4301_v54, %v4300_v55  ;;  %v4331_v60 = vor.u32 %v4330_v57, %v4298_v35  ;;  %v15989_v54 = vld [vmem:[#allocation18 + $0x264] ss:$16 sps:$4 sm:$0xff]   ;;  %v15987_v41 = vld [vmem:[#allocation18 + $0x260] ss:$16 sps:$4 sm:$0xff]  }
 0x902   : > { %v17932_v1 = vpack.c.bf16 %v4281_v62, %v4277_v11  ;;  %v4283_v7 = vpop.f32.mrb[23].mxu0  ;;  %v4324_v2 = vsel %vm17754_vm9, 0, %v4296_v61  ;;  %v15990_v11 = vld [vmem:[#allocation18 + $0x268] ss:$16 sps:$4 sm:$0xff]   ;;  %v15998_v57 = vld [vmem:[#allocation18 + $0x28c] ss:$16 sps:$4 sm:$0xff]  }
 0x903   : > { %v17935_v17 = vpack.c.bf16 %v4283_v7, %v4279_v59  ;;  %v4325_v12 = vsel %vm17754_vm9, 0, %v4303_v63  ;;  %v16001_v59 = vld [vmem:[#allocation18 + $0x2a4] ss:$16 sps:$4 sm:$0xff]   ;;  %v16004_v61 = vld [vmem:[#allocation18 + $0x2ac] ss:$16 sps:$4 sm:$0xff]  }
 0x904   : > { %v4305_v39 = vshrl.u32 %v17932_v1, 16  ;;  %v4308_v14 = vshll.u32 %v17932_v1, 16  ;;  %13691 = vmatprep.mubr.msk.bf16.mxu1 %vm17928_vm7, %v4325_v12  ;;  %13707 = vmatprep.mubr.msk.bf16.mxu0 %vm17928_vm7, %v4325_v12  ;;  %v15999_v62 = vld [vmem:[#allocation18 + $0x2a0] ss:$16 sps:$4 sm:$0xff]   ;;  %v16002_v63 = vld [vmem:[#allocation18 + $0x2a8] ss:$16 sps:$4 sm:$0xff]  }
 0x905   : > { %v4313_v16 = vshrl.u32 %v17935_v17, 16  ;;  %v4316_v18 = vshll.u32 %v17935_v17, 16  ;;  %13693 = vmatmul.mubr.msk.bf16.vlgmr.msra.gmra.mrb[24].mxu1 %vm17928_vm7, %v4324_v2  ;;  %13709 = vmatmul.mubr.msk.bf16.vlgmr.msra.gmra.mrb[24].mxu0 %vm17928_vm7, %v4324_v2  ;;  %v16008_v7 = vld [vmem:[#allocation18 + $0x2c8] ss:$16 sps:$4 sm:$0xff]   ;;  %v16025_v2 = vld [vmem:[#allocation18 + $0x324] ss:$16 sps:$4 sm:$0xff]  }
 0x906   : > { %v4328_v20 = vrot.slane %v4308_v14, 1  ;;  %5684 = vmatpush1.bf16.msra.mxu1 %v15969_v25  ;;  %5843 = vmatpush1.bf16.msra.mxu0 %v15972_v9  ;;  %v4307_v37 = vrot.slane %v4305_v39, 7  ;;  %v16013_v25 = vld [vmem:[#allocation18 + $0x2e4] ss:$16 sps:$4 sm:$0xff]   ;;  %v16016_v9 = vld [vmem:[#allocation18 + $0x2ec] ss:$16 sps:$4 sm:$0xff]  }
 0x907   : > { %5685 = vmatprep.subr.bf16.mxu1 %v15977_v42  ;;  %5844 = vmatprep.subr.bf16.mxu0 %v15980_v13  ;;  %v4315_v8 = vrot.slane %v4313_v16, 7  ;;  %v4332_v44 = vrot.slane %v4316_v18, 1  ;;  %v16014_v12 = vld [vmem:[#allocation18 + $0x2e8] ss:$16 sps:$4 sm:$0xff]   ;;  %v16019_v42 = vld [vmem:[#allocation18 + $0x304] ss:$16 sps:$4 sm:$0xff]  }
 0x908   : > { %v4310_v45 = vor.u32 %v4308_v14, %v4307_v37  ;;  %v17955_v47 = vsel %vm2715_vm13, %v4327_v58, %v4328_v20  ;;  %v17957_v46 = vor.u32 %v4328_v20, %v4305_v39  ;;  %v15996_v58 = vld [vmem:[#allocation18 + $0x288] ss:$16 sps:$4 sm:$0xff]   ;;  %v16022_v13 = vld [vmem:[#allocation18 + $0x30c] ss:$16 sps:$4 sm:$0xff]   ;;  %v16017_v39 = vld [vmem:[#allocation18 + $0x300] ss:$16 sps:$4 sm:$0xff]  }
 0x909   : > { %v4318_v29 = vor.u32 %v4316_v18, %v4315_v8  ;;  %v17964_v49 = vsel %vm2715_vm13, %v4331_v60, %v4332_v44  ;;  %v17966_v30 = vor.u32 %v4332_v44, %v4313_v16  ;;  %v16005_v60 = vld [vmem:[#allocation18 + $0x2c0] ss:$16 sps:$4 sm:$0xff]   ;;  %v16020_v14 = vld [vmem:[#allocation18 + $0x308] ss:$16 sps:$4 sm:$0xff]   ;;  %v16028_v16 = vld [vmem:[#allocation18 + $0x32c] ss:$16 sps:$4 sm:$0xff]  }
 0x90a   : > { %5686 = vmatpush1.bf16.msra.mxu1 %v15975_v21  ;;  %5845 = vmatpush1.bf16.msra.mxu0 %v15978_v24  ;;  %v4311_v35 = vsel %vm1163_vm8, %v4293_v26, %v4310_v45  ;;  %v15993_v26 = vld [vmem:[#allocation18 + $0x280] ss:$16 sps:$4 sm:$0xff]   ;;  %v16031_v20 = vld [vmem:[#allocation18 + $0x344] ss:$16 sps:$4 sm:$0xff]   ;;  %v16034_v21 = vld [vmem:[#allocation18 + $0x34c] ss:$16 sps:$4 sm:$0xff]  }
 0x90b   : > { %v4319_v53 = vsel %vm1163_vm8, %v4300_v55, %v4318_v29  ;;  %5687 = vmatprep.subr.bf16.mxu1 %v15983_v38  ;;  %5846 = vmatprep.subr.bf16.mxu0 %v15986_v43  ;;  %v15995_v55 = vld [vmem:[#allocation18 + $0x284] ss:$16 sps:$4 sm:$0xff]   ;;  %v16023_v18 = vld [vmem:[#allocation18 + $0x320] ss:$16 sps:$4 sm:$0xff]   ;;  %v16032_v37 = vld [vmem:[#allocation18 + $0x348] ss:$16 sps:$4 sm:$0xff]  }
 0x90c   : > { %13695 = vmatprep.mubr.msk.bf16.mxu1 %vm17959_vm10, %v4319_v53  ;;  %13711 = vmatprep.mubr.msk.bf16.mxu0 %vm17959_vm10, %v4319_v53  ;;  %v16029_v24 = vld [vmem:[#allocation18 + $0x340] ss:$16 sps:$4 sm:$0xff]   ;;  %v16037_v8 = vld [vmem:[#allocation18 + $0x364] ss:$16 sps:$4 sm:$0xff]   ;;  %v16040_v38 = vld [vmem:[#allocation18 + $0x36c] ss:$16 sps:$4 sm:$0xff]  }
 0x90d   : > { %13697 = vmatmul.mubr.msk.bf16.gmra.mrb[28].mxu1 %vm17959_vm10, %v4311_v35  ;;  %13713 = vmatmul.mubr.msk.bf16.gmra.mrb[28].mxu0 %vm17959_vm10, %v4311_v35  ;;  %v16035_v43 = vld [vmem:[#allocation18 + $0x360] ss:$16 sps:$4 sm:$0xff]   ;;  %v16038_v44 = vld [vmem:[#allocation18 + $0x368] ss:$16 sps:$4 sm:$0xff]   ;;  %v16043_v45 = vld [vmem:[#allocation18 + $0x384] ss:$16 sps:$4 sm:$0xff]  }
 0x90e   : > { %5688 = vmatpush1.bf16.msra.mxu1 %v15981_v52  ;;  %5847 = vmatpush1.bf16.msra.mxu0 %v15984_v31  ;;  %v16046_v29 = vld [vmem:[#allocation18 + $0x38c] ss:$16 sps:$4 sm:$0xff]   ;;  %v16044_v52 = vld [vmem:[#allocation18 + $0x388] ss:$16 sps:$4 sm:$0xff]   ;;  %v16049_v31 = vld [vmem:[#allocation18 + $0x3a4] ss:$16 sps:$4 sm:$0xff]  }
 0x90f   : > { %5715 = vmatprep.mubr.bf16.mxu1 %v17914_v51  ;;  %5874 = vmatprep.mubr.bf16.mxu0 %v17914_v51  ;;  %v16010_v51 = vld [vmem:[#allocation18 + $0x2cc] ss:$16 sps:$4 sm:$0xff]   ;;  %v16047_v35 = vld [vmem:[#allocation18 + $0x3a0] ss:$16 sps:$4 sm:$0xff]  }
 0x910   : > { %5689 = vmatprep.subr.bf16.mxu1 %v15989_v54  ;;  %5848 = vmatprep.subr.bf16.mxu0 %v15992_v28  ;;  %v16052_v53 = vld [vmem:[#allocation18 + $0x3ac] ss:$16 sps:$4 sm:$0xff]   ;;  %v16050_v54 = vld [vmem:[#allocation18 + $0x3a8] ss:$16 sps:$4 sm:$0xff]   ;;  %v16055_v28 = vld [vmem:[#allocation18 + $0x3c4] ss:$16 sps:$4 sm:$0xff]  }
 0x912   : > { %5690 = vmatpush1.bf16.msra.mxu1 %v15987_v41  ;;  %5849 = vmatpush1.bf16.msra.mxu0 %v15990_v11  ;;  %v16058_v41 = vld [vmem:[#allocation18 + $0x3cc] ss:$16 sps:$4 sm:$0xff]   ;;  %v16053_v11 = vld [vmem:[#allocation18 + $0x3c0] ss:$16 sps:$4 sm:$0xff]  }
 0x913   : > { %5691 = vmatprep.subr.bf16.mxu1 %v15995_v55  ;;  %5850 = vmatprep.subr.bf16.mxu0 %v15998_v57  ;;  %v16056_v55 = vld [vmem:[#allocation18 + $0x3c8] ss:$16 sps:$4 sm:$0xff]   ;;  %v4355_v57 = vand.u32 15, %v17833_v40  ;;  %v16073_v40 = vld [vmem:[#allocation18 + $0x424] ss:$16 sps:$4 sm:$0xff]  }
 0x915   : > { %vm4425_vm11 = vcmp.eq.s32.totalorder %v4355_v57, 15  ;;  %v16127_v57 = vld [vmem:[#allocation18 + $0x544] ss:$16 sps:$4 sm:$0xff]  }
 0x916   : > { %5692 = vmatpush1.bf16.msra.mxu1 %v15993_v26  ;;  %5851 = vmatpush1.bf16.msra.mxu0 %v15996_v58  ;;  %v16061_v26 = vld [vmem:[#allocation18 + $0x3e4] ss:$16 sps:$4 sm:$0xff]   ;;  %v16064_v58 = vld [vmem:[#allocation18 + $0x3ec] ss:$16 sps:$4 sm:$0xff]   ;;  %vm4437_vm12 = vmpackc.low %vm4425_vm11, %vm4425_vm11 }
 0x917   : > { %5693 = vmatprep.subr.bf16.mxu1 %v16001_v59  ;;  %5852 = vmatprep.subr.bf16.mxu0 %v16004_v61  ;;  %v16059_v59 = vld [vmem:[#allocation18 + $0x3e0] ss:$16 sps:$4 sm:$0xff]   ;;  %v16062_v61 = vld [vmem:[#allocation18 + $0x3e8] ss:$16 sps:$4 sm:$0xff]  }
 0x91a   : > { %5694 = vmatpush1.bf16.msra.mxu1 %v15999_v62  ;;  %5853 = vmatpush1.bf16.msra.mxu0 %v16002_v63  ;;  %v16067_v62 = vld [vmem:[#allocation18 + $0x404] ss:$16 sps:$4 sm:$0xff]   ;;  %v16070_v63 = vld [vmem:[#allocation18 + $0x40c] ss:$16 sps:$4 sm:$0xff]  }
 0x91b   : > { %5695 = vmatprep.subr.bf16.mxu1 %v16007_v15  ;;  %5854 = vmatprep.subr.bf16.mxu0 %v16010_v51  ;;  %v16065_v15 = vld [vmem:[#allocation18 + $0x400] ss:$16 sps:$4 sm:$0xff]   ;;  %v16068_v51 = vld [vmem:[#allocation18 + $0x408] ss:$16 sps:$4 sm:$0xff]  }
 0x91e   : > { %5696 = vmatpush1.bf16.msra.mxu1 %v16005_v60  ;;  %5855 = vmatpush1.bf16.msra.mxu0 %v16008_v7  ;;  %v16076_v60 = vld [vmem:[#allocation18 + $0x42c] ss:$16 sps:$4 sm:$0xff]   ;;  %v4441_v7 = vsel %vm4437_vm12, 65537, %v19554_v0 }
 0x91f   : > { %5697 = vmatprep.subr.bf16.mxu1 %v16013_v25  ;;  %5856 = vmatprep.subr.bf16.mxu0 %v16016_v9  ;;  %v16071_v25 = vld [vmem:[#allocation18 + $0x420] ss:$16 sps:$4 sm:$0xff]   ;;  %v16074_v9 = vld [vmem:[#allocation18 + $0x428] ss:$16 sps:$4 sm:$0xff]  }
 0x922   : > { %5698 = vmatpush1.bf16.msra.mxu1 %v16011_v10  ;;  %5857 = vmatpush1.bf16.msra.mxu0 %v16014_v12  ;;  %v16079_v10 = vld [vmem:[#allocation18 + $0x444] ss:$16 sps:$4 sm:$0xff]   ;;  %v13496_v12 = vcombine.low %v17912_v50, %v4441_v7  ;;  %v16137_v7 = vld [vmem:[#allocation18 + $0x580] ss:$16 sps:$4 sm:$0xff]  }
 0x923   : > { %5699 = vmatprep.subr.bf16.mxu1 %v16019_v42  ;;  %5858 = vmatprep.subr.bf16.mxu0 %v16022_v13  ;;  %v16082_v42 = vld [vmem:[#allocation18 + $0x44c] ss:$16 sps:$4 sm:$0xff]   ;;  %v16077_v13 = vld [vmem:[#allocation18 + $0x440] ss:$16 sps:$4 sm:$0xff]  }
 0x924   : > { %vm17987_vm15 = vcmp.eq.s16.totalorder %v13496_v12, 0  ;;  %v16148_v12 = vld [vmem:[#allocation18 + $0x5ac] ss:$16 sps:$4 sm:$0xff]  }
 0x926   : > { %5700 = vmatpush1.bf16.msra.mxu1 %v16017_v39  ;;  %5859 = vmatpush1.bf16.msra.mxu0 %v16020_v14  ;;  %v16080_v39 = vld [vmem:[#allocation18 + $0x448] ss:$16 sps:$4 sm:$0xff]   ;;  %v16085_v14 = vld [vmem:[#allocation18 + $0x464] ss:$16 sps:$4 sm:$0xff]  }
 0x927   : > { %5701 = vmatprep.subr.bf16.mxu1 %v16025_v2  ;;  %5860 = vmatprep.subr.bf16.mxu0 %v16028_v16  ;;  %v16083_v2 = vld [vmem:[#allocation18 + $0x460] ss:$16 sps:$4 sm:$0xff]   ;;  %v16086_v16 = vld [vmem:[#allocation18 + $0x468] ss:$16 sps:$4 sm:$0xff]  }
 0x92a   : > { %5702 = vmatpush1.bf16.msra.mxu1 %v16023_v18  ;;  %5861 = vmatpush1.bf16.msra.mxu0 %v16026_v19  ;;  %v16091_v18 = vld [vmem:[#allocation18 + $0x484] ss:$16 sps:$4 sm:$0xff]   ;;  %v16094_v19 = vld [vmem:[#allocation18 + $0x48c] ss:$16 sps:$4 sm:$0xff]  }
 0x92b   : > { %5703 = vmatprep.subr.bf16.mxu1 %v16031_v20  ;;  %5862 = vmatprep.subr.bf16.mxu0 %v16034_v21  ;;  %v16089_v20 = vld [vmem:[#allocation18 + $0x480] ss:$16 sps:$4 sm:$0xff]   ;;  %v16097_v21 = vld [vmem:[#allocation18 + $0x4a4] ss:$16 sps:$4 sm:$0xff]  }
 0x92e   : > { %5704 = vmatpush1.bf16.msra.mxu1 %v16029_v24  ;;  %5863 = vmatpush1.bf16.msra.mxu0 %v16032_v37  ;;  %v16100_v24 = vld [vmem:[#allocation18 + $0x4ac] ss:$16 sps:$4 sm:$0xff]   ;;  %v16095_v37 = vld [vmem:[#allocation18 + $0x4a0] ss:$16 sps:$4 sm:$0xff]  }
 0x92f   : > { %5705 = vmatprep.subr.bf16.mxu1 %v16037_v8  ;;  %5864 = vmatprep.subr.bf16.mxu0 %v16040_v38  ;;  %v16098_v8 = vld [vmem:[#allocation18 + $0x4a8] ss:$16 sps:$4 sm:$0xff]   ;;  %v16103_v38 = vld [vmem:[#allocation18 + $0x4c4] ss:$16 sps:$4 sm:$0xff]  }
 0x932   : > { %5706 = vmatpush1.bf16.msra.mxu1 %v16035_v43  ;;  %5865 = vmatpush1.bf16.msra.mxu0 %v16038_v44  ;;  %v16101_v43 = vld [vmem:[#allocation18 + $0x4c0] ss:$16 sps:$4 sm:$0xff]   ;;  %v16104_v44 = vld [vmem:[#allocation18 + $0x4c8] ss:$16 sps:$4 sm:$0xff]  }
 0x933   : > { %5707 = vmatprep.subr.bf16.mxu1 %v16043_v45  ;;  %5866 = vmatprep.subr.bf16.mxu0 %v16046_v29  ;;  %v16109_v45 = vld [vmem:[#allocation18 + $0x4e4] ss:$16 sps:$4 sm:$0xff]   ;;  %v16112_v29 = vld [vmem:[#allocation18 + $0x4ec] ss:$16 sps:$4 sm:$0xff]  }
 0x936   : > { %5708 = vmatpush1.bf16.msra.mxu1 %v16041_v56  ;;  %5867 = vmatpush1.bf16.msra.mxu0 %v16044_v52  ;;  %v16107_v56 = vld [vmem:[#allocation18 + $0x4e0] ss:$16 sps:$4 sm:$0xff]   ;;  %v16110_v52 = vld [vmem:[#allocation18 + $0x4e8] ss:$16 sps:$4 sm:$0xff]  }
 0x937   : > { %5709 = vmatprep.subr.bf16.mxu1 %v16049_v31  ;;  %5868 = vmatprep.subr.bf16.mxu0 %v16052_v53  ;;  %v16115_v31 = vld [vmem:[#allocation18 + $0x504] ss:$16 sps:$4 sm:$0xff]   ;;  %v16118_v53 = vld [vmem:[#allocation18 + $0x50c] ss:$16 sps:$4 sm:$0xff]  }
 0x93a   : > { %5710 = vmatpush1.bf16.msra.mxu1 %v16047_v35  ;;  %5869 = vmatpush1.bf16.msra.mxu0 %v16050_v54  ;;  %v16113_v35 = vld [vmem:[#allocation18 + $0x500] ss:$16 sps:$4 sm:$0xff]   ;;  %v16116_v54 = vld [vmem:[#allocation18 + $0x508] ss:$16 sps:$4 sm:$0xff]  }
 0x93b   : > { %5711 = vmatprep.subr.bf16.mxu1 %v16055_v28  ;;  %5870 = vmatprep.subr.bf16.mxu0 %v16058_v41  ;;  %v16121_v28 = vld [vmem:[#allocation18 + $0x524] ss:$16 sps:$4 sm:$0xff]   ;;  %v16124_v41 = vld [vmem:[#allocation18 + $0x52c] ss:$16 sps:$4 sm:$0xff]  }
 0x93e   : > { %5712 = vmatpush1.bf16.msra.mxu1 %v16053_v11  ;;  %5871 = vmatpush1.bf16.msra.mxu0 %v16056_v55  ;;  %v16119_v11 = vld [vmem:[#allocation18 + $0x520] ss:$16 sps:$4 sm:$0xff]   ;;  %v16122_v55 = vld [vmem:[#allocation18 + $0x528] ss:$16 sps:$4 sm:$0xff]  }
 0x93f   : > { %5713 = vmatprep.subr.bf16.mxu1 %v16061_v26  ;;  %5872 = vmatprep.subr.bf16.mxu0 %v16064_v58  ;;  %v16130_v26 = vld [vmem:[#allocation18 + $0x54c] ss:$16 sps:$4 sm:$0xff]   ;;  %v16125_v58 = vld [vmem:[#allocation18 + $0x540] ss:$16 sps:$4 sm:$0xff]  }
 0x942   : > { %5714 = vmatpush1.bf16.msra.mxu1 %v16059_v59  ;;  %5873 = vmatpush1.bf16.msra.mxu0 %v16062_v61  ;;  %v16128_v59 = vld [vmem:[#allocation18 + $0x548] ss:$16 sps:$4 sm:$0xff]   ;;  %v16133_v61 = vld [vmem:[#allocation18 + $0x564] ss:$16 sps:$4 sm:$0xff]  }
 0x943   : > { %5736 = vmatprep.subr.bf16.mxu1 %v16067_v62  ;;  %5895 = vmatprep.subr.bf16.mxu0 %v16070_v63  ;;  %v16136_v62 = vld [vmem:[#allocation18 + $0x56c] ss:$16 sps:$4 sm:$0xff]   ;;  %v16131_v63 = vld [vmem:[#allocation18 + $0x560] ss:$16 sps:$4 sm:$0xff]  }
 0x945   : > { %5716 = vmatmul.mubr.bf16.vlgmr.msra.gmra.mrb[24].mxu1 %v17908_v48  ;;  %5875 = vmatmul.mubr.bf16.vlgmr.msra.gmra.mrb[24].mxu0 %v17908_v48 }
 0x946   : > { %5725 = vmatprep.mubr.bf16.mxu1 %v17935_v17  ;;  %5737 = vmatpush1.bf16.msra.mxu1 %v16065_v15  ;;  %v18000_v15 = vadd.s32 24, %v17690_v27 }
 0x947   : > { %5884 = vmatprep.mubr.bf16.mxu0 %v17935_v17  ;;  %5896 = vmatpush1.bf16.msra.mxu0 %v16068_v51  ;;  %v16088_v17 = vld [vmem:[#allocation18 + $0x46c] ss:$16 sps:$4 sm:$0xff]   ;;  %v16134_v51 = vld [vmem:[#allocation18 + $0x568] ss:$16 sps:$4 sm:$0xff]  }
 0x948   : > { %5738 = vmatprep.subr.bf16.mxu1 %v16073_v40  ;;  %5897 = vmatprep.subr.bf16.mxu0 %v16076_v60  ;;  %v16139_v40 = vld [vmem:[#allocation18 + $0x584] ss:$16 sps:$4 sm:$0xff]   ;;  %v16142_v60 = vld [vmem:[#allocation18 + $0x58c] ss:$16 sps:$4 sm:$0xff]  }
 0x94a   : > { %5739 = vmatpush1.bf16.msra.mxu1 %v16071_v25  ;;  %v4369_v25 = vand.u32 15, %v18000_v15 }
 0x94b   : > { %5898 = vmatpush1.bf16.msra.mxu0 %v16074_v9  ;;  %5740 = vmatprep.subr.bf16.mxu1 %v16079_v10  ;;  %v16140_v9 = vld [vmem:[#allocation18 + $0x588] ss:$16 sps:$4 sm:$0xff]   ;;  %v16145_v10 = vld [vmem:[#allocation18 + $0x5a4] ss:$16 sps:$4 sm:$0xff]  }
 0x94c   : > { %5899 = vmatprep.subr.bf16.mxu0 %v16082_v42  ;;  %v16143_v42 = vld [vmem:[#allocation18 + $0x5a0] ss:$16 sps:$4 sm:$0xff]   ;;  %vm18003_vm0 = vcmp.eq.s32.totalorder %v4369_v25, 15  ;;  %v6474_v25 = vld [vmem:[#allocation22 + $0x200] sm:$0xff] }
 0x94d   : > { %5726 = vmatmul.mubr.bf16.gmra.mrb[28].mxu1 %v17932_v1  ;;  %5885 = vmatmul.mubr.bf16.gmra.mrb[28].mxu0 %v17932_v1  ;;  %v16092_v1 = vld [vmem:[#allocation18 + $0x488] ss:$16 sps:$4 sm:$0xff]   ;;  %vm4439_vm1 = vmpackc.low %vm18003_vm0, %vm18003_vm0 }
 0x94e   : > { %5741 = vmatpush1.bf16.msra.mxu1 %v16077_v13  ;;  %13699 = vmatprep.mubr.msk.bf16.mxu1 %vm17987_vm15, %v17964_v49  ;;  %v6486_v13 = vld [vmem:[#allocation22 + $0x260] sm:$0xff] }
 0x94f   : > { %5900 = vmatpush1.bf16.msra.mxu0 %v16080_v39  ;;  %13715 = vmatprep.mubr.msk.bf16.mxu0 %vm17987_vm15, %v17964_v49  ;;  %v16106_v49 = vld [vmem:[#allocation18 + $0x4cc] ss:$16 sps:$4 sm:$0xff]   ;;  %v16146_v39 = vld [vmem:[#allocation18 + $0x5a8] ss:$16 sps:$4 sm:$0xff]  }
 0x950   : > { %5742 = vmatprep.subr.bf16.mxu1 %v16085_v14  ;;  %5901 = vmatprep.subr.bf16.mxu0 %v16088_v17  ;;  %v16151_v14 = vld [vmem:[#allocation18 + $0x5c4] ss:$16 sps:$4 sm:$0xff]   ;;  %v16154_v17 = vld [vmem:[#allocation18 + $0x5cc] ss:$16 sps:$4 sm:$0xff]  }
 0x952   : > { %5743 = vmatpush1.bf16.msra.mxu1 %v16083_v2  ;;  %v16149_v2 = vld [vmem:[#allocation18 + $0x5c0] ss:$16 sps:$4 sm:$0xff]  }
 0x953   : > { %5902 = vmatpush1.bf16.msra.mxu0 %v16086_v16  ;;  %5744 = vmatprep.subr.bf16.mxu1 %v16091_v18  ;;  %v16152_v16 = vld [vmem:[#allocation18 + $0x5c8] ss:$16 sps:$4 sm:$0xff]   ;;  %v16157_v18 = vld [vmem:[#allocation18 + $0x5e4] ss:$16 sps:$4 sm:$0xff]  }
 0x954   : > { %5903 = vmatprep.subr.bf16.mxu0 %v16094_v19  ;;  %v16160_v19 = vld [vmem:[#allocation18 + $0x5ec] ss:$16 sps:$4 sm:$0xff]  }
 0x956   : > { %5745 = vmatpush1.bf16.msra.mxu1 %v16089_v20  ;;  %v4443_v20 = vsel %vm4439_vm1, 65537, %v19554_v0 }
 0x957   : > { %5904 = vmatpush1.bf16.msra.mxu0 %v16092_v1  ;;  %5746 = vmatprep.subr.bf16.mxu1 %v16097_v21  ;;  %v16155_v1 = vld [vmem:[#allocation18 + $0x5e0] ss:$16 sps:$4 sm:$0xff]   ;;  %v16158_v21 = vld [vmem:[#allocation18 + $0x5e8] ss:$16 sps:$4 sm:$0xff]  }
 0x958   : > { %5905 = vmatprep.subr.bf16.mxu0 %v16100_v24  ;;  %v13497_v24 = vcombine.low %v17912_v50, %v4443_v20  ;;  %v6502_v20 = vld [vmem:[#allocation22 + $0x2e0] sm:$0xff] }
 0x95a   : > { %5747 = vmatpush1.bf16.msra.mxu1 %v16095_v37  ;;  %vm14621_vm2 = vcmp.eq.s16.totalorder %v13497_v24, 0  ;;  %v4341_v37 = vsel %vm17876_vm14, %v17966_v30, 0  ;;  %v6422_v30 = vld [vmem:[#allocation22 + $0x60] sm:$0xff] }
 0x95b   : > { %5906 = vmatpush1.bf16.msra.mxu0 %v16098_v8  ;;  %5748 = vmatprep.subr.bf16.mxu1 %v16103_v38  ;;  %v4340_v8 = vsel %vm17876_vm14, %v17957_v46, 0  ;;  %v6410_v38 = vld [vmem:[#allocation22] sm:$0xff] }
 0x95c   : > { %5907 = vmatprep.subr.bf16.mxu0 %v16106_v49  ;;  %v6414_v49 = vld [vmem:[#allocation22 + $0x20] sm:$0xff] }
 0x95d   : > { %v6438_v46 = vld [vmem:[#allocation22 + $0xe0] sm:$0xff] }
 0x95e   : > { %5749 = vmatpush1.bf16.msra.mxu1 %v16101_v43  ;;  %v13738_v43 = vcombine.low %v6410_v38, %v6414_v49  ;;  %v6506_v24 = vld [vmem:[#allocation22 + $0x300] sm:$0xff] }
 0x95f   : > { %5908 = vmatpush1.bf16.msra.mxu0 %v16104_v44  ;;  %5750 = vmatprep.subr.bf16.mxu1 %v16109_v45  ;;  %v13739_v44 = vcombine.high %v6410_v38, %v6414_v49  ;;  %v6418_v45 = vld [vmem:[#allocation22 + $0x40] sm:$0xff] }
 0x960   : > { %5909 = vmatprep.subr.bf16.mxu0 %v16112_v29  ;;  %v13747_v29 = vcombine.high %v6418_v45, %v6422_v30  ;;  %v13746_v48 = vcombine.low %v6418_v45, %v6422_v30 }
 0x962   : > { %5751 = vmatpush1.bf16.msra.mxu1 %v16107_v56  ;;  %v6426_v56 = vld [vmem:[#allocation22 + $0x80] sm:$0xff] }
 0x963   : > { %5910 = vmatpush1.bf16.msra.mxu0 %v16110_v52  ;;  %5752 = vmatprep.subr.bf16.mxu1 %v16115_v31  ;;  %v6434_v31 = vld [vmem:[#allocation22 + $0xc0] sm:$0xff] }
 0x964   : > { %5911 = vmatprep.subr.bf16.mxu0 %v16118_v53 }
 0x966   : > { %5753 = vmatpush1.bf16.msra.mxu1 %v16113_v35  ;;  %v13763_v35 = vcombine.high %v6434_v31, %v6438_v46 }
 0x967   : > { %5912 = vmatpush1.bf16.msra.mxu0 %v16116_v54  ;;  %5754 = vmatprep.subr.bf16.mxu1 %v16121_v28  ;;  %v6442_v54 = vld [vmem:[#allocation22 + $0x100] sm:$0xff] }
 0x968   : > { %5913 = vmatprep.subr.bf16.mxu0 %v16124_v41  ;;  %v6446_v28 = vld [vmem:[#allocation22 + $0x120] sm:$0xff]  ;;  %v13762_v41 = vcombine.low %v6434_v31, %v6438_v46 }
 0x96a   : > { %5755 = vmatpush1.bf16.msra.mxu1 %v16119_v11  ;;  %v13771_v11 = vcombine.high %v6442_v54, %v6446_v28 }
 0x96b   : > { %5914 = vmatpush1.bf16.msra.mxu0 %v16122_v55  ;;  %5756 = vmatprep.subr.bf16.mxu1 %v16127_v57  ;;  %v6450_v55 = vld [vmem:[#allocation22 + $0x140] sm:$0xff] }
 0x96c   : > { %5915 = vmatprep.subr.bf16.mxu0 %v16130_v26  ;;  %v6454_v57 = vld [vmem:[#allocation22 + $0x160] sm:$0xff]  ;;  %v13770_v26 = vcombine.low %v6442_v54, %v6446_v28 }
 0x96e   : > { %5757 = vmatpush1.bf16.msra.mxu1 %v16125_v58  ;;  %v13779_v58 = vcombine.high %v6450_v55, %v6454_v57 }
 0x96f   : > { %5916 = vmatpush1.bf16.msra.mxu0 %v16128_v59  ;;  %5758 = vmatprep.subr.bf16.mxu1 %v16133_v61  ;;  %v6458_v59 = vld [vmem:[#allocation22 + $0x180] sm:$0xff] }
 0x970   : > { %5917 = vmatprep.subr.bf16.mxu0 %v16136_v62  ;;  %v6462_v61 = vld [vmem:[#allocation22 + $0x1a0] sm:$0xff]  ;;  %v13778_v62 = vcombine.low %v6450_v55, %v6454_v57 }
 0x972   : > { %5759 = vmatpush1.bf16.msra.mxu1 %v16131_v63  ;;  %v13787_v63 = vcombine.high %v6458_v59, %v6462_v61 }
 0x973   : > { %5918 = vmatpush1.bf16.msra.mxu0 %v16134_v51  ;;  %5760 = vmatprep.subr.bf16.mxu1 %v16139_v40  ;;  %v6466_v51 = vld [vmem:[#allocation22 + $0x1c0] sm:$0xff] }
 0x974   : > { %5919 = vmatprep.subr.bf16.mxu0 %v16142_v60  ;;  %v6470_v40 = vld [vmem:[#allocation22 + $0x1e0] sm:$0xff]  ;;  %v13786_v60 = vcombine.low %v6458_v59, %v6462_v61 }
 0x976   : > { %5761 = vmatpush1.bf16.msra.mxu1 %v16137_v7  ;;  %v13795_v7 = vcombine.high %v6466_v51, %v6470_v40 }
 0x977   : > { %5920 = vmatpush1.bf16.msra.mxu0 %v16140_v9  ;;  %5762 = vmatprep.subr.bf16.mxu1 %v16145_v10  ;;  %v6478_v9 = vld [vmem:[#allocation22 + $0x220] sm:$0xff]  ;;  %v13794_v10 = vcombine.low %v6466_v51, %v6470_v40 }
 0x978   : > { %5921 = vmatprep.subr.bf16.mxu0 %v16148_v12  ;;  %v13803_v12 = vcombine.high %v6474_v25, %v6478_v9 }
 0x97a   : > { %5763 = vmatpush1.bf16.msra.mxu1 %v16143_v42  ;;  %v6482_v42 = vld [vmem:[#allocation22 + $0x240] sm:$0xff] }
 0x97b   : > { %5922 = vmatpush1.bf16.msra.mxu0 %v16146_v39  ;;  %5764 = vmatprep.subr.bf16.mxu1 %v16151_v14  ;;  %v13802_v39 = vcombine.low %v6474_v25, %v6478_v9  ;;  %v13811_v14 = vcombine.high %v6482_v42, %v6486_v13 }
 0x97c   : > { %5923 = vmatprep.subr.bf16.mxu0 %v16154_v17  ;;  %v6490_v17 = vld [vmem:[#allocation22 + $0x280] sm:$0xff] }
 0x97e   : > { %5765 = vmatpush1.bf16.msra.mxu1 %v16149_v2  ;;  %v6494_v2 = vld [vmem:[#allocation22 + $0x2a0] sm:$0xff] }
 0x97f   : > { %5924 = vmatpush1.bf16.msra.mxu0 %v16152_v16  ;;  %5766 = vmatprep.subr.bf16.mxu1 %v16157_v18  ;;  %v13810_v16 = vcombine.low %v6482_v42, %v6486_v13  ;;  %v13819_v18 = vcombine.high %v6490_v17, %v6494_v2 }
 0x980   : > { %5925 = vmatprep.subr.bf16.mxu0 %v16160_v19  ;;  %v6498_v19 = vld [vmem:[#allocation22 + $0x2c0] sm:$0xff] }
 0x982   : > { %5767 = vmatpush1.bf16.msra.mxu1 %v16155_v1  ;;  %v13818_v1 = vcombine.low %v6490_v17, %v6494_v2 }
 0x983   : > { %5926 = vmatpush1.bf16.msra.mxu0 %v16158_v21  ;;  %v13827_v21 = vcombine.high %v6498_v19, %v6502_v20 }
 0x984   : > { %8756 = vmatprep.subr.bf16.mxu0 %v13739_v44 }
 0x985   : > { %13701 = vmatmul.mubr.msk.bf16.vlgmr.msra.gmra.mrb[24].mxu1 %vm17987_vm15, %v17955_v47 }
 0x986   : > { %13717 = vmatmul.mubr.msk.bf16.vlgmr.msra.gmra.mrb[24].mxu0 %vm17987_vm15, %v17955_v47  ;;  %13703 = vmatprep.mubr.msk.bf16.mxu1 %vm14621_vm2, %v4341_v37  ;;  %v6430_v47 = vld [vmem:[#allocation22 + $0xa0] sm:$0xff] }
 0x987   : > { %13719 = vmatprep.mubr.msk.bf16.mxu0 %vm14621_vm2, %v4341_v37  ;;  %8757 = vmatpush1.bf16.msra.mxu0 %v13738_v43  ;;  %v13755_v52 = vcombine.high %v6426_v56, %v6430_v47  ;;  %v13754_v53 = vcombine.low %v6426_v56, %v6430_v47  ;;  %v6510_v37 = vld [vmem:[#allocation22 + $0x320] sm:$0xff]  ;;  %v4648_v43 = vld [vmem:[#allocation19] sm:$0xf] }
 0x988   : > { %8758 = vmatprep.subr.bf16.mxu0 %v13747_v29  ;;  %v13835_v38 = vcombine.high %v6506_v24, %v6510_v37  ;;  %v13834_v49 = vcombine.low %v6506_v24, %v6510_v37  ;;  %v4653_v44 = vrot.slane %v4648_v43, %v17719_v5  ;;  %v4661_v30 = vrot.slane %v4648_v43, %v17713_v3  ;;  %v6411_v24 = vld [vmem:[#allocation22 + $0x8] sm:$0xff] }
 0x989   : > { %v4657_v29 = vrot.slane %v4648_v43, %v17722_v6  ;;  %v6415_v37 = vld [vmem:[#allocation22 + $0x28] sm:$0xff] }
 0x98b   : > { %8759 = vmatpush1.bf16.msra.mxu0 %v13746_v48  ;;  %v4665_v48 = vrot.slane %v4648_v43, %v17716_v4  ;;  %v16161_v43 = vld [vmem:[#allocation21] sm:$0xff]  }
 0x98c   : > { %8760 = vmatprep.subr.bf16.mxu0 %v13755_v52 }
 0x98d   : > { %13705 = vmatmul.mubr.msk.bf16.gmra.mrb[28].mxu1 %vm14621_vm2, %v4340_v8 }
 0x98e   : > { %13721 = vmatmul.mubr.msk.bf16.gmra.mrb[28].mxu0 %vm14621_vm2, %v4340_v8  ;;  %6029 = vmatprep.mubr.bf16.mxu1 %v19554_v0  ;;  %v13826_v8 = vcombine.low %v6498_v19, %v6502_v20 }
 0x98f   : > { %8761 = vmatpush1.bf16.msra.mxu0 %v13754_v53 }
 0x990   : > { %8762 = vmatprep.subr.bf16.mxu0 %v13763_v35 }
 0x993   : > { %8763 = vmatpush1.bf16.msra.mxu0 %v13762_v41 }
 0x994   : > { %8764 = vmatprep.subr.bf16.mxu0 %v13771_v11 }
 0x997   : > { %8765 = vmatpush1.bf16.msra.mxu0 %v13770_v26 }
 0x998   : > { %8766 = vmatprep.subr.bf16.mxu0 %v13779_v58 }
 0x99b   : > { %8767 = vmatpush1.bf16.msra.mxu0 %v13778_v62 }
 0x99c   : > { %8768 = vmatprep.subr.bf16.mxu0 %v13787_v63 }
 0x99f   : > { %8769 = vmatpush1.bf16.msra.mxu0 %v13786_v60 }
 0x9a0   : > { %8770 = vmatprep.subr.bf16.mxu0 %v13795_v7 }
 0x9a3   : > { %8771 = vmatpush1.bf16.msra.mxu0 %v13794_v10 }
 0x9a4   : > { %8772 = vmatprep.subr.bf16.mxu0 %v13803_v12 }
 0x9a7   : > { %8773 = vmatpush1.bf16.msra.mxu0 %v13802_v39 }
 0x9a8   : > { %8774 = vmatprep.subr.bf16.mxu0 %v13811_v14 }
 0x9ab   : > { %8775 = vmatpush1.bf16.msra.mxu0 %v13810_v16 }
 0x9ac   : > { %8776 = vmatprep.subr.bf16.mxu0 %v13819_v18 }
 0x9af   : > { %8777 = vmatpush1.bf16.msra.mxu0 %v13818_v1 }
 0x9b0   : > { %8778 = vmatprep.subr.bf16.mxu0 %v13827_v21 }
 0x9b3   : > { %8779 = vmatpush1.bf16.msra.mxu0 %v13826_v8  ;;  %v13741_v8 = vcombine.high %v6411_v24, %v6415_v37 }
 0x9b4   : > { %8780 = vmatprep.subr.bf16.mxu0 %v13835_v38  ;;  %v6419_v38 = vld [vmem:[#allocation22 + $0x48] sm:$0xff] }
 0x9b7   : > { %8781 = vmatpush1.bf16.msra.mxu0 %v13834_v49  ;;  %v6423_v49 = vld [vmem:[#allocation22 + $0x68] sm:$0xff] }
 0xa58   : > { %v5770_v45 = vpop.f32.mrb[24].mxu1 }
 0xa59   : > { %v5929_v56 = vpop.f32.mrb[24].mxu0  ;;  %v5772_v47 = vpop.f32.mrb[25].mxu1  ;;  %v14643_v46 = vadd.f32 %v5770_v45, %v4653_v44  ;;  %v13749_v45 = vcombine.high %v6419_v38, %v6423_v49 }
 0xa5a   : > { %v5931_v52 = vpop.f32.mrb[25].mxu0  ;;  %v5774_v31 = vpop.f32.mrb[26].mxu1  ;;  %v14651_v28 = vadd.f32 %v5929_v56, %v4661_v30  ;;  %v14644_v41 = vadd.f32 %v5772_v47, %v4657_v29  ;;  %v13748_v56 = vcombine.low %v6419_v38, %v6423_v49 }
 0xa5b   : > { %v14645_v53 = vadd.f32 %v5774_v31, %v4653_v44  ;;  %v5933_v35 = vpop.f32.mrb[26].mxu0  ;;  %v5776_v54 = vpop.f32.mrb[27].mxu1  ;;  %v14652_v26 = vadd.f32 %v5931_v52, %v4665_v48  ;;  %v6439_v52 = vld [vmem:[#allocation22 + $0xe8] sm:$0xff] }
 0xa5c   : > { %v14653_v11 = vadd.f32 %v5933_v35, %v4661_v30  ;;  %v14646_v55 = vadd.f32 %v5776_v54, %v4657_v29  ;;  %v5935_v57 = vpop.f32.mrb[27].mxu0  ;;  %v16162_v31 = vld [vmem:[#allocation21 + $0x8] sm:$0xff]  }
 0xa5d   : > { %v5948_v58 = vpack.c.bf16 %v14645_v53, %v14643_v46  ;;  %v14654_v59 = vadd.f32 %v5935_v57, %v4665_v48  ;;  %v6443_v35 = vld [vmem:[#allocation22 + $0x108] sm:$0xff]  ;;  %v16163_v57 = vld [vmem:[#allocation21 + $0x10] sm:$0xff]  }
 0xa5e   : > { %v5952_v61 = vpack.c.bf16 %v14653_v11, %v14651_v28  ;;  %v5949_v62 = vpack.c.bf16 %v14646_v55, %v14644_v41  ;;  %v6447_v54 = vld [vmem:[#allocation22 + $0x128] sm:$0xff] }
 0xa5f   : > { %v5953_v63 = vpack.c.bf16 %v14654_v59, %v14652_v26  ;;  %v13773_v41 = vcombine.high %v6443_v35, %v6447_v54  ;;  %v6451_v11 = vld [vmem:[#allocation22 + $0x148] sm:$0xff]  ;;  %v13772_v26 = vcombine.low %v6443_v35, %v6447_v54 }
 0xa60   : > { %v5780_v51 = vpop.f32.mrb[28].mxu1  ;;  %5997 = vmatprep.subr.bf16.mxu1 %v5949_v62  ;;  %v6455_v55 = vld [vmem:[#allocation22 + $0x168] sm:$0xff] }
 0xa61   : > { %v5939_v40 = vpop.f32.mrb[28].mxu0  ;;  %v5782_v60 = vpop.f32.mrb[29].mxu1  ;;  %5998 = vmatpush1.bf16.msra.mxu1 %v5948_v58  ;;  %v14647_v9 = vadd.f32 %v5780_v51, %v4653_v44  ;;  %v13781_v58 = vcombine.high %v6451_v11, %v6455_v55  ;;  %v6459_v59 = vld [vmem:[#allocation22 + $0x188] sm:$0xff]  ;;  %v13780_v62 = vcombine.low %v6451_v11, %v6455_v55  ;;  %v6530_v55 = vld [vmem:[#allocation22 + $0x3c0] sm:$0xff] }
 0xa62   : > { %v5941_v7 = vpop.f32.mrb[29].mxu0  ;;  %v5784_v25 = vpop.f32.mrb[30].mxu1  ;;  %v14655_v13 = vadd.f32 %v5939_v40, %v4661_v30  ;;  %v14648_v39 = vadd.f32 %v5782_v60, %v4657_v29  ;;  %v6467_v51 = vld [vmem:[#allocation22 + $0x1c8] sm:$0xff]  ;;  %v16164_v60 = vld [vmem:[#allocation21 + $0x18] sm:$0xff]  }
 0xa63   : > { %v14649_v10 = vadd.f32 %v5784_v25, %v4653_v44  ;;  %v5943_v12 = vpop.f32.mrb[30].mxu0  ;;  %v5786_v42 = vpop.f32.mrb[31].mxu1  ;;  %v14656_v16 = vadd.f32 %v5941_v7, %v4665_v48  ;;  %v13740_v44 = vcombine.low %v6411_v24, %v6415_v37  ;;  %v6471_v40 = vld [vmem:[#allocation22 + $0x1e8] sm:$0xff] }
 0xa64   : > { %v14657_v14 = vadd.f32 %v5943_v12, %v4661_v30  ;;  %v14650_v17 = vadd.f32 %v5786_v42, %v4657_v29  ;;  %v5945_v2 = vpop.f32.mrb[31].mxu0  ;;  %v6427_v30 = vld [vmem:[#allocation22 + $0x88] sm:$0xff]  ;;  %v13797_v25 = vcombine.high %v6467_v51, %v6471_v40  ;;  %v13796_v12 = vcombine.low %v6467_v51, %v6471_v40  ;;  %v18036_v51 = vld [vmem:[#allocation22 + $0x400] sm:$0xff] }
 0xa65   : > { %v5950_v18 = vpack.c.bf16 %v14649_v10, %v14647_v9  ;;  %v14658_v19 = vadd.f32 %v5945_v2, %v4665_v48  ;;  %v6431_v29 = vld [vmem:[#allocation22 + $0xa8] sm:$0xff]  ;;  %v18038_v40 = vld [vmem:[#allocation22 + $0x420] sm:$0xff] }
 0xa66   : > { %v5954_v20 = vpack.c.bf16 %v14657_v14, %v14655_v13  ;;  %v5951_v1 = vpack.c.bf16 %v14650_v17, %v14648_v39  ;;  %v13757_v47 = vcombine.high %v6427_v30, %v6431_v29  ;;  %v6435_v48 = vld [vmem:[#allocation22 + $0xc8] sm:$0xff]  ;;  %v13756_v46 = vcombine.low %v6427_v30, %v6431_v29 }
 0xa67   : > { %v5955_v21 = vpack.c.bf16 %v14658_v19, %v14656_v16  ;;  %v13765_v53 = vcombine.high %v6435_v48, %v6439_v52  ;;  %v13764_v28 = vcombine.low %v6435_v48, %v6439_v52  ;;  %v6475_v9 = vld [vmem:[#allocation22 + $0x208] sm:$0xff] }
 0xa68   : > { %5999 = vmatprep.subr.bf16.mxu1 %v5951_v1  ;;  %v6479_v10 = vld [vmem:[#allocation22 + $0x228] sm:$0xff] }
 0xa69   : > { %6000 = vmatpush1.bf16.msra.mxu1 %v5950_v18  ;;  %v13805_v42 = vcombine.high %v6475_v9, %v6479_v10  ;;  %v6483_v13 = vld [vmem:[#allocation22 + $0x248] sm:$0xff]  ;;  %v13804_v14 = vcombine.low %v6475_v9, %v6479_v10  ;;  %v13866_v9 = vcombine.low %v18036_v51, %v18038_v40 }
 0xa6a   : > { %6001 = vmatprep.subr.bf16.mxu1 %v5953_v63  ;;  %v6487_v39 = vld [vmem:[#allocation22 + $0x268] sm:$0xff] }
 0xa6b   : > { %v13813_v17 = vcombine.high %v6483_v13, %v6487_v39  ;;  %v6491_v2 = vld [vmem:[#allocation22 + $0x288] sm:$0xff]  ;;  %v13812_v18 = vcombine.low %v6483_v13, %v6487_v39 }
 0xa6c   : > { %v6495_v16 = vld [vmem:[#allocation22 + $0x2a8] sm:$0xff] }
 0xa6d   : > { %6002 = vmatpush1.bf16.msra.mxu1 %v5952_v61  ;;  %v6463_v61 = vld [vmem:[#allocation22 + $0x1a8] sm:$0xff]  ;;  %v13821_v19 = vcombine.high %v6491_v2, %v6495_v16 }
 0xa6e   : > { %6003 = vmatprep.subr.bf16.mxu1 %v5955_v21  ;;  %v13789_v63 = vcombine.high %v6459_v59, %v6463_v61  ;;  %v13788_v7 = vcombine.low %v6459_v59, %v6463_v61  ;;  %v6503_v1 = vld [vmem:[#allocation22 + $0x2e8] sm:$0xff]  ;;  %v13820_v21 = vcombine.low %v6491_v2, %v6495_v16 }
 0xa6f   : > { %v6507_v37 = vld [vmem:[#allocation22 + $0x308] sm:$0xff] }
 0xa70   : > { %v6515_v30 = vld [vmem:[#allocation22 + $0x348] sm:$0xff] }
 0xa71   : > { %6004 = vmatpush1.bf16.msra.mxu1 %v5954_v20  ;;  %v6499_v20 = vld [vmem:[#allocation22 + $0x2c8] sm:$0xff] }
 0xa72   : > { %8975 = vmatprep.subr.bf16.mxu1 %v13741_v8  ;;  %v13829_v24 = vcombine.high %v6499_v20, %v6503_v1  ;;  %v6511_v8 = vld [vmem:[#allocation22 + $0x328] sm:$0xff]  ;;  %v13828_v38 = vcombine.low %v6499_v20, %v6503_v1 }
 0xa73   : > { %v13837_v49 = vcombine.high %v6507_v37, %v6511_v8  ;;  %v6535_v59 = vld [vmem:[#allocation22 + $0x3e8] sm:$0xff] }
 0xa74   : > { %13726 = vmatmul.mubr.msk.bf16.vlgmr.msra.gmra.mrb[32].mxu1 %vm5984_vm3, %v16161_v43  ;;  %v13836_v43 = vcombine.low %v6507_v37, %v6511_v8 }
 0xa75   : > { %6039 = vmatprep.mubr.bf16.mxu1 %v19554_v0  ;;  %8976 = vmatpush1.bf16.msra.mxu1 %v13740_v44  ;;  %v6514_v44 = vld [vmem:[#allocation22 + $0x340] sm:$0xff] }
 0xa76   : > { %8977 = vmatprep.subr.bf16.mxu1 %v13749_v45  ;;  %v6518_v45 = vld [vmem:[#allocation22 + $0x360] sm:$0xff] }
 0xa77   : > { %v13843_v29 = vcombine.high %v6514_v44, %v6518_v45 }
 0xa79   : > { %8978 = vmatpush1.bf16.msra.mxu1 %v13748_v56  ;;  %v6519_v56 = vld [vmem:[#allocation22 + $0x368] sm:$0xff]  ;;  %8782 = vmatprep.subr.bf16.mxu0 %v13843_v29 }
 0xa7a   : > { %8979 = vmatprep.subr.bf16.mxu1 %v13757_v47  ;;  %v13842_v47 = vcombine.low %v6514_v44, %v6518_v45  ;;  %v13844_v48 = vcombine.low %v6515_v30, %v6519_v56  ;;  %v13845_v52 = vcombine.high %v6515_v30, %v6519_v56  ;;  %v18068_v30 = vld [vmem:[#allocation22 + $0x440] sm:$0xff] }
 0xa7c   : > { %13727 = vmatmul.mubr.msk.bf16.gmra.mrb[36].mxu1 %vm5984_vm3, %v16162_v31  ;;  %8783 = vmatpush1.bf16.msra.mxu0 %v13842_v47  ;;  %v6522_v31 = vld [vmem:[#allocation22 + $0x380] sm:$0xff] }
 0xa7d   : > { %6049 = vmatprep.mubr.bf16.mxu1 %v19554_v0  ;;  %8980 = vmatpush1.bf16.msra.mxu1 %v13756_v46  ;;  %v6526_v46 = vld [vmem:[#allocation22 + $0x3a0] sm:$0xff] }
 0xa7e   : > { %8981 = vmatprep.subr.bf16.mxu1 %v13765_v53  ;;  %v6523_v53 = vld [vmem:[#allocation22 + $0x388] sm:$0xff]  ;;  %v13850_v35 = vcombine.low %v6522_v31, %v6526_v46  ;;  %v13851_v54 = vcombine.high %v6522_v31, %v6526_v46  ;;  %v6550_v47 = vld [vmem:[#allocation22 + $0x460] sm:$0xff]  ;;  %v13731_v46 = vcombine.low %v17912_v50, %v17912_v50 }
 0xa80   : > { %8784 = vmatprep.subr.bf16.mxu0 %v13851_v54  ;;  %vm18111_vm10 = vcmp.eq.s16.totalorder %v13731_v46, 0  ;;  %v6564_v54 = vld [vmem:[#allocation22 + $0x4d0] sm:$0xff] }
 0xa81   : > { %8982 = vmatpush1.bf16.msra.mxu1 %v13764_v28  ;;  %v6527_v28 = vld [vmem:[#allocation22 + $0x3a8] sm:$0xff]  ;;  %8785 = vmatpush1.bf16.msra.mxu0 %v13850_v35 }
 0xa82   : > { %8983 = vmatprep.subr.bf16.mxu1 %v13773_v41  ;;  %v13852_v41 = vcombine.low %v6523_v53, %v6527_v28  ;;  %v13853_v11 = vcombine.high %v6523_v53, %v6527_v28 }
 0xa84   : > { %13728 = vmatmul.mubr.msk.bf16.gmra.mrb[40].mxu1 %vm5984_vm3, %v16163_v57  ;;  %v6534_v57 = vld [vmem:[#allocation22 + $0x3e0] sm:$0xff] }
 0xa85   : > { %6059 = vmatprep.mubr.bf16.mxu1 %v19554_v0  ;;  %8984 = vmatpush1.bf16.msra.mxu1 %v13772_v26  ;;  %v6531_v26 = vld [vmem:[#allocation22 + $0x3c8] sm:$0xff]  ;;  %v13858_v61 = vcombine.low %v6530_v55, %v6534_v57 }
 0xa86   : > { %8985 = vmatprep.subr.bf16.mxu1 %v13781_v58  ;;  %v13859_v58 = vcombine.high %v6530_v55, %v6534_v57 }
 0xa88   : > { %8786 = vmatprep.subr.bf16.mxu0 %v13859_v58  ;;  %v13875_v58 = vcombine.high %v18068_v30, %v6550_v47 }
 0xa89   : > { %8986 = vmatpush1.bf16.msra.mxu1 %v13780_v62  ;;  %v13860_v62 = vcombine.low %v6531_v26, %v6535_v59  ;;  %8787 = vmatpush1.bf16.msra.mxu0 %v13858_v61  ;;  %v18091_v61 = vld [vmem:[#allocation22 + $0x480] sm:$0xff] }
 0xa8a   : > { %8987 = vmatprep.subr.bf16.mxu1 %v13789_v63  ;;  %v13861_v63 = vcombine.high %v6531_v26, %v6535_v59 }
 0xa8c   : > { %13729 = vmatmul.mubr.msk.bf16.gmra.mrb[44].mxu1 %vm5984_vm3, %v16164_v60  ;;  %v18040_v60 = vld [vmem:[#allocation22 + $0x408] sm:$0xff] }
 0xa8d   : > { %8988 = vmatpush1.bf16.msra.mxu1 %v13788_v7  ;;  %v13867_v7 = vcombine.high %v18036_v51, %v18038_v40  ;;  %v18105_v51 = vld [vmem:[#allocation22 + $0x488] sm:$0xff] }
 0xa8e   : > { %8989 = vmatprep.subr.bf16.mxu1 %v13797_v25  ;;  %v18044_v25 = vld [vmem:[#allocation22 + $0x428] sm:$0xff] }
 0xa8f   : > { %v13868_v10 = vcombine.low %v18040_v60, %v18044_v25  ;;  %8829 = vmatprep.subr.bf16.mxu0 %v13867_v7  ;;  %v18107_v40 = vld [vmem:[#allocation22 + $0x4a8] sm:$0xff] }
 0xa91   : > { %8990 = vmatpush1.bf16.msra.mxu1 %v13796_v12  ;;  %v13869_v12 = vcombine.high %v18040_v60, %v18044_v25 }
 0xa92   : > { %8991 = vmatprep.subr.bf16.mxu1 %v13805_v42  ;;  %v6190_v42 = vand.u32 31, %v17690_v27 }
 0xa94   : > { %vm6282_vm4 = vcmp.eq.s32.totalorder %v6190_v42, 0 }
 0xa95   : > { %8992 = vmatpush1.bf16.msra.mxu1 %v13804_v14  ;;  %vm6306_vm5 = vmpackc.low %vm6282_vm4, %vm6282_vm4 }
 0xa96   : > { %8993 = vmatprep.subr.bf16.mxu1 %v13813_v17  ;;  %v6314_v16 = vsel %vm6306_vm5, 65537, %v19554_v0 }
 0xa97   : > { %v13730_v37 = vcombine.low %v6314_v16, %v17912_v50 }
 0xa99   : > { %8994 = vmatpush1.bf16.msra.mxu1 %v13812_v18  ;;  %v6182_v18 = vadd.s32 32, %v17690_v27  ;;  %vm18074_vm6 = vcmp.eq.s16.totalorder %v13730_v37, 0  ;;  %v18143_v37 = vld [vmem:[#allocation22 + $0x4e8] sm:$0xff] }
 0xa9a   : > { %8995 = vmatprep.subr.bf16.mxu1 %v13821_v19 }
 0xa9d   : > { %8996 = vmatpush1.bf16.msra.mxu1 %v13820_v21 }
 0xa9e   : > { %8997 = vmatprep.subr.bf16.mxu1 %v13829_v24 }
 0xaa1   : > { %8998 = vmatpush1.bf16.msra.mxu1 %v13828_v38 }
 0xaa2   : > { %8999 = vmatprep.subr.bf16.mxu1 %v13837_v49  ;;  %v6218_v49 = vand.u32 31, %v6182_v18  ;;  %v18131_v18 = vld [vmem:[#allocation22 + $0x4c0] sm:$0xff] }
 0xaa4   : > { %vm18080_vm7 = vcmp.eq.s32.totalorder %v6218_v49, 0 }
 0xaa5   : > { %9000 = vmatpush1.bf16.msra.mxu1 %v13836_v43  ;;  %vm6310_vm11 = vmpackc.low %vm18080_vm7, %vm18080_vm7 }
 0xaa6   : > { %9001 = vmatprep.subr.bf16.mxu1 %v13845_v52  ;;  %v6551_v52 = vld [vmem:[#allocation22 + $0x468] sm:$0xff] }
 0xaa9   : > { %9002 = vmatpush1.bf16.msra.mxu1 %v13844_v48  ;;  %v6547_v48 = vld [vmem:[#allocation22 + $0x448] sm:$0xff] }
 0xaaa   : > { %9003 = vmatprep.subr.bf16.mxu1 %v13853_v11  ;;  %v13877_v59 = vcombine.high %v6547_v48, %v6551_v52 }
 0xaad   : > { %9004 = vmatpush1.bf16.msra.mxu1 %v13852_v41 }
 0xaae   : > { %9005 = vmatprep.subr.bf16.mxu1 %v13861_v63 }
 0xab1   : > { %9006 = vmatpush1.bf16.msra.mxu1 %v13860_v62  ;;  %v18093_v62 = vld [vmem:[#allocation22 + $0x4a0] sm:$0xff] }
 0xab2   : > { %9048 = vmatprep.subr.bf16.mxu1 %v13869_v12  ;;  %v13874_v12 = vcombine.low %v18068_v30, %v6550_v47 }
 0xb47   : > { %v6031_v13 = vpop.f32.mrb[32].mxu1 }
 0xb48   : > { %v6033_v39 = vpop.f32.mrb[33].mxu1 }
 0xb49   : > { %v6035_v14 = vpop.f32.mrb[34].mxu1 }
 0xb4a   : > { %v18053_v17 = vpack.c.bf16 %v6035_v14, %v6031_v13  ;;  %v6037_v2 = vpop.f32.mrb[35].mxu1  ;;  %v13883_v14 = vcombine.high %v18091_v61, %v18093_v62 }
 0xb4b   : > { %v18057_v19 = vpack.c.bf16 %v6037_v2, %v6033_v39  ;;  %v13876_v39 = vcombine.low %v6547_v48, %v6551_v52  ;;  %v13884_v48 = vcombine.low %v18105_v51, %v18107_v40 }
 0xb4c   : > { %v6079_v20 = vshrl.u32 %v18053_v17, 16  ;;  %v6082_v1 = vshll.u32 %v18053_v17, 16 }
 0xb4d   : > { %v6086_v21 = vshrl.u32 %v18057_v19, 16  ;;  %v6089_v24 = vshll.u32 %v18057_v19, 16 }
 0xb4e   : > { %v18064_v8 = vrot.slane %v6079_v20, 7  ;;  %v6150_v38 = vrot.slane %v6082_v1, 1 }
 0xb4f   : > { %v6041_v43 = vpop.f32.mrb[36].mxu1  ;;  %v18066_v44 = vrot.slane %v6086_v21, 7  ;;  %v6154_v45 = vrot.slane %v6089_v24, 1 }
 0xb50   : > { %v6043_v29 = vpop.f32.mrb[37].mxu1  ;;  %v6084_v56 = vor.u32 %v6082_v1, %v18064_v8  ;;  %v6151_v31 = vor.u32 %v6150_v38, %v6079_v20 }
 0xb51   : > { %v6045_v53 = vpop.f32.mrb[38].mxu1  ;;  %v6091_v35 = vor.u32 %v6089_v24, %v18066_v44  ;;  %v6155_v28 = vor.u32 %v6154_v45, %v6086_v21  ;;  %v13882_v21 = vcombine.low %v18091_v61, %v18093_v62  ;;  %v18141_v24 = vld [vmem:[#allocation22 + $0x4c8] sm:$0xff]  ;;  %v6318_v45 = vsel %vm6310_vm11, 65537, %v19554_v0  ;;  %v18176_v61 = vld [vmem:[#allocation22 + $0x520] sm:$0xff] }
 0xb52   : > { %v18078_v41 = vpack.c.bf16 %v6045_v53, %v6041_v43  ;;  %v6047_v11 = vpop.f32.mrb[39].mxu1  ;;  %v18103_v63 = vsel %vm17754_vm9, 0, %v6084_v56  ;;  %v6571_v62 = vld [vmem:[#allocation22 + $0x508] sm:$0xff] }
 0xb53   : > { %v18084_v57 = vpack.c.bf16 %v6047_v11, %v6043_v29  ;;  %v18088_v26 = vsel %vm17754_vm9, 0, %v6091_v35  ;;  %v13893_v11 = vcombine.high %v18141_v24, %v18143_v37 }
 0xb54   : > { %14123 = vmatprep.mubr.msk.bf16.mxu0 %vm18074_vm6, %v18088_v26  ;;  %14155 = vmatprep.mubr.msk.bf16.mxu1 %vm18074_vm6, %v18088_v26  ;;  %v6093_v60 = vshrl.u32 %v18078_v41, 16  ;;  %v6096_v7 = vshll.u32 %v18078_v41, 16 }
 0xb55   : > { %14125 = vmatmul.mubr.msk.bf16.vlgmr.msra.gmra.mrb[32].mxu0 %vm18074_vm6, %v18103_v63  ;;  %14157 = vmatmul.mubr.msk.bf16.vlgmr.msra.gmra.mrb[48].mxu1 %vm18074_vm6, %v18103_v63  ;;  %v6101_v42 = vshrl.u32 %v18084_v57, 16  ;;  %v6104_v13 = vshll.u32 %v18084_v57, 16 }
 0xb56   : > { %8830 = vmatpush1.bf16.msra.mxu0 %v13866_v9  ;;  %9049 = vmatpush1.bf16.msra.mxu1 %v13868_v10  ;;  %v18129_v2 = vrot.slane %v6093_v60, 7  ;;  %v6152_v16 = vrot.slane %v6096_v7, 1  ;;  %v13885_v9 = vcombine.high %v18105_v51, %v18107_v40  ;;  %v18139_v10 = vld [vmem:[#allocation22 + $0x4e0] sm:$0xff]  ;;  %v6575_v51 = vld [vmem:[#allocation22 + $0x528] sm:$0xff] }
 0xb57   : > { %v6051_v20 = vpop.f32.mrb[40].mxu1  ;;  %8831 = vmatprep.subr.bf16.mxu0 %v13875_v58  ;;  %9050 = vmatprep.subr.bf16.mxu1 %v13877_v59  ;;  %v18133_v1 = vrot.slane %v6101_v42, 7  ;;  %v6156_v38 = vrot.slane %v6104_v13, 1  ;;  %v18174_v59 = vld [vmem:[#allocation22 + $0x500] sm:$0xff] }
 0xb58   : > { %v6053_v49 = vpop.f32.mrb[41].mxu1  ;;  %v6098_v43 = vor.u32 %v6096_v7, %v18129_v2  ;;  %v18153_v30 = vsel %vm2715_vm13, %v6151_v31, %v6152_v16  ;;  %v6158_v29 = vor.u32 %v6152_v16, %v6093_v60  ;;  %v13891_v31 = vcombine.high %v18131_v18, %v18139_v10 }
 0xb59   : > { %v6055_v56 = vpop.f32.mrb[42].mxu1  ;;  %v6106_v47 = vor.u32 %v6104_v13, %v18133_v1  ;;  %v18159_v52 = vsel %vm2715_vm13, %v6155_v28, %v6156_v38  ;;  %v6161_v46 = vor.u32 %v6156_v38, %v6101_v42  ;;  %v13732_v28 = vcombine.low %v6318_v45, %v17912_v50  ;;  %v6583_v45 = vld [vmem:[#allocation22 + $0x568] sm:$0xff] }
 0xb5a   : > { %v18161_v53 = vpack.c.bf16 %v6055_v56, %v6051_v20  ;;  %8832 = vmatpush1.bf16.msra.mxu0 %v13874_v12  ;;  %9051 = vmatpush1.bf16.msra.mxu1 %v13876_v39  ;;  %v6057_v35 = vpop.f32.mrb[43].mxu1  ;;  %v13890_v7 = vcombine.low %v18131_v18, %v18139_v10  ;;  %v13892_v42 = vcombine.low %v18141_v24, %v18143_v37  ;;  %v6582_v10 = vld [vmem:[#allocation22 + $0x560] sm:$0xff]  ;;  %v6596_v18 = vld [vmem:[#allocation22 + $0x5d0] sm:$0xff] }
 0xb5b   : > { %v18167_v55 = vpack.c.bf16 %v6057_v35, %v6053_v49  ;;  %v18171_v58 = vsel %vm1163_vm8, %v18066_v44, %v6106_v47  ;;  %8833 = vmatprep.subr.bf16.mxu0 %v13883_v14  ;;  %9052 = vmatprep.subr.bf16.mxu1 %v13885_v9  ;;  %v18186_v44 = vsel %vm1163_vm8, %v18064_v8, %v6098_v43  ;;  %vm18208_vm12 = vcmp.eq.s16.totalorder %v13732_v28, 0  ;;  %v6578_v9 = vld [vmem:[#allocation22 + $0x540] sm:$0xff]  ;;  %v6579_v43 = vld [vmem:[#allocation22 + $0x548] sm:$0xff] }
 0xb5c   : > { %14127 = vmatprep.mubr.msk.bf16.mxu0 %vm18111_vm10, %v18171_v58  ;;  %14159 = vmatprep.mubr.msk.bf16.mxu1 %vm18111_vm10, %v18171_v58  ;;  %v6109_v40 = vshrl.u32 %v18161_v53, 16  ;;  %v6112_v60 = vshll.u32 %v18161_v53, 16  ;;  %v13899_v13 = vcombine.high %v18174_v59, %v18176_v61  ;;  %v13898_v37 = vcombine.low %v18174_v59, %v18176_v61 }
 0xb5d   : > { %14129 = vmatmul.mubr.msk.bf16.gmra.mrb[36].mxu0 %vm18111_vm10, %v18186_v44  ;;  %14161 = vmatmul.mubr.msk.bf16.gmra.mrb[52].mxu1 %vm18111_vm10, %v18186_v44  ;;  %v6117_v8 = vshrl.u32 %v18167_v55, 16  ;;  %v6120_v12 = vshll.u32 %v18167_v55, 16 }
 0xb5e   : > { %8834 = vmatpush1.bf16.msra.mxu0 %v13882_v21  ;;  %9053 = vmatpush1.bf16.msra.mxu1 %v13884_v48  ;;  %v18204_v39 = vrot.slane %v6109_v40, 7  ;;  %v6159_v14 = vrot.slane %v6112_v60, 1  ;;  %v13901_v21 = vcombine.high %v6571_v62, %v6575_v51 }
 0xb5f   : > { %v6061_v16 = vpop.f32.mrb[44].mxu1  ;;  %8835 = vmatprep.subr.bf16.mxu0 %v13891_v31  ;;  %9054 = vmatprep.subr.bf16.mxu1 %v13893_v11  ;;  %v18206_v20 = vrot.slane %v6117_v8, 7  ;;  %v6162_v38 = vrot.slane %v6120_v12, 1  ;;  %v13900_v31 = vcombine.low %v6571_v62, %v6575_v51  ;;  %v6586_v62 = vld [vmem:[#allocation22 + $0x580] sm:$0xff]  ;;  %v6587_v51 = vld [vmem:[#allocation22 + $0x588] sm:$0xff] }
 0xb60   : > { %v6063_v24 = vpop.f32.mrb[45].mxu1  ;;  %v6114_v49 = vor.u32 %v6112_v60, %v18204_v39  ;;  %v18216_v56 = vsel %vm2715_vm13, %v6158_v29, %v6159_v14  ;;  %v6164_v47 = vor.u32 %v6159_v14, %v6109_v40  ;;  %v13907_v29 = vcombine.high %v6578_v9, %v6582_v10 }
 0xb61   : > { %v6065_v48 = vpop.f32.mrb[46].mxu1  ;;  %v6122_v35 = vor.u32 %v6120_v12, %v18206_v20  ;;  %v18220_v11 = vsel %vm2715_vm13, %v6161_v46, %v6162_v38  ;;  %v6167_v28 = vor.u32 %v6162_v38, %v6117_v8  ;;  %v13909_v46 = vcombine.high %v6579_v43, %v6583_v45 }
 0xb62   : > { %v18222_v0 = vpack.c.bf16 %v6065_v48, %v6061_v16  ;;  %8836 = vmatpush1.bf16.msra.mxu0 %v13890_v7  ;;  %9055 = vmatpush1.bf16.msra.mxu1 %v13892_v42  ;;  %v6067_v59 = vpop.f32.mrb[47].mxu1  ;;  %v18226_v61 = vsel %vm1163_vm8, %v18129_v2, %v6114_v49  ;;  %v6590_v2 = vld [vmem:[#allocation22 + $0x5a0] sm:$0xff]  ;;  %v6591_v7 = vld [vmem:[#allocation22 + $0x5a8] sm:$0xff]  ;;  %v13908_v14 = vcombine.low %v6579_v43, %v6583_v45 }
 0xb63   : > { %v18228_v60 = vpack.c.bf16 %v6067_v59, %v6063_v24  ;;  %v18232_v40 = vsel %vm1163_vm8, %v18133_v1, %v6122_v35  ;;  %8837 = vmatprep.subr.bf16.mxu0 %v13899_v13  ;;  %9056 = vmatprep.subr.bf16.mxu1 %v13901_v21  ;;  %v13906_v13 = vcombine.low %v6578_v9, %v6582_v10  ;;  %v6594_v59 = vld [vmem:[#allocation22 + $0x5c0] sm:$0xff]  ;;  %v6599_v9 = vld [vmem:[#allocation22 + $0x5e8] sm:$0xff] }
 0xb64   : > { %14131 = vmatprep.mubr.msk.bf16.mxu0 %vm18208_vm12, %v18232_v40  ;;  %14163 = vmatprep.mubr.msk.bf16.mxu1 %vm18208_vm12, %v18232_v40  ;;  %v6125_v8 = vshrl.u32 %v18222_v0, 16  ;;  %v6128_v1 = vshll.u32 %v18222_v0, 16  ;;  %v13915_v24 = vcombine.high %v6586_v62, %v6590_v2  ;;  %v13917_v49 = vcombine.high %v6587_v51, %v6591_v7 }
 0xb65   : > { %14133 = vmatmul.mubr.msk.bf16.gmra.mrb[40].mxu0 %vm18208_vm12, %v18226_v61  ;;  %14165 = vmatmul.mubr.msk.bf16.gmra.mrb[56].mxu1 %vm18208_vm12, %v18226_v61  ;;  %v6133_v12 = vshrl.u32 %v18228_v60, 16  ;;  %v6136_v42 = vshll.u32 %v18228_v60, 16  ;;  %v13914_v45 = vcombine.low %v6586_v62, %v6590_v2  ;;  %v6606_v2 = vld [vmem:[#allocation22 + $0x620] sm:$0xff] }
 0xb66   : > { %8838 = vmatpush1.bf16.msra.mxu0 %v13898_v37  ;;  %9057 = vmatpush1.bf16.msra.mxu1 %v13900_v31  ;;  %v6127_v16 = vrot.slane %v6125_v8, 7  ;;  %v6165_v21 = vrot.slane %v6128_v1, 1  ;;  %v6598_v37 = vld [vmem:[#allocation22 + $0x5e0] sm:$0xff]  ;;  %v6595_v31 = vld [vmem:[#allocation22 + $0x5c8] sm:$0xff] }
 0xb67   : > { %8839 = vmatprep.subr.bf16.mxu0 %v13907_v29  ;;  %9058 = vmatprep.subr.bf16.mxu1 %v13909_v46  ;;  %v6135_v38 = vrot.slane %v6133_v12, 7  ;;  %v6168_v48 = vrot.slane %v6136_v42, 1  ;;  %v13916_v29 = vcombine.low %v6587_v51, %v6591_v7  ;;  %v13925_v62 = vcombine.high %v6595_v31, %v6599_v9  ;;  %v6607_v51 = vld [vmem:[#allocation22 + $0x628] sm:$0xff] }
 0xb68   : > { %v6130_v35 = vor.u32 %v6128_v1, %v6127_v16  ;;  %v18251_v23 = vsel %vm2715_vm13, %v6164_v47, %v6165_v21  ;;  %v18253_v36 = vor.u32 %v6165_v21, %v6125_v8  ;;  %v6602_v8 = vld [vmem:[#allocation22 + $0x600] sm:$0xff] }
 0xb69   : > { %v6138_v34 = vor.u32 %v6136_v42, %v6135_v38  ;;  %v18256_v10 = vsel %vm2715_vm13, %v6167_v28, %v6168_v48  ;;  %v18258_v43 = vor.u32 %v6168_v48, %v6133_v12  ;;  %v13923_v28 = vcombine.high %v6594_v59, %v6598_v37  ;;  %v6610_v12 = vld [vmem:[#allocation22 + $0x640] sm:$0xff] }
 0xb6a   : > { %8840 = vmatpush1.bf16.msra.mxu0 %v13906_v13  ;;  %9059 = vmatpush1.bf16.msra.mxu1 %v13908_v14  ;;  %v18262_v46 = vsel %vm1163_vm8, %v18204_v39, %v6130_v35  ;;  %v6603_v39 = vld [vmem:[#allocation22 + $0x608] sm:$0xff]  ;;  %v13931_v7 = vcombine.high %v6602_v8, %v6606_v2  ;;  %v6614_v42 = vld [vmem:[#allocation22 + $0x660] sm:$0xff]  ;;  %v13930_v16 = vcombine.low %v6602_v8, %v6606_v2 }
 0xb6b   : > { %v18266_v47 = vsel %vm1163_vm8, %v18206_v20, %v6138_v34  ;;  %8841 = vmatprep.subr.bf16.mxu0 %v13915_v24  ;;  %9060 = vmatprep.subr.bf16.mxu1 %v13917_v49  ;;  %v13922_v34 = vcombine.low %v6594_v59, %v6598_v37  ;;  %v13924_v20 = vcombine.low %v6595_v31, %v6599_v9  ;;  %v6611_v13 = vld [vmem:[#allocation22 + $0x648] sm:$0xff]  ;;  %v6618_v49 = vld [vmem:[#allocation22 + $0x680] sm:$0xff] }
 0xb6c   : > { %14135 = vmatprep.mubr.msk.bf16.mxu0 %vm18111_vm10, %v18266_v47  ;;  %14167 = vmatprep.mubr.msk.bf16.mxu1 %vm18111_vm10, %v18266_v47  ;;  %v13933_v1 = vcombine.high %v6603_v39, %v6607_v51  ;;  %v6615_v14 = vld [vmem:[#allocation22 + $0x668] sm:$0xff]  ;;  %v13932_v21 = vcombine.low %v6603_v39, %v6607_v51  ;;  %v13939_v38 = vcombine.high %v6610_v12, %v6614_v42  ;;  %v6622_v48 = vld [vmem:[#allocation22 + $0x6a0] sm:$0xff] }
 0xb6d   : > { %14137 = vmatmul.mubr.msk.bf16.gmra.mrb[44].mxu0 %vm18111_vm10, %v18262_v46  ;;  %14169 = vmatmul.mubr.msk.bf16.gmra.mrb[60].mxu1 %vm18111_vm10, %v18262_v46  ;;  %v13941_v24 = vcombine.high %v6611_v13, %v6615_v14  ;;  %v6619_v35 = vld [vmem:[#allocation22 + $0x688] sm:$0xff]  ;;  %v13938_v37 = vcombine.low %v6610_v12, %v6614_v42  ;;  %v13940_v31 = vcombine.low %v6611_v13, %v6615_v14 }
 0xb6e   : > { %8842 = vmatpush1.bf16.msra.mxu0 %v13914_v45  ;;  %9061 = vmatpush1.bf16.msra.mxu1 %v13916_v29  ;;  %v6623_v59 = vld [vmem:[#allocation22 + $0x6a8] sm:$0xff]  ;;  %v13947_v9 = vcombine.high %v6618_v49, %v6622_v48  ;;  %v6626_v29 = vld [vmem:[#allocation22 + $0x6c0] sm:$0xff]  ;;  %v13946_v2 = vcombine.low %v6618_v49, %v6622_v48 }
 0xb6f   : > { %8861 = vmatprep.mubr.bf16.mxu0 %v18057_v19  ;;  %9080 = vmatprep.mubr.bf16.mxu1 %v18057_v19  ;;  %v13949_v45 = vcombine.high %v6619_v35, %v6623_v59  ;;  %v6627_v8 = vld [vmem:[#allocation22 + $0x6c8] sm:$0xff]  ;;  %v13948_v39 = vcombine.low %v6619_v35, %v6623_v59 }
 0xb70   : > { %8843 = vmatprep.subr.bf16.mxu0 %v13923_v28  ;;  %9062 = vmatprep.subr.bf16.mxu1 %v13925_v62  ;;  %v6630_v28 = vld [vmem:[#allocation22 + $0x6e0] sm:$0xff]  ;;  %v6631_v62 = vld [vmem:[#allocation22 + $0x6e8] sm:$0xff] }
 0xb71   : > { %v13955_v51 = vcombine.high %v6626_v29, %v6630_v28  ;;  %v6639_v12 = vld [vmem:[#allocation22 + $0x728] sm:$0xff]  ;;  %v13954_v42 = vcombine.low %v6626_v29, %v6630_v28  ;;  %v13956_v13 = vcombine.low %v6627_v8, %v6631_v62 }
 0xb72   : > { %8844 = vmatpush1.bf16.msra.mxu0 %v13922_v34  ;;  %9063 = vmatpush1.bf16.msra.mxu1 %v13924_v20  ;;  %v13957_v34 = vcombine.high %v6627_v8, %v6631_v62  ;;  %v6634_v20 = vld [vmem:[#allocation22 + $0x700] sm:$0xff]  ;;  %v6647_v49 = vld [vmem:[#allocation22 + $0x768] sm:$0xff] }
 0xb73   : > { %8845 = vmatprep.subr.bf16.mxu0 %v13931_v7  ;;  %9064 = vmatprep.subr.bf16.mxu1 %v13933_v1  ;;  %v6638_v7 = vld [vmem:[#allocation22 + $0x720] sm:$0xff]  ;;  %v6635_v1 = vld [vmem:[#allocation22 + $0x708] sm:$0xff] }
 0xb74   : > { %v13963_v14 = vcombine.high %v6634_v20, %v6638_v7  ;;  %v13962_v48 = vcombine.low %v6634_v20, %v6638_v7  ;;  %v13964_v35 = vcombine.low %v6635_v1, %v6639_v12  ;;  %v6655_v29 = vld [vmem:[#allocation22 + $0x7a8] sm:$0xff] }
 0xb75   : > { %v6663_v20 = vld [vmem:[#allocation22 + $0x7e8] sm:$0xff] }
 0xb76   : > { %8846 = vmatpush1.bf16.msra.mxu0 %v13930_v16  ;;  %9065 = vmatpush1.bf16.msra.mxu1 %v13932_v21  ;;  %v13965_v16 = vcombine.high %v6635_v1, %v6639_v12  ;;  %v6642_v21 = vld [vmem:[#allocation22 + $0x740] sm:$0xff] }
 0xb77   : > { %8847 = vmatprep.subr.bf16.mxu0 %v13939_v38  ;;  %9066 = vmatprep.subr.bf16.mxu1 %v13941_v24  ;;  %v6646_v38 = vld [vmem:[#allocation22 + $0x760] sm:$0xff]  ;;  %v6643_v24 = vld [vmem:[#allocation22 + $0x748] sm:$0xff] }
 0xb78   : > { %v13971_v59 = vcombine.high %v6642_v21, %v6646_v38  ;;  %v13970_v28 = vcombine.low %v6642_v21, %v6646_v38  ;;  %v13972_v8 = vcombine.low %v6643_v24, %v6647_v49  ;;  %v6671_v21 = vld [vmem:[#allocation22 + $0x828] sm:$0xff] }
 0xb7a   : > { %8848 = vmatpush1.bf16.msra.mxu0 %v13938_v37  ;;  %9067 = vmatpush1.bf16.msra.mxu1 %v13940_v31  ;;  %v13973_v37 = vcombine.high %v6643_v24, %v6647_v49  ;;  %v6650_v31 = vld [vmem:[#allocation22 + $0x780] sm:$0xff] }
 0xb7b   : > { %8849 = vmatprep.subr.bf16.mxu0 %v13947_v9  ;;  %9068 = vmatprep.subr.bf16.mxu1 %v13949_v45  ;;  %v6654_v9 = vld [vmem:[#allocation22 + $0x7a0] sm:$0xff]  ;;  %v6651_v45 = vld [vmem:[#allocation22 + $0x788] sm:$0xff] }
 0xb7c   : > { %v13979_v62 = vcombine.high %v6650_v31, %v6654_v9  ;;  %v13978_v7 = vcombine.low %v6650_v31, %v6654_v9  ;;  %v13980_v1 = vcombine.low %v6651_v45, %v6655_v29  ;;  %v6679_v31 = vld [vmem:[#allocation22 + $0x868] sm:$0xff] }
 0xb7e   : > { %8850 = vmatpush1.bf16.msra.mxu0 %v13946_v2  ;;  %9069 = vmatpush1.bf16.msra.mxu1 %v13948_v39  ;;  %v13981_v2 = vcombine.high %v6651_v45, %v6655_v29  ;;  %v6658_v39 = vld [vmem:[#allocation22 + $0x7c0] sm:$0xff] }
 0xb7f   : > { %8851 = vmatprep.subr.bf16.mxu0 %v13955_v51  ;;  %9070 = vmatprep.subr.bf16.mxu1 %v13957_v34  ;;  %v6662_v51 = vld [vmem:[#allocation22 + $0x7e0] sm:$0xff]  ;;  %v6659_v34 = vld [vmem:[#allocation22 + $0x7c8] sm:$0xff] }
 0xb80   : > { %v13987_v12 = vcombine.high %v6658_v39, %v6662_v51  ;;  %v13986_v38 = vcombine.low %v6658_v39, %v6662_v51  ;;  %v13988_v24 = vcombine.low %v6659_v34, %v6663_v20  ;;  %v6687_v39 = vld [vmem:[#allocation22 + $0x8a8] sm:$0xff] }
 0xb82   : > { %8852 = vmatpush1.bf16.msra.mxu0 %v13954_v42  ;;  %9071 = vmatpush1.bf16.msra.mxu1 %v13956_v13  ;;  %v13989_v42 = vcombine.high %v6659_v34, %v6663_v20  ;;  %v6666_v13 = vld [vmem:[#allocation22 + $0x800] sm:$0xff] }
 0xb83   : > { %8853 = vmatprep.subr.bf16.mxu0 %v13963_v14  ;;  %9072 = vmatprep.subr.bf16.mxu1 %v13965_v16  ;;  %v6670_v14 = vld [vmem:[#allocation22 + $0x820] sm:$0xff]  ;;  %v6667_v16 = vld [vmem:[#allocation22 + $0x808] sm:$0xff] }
 0xb84   : > { %v13995_v49 = vcombine.high %v6666_v13, %v6670_v14  ;;  %v13994_v9 = vcombine.low %v6666_v13, %v6670_v14  ;;  %v13996_v45 = vcombine.low %v6667_v16, %v6671_v21  ;;  %v6695_v13 = vld [vmem:[#allocation22 + $0x8e8] sm:$0xff] }
 0xb86   : > { %8854 = vmatpush1.bf16.msra.mxu0 %v13962_v48  ;;  %9073 = vmatpush1.bf16.msra.mxu1 %v13964_v35  ;;  %v13997_v48 = vcombine.high %v6667_v16, %v6671_v21  ;;  %v6674_v35 = vld [vmem:[#allocation22 + $0x840] sm:$0xff] }
 0xb87   : > { %8855 = vmatprep.subr.bf16.mxu0 %v13971_v59  ;;  %9074 = vmatprep.subr.bf16.mxu1 %v13973_v37  ;;  %v6678_v59 = vld [vmem:[#allocation22 + $0x860] sm:$0xff]  ;;  %v6675_v37 = vld [vmem:[#allocation22 + $0x848] sm:$0xff] }
 0xb88   : > { %v14003_v29 = vcombine.high %v6674_v35, %v6678_v59  ;;  %v14002_v51 = vcombine.low %v6674_v35, %v6678_v59  ;;  %v14004_v34 = vcombine.low %v6675_v37, %v6679_v31  ;;  %v6703_v35 = vld [vmem:[#allocation22 + $0x928] sm:$0xff] }
 0xb8a   : > { %8856 = vmatpush1.bf16.msra.mxu0 %v13970_v28  ;;  %9075 = vmatpush1.bf16.msra.mxu1 %v13972_v8  ;;  %v14005_v28 = vcombine.high %v6675_v37, %v6679_v31  ;;  %v6682_v8 = vld [vmem:[#allocation22 + $0x880] sm:$0xff] }
 0xb8b   : > { %8857 = vmatprep.subr.bf16.mxu0 %v13979_v62  ;;  %9076 = vmatprep.subr.bf16.mxu1 %v13981_v2  ;;  %v6686_v62 = vld [vmem:[#allocation22 + $0x8a0] sm:$0xff]  ;;  %v6683_v2 = vld [vmem:[#allocation22 + $0x888] sm:$0xff] }
 0xb8c   : > { %v14011_v20 = vcombine.high %v6682_v8, %v6686_v62  ;;  %v14010_v14 = vcombine.low %v6682_v8, %v6686_v62  ;;  %v14012_v16 = vcombine.low %v6683_v2, %v6687_v39  ;;  %v6711_v8 = vld [vmem:[#allocation22 + $0x968] sm:$0xff] }
 0xb8e   : > { %8858 = vmatpush1.bf16.msra.mxu0 %v13978_v7  ;;  %9077 = vmatpush1.bf16.msra.mxu1 %v13980_v1  ;;  %v14013_v7 = vcombine.high %v6683_v2, %v6687_v39  ;;  %v6690_v1 = vld [vmem:[#allocation22 + $0x8c0] sm:$0xff] }
 0xb8f   : > { %8859 = vmatprep.subr.bf16.mxu0 %v13987_v12  ;;  %9078 = vmatprep.subr.bf16.mxu1 %v13989_v42  ;;  %v6694_v12 = vld [vmem:[#allocation22 + $0x8e0] sm:$0xff]  ;;  %v6691_v42 = vld [vmem:[#allocation22 + $0x8c8] sm:$0xff] }
 0xb90   : > { %v14019_v21 = vcombine.high %v6690_v1, %v6694_v12  ;;  %v14018_v59 = vcombine.low %v6690_v1, %v6694_v12  ;;  %v14020_v37 = vcombine.low %v6691_v42, %v6695_v13  ;;  %v6719_v1 = vld [vmem:[#allocation22 + $0x9a8] sm:$0xff] }
 0xb92   : > { %8860 = vmatpush1.bf16.msra.mxu0 %v13986_v38  ;;  %9079 = vmatpush1.bf16.msra.mxu1 %v13988_v24  ;;  %v14021_v38 = vcombine.high %v6691_v42, %v6695_v13  ;;  %v6698_v24 = vld [vmem:[#allocation22 + $0x900] sm:$0xff] }
 0xb93   : > { %8902 = vmatprep.subr.bf16.mxu0 %v13995_v49  ;;  %9121 = vmatprep.subr.bf16.mxu1 %v13997_v48  ;;  %v6702_v49 = vld [vmem:[#allocation22 + $0x920] sm:$0xff]  ;;  %v6699_v48 = vld [vmem:[#allocation22 + $0x908] sm:$0xff] }
 0xb94   : > { %v14027_v31 = vcombine.high %v6698_v24, %v6702_v49  ;;  %v14026_v62 = vcombine.low %v6698_v24, %v6702_v49  ;;  %v14028_v2 = vcombine.low %v6699_v48, %v6703_v35  ;;  %v6727_v24 = vld [vmem:[#allocation22 + $0x9e8] sm:$0xff] }
 0xb95   : > { %8862 = vmatmul.mubr.bf16.vlgmr.msra.gmra.mrb[32].mxu0 %v18053_v17  ;;  %9081 = vmatmul.mubr.bf16.vlgmr.msra.gmra.mrb[48].mxu1 %v18053_v17 }
 0xb96   : > { %8871 = vmatprep.mubr.bf16.mxu0 %v18084_v57  ;;  %8903 = vmatpush1.bf16.msra.mxu0 %v13994_v9  ;;  %v14029_v9 = vcombine.high %v6699_v48, %v6703_v35 }
 0xb97   : > { %9090 = vmatprep.mubr.bf16.mxu1 %v18084_v57  ;;  %9122 = vmatpush1.bf16.msra.mxu1 %v13996_v45  ;;  %v6706_v45 = vld [vmem:[#allocation22 + $0x940] sm:$0xff] }
 0xb98   : > { %8904 = vmatprep.subr.bf16.mxu0 %v14003_v29  ;;  %9123 = vmatprep.subr.bf16.mxu1 %v14005_v28  ;;  %v6710_v29 = vld [vmem:[#allocation22 + $0x960] sm:$0xff]  ;;  %v6707_v28 = vld [vmem:[#allocation22 + $0x948] sm:$0xff] }
 0xb99   : > { %v14035_v39 = vcombine.high %v6706_v45, %v6710_v29  ;;  %v14034_v12 = vcombine.low %v6706_v45, %v6710_v29  ;;  %v14036_v42 = vcombine.low %v6707_v28, %v6711_v8  ;;  %v6735_v45 = vld [vmem:[#allocation22 + $0xa28] sm:$0xff] }
 0xb9a   : > { %8905 = vmatpush1.bf16.msra.mxu0 %v14002_v51  ;;  %v14037_v51 = vcombine.high %v6707_v28, %v6711_v8 }
 0xb9b   : > { %9124 = vmatpush1.bf16.msra.mxu1 %v14004_v34  ;;  %8906 = vmatprep.subr.bf16.mxu0 %v14011_v20  ;;  %v6714_v34 = vld [vmem:[#allocation22 + $0x980] sm:$0xff] }
 0xb9c   : > { %9125 = vmatprep.subr.bf16.mxu1 %v14013_v7  ;;  %v6718_v20 = vld [vmem:[#allocation22 + $0x9a0] sm:$0xff]  ;;  %v6715_v7 = vld [vmem:[#allocation22 + $0x988] sm:$0xff] }
 0xb9d   : > { %8872 = vmatmul.mubr.bf16.gmra.mrb[36].mxu0 %v18078_v41  ;;  %9091 = vmatmul.mubr.bf16.gmra.mrb[52].mxu1 %v18078_v41  ;;  %v14043_v13 = vcombine.high %v6714_v34, %v6718_v20  ;;  %v14042_v49 = vcombine.low %v6714_v34, %v6718_v20  ;;  %v14044_v48 = vcombine.low %v6715_v7, %v6719_v1  ;;  %v6743_v34 = vld [vmem:[#allocation22 + $0xa68] sm:$0xff] }
 0xb9e   : > { %8881 = vmatprep.mubr.bf16.mxu0 %v18167_v55  ;;  %8907 = vmatpush1.bf16.msra.mxu0 %v14010_v14  ;;  %v14045_v14 = vcombine.high %v6715_v7, %v6719_v1 }
 0xb9f   : > { %9100 = vmatprep.mubr.bf16.mxu1 %v18167_v55  ;;  %9126 = vmatpush1.bf16.msra.mxu1 %v14012_v16  ;;  %v6722_v16 = vld [vmem:[#allocation22 + $0x9c0] sm:$0xff] }
 0xba0   : > { %8908 = vmatprep.subr.bf16.mxu0 %v14019_v21  ;;  %9127 = vmatprep.subr.bf16.mxu1 %v14021_v38  ;;  %v6726_v21 = vld [vmem:[#allocation22 + $0x9e0] sm:$0xff]  ;;  %v6723_v38 = vld [vmem:[#allocation22 + $0x9c8] sm:$0xff] }
 0xba1   : > { %v14051_v35 = vcombine.high %v6722_v16, %v6726_v21  ;;  %v14050_v29 = vcombine.low %v6722_v16, %v6726_v21  ;;  %v14052_v28 = vcombine.low %v6723_v38, %v6727_v24  ;;  %v6751_v16 = vld [vmem:[#allocation22 + $0xaa8] sm:$0xff] }
 0xba2   : > { %8909 = vmatpush1.bf16.msra.mxu0 %v14018_v59  ;;  %v14053_v59 = vcombine.high %v6723_v38, %v6727_v24 }
 0xba3   : > { %9128 = vmatpush1.bf16.msra.mxu1 %v14020_v37  ;;  %8910 = vmatprep.subr.bf16.mxu0 %v14027_v31  ;;  %v6730_v37 = vld [vmem:[#allocation22 + $0xa00] sm:$0xff] }
 0xba4   : > { %9129 = vmatprep.subr.bf16.mxu1 %v14029_v9  ;;  %v6734_v31 = vld [vmem:[#allocation22 + $0xa20] sm:$0xff]  ;;  %v6731_v9 = vld [vmem:[#allocation22 + $0xa08] sm:$0xff] }
 0xba5   : > { %8882 = vmatmul.mubr.bf16.gmra.mrb[40].mxu0 %v18161_v53  ;;  %9101 = vmatmul.mubr.bf16.gmra.mrb[56].mxu1 %v18161_v53  ;;  %v14059_v8 = vcombine.high %v6730_v37, %v6734_v31  ;;  %v14058_v20 = vcombine.low %v6730_v37, %v6734_v31  ;;  %v14060_v7 = vcombine.low %v6731_v9, %v6735_v45  ;;  %v6759_v37 = vld [vmem:[#allocation22 + $0xae8] sm:$0xff] }
 0xba6   : > { %8891 = vmatprep.mubr.bf16.mxu0 %v18228_v60  ;;  %8911 = vmatpush1.bf16.msra.mxu0 %v14026_v62  ;;  %v14061_v62 = vcombine.high %v6731_v9, %v6735_v45 }
 0xba7   : > { %9110 = vmatprep.mubr.bf16.mxu1 %v18228_v60  ;;  %9130 = vmatpush1.bf16.msra.mxu1 %v14028_v2  ;;  %v6738_v2 = vld [vmem:[#allocation22 + $0xa40] sm:$0xff] }
 0xba8   : > { %8912 = vmatprep.subr.bf16.mxu0 %v14035_v39  ;;  %9131 = vmatprep.subr.bf16.mxu1 %v14037_v51  ;;  %v6742_v39 = vld [vmem:[#allocation22 + $0xa60] sm:$0xff]  ;;  %v6739_v51 = vld [vmem:[#allocation22 + $0xa48] sm:$0xff] }
 0xba9   : > { %v14067_v1 = vcombine.high %v6738_v2, %v6742_v39  ;;  %v14066_v21 = vcombine.low %v6738_v2, %v6742_v39  ;;  %v14068_v38 = vcombine.low %v6739_v51, %v6743_v34  ;;  %v6767_v2 = vld [vmem:[#allocation22 + $0xb28] sm:$0xff] }
 0xbaa   : > { %8913 = vmatpush1.bf16.msra.mxu0 %v14034_v12  ;;  %v14069_v12 = vcombine.high %v6739_v51, %v6743_v34 }
 0xbab   : > { %9132 = vmatpush1.bf16.msra.mxu1 %v14036_v42  ;;  %8914 = vmatprep.subr.bf16.mxu0 %v14043_v13  ;;  %v6746_v42 = vld [vmem:[#allocation22 + $0xa80] sm:$0xff] }
 0xbac   : > { %9133 = vmatprep.subr.bf16.mxu1 %v14045_v14  ;;  %v6750_v13 = vld [vmem:[#allocation22 + $0xaa0] sm:$0xff]  ;;  %v6747_v14 = vld [vmem:[#allocation22 + $0xa88] sm:$0xff] }
 0xbad   : > { %8892 = vmatmul.mubr.bf16.gmra.mrb[44].mxu0 %v18222_v0  ;;  %9111 = vmatmul.mubr.bf16.gmra.mrb[60].mxu1 %v18222_v0  ;;  %v14075_v24 = vcombine.high %v6746_v42, %v6750_v13  ;;  %v14074_v31 = vcombine.low %v6746_v42, %v6750_v13  ;;  %v14076_v9 = vcombine.low %v6747_v14, %v6751_v16  ;;  %v6775_v42 = vld [vmem:[#allocation22 + $0xb68] sm:$0xff]  ;;  %v6211_v13 = vand.u32 31, %v18000_v15 }
 0xbae   : > { %8915 = vmatpush1.bf16.msra.mxu0 %v14042_v49  ;;  %14139 = vmatprep.mubr.msk.bf16.mxu0 %vm18111_vm10, %v18159_v52  ;;  %v14077_v49 = vcombine.high %v6747_v14, %v6751_v16 }
 0xbaf   : > { %9134 = vmatpush1.bf16.msra.mxu1 %v14044_v48  ;;  %14171 = vmatprep.mubr.msk.bf16.mxu1 %vm18111_vm10, %v18159_v52  ;;  %v6754_v48 = vld [vmem:[#allocation22 + $0xac0] sm:$0xff]  ;;  %vm18303_vm15 = vcmp.eq.s32.totalorder %v6211_v13, 31 }
 0xbb0   : > { %8916 = vmatprep.subr.bf16.mxu0 %v14051_v35  ;;  %9135 = vmatprep.subr.bf16.mxu1 %v14053_v59  ;;  %v6758_v35 = vld [vmem:[#allocation22 + $0xae0] sm:$0xff]  ;;  %v6755_v59 = vld [vmem:[#allocation22 + $0xac8] sm:$0xff]  ;;  %vm6373_vm0 = vmpackc.low %vm18303_vm15, %vm18303_vm15 }
 0xbb1   : > { %v14083_v45 = vcombine.high %v6754_v48, %v6758_v35  ;;  %v14082_v39 = vcombine.low %v6754_v48, %v6758_v35  ;;  %v14084_v51 = vcombine.low %v6755_v59, %v6759_v37  ;;  %v6779_v48 = vld [vmem:[#allocation22 + $0xb88] sm:$0xff] }
 0xbb2   : > { %8917 = vmatpush1.bf16.msra.mxu0 %v14050_v29  ;;  %v14085_v29 = vcombine.high %v6755_v59, %v6759_v37  ;;  %v6783_v35 = vld [vmem:[#allocation22 + $0xba8] sm:$0xff]  ;;  %v6425_v59 = vld [vmem:[#allocation22 + $0x78] sm:$0xff] }
 0xbb3   : > { %9136 = vmatpush1.bf16.msra.mxu1 %v14052_v28  ;;  %8918 = vmatprep.subr.bf16.mxu0 %v14059_v8  ;;  %v6762_v28 = vld [vmem:[#allocation22 + $0xb00] sm:$0xff] }
 0xbb4   : > { %9137 = vmatprep.subr.bf16.mxu1 %v14061_v62  ;;  %v6766_v8 = vld [vmem:[#allocation22 + $0xb20] sm:$0xff]  ;;  %v6763_v62 = vld [vmem:[#allocation22 + $0xb08] sm:$0xff] }
 0xbb5   : > { %v14091_v34 = vcombine.high %v6762_v28, %v6766_v8  ;;  %v14090_v14 = vcombine.low %v6762_v28, %v6766_v8  ;;  %v14092_v16 = vcombine.low %v6763_v62, %v6767_v2  ;;  %v6787_v28 = vld [vmem:[#allocation22 + $0xbc8] sm:$0xff] }
 0xbb6   : > { %8919 = vmatpush1.bf16.msra.mxu0 %v14058_v20  ;;  %v14093_v20 = vcombine.high %v6763_v62, %v6767_v2  ;;  %v6791_v8 = vld [vmem:[#allocation22 + $0xbe8] sm:$0xff]  ;;  %v14108_v2 = vcombine.low %v6779_v48, %v6783_v35 }
 0xbb7   : > { %9138 = vmatpush1.bf16.msra.mxu1 %v14060_v7  ;;  %8920 = vmatprep.subr.bf16.mxu0 %v14067_v1  ;;  %v6770_v7 = vld [vmem:[#allocation22 + $0xb40] sm:$0xff] }
 0xbb8   : > { %9139 = vmatprep.subr.bf16.mxu1 %v14069_v12  ;;  %v6774_v1 = vld [vmem:[#allocation22 + $0xb60] sm:$0xff]  ;;  %v6771_v12 = vld [vmem:[#allocation22 + $0xb48] sm:$0xff] }
 0xbb9   : > { %v14098_v37 = vcombine.low %v6770_v7, %v6774_v1  ;;  %v14100_v15 = vcombine.low %v6771_v12, %v6775_v42 }
 0xbba   : > { %8921 = vmatpush1.bf16.msra.mxu0 %v14066_v21  ;;  %v14099_v21 = vcombine.high %v6770_v7, %v6774_v1  ;;  %v6412_v7 = vld [vmem:[#allocation22 + $0x10] sm:$0xff] }
 0xbbb   : > { %9140 = vmatpush1.bf16.msra.mxu1 %v14068_v38  ;;  %8922 = vmatprep.subr.bf16.mxu0 %v14075_v24  ;;  %v14101_v38 = vcombine.high %v6771_v12, %v6775_v42  ;;  %v6778_v24 = vld [vmem:[#allocation22 + $0xb80] sm:$0xff]  ;;  %v6416_v1 = vld [vmem:[#allocation22 + $0x30] sm:$0xff]  ;;  %v6413_v12 = vld [vmem:[#allocation22 + $0x18] sm:$0xff] }
 0xbbc   : > { %9141 = vmatprep.subr.bf16.mxu1 %v14077_v49  ;;  %v6782_v49 = vld [vmem:[#allocation22 + $0xba0] sm:$0xff]  ;;  %v6417_v42 = vld [vmem:[#allocation22 + $0x38] sm:$0xff] }
 0xbbd   : > { %v14106_v62 = vcombine.low %v6778_v24, %v6782_v49 }
 0xbbe   : > { %8923 = vmatpush1.bf16.msra.mxu0 %v14074_v31  ;;  %v14107_v31 = vcombine.high %v6778_v24, %v6782_v49  ;;  %v13745_v24 = vcombine.high %v6413_v12, %v6417_v42  ;;  %v6420_v49 = vld [vmem:[#allocation22 + $0x50] sm:$0xff] }
 0xbbf   : > { %9142 = vmatpush1.bf16.msra.mxu1 %v14076_v9  ;;  %8924 = vmatprep.subr.bf16.mxu0 %v14083_v45  ;;  %v14109_v9 = vcombine.high %v6779_v48, %v6783_v35  ;;  %v6786_v45 = vld [vmem:[#allocation22 + $0xbc0] sm:$0xff]  ;;  %v6424_v48 = vld [vmem:[#allocation22 + $0x70] sm:$0xff]  ;;  %v6421_v35 = vld [vmem:[#allocation22 + $0x58] sm:$0xff] }
 0xbc0   : > { %9143 = vmatprep.subr.bf16.mxu1 %v14085_v29  ;;  %v6790_v29 = vld [vmem:[#allocation22 + $0xbe0] sm:$0xff] }
 0xbc1   : > { %v14114_v13 = vcombine.low %v6786_v45, %v6790_v29 }
 0xbc2   : > { %8925 = vmatpush1.bf16.msra.mxu0 %v14082_v39  ;;  %v14115_v39 = vcombine.high %v6786_v45, %v6790_v29  ;;  %v13751_v45 = vcombine.high %v6420_v49, %v6424_v48  ;;  %v13753_v29 = vcombine.high %v6421_v35, %v6425_v59 }
 0xbc3   : > { %9144 = vmatpush1.bf16.msra.mxu1 %v14084_v51  ;;  %8926 = vmatprep.subr.bf16.mxu0 %v14091_v34  ;;  %v19715_v51 = vmov 0  }
 0xbc4   : > { %9145 = vmatprep.subr.bf16.mxu1 %v14093_v20  ;;  %v6381_v34 = vsel %vm6373_vm0, 65537, %v19715_v51  ;;  %v14117_v20 = vcombine.high %v6787_v28, %v6791_v8 }
 0xbc6   : > { %8927 = vmatpush1.bf16.msra.mxu0 %v14090_v14  ;;  %v18312_v14 = vadd.s32 56, %v17690_v27 }
 0xbc7   : > { %9146 = vmatpush1.bf16.msra.mxu1 %v14092_v16  ;;  %8928 = vmatprep.subr.bf16.mxu0 %v14099_v21  ;;  %v13735_v16 = vcombine.low %v17912_v50, %v6381_v34  ;;  %v14116_v21 = vcombine.low %v6787_v28, %v6791_v8  ;;  %v6428_v28 = vld [vmem:[#allocation22 + $0x90] sm:$0xff]  ;;  %v13750_v34 = vcombine.low %v6420_v49, %v6424_v48 }
 0xbc8   : > { %9147 = vmatprep.subr.bf16.mxu1 %v14101_v38  ;;  %19716 = vst [vmem:[#allocation48_spill] sm:$0xff] %v18312_v14  ;;  %v13743_v38 = vcombine.high %v6412_v7, %v6416_v1  ;;  %v6432_v8 = vld [vmem:[#allocation22 + $0xb0] sm:$0xff] }
 0xbc9   : > { %vm18316_vm1 = vcmp.eq.s16.totalorder %v13735_v16, 0  ;;  %v6441_v16 = vld [vmem:[#allocation22 + $0xf8] sm:$0xff] }
 0xbca   : > { %8929 = vmatpush1.bf16.msra.mxu0 %v14098_v37  ;;  %v6239_v37 = vand.u32 31, %v18312_v14 }
 0xbcb   : > { %9148 = vmatpush1.bf16.msra.mxu1 %v14100_v15  ;;  %8930 = vmatprep.subr.bf16.mxu0 %v14107_v31  ;;  %v13742_v31 = vcombine.low %v6412_v7, %v6416_v1  ;;  %v13759_v7 = vcombine.high %v6428_v28, %v6432_v8 }
 0xbcc   : > { %9149 = vmatprep.subr.bf16.mxu1 %v14109_v9  ;;  %v13744_v9 = vcombine.low %v6413_v12, %v6417_v42  ;;  %vm18329_vm2 = vcmp.eq.s32.totalorder %v6239_v37, 31  ;;  %v6436_v12 = vld [vmem:[#allocation22 + $0xd0] sm:$0xff]  ;;  %v6445_v37 = vld [vmem:[#allocation22 + $0x118] sm:$0xff] }
 0xbcd   : > { %v6440_v42 = vld [vmem:[#allocation22 + $0xf0] sm:$0xff]  ;;  %vm6377_vm3 = vmpackc.low %vm18329_vm2, %vm18329_vm2 }
 0xbce   : > { %8931 = vmatpush1.bf16.msra.mxu0 %v14106_v62  ;;  %v6429_v62 = vld [vmem:[#allocation22 + $0x98] sm:$0xff]  ;;  %v6385_v49 = vsel %vm6377_vm3, 65537, %v19715_v51 }
 0xbcf   : > { %9150 = vmatpush1.bf16.msra.mxu1 %v14108_v2  ;;  %8932 = vmatprep.subr.bf16.mxu0 %v14115_v39  ;;  %v6433_v2 = vld [vmem:[#allocation22 + $0xb8] sm:$0xff] }
 0xbd0   : > { %9151 = vmatprep.subr.bf16.mxu1 %v14117_v20  ;;  %v13752_v20 = vcombine.low %v6421_v35, %v6425_v59  ;;  %v13761_v1 = vcombine.high %v6429_v62, %v6433_v2  ;;  %v6444_v35 = vld [vmem:[#allocation22 + $0x110] sm:$0xff]  ;;  %v6453_v39 = vld [vmem:[#allocation22 + $0x158] sm:$0xff] }
 0xbd1   : > { %v6448_v59 = vld [vmem:[#allocation22 + $0x130] sm:$0xff] }
 0xbd2   : > { %8933 = vmatpush1.bf16.msra.mxu0 %v14114_v13  ;;  %v6437_v13 = vld [vmem:[#allocation22 + $0xd8] sm:$0xff] }
 0xbd3   : > { %9152 = vmatpush1.bf16.msra.mxu1 %v14116_v21  ;;  %9194 = vmatprep.subr.bf16.mxu0 %v13743_v38  ;;  %v13758_v21 = vcombine.low %v6428_v28, %v6432_v8  ;;  %v13760_v38 = vcombine.low %v6429_v62, %v6433_v2  ;;  %v13769_v48 = vcombine.high %v6437_v13, %v6441_v16  ;;  %v6452_v62 = vld [vmem:[#allocation22 + $0x150] sm:$0xff] }
 0xbd4   : > { %9413 = vmatprep.subr.bf16.mxu1 %v13745_v24  ;;  %v13767_v24 = vcombine.high %v6436_v12, %v6440_v42  ;;  %v13775_v28 = vcombine.high %v6444_v35, %v6448_v59  ;;  %v6456_v2 = vld [vmem:[#allocation22 + $0x170] sm:$0xff] }
 0xbd5   : > { %14141 = vmatmul.mubr.msk.bf16.vlgmr.msra.gmra.mrb[32].mxu0 %vm18111_vm10, %v18153_v30 }
 0xbd6   : > { %14173 = vmatmul.mubr.msk.bf16.vlgmr.msra.gmra.mrb[48].mxu1 %vm18111_vm10, %v18153_v30  ;;  %14143 = vmatprep.mubr.msk.bf16.mxu0 %vm18316_vm1, %v18220_v11 }
 0xbd7   : > { %14175 = vmatprep.mubr.msk.bf16.mxu1 %vm18316_vm1, %v18220_v11  ;;  %9195 = vmatpush1.bf16.msra.mxu0 %v13742_v31  ;;  %v6449_v31 = vld [vmem:[#allocation22 + $0x138] sm:$0xff] }
 0xbd8   : > { %9414 = vmatpush1.bf16.msra.mxu1 %v13744_v9  ;;  %9196 = vmatprep.subr.bf16.mxu0 %v13751_v45  ;;  %v13766_v9 = vcombine.low %v6436_v12, %v6440_v42  ;;  %v13737_v45 = vcombine.low %v17912_v50, %v6385_v49  ;;  %v13777_v8 = vcombine.high %v6445_v37, %v6449_v31  ;;  %v18363_v42 = vsel %vm17876_vm14, %v18258_v43, 0 }
 0xbd9   : > { %9415 = vmatprep.subr.bf16.mxu1 %v13753_v29  ;;  %v13768_v29 = vcombine.low %v6437_v13, %v6441_v16  ;;  %v13783_v12 = vcombine.high %v6452_v62, %v6456_v2  ;;  %v6460_v16 = vld [vmem:[#allocation22 + $0x190] sm:$0xff]  ;;  %v13782_v43 = vcombine.low %v6452_v62, %v6456_v2 }
 0xbda   : > { %vm18353_vm4 = vcmp.eq.s16.totalorder %v13737_v45, 0  ;;  %v6476_v2 = vld [vmem:[#allocation22 + $0x210] sm:$0xff] }
 0xbdb   : > { %9197 = vmatpush1.bf16.msra.mxu0 %v13750_v34  ;;  %v6457_v34 = vld [vmem:[#allocation22 + $0x178] sm:$0xff] }
 0xbdc   : > { %9416 = vmatpush1.bf16.msra.mxu1 %v13752_v20  ;;  %9198 = vmatprep.subr.bf16.mxu0 %v13759_v7  ;;  %v13774_v20 = vcombine.low %v6444_v35, %v6448_v59  ;;  %v13785_v13 = vcombine.high %v6453_v39, %v6457_v34  ;;  %v13784_v49 = vcombine.low %v6453_v39, %v6457_v34  ;;  %v6468_v59 = vld [vmem:[#allocation22 + $0x1d0] sm:$0xff]  ;;  %v6481_v34 = vld [vmem:[#allocation22 + $0x238] sm:$0xff] }
 0xbdd   : > { %14145 = vmatmul.mubr.msk.bf16.gmra.mrb[36].mxu0 %vm18316_vm1, %v18216_v56  ;;  %9417 = vmatprep.subr.bf16.mxu1 %v13761_v1  ;;  %v13776_v1 = vcombine.low %v6445_v37, %v6449_v31  ;;  %v6472_v37 = vld [vmem:[#allocation22 + $0x1f0] sm:$0xff]  ;;  %v6469_v31 = vld [vmem:[#allocation22 + $0x1d8] sm:$0xff] }
 0xbde   : > { %14177 = vmatmul.mubr.msk.bf16.gmra.mrb[52].mxu1 %vm18316_vm1, %v18216_v56  ;;  %14147 = vmatprep.mubr.msk.bf16.mxu0 %vm18111_vm10, %v18256_v10  ;;  %v6480_v39 = vld [vmem:[#allocation22 + $0x230] sm:$0xff] }
 0xbdf   : > { %14179 = vmatprep.mubr.msk.bf16.mxu1 %vm18111_vm10, %v18256_v10  ;;  %9199 = vmatpush1.bf16.msra.mxu0 %v13758_v21  ;;  %v6464_v21 = vld [vmem:[#allocation22 + $0x1b0] sm:$0xff] }
 0xbe0   : > { %9418 = vmatpush1.bf16.msra.mxu1 %v13760_v38  ;;  %9200 = vmatprep.subr.bf16.mxu0 %v13767_v24  ;;  %v6461_v38 = vld [vmem:[#allocation22 + $0x198] sm:$0xff]  ;;  %v13790_v45 = vcombine.low %v6460_v16, %v6464_v21 }
 0xbe1   : > { %9419 = vmatprep.subr.bf16.mxu1 %v13769_v48  ;;  %v6465_v24 = vld [vmem:[#allocation22 + $0x1b8] sm:$0xff]  ;;  %v13791_v48 = vcombine.high %v6460_v16, %v6464_v21  ;;  %v6484_v16 = vld [vmem:[#allocation22 + $0x250] sm:$0xff] }
 0xbe2   : > { %v13793_v35 = vcombine.high %v6461_v38, %v6465_v24  ;;  %v6488_v21 = vld [vmem:[#allocation22 + $0x270] sm:$0xff] }
 0xbe3   : > { %9201 = vmatpush1.bf16.msra.mxu0 %v13766_v9  ;;  %v6473_v9 = vld [vmem:[#allocation22 + $0x1f8] sm:$0xff] }
 0xbe4   : > { %9420 = vmatpush1.bf16.msra.mxu1 %v13768_v29  ;;  %9202 = vmatprep.subr.bf16.mxu0 %v13775_v28  ;;  %v18377_v29 = vsel %vm17876_vm14, %v18253_v36, 0  ;;  %v13792_v28 = vcombine.low %v6461_v38, %v6465_v24  ;;  %v13801_v62 = vcombine.high %v6469_v31, %v6473_v9  ;;  %v6477_v36 = vld [vmem:[#allocation22 + $0x218] sm:$0xff] }
 0xbe5   : > { %14149 = vmatmul.mubr.msk.bf16.gmra.mrb[40].mxu0 %vm18111_vm10, %v18251_v23  ;;  %9421 = vmatprep.subr.bf16.mxu1 %v13777_v8  ;;  %v13799_v8 = vcombine.high %v6468_v59, %v6472_v37  ;;  %v6485_v38 = vld [vmem:[#allocation22 + $0x258] sm:$0xff] }
 0xbe6   : > { %14181 = vmatmul.mubr.msk.bf16.gmra.mrb[56].mxu1 %vm18111_vm10, %v18251_v23  ;;  %14151 = vmatprep.mubr.msk.bf16.mxu0 %vm18353_vm4, %v18363_v42  ;;  %v6489_v24 = vld [vmem:[#allocation22 + $0x278] sm:$0xff] }
 0xbe7   : > { %14183 = vmatprep.mubr.msk.bf16.mxu1 %vm18353_vm4, %v18363_v42  ;;  %9203 = vmatpush1.bf16.msra.mxu0 %v13774_v20  ;;  %v13798_v20 = vcombine.low %v6468_v59, %v6472_v37  ;;  %v6496_v59 = vld [vmem:[#allocation22 + $0x2b0] sm:$0xff]  ;;  %v6493_v37 = vld [vmem:[#allocation22 + $0x298] sm:$0xff] }
 0xbe8   : > { %9422 = vmatpush1.bf16.msra.mxu1 %v13776_v1  ;;  %9204 = vmatprep.subr.bf16.mxu0 %v13783_v12  ;;  %v13800_v1 = vcombine.low %v6469_v31, %v6473_v9  ;;  %v13807_v12 = vcombine.high %v6476_v2, %v6480_v39  ;;  %v13814_v31 = vcombine.low %v6484_v16, %v6488_v21 }
 0xbe9   : > { %9423 = vmatprep.subr.bf16.mxu1 %v13785_v13  ;;  %v13809_v13 = vcombine.high %v6477_v36, %v6481_v34  ;;  %v13816_v9 = vcombine.low %v6485_v38, %v6489_v24 }
 0xbeb   : > { %9205 = vmatpush1.bf16.msra.mxu0 %v13782_v43  ;;  %v13806_v43 = vcombine.low %v6476_v2, %v6480_v39  ;;  %v6504_v2 = vld [vmem:[#allocation22 + $0x2f0] sm:$0xff]  ;;  %v6501_v39 = vld [vmem:[#allocation22 + $0x2d8] sm:$0xff] }
 0xbec   : > { %9424 = vmatpush1.bf16.msra.mxu1 %v13784_v49  ;;  %9206 = vmatprep.subr.bf16.mxu0 %v13791_v48  ;;  %v13808_v49 = vcombine.low %v6477_v36, %v6481_v34  ;;  %v13815_v48 = vcombine.high %v6484_v16, %v6488_v21  ;;  %v6512_v16 = vld [vmem:[#allocation22 + $0x330] sm:$0xff]  ;;  %v6509_v21 = vld [vmem:[#allocation22 + $0x318] sm:$0xff] }
 0xbed   : > { %14153 = vmatmul.mubr.msk.bf16.gmra.mrb[44].mxu0 %vm18353_vm4, %v18377_v29  ;;  %9425 = vmatprep.subr.bf16.mxu1 %v13793_v35  ;;  %v13817_v35 = vcombine.high %v6485_v38, %v6489_v24 }
 0xbee   : > { %14185 = vmatmul.mubr.msk.bf16.gmra.mrb[60].mxu1 %vm18353_vm4, %v18377_v29  ;;  %14187 = vmatprep.mubr.msk.bf16.mxu0 %vm18074_vm6, %v18088_v26 }
 0xbef   : > { %9207 = vmatpush1.bf16.msra.mxu0 %v13790_v45  ;;  %14219 = vmatprep.mubr.msk.bf16.mxu1 %vm18074_vm6, %v18088_v26  ;;  %v6492_v26 = vld [vmem:[#allocation22 + $0x290] sm:$0xff]  ;;  %v6497_v45 = vld [vmem:[#allocation22 + $0x2b8] sm:$0xff] }
 0xbf0   : > { %9426 = vmatpush1.bf16.msra.mxu1 %v13792_v28  ;;  %9208 = vmatprep.subr.bf16.mxu0 %v13799_v8  ;;  %v13823_v28 = vcombine.high %v6492_v26, %v6496_v59  ;;  %v13825_v8 = vcombine.high %v6493_v37, %v6497_v45  ;;  %v13822_v36 = vcombine.low %v6492_v26, %v6496_v59  ;;  %v6520_v26 = vld [vmem:[#allocation22 + $0x370] sm:$0xff]  ;;  %v6517_v59 = vld [vmem:[#allocation22 + $0x358] sm:$0xff] }
 0xbf1   : > { %9427 = vmatprep.subr.bf16.mxu1 %v13801_v62  ;;  %v6500_v62 = vld [vmem:[#allocation22 + $0x2d0] sm:$0xff]  ;;  %v13824_v34 = vcombine.low %v6493_v37, %v6497_v45 }
 0xbf2   : > { %v13830_v38 = vcombine.low %v6500_v62, %v6504_v2 }
 0xbf3   : > { %9209 = vmatpush1.bf16.msra.mxu0 %v13798_v20  ;;  %v6505_v20 = vld [vmem:[#allocation22 + $0x2f8] sm:$0xff] }
 0xbf4   : > { %9428 = vmatpush1.bf16.msra.mxu1 %v13800_v1  ;;  %9210 = vmatprep.subr.bf16.mxu0 %v13807_v12  ;;  %v13831_v1 = vcombine.high %v6500_v62, %v6504_v2  ;;  %v13833_v12 = vcombine.high %v6501_v39, %v6505_v20  ;;  %v13832_v24 = vcombine.low %v6501_v39, %v6505_v20  ;;  %v6528_v62 = vld [vmem:[#allocation22 + $0x3b0] sm:$0xff]  ;;  %v6525_v2 = vld [vmem:[#allocation22 + $0x398] sm:$0xff] }
 0xbf5   : > { %9429 = vmatprep.subr.bf16.mxu1 %v13809_v13  ;;  %v6508_v13 = vld [vmem:[#allocation22 + $0x310] sm:$0xff] }
 0xbf6   : > { %v13838_v37 = vcombine.low %v6508_v13, %v6512_v16 }
 0xbf7   : > { %9211 = vmatpush1.bf16.msra.mxu0 %v13806_v43  ;;  %v6513_v43 = vld [vmem:[#allocation22 + $0x338] sm:$0xff] }
 0xbf8   : > { %9430 = vmatpush1.bf16.msra.mxu1 %v13808_v49  ;;  %9212 = vmatprep.subr.bf16.mxu0 %v13815_v48  ;;  %v13839_v49 = vcombine.high %v6508_v13, %v6512_v16  ;;  %v13841_v48 = vcombine.high %v6509_v21, %v6513_v43  ;;  %v13840_v45 = vcombine.low %v6509_v21, %v6513_v43  ;;  %v6536_v13 = vld [vmem:[#allocation22 + $0x3f0] sm:$0xff]  ;;  %v6533_v16 = vld [vmem:[#allocation22 + $0x3d8] sm:$0xff] }
 0xbf9   : > { %9431 = vmatprep.subr.bf16.mxu1 %v13817_v35  ;;  %v6516_v35 = vld [vmem:[#allocation22 + $0x350] sm:$0xff] }
 0xbfa   : > { %v13846_v39 = vcombine.low %v6516_v35, %v6520_v26 }
 0xbfb   : > { %9213 = vmatpush1.bf16.msra.mxu0 %v13814_v31  ;;  %v6521_v31 = vld [vmem:[#allocation22 + $0x378] sm:$0xff] }
 0xbfc   : > { %9432 = vmatpush1.bf16.msra.mxu1 %v13816_v9  ;;  %9214 = vmatprep.subr.bf16.mxu0 %v13823_v28  ;;  %v13847_v9 = vcombine.high %v6516_v35, %v6520_v26  ;;  %v13849_v28 = vcombine.high %v6517_v59, %v6521_v31  ;;  %v13848_v20 = vcombine.low %v6517_v59, %v6521_v31  ;;  %v6544_v35 = vld [vmem:[#allocation22 + $0x430] sm:$0xff]  ;;  %v6541_v26 = vld [vmem:[#allocation22 + $0x418] sm:$0xff] }
 0xbfd   : > { %9433 = vmatprep.subr.bf16.mxu1 %v13825_v8  ;;  %v6524_v8 = vld [vmem:[#allocation22 + $0x390] sm:$0xff] }
 0xbfe   : > { %v13854_v21 = vcombine.low %v6524_v8, %v6528_v62 }
 0xbff   : > { %9215 = vmatpush1.bf16.msra.mxu0 %v13822_v36  ;;  %v6529_v36 = vld [vmem:[#allocation22 + $0x3b8] sm:$0xff] }
 0xc00   : > { %9434 = vmatpush1.bf16.msra.mxu1 %v13824_v34  ;;  %9216 = vmatprep.subr.bf16.mxu0 %v13831_v1  ;;  %v13855_v34 = vcombine.high %v6524_v8, %v6528_v62  ;;  %v13857_v1 = vcombine.high %v6525_v2, %v6529_v36  ;;  %v13856_v43 = vcombine.low %v6525_v2, %v6529_v36  ;;  %v6552_v8 = vld [vmem:[#allocation22 + $0x470] sm:$0xff]  ;;  %v6549_v62 = vld [vmem:[#allocation22 + $0x458] sm:$0xff] }
 0xc01   : > { %9435 = vmatprep.subr.bf16.mxu1 %v13833_v12  ;;  %v6532_v12 = vld [vmem:[#allocation22 + $0x3d0] sm:$0xff]  ;;  %v6553_v2 = vld [vmem:[#allocation22 + $0x478] sm:$0xff] }
 0xc02   : > { %v13862_v59 = vcombine.low %v6532_v12, %v6536_v13 }
 0xc03   : > { %9217 = vmatpush1.bf16.msra.mxu0 %v13830_v38  ;;  %v6537_v38 = vld [vmem:[#allocation22 + $0x3f8] sm:$0xff] }
 0xc04   : > { %9436 = vmatpush1.bf16.msra.mxu1 %v13832_v24  ;;  %9218 = vmatprep.subr.bf16.mxu0 %v13839_v49  ;;  %v13863_v24 = vcombine.high %v6532_v12, %v6536_v13  ;;  %v13865_v49 = vcombine.high %v6533_v16, %v6537_v38  ;;  %v13864_v31 = vcombine.low %v6533_v16, %v6537_v38  ;;  %v6560_v12 = vld [vmem:[#allocation22 + $0x4b0] sm:$0xff]  ;;  %v6557_v13 = vld [vmem:[#allocation22 + $0x498] sm:$0xff] }
 0xc05   : > { %9437 = vmatprep.subr.bf16.mxu1 %v13841_v48  ;;  %v6540_v48 = vld [vmem:[#allocation22 + $0x410] sm:$0xff]  ;;  %v6561_v16 = vld [vmem:[#allocation22 + $0x4b8] sm:$0xff] }
 0xc06   : > { %v13870_v36 = vcombine.low %v6540_v48, %v6544_v35 }
 0xc07   : > { %9219 = vmatpush1.bf16.msra.mxu0 %v13838_v37  ;;  %v6545_v37 = vld [vmem:[#allocation22 + $0x438] sm:$0xff] }
 0xc08   : > { %9438 = vmatpush1.bf16.msra.mxu1 %v13840_v45  ;;  %9220 = vmatprep.subr.bf16.mxu0 %v13847_v9  ;;  %v13871_v45 = vcombine.high %v6540_v48, %v6544_v35  ;;  %v13873_v9 = vcombine.high %v6541_v26, %v6545_v37  ;;  %v6569_v48 = vld [vmem:[#allocation22 + $0x4f8] sm:$0xff] }
 0xc09   : > { %9439 = vmatprep.subr.bf16.mxu1 %v13849_v28  ;;  %v6548_v28 = vld [vmem:[#allocation22 + $0x450] sm:$0xff] }
 0xc0a   : > { %v13878_v38 = vcombine.low %v6548_v28, %v6552_v8 }
 0xc0b   : > { %9221 = vmatpush1.bf16.msra.mxu0 %v13846_v39  ;;  %v13872_v39 = vcombine.low %v6541_v26, %v6545_v37  ;;  %v13888_v26 = vcombine.low %v6557_v13, %v6561_v16 }
 0xc0c   : > { %9440 = vmatpush1.bf16.msra.mxu1 %v13848_v20  ;;  %9222 = vmatprep.subr.bf16.mxu0 %v13855_v34  ;;  %v13879_v20 = vcombine.high %v6548_v28, %v6552_v8  ;;  %v13881_v34 = vcombine.high %v6549_v62, %v6553_v2 }
 0xc0d   : > { %9441 = vmatprep.subr.bf16.mxu1 %v13857_v1  ;;  %v6556_v1 = vld [vmem:[#allocation22 + $0x490] sm:$0xff] }
 0xc0e   : > { %v13886_v35 = vcombine.low %v6556_v1, %v6560_v12 }
 0xc0f   : > { %9223 = vmatpush1.bf16.msra.mxu0 %v13854_v21  ;;  %v13880_v21 = vcombine.low %v6549_v62, %v6553_v2 }
 0xc10   : > { %9442 = vmatpush1.bf16.msra.mxu1 %v13856_v43  ;;  %9224 = vmatprep.subr.bf16.mxu0 %v13863_v24  ;;  %v13887_v43 = vcombine.high %v6556_v1, %v6560_v12  ;;  %v13889_v24 = vcombine.high %v6557_v13, %v6561_v16  ;;  %v6588_v13 = vld [vmem:[#allocation22 + $0x590] sm:$0xff] }
 0xc11   : > { %9443 = vmatprep.subr.bf16.mxu1 %v13865_v49  ;;  %v6565_v49 = vld [vmem:[#allocation22 + $0x4d8] sm:$0xff]  ;;  %v6592_v16 = vld [vmem:[#allocation22 + $0x5b0] sm:$0xff] }
 0xc12   : > { %v13896_v8 = vcombine.low %v6565_v49, %v6569_v48 }
 0xc13   : > { %9225 = vmatpush1.bf16.msra.mxu0 %v13862_v59  ;;  %v6572_v59 = vld [vmem:[#allocation22 + $0x510] sm:$0xff] }
 0xc14   : > { %9444 = vmatpush1.bf16.msra.mxu1 %v13864_v31  ;;  %9267 = vmatprep.subr.bf16.mxu0 %v13871_v45  ;;  %v6576_v31 = vld [vmem:[#allocation22 + $0x530] sm:$0xff]  ;;  %v6573_v45 = vld [vmem:[#allocation22 + $0x518] sm:$0xff] }
 0xc15   : > { %9486 = vmatprep.subr.bf16.mxu1 %v13873_v9  ;;  %v6577_v9 = vld [vmem:[#allocation22 + $0x538] sm:$0xff]  ;;  %v13903_v62 = vcombine.high %v6572_v59, %v6576_v31 }
 0xc16   : > { %14189 = vmatmul.mubr.msk.bf16.vlgmr.msra.gmra.mrb[48].mxu0 %vm18074_vm6, %v18103_v63  ;;  %v13905_v2 = vcombine.high %v6573_v45, %v6577_v9  ;;  %v13904_v1 = vcombine.low %v6573_v45, %v6577_v9  ;;  %v6609_v45 = vld [vmem:[#allocation22 + $0x638] sm:$0xff] }
 0xc17   : > { %14221 = vmatmul.mubr.msk.bf16.vlgmr.msra.gmra.mrb[64].mxu1 %vm18074_vm6, %v18103_v63  ;;  %14191 = vmatprep.mubr.msk.bf16.mxu0 %vm18111_vm10, %v18171_v58  ;;  %v6568_v63 = vld [vmem:[#allocation22 + $0x4f0] sm:$0xff] }
 0xc18   : > { %9268 = vmatpush1.bf16.msra.mxu0 %v13870_v36  ;;  %14223 = vmatprep.mubr.msk.bf16.mxu1 %vm18111_vm10, %v18171_v58  ;;  %v13895_v37 = vcombine.high %v6564_v54, %v6568_v63  ;;  %v13897_v58 = vcombine.high %v6565_v49, %v6569_v48  ;;  %v13894_v28 = vcombine.low %v6564_v54, %v6568_v63  ;;  %v6580_v36 = vld [vmem:[#allocation22 + $0x550] sm:$0xff]  ;;  %v6597_v49 = vld [vmem:[#allocation22 + $0x5d8] sm:$0xff] }
 0xc19   : > { %9487 = vmatpush1.bf16.msra.mxu1 %v13872_v39  ;;  %9269 = vmatprep.subr.bf16.mxu0 %v13879_v20  ;;  %v6581_v39 = vld [vmem:[#allocation22 + $0x558] sm:$0xff]  ;;  %v13919_v54 = vcombine.high %v6588_v13, %v6592_v16 }
 0xc1a   : > { %9488 = vmatprep.subr.bf16.mxu1 %v13881_v34  ;;  %v6585_v20 = vld [vmem:[#allocation22 + $0x578] sm:$0xff]  ;;  %v13902_v34 = vcombine.low %v6572_v59, %v6576_v31  ;;  %v6608_v59 = vld [vmem:[#allocation22 + $0x630] sm:$0xff] }
 0xc1b   : > { %v6601_v48 = vld [vmem:[#allocation22 + $0x5f8] sm:$0xff] }
 0xc1c   : > { %9270 = vmatpush1.bf16.msra.mxu0 %v13878_v38  ;;  %v6589_v38 = vld [vmem:[#allocation22 + $0x598] sm:$0xff] }
 0xc1d   : > { %9489 = vmatpush1.bf16.msra.mxu1 %v13880_v21  ;;  %9271 = vmatprep.subr.bf16.mxu0 %v13887_v43  ;;  %v6593_v21 = vld [vmem:[#allocation22 + $0x5b8] sm:$0xff] }
 0xc1e   : > { %14193 = vmatmul.mubr.msk.bf16.gmra.mrb[52].mxu0 %vm18111_vm10, %v18186_v44  ;;  %9490 = vmatprep.subr.bf16.mxu1 %v13889_v24  ;;  %v13912_v24 = vcombine.low %v6581_v39, %v6585_v20  ;;  %v13921_v63 = vcombine.high %v6589_v38, %v6593_v21  ;;  %v6605_v31 = vld [vmem:[#allocation22 + $0x618] sm:$0xff] }
 0xc1f   : > { %14225 = vmatmul.mubr.msk.bf16.gmra.mrb[68].mxu1 %vm18111_vm10, %v18186_v44  ;;  %14195 = vmatprep.mubr.msk.bf16.mxu0 %vm18208_vm12, %v18232_v40  ;;  %v6584_v44 = vld [vmem:[#allocation22 + $0x570] sm:$0xff] }
 0xc20   : > { %9272 = vmatpush1.bf16.msra.mxu0 %v13886_v35  ;;  %14227 = vmatprep.mubr.msk.bf16.mxu1 %vm18208_vm12, %v18232_v40  ;;  %v13911_v12 = vcombine.high %v6580_v36, %v6584_v44  ;;  %v13913_v40 = vcombine.high %v6581_v39, %v6585_v20  ;;  %v13910_v43 = vcombine.low %v6580_v36, %v6584_v44  ;;  %v6616_v36 = vld [vmem:[#allocation22 + $0x670] sm:$0xff]  ;;  %v6613_v44 = vld [vmem:[#allocation22 + $0x658] sm:$0xff] }
 0xc21   : > { %9491 = vmatpush1.bf16.msra.mxu1 %v13888_v26  ;;  %9273 = vmatprep.subr.bf16.mxu0 %v13895_v37  ;;  %v13918_v35 = vcombine.low %v6588_v13, %v6592_v16  ;;  %v13920_v26 = vcombine.low %v6589_v38, %v6593_v21  ;;  %v6617_v39 = vld [vmem:[#allocation22 + $0x678] sm:$0xff]  ;;  %v13936_v20 = vcombine.low %v6605_v31, %v6609_v45 }
 0xc22   : > { %9492 = vmatprep.subr.bf16.mxu1 %v13897_v58  ;;  %v6604_v58 = vld [vmem:[#allocation22 + $0x610] sm:$0xff]  ;;  %v6625_v13 = vld [vmem:[#allocation22 + $0x6b8] sm:$0xff]  ;;  %v13944_v38 = vcombine.low %v6613_v44, %v6617_v39 }
 0xc24   : > { %9274 = vmatpush1.bf16.msra.mxu0 %v13894_v28  ;;  %v13928_v28 = vcombine.low %v6597_v49, %v6601_v48 }
 0xc25   : > { %9493 = vmatpush1.bf16.msra.mxu1 %v13896_v8  ;;  %9275 = vmatprep.subr.bf16.mxu0 %v13903_v62  ;;  %v13935_v8 = vcombine.high %v6604_v58, %v6608_v59  ;;  %v13937_v62 = vcombine.high %v6605_v31, %v6609_v45 }
 0xc26   : > { %14197 = vmatmul.mubr.msk.bf16.gmra.mrb[56].mxu0 %vm18208_vm12, %v18226_v61  ;;  %9494 = vmatprep.subr.bf16.mxu1 %v13905_v2  ;;  %v6612_v2 = vld [vmem:[#allocation22 + $0x650] sm:$0xff] }
 0xc27   : > { %14229 = vmatmul.mubr.msk.bf16.gmra.mrb[72].mxu1 %vm18208_vm12, %v18226_v61  ;;  %14199 = vmatprep.mubr.msk.bf16.mxu0 %vm18111_vm10, %v18266_v47  ;;  %v6600_v61 = vld [vmem:[#allocation22 + $0x5f0] sm:$0xff]  ;;  %v13942_v16 = vcombine.low %v6612_v2, %v6616_v36 }
 0xc28   : > { %9276 = vmatpush1.bf16.msra.mxu0 %v13902_v34  ;;  %14231 = vmatprep.mubr.msk.bf16.mxu1 %vm18111_vm10, %v18266_v47  ;;  %v13927_v37 = vcombine.high %v6596_v18, %v6600_v61  ;;  %v13929_v47 = vcombine.high %v6597_v49, %v6601_v48  ;;  %v13926_v9 = vcombine.low %v6596_v18, %v6600_v61  ;;  %v6633_v18 = vld [vmem:[#allocation22 + $0x6f8] sm:$0xff] }
 0xc29   : > { %9495 = vmatpush1.bf16.msra.mxu1 %v13904_v1  ;;  %9277 = vmatprep.subr.bf16.mxu0 %v13911_v12  ;;  %v13943_v34 = vcombine.high %v6612_v2, %v6616_v36  ;;  %v13945_v1 = vcombine.high %v6613_v44, %v6617_v39  ;;  %v6624_v12 = vld [vmem:[#allocation22 + $0x6b0] sm:$0xff]  ;;  %v6649_v2 = vld [vmem:[#allocation22 + $0x778] sm:$0xff] }
 0xc2a   : > { %9496 = vmatprep.subr.bf16.mxu1 %v13913_v40  ;;  %v6621_v40 = vld [vmem:[#allocation22 + $0x698] sm:$0xff] }
 0xc2b   : > { %v13952_v49 = vcombine.low %v6621_v40, %v6625_v13 }
 0xc2c   : > { %9278 = vmatpush1.bf16.msra.mxu0 %v13910_v43  ;;  %v13953_v43 = vcombine.high %v6621_v40, %v6625_v13 }
 0xc2d   : > { %9497 = vmatpush1.bf16.msra.mxu1 %v13912_v24  ;;  %9279 = vmatprep.subr.bf16.mxu0 %v13919_v54  ;;  %v6628_v24 = vld [vmem:[#allocation22 + $0x6d0] sm:$0xff] }
 0xc2e   : > { %14201 = vmatmul.mubr.msk.bf16.gmra.mrb[60].mxu0 %vm18111_vm10, %v18262_v46  ;;  %9498 = vmatprep.subr.bf16.mxu1 %v13921_v63  ;;  %v6632_v54 = vld [vmem:[#allocation22 + $0x6f0] sm:$0xff]  ;;  %v6629_v63 = vld [vmem:[#allocation22 + $0x6d8] sm:$0xff] }
 0xc2f   : > { %14233 = vmatmul.mubr.msk.bf16.gmra.mrb[76].mxu1 %vm18111_vm10, %v18262_v46  ;;  %9299 = vmatprep.mubr.bf16.mxu0 %v18057_v19  ;;  %v13934_v46 = vcombine.low %v6604_v58, %v6608_v59  ;;  %v13959_v48 = vcombine.high %v6628_v24, %v6632_v54  ;;  %v6641_v58 = vld [vmem:[#allocation22 + $0x738] sm:$0xff]  ;;  %v13958_v59 = vcombine.low %v6628_v24, %v6632_v54 }
 0xc30   : > { %9280 = vmatpush1.bf16.msra.mxu0 %v13918_v35  ;;  %9518 = vmatprep.mubr.bf16.mxu1 %v18057_v19  ;;  %v6620_v19 = vld [vmem:[#allocation22 + $0x690] sm:$0xff]  ;;  %v13961_v35 = vcombine.high %v6629_v63, %v6633_v18  ;;  %v13960_v31 = vcombine.low %v6629_v63, %v6633_v18  ;;  %v6665_v24 = vld [vmem:[#allocation22 + $0x7f8] sm:$0xff] }
 0xc31   : > { %9499 = vmatpush1.bf16.msra.mxu1 %v13920_v26  ;;  %9281 = vmatprep.subr.bf16.mxu0 %v13927_v37  ;;  %v13951_v21 = vcombine.high %v6620_v19, %v6624_v12  ;;  %v13950_v61 = vcombine.low %v6620_v19, %v6624_v12  ;;  %v6636_v26 = vld [vmem:[#allocation22 + $0x710] sm:$0xff]  ;;  %v6657_v19 = vld [vmem:[#allocation22 + $0x7b8] sm:$0xff] }
 0xc32   : > { %9500 = vmatprep.subr.bf16.mxu1 %v13929_v47  ;;  %v6640_v37 = vld [vmem:[#allocation22 + $0x730] sm:$0xff]  ;;  %v6637_v47 = vld [vmem:[#allocation22 + $0x718] sm:$0xff] }
 0xc33   : > { %v13967_v45 = vcombine.high %v6636_v26, %v6640_v37  ;;  %v13966_v36 = vcombine.low %v6636_v26, %v6640_v37  ;;  %v13968_v44 = vcombine.low %v6637_v47, %v6641_v58  ;;  %v6673_v26 = vld [vmem:[#allocation22 + $0x838] sm:$0xff] }
 0xc34   : > { %9282 = vmatpush1.bf16.msra.mxu0 %v13926_v9  ;;  %v13969_v9 = vcombine.high %v6637_v47, %v6641_v58 }
 0xc35   : > { %9501 = vmatpush1.bf16.msra.mxu1 %v13928_v28  ;;  %9283 = vmatprep.subr.bf16.mxu0 %v13935_v8  ;;  %v6644_v28 = vld [vmem:[#allocation22 + $0x750] sm:$0xff] }
 0xc36   : > { %9502 = vmatprep.subr.bf16.mxu1 %v13937_v62  ;;  %v6648_v8 = vld [vmem:[#allocation22 + $0x770] sm:$0xff]  ;;  %v6645_v62 = vld [vmem:[#allocation22 + $0x758] sm:$0xff] }
 0xc37   : > { %v13975_v39 = vcombine.high %v6644_v28, %v6648_v8  ;;  %v13974_v12 = vcombine.low %v6644_v28, %v6648_v8  ;;  %v13976_v40 = vcombine.low %v6645_v62, %v6649_v2  ;;  %v6681_v28 = vld [vmem:[#allocation22 + $0x878] sm:$0xff] }
 0xc38   : > { %9284 = vmatpush1.bf16.msra.mxu0 %v13934_v46  ;;  %v13977_v46 = vcombine.high %v6645_v62, %v6649_v2 }
 0xc39   : > { %9503 = vmatpush1.bf16.msra.mxu1 %v13936_v20  ;;  %9285 = vmatprep.subr.bf16.mxu0 %v13943_v34  ;;  %v6652_v20 = vld [vmem:[#allocation22 + $0x790] sm:$0xff] }
 0xc3a   : > { %9504 = vmatprep.subr.bf16.mxu1 %v13945_v1  ;;  %v6656_v34 = vld [vmem:[#allocation22 + $0x7b0] sm:$0xff]  ;;  %v6653_v1 = vld [vmem:[#allocation22 + $0x798] sm:$0xff] }
 0xc3b   : > { %v13983_v13 = vcombine.high %v6652_v20, %v6656_v34  ;;  %v13982_v54 = vcombine.low %v6652_v20, %v6656_v34  ;;  %v13984_v63 = vcombine.low %v6653_v1, %v6657_v19  ;;  %v6689_v20 = vld [vmem:[#allocation22 + $0x8b8] sm:$0xff] }
 0xc3c   : > { %9286 = vmatpush1.bf16.msra.mxu0 %v13942_v16  ;;  %v13985_v16 = vcombine.high %v6653_v1, %v6657_v19 }
 0xc3d   : > { %9505 = vmatpush1.bf16.msra.mxu1 %v13944_v38  ;;  %9287 = vmatprep.subr.bf16.mxu0 %v13951_v21  ;;  %v6660_v38 = vld [vmem:[#allocation22 + $0x7d0] sm:$0xff] }
 0xc3e   : > { %9506 = vmatprep.subr.bf16.mxu1 %v13953_v43  ;;  %v6664_v21 = vld [vmem:[#allocation22 + $0x7f0] sm:$0xff]  ;;  %v6661_v43 = vld [vmem:[#allocation22 + $0x7d8] sm:$0xff] }
 0xc3f   : > { %v13991_v18 = vcombine.high %v6660_v38, %v6664_v21  ;;  %v13990_v37 = vcombine.low %v6660_v38, %v6664_v21  ;;  %v13992_v47 = vcombine.low %v6661_v43, %v6665_v24  ;;  %v6697_v38 = vld [vmem:[#allocation22 + $0x8f8] sm:$0xff] }
 0xc40   : > { %9288 = vmatpush1.bf16.msra.mxu0 %v13950_v61  ;;  %v13993_v61 = vcombine.high %v6661_v43, %v6665_v24  ;;  %v6700_v24 = vld [vmem:[#allocation22 + $0x910] sm:$0xff] }
 0xc41   : > { %9507 = vmatpush1.bf16.msra.mxu1 %v13952_v49  ;;  %9289 = vmatprep.subr.bf16.mxu0 %v13959_v48  ;;  %v6668_v49 = vld [vmem:[#allocation22 + $0x810] sm:$0xff] }
 0xc42   : > { %9508 = vmatprep.subr.bf16.mxu1 %v13961_v35  ;;  %v6672_v48 = vld [vmem:[#allocation22 + $0x830] sm:$0xff]  ;;  %v6669_v35 = vld [vmem:[#allocation22 + $0x818] sm:$0xff] }
 0xc43   : > { %v13999_v58 = vcombine.high %v6668_v49, %v6672_v48  ;;  %v13998_v8 = vcombine.low %v6668_v49, %v6672_v48  ;;  %v14000_v62 = vcombine.low %v6669_v35, %v6673_v26 }
 0xc44   : > { %9290 = vmatpush1.bf16.msra.mxu0 %v13958_v59  ;;  %v14001_v59 = vcombine.high %v6669_v35, %v6673_v26  ;;  %v6708_v26 = vld [vmem:[#allocation22 + $0x950] sm:$0xff] }
 0xc45   : > { %9509 = vmatpush1.bf16.msra.mxu1 %v13960_v31  ;;  %9291 = vmatprep.subr.bf16.mxu0 %v13967_v45  ;;  %v6676_v31 = vld [vmem:[#allocation22 + $0x850] sm:$0xff] }
 0xc46   : > { %9510 = vmatprep.subr.bf16.mxu1 %v13969_v9  ;;  %v6680_v45 = vld [vmem:[#allocation22 + $0x870] sm:$0xff]  ;;  %v6677_v9 = vld [vmem:[#allocation22 + $0x858] sm:$0xff] }
 0xc47   : > { %v14007_v2 = vcombine.high %v6676_v31, %v6680_v45  ;;  %v14006_v34 = vcombine.low %v6676_v31, %v6680_v45  ;;  %v14008_v1 = vcombine.low %v6677_v9, %v6681_v28  ;;  %v6716_v45 = vld [vmem:[#allocation22 + $0x990] sm:$0xff] }
 0xc48   : > { %9292 = vmatpush1.bf16.msra.mxu0 %v13966_v36  ;;  %v14009_v36 = vcombine.high %v6677_v9, %v6681_v28  ;;  %v6720_v9 = vld [vmem:[#allocation22 + $0x9b0] sm:$0xff]  ;;  %v6717_v28 = vld [vmem:[#allocation22 + $0x998] sm:$0xff] }
 0xc49   : > { %9511 = vmatpush1.bf16.msra.mxu1 %v13968_v44  ;;  %9293 = vmatprep.subr.bf16.mxu0 %v13975_v39  ;;  %v6684_v44 = vld [vmem:[#allocation22 + $0x890] sm:$0xff] }
 0xc4a   : > { %9512 = vmatprep.subr.bf16.mxu1 %v13977_v46  ;;  %v6688_v39 = vld [vmem:[#allocation22 + $0x8b0] sm:$0xff]  ;;  %v6685_v46 = vld [vmem:[#allocation22 + $0x898] sm:$0xff] }
 0xc4b   : > { %v14015_v19 = vcombine.high %v6684_v44, %v6688_v39  ;;  %v14016_v21 = vcombine.low %v6685_v46, %v6689_v20 }
 0xc4c   : > { %9294 = vmatpush1.bf16.msra.mxu0 %v13974_v12  ;;  %v14017_v12 = vcombine.high %v6685_v46, %v6689_v20  ;;  %v6728_v46 = vld [vmem:[#allocation22 + $0x9f0] sm:$0xff]  ;;  %v6725_v20 = vld [vmem:[#allocation22 + $0x9d8] sm:$0xff] }
 0xc4d   : > { %9513 = vmatpush1.bf16.msra.mxu1 %v13976_v40  ;;  %9295 = vmatprep.subr.bf16.mxu0 %v13983_v13  ;;  %v6692_v40 = vld [vmem:[#allocation22 + $0x8d0] sm:$0xff] }
 0xc4e   : > { %9514 = vmatprep.subr.bf16.mxu1 %v13985_v16  ;;  %v6696_v13 = vld [vmem:[#allocation22 + $0x8f0] sm:$0xff]  ;;  %v6693_v16 = vld [vmem:[#allocation22 + $0x8d8] sm:$0xff] }
 0xc4f   : > { %v14023_v43 = vcombine.high %v6692_v40, %v6696_v13  ;;  %v14024_v49 = vcombine.low %v6693_v16, %v6697_v38 }
 0xc50   : > { %9296 = vmatpush1.bf16.msra.mxu0 %v13982_v54  ;;  %v6704_v54 = vld [vmem:[#allocation22 + $0x930] sm:$0xff] }
 0xc51   : > { %9515 = vmatpush1.bf16.msra.mxu1 %v13984_v63  ;;  %9297 = vmatprep.subr.bf16.mxu0 %v13991_v18  ;;  %v6701_v63 = vld [vmem:[#allocation22 + $0x918] sm:$0xff]  ;;  %v14031_v48 = vcombine.high %v6700_v24, %v6704_v54 }
 0xc52   : > { %9516 = vmatprep.subr.bf16.mxu1 %v13993_v61  ;;  %v6705_v18 = vld [vmem:[#allocation22 + $0x938] sm:$0xff]  ;;  %v14022_v61 = vcombine.low %v6692_v40, %v6696_v13  ;;  %v6736_v40 = vld [vmem:[#allocation22 + $0xa30] sm:$0xff] }
 0xc53   : > { %v14033_v35 = vcombine.high %v6701_v63, %v6705_v18  ;;  %v6733_v13 = vld [vmem:[#allocation22 + $0xa18] sm:$0xff] }
 0xc54   : > { %9298 = vmatpush1.bf16.msra.mxu0 %v13990_v37  ;;  %v6712_v37 = vld [vmem:[#allocation22 + $0x970] sm:$0xff] }
 0xc55   : > { %9517 = vmatpush1.bf16.msra.mxu1 %v13992_v47  ;;  %9340 = vmatprep.subr.bf16.mxu0 %v13999_v58  ;;  %v6709_v47 = vld [vmem:[#allocation22 + $0x958] sm:$0xff]  ;;  %v14039_v31 = vcombine.high %v6708_v26, %v6712_v37 }
 0xc56   : > { %9559 = vmatprep.subr.bf16.mxu1 %v14001_v59  ;;  %v6713_v58 = vld [vmem:[#allocation22 + $0x978] sm:$0xff]  ;;  %v14032_v59 = vcombine.low %v6701_v63, %v6705_v18 }
 0xc57   : > { %9300 = vmatmul.mubr.bf16.vlgmr.msra.gmra.mrb[48].mxu0 %v18053_v17 }
 0xc58   : > { %9519 = vmatmul.mubr.bf16.vlgmr.msra.gmra.mrb[64].mxu1 %v18053_v17  ;;  %9309 = vmatprep.mubr.bf16.mxu0 %v18084_v57  ;;  %v14014_v17 = vcombine.low %v6684_v44, %v6688_v39  ;;  %v6724_v39 = vld [vmem:[#allocation22 + $0x9d0] sm:$0xff] }
 0xc59   : > { %9341 = vmatpush1.bf16.msra.mxu0 %v13998_v8  ;;  %9528 = vmatprep.mubr.bf16.mxu1 %v18084_v57  ;;  %v14025_v57 = vcombine.high %v6693_v16, %v6697_v38  ;;  %v6721_v8 = vld [vmem:[#allocation22 + $0x9b8] sm:$0xff]  ;;  %v14054_v38 = vcombine.low %v6724_v39, %v6728_v46 }
 0xc5a   : > { %9560 = vmatpush1.bf16.msra.mxu1 %v14000_v62  ;;  %9342 = vmatprep.subr.bf16.mxu0 %v14007_v2  ;;  %v14038_v62 = vcombine.low %v6708_v26, %v6712_v37  ;;  %v14040_v2 = vcombine.low %v6709_v47, %v6713_v58  ;;  %v14049_v44 = vcombine.high %v6717_v28, %v6721_v8  ;;  %v6737_v16 = vld [vmem:[#allocation22 + $0xa38] sm:$0xff] }
 0xc5b   : > { %9561 = vmatprep.subr.bf16.mxu1 %v14009_v36  ;;  %v14047_v36 = vcombine.high %v6716_v45, %v6720_v9  ;;  %v14064_v18 = vcombine.low %v6733_v13, %v6737_v16  ;;  %v6753_v26 = vld [vmem:[#allocation22 + $0xab8] sm:$0xff] }
 0xc5d   : > { %9343 = vmatpush1.bf16.msra.mxu0 %v14006_v34  ;;  %v6729_v34 = vld [vmem:[#allocation22 + $0x9f8] sm:$0xff] }
 0xc5e   : > { %9562 = vmatpush1.bf16.msra.mxu1 %v14008_v1  ;;  %9344 = vmatprep.subr.bf16.mxu0 %v14015_v19  ;;  %v14048_v1 = vcombine.low %v6717_v28, %v6721_v8  ;;  %v14055_v19 = vcombine.high %v6724_v39, %v6728_v46  ;;  %v6769_v39 = vld [vmem:[#allocation22 + $0xb38] sm:$0xff] }
 0xc5f   : > { %9310 = vmatmul.mubr.bf16.gmra.mrb[52].mxu0 %v18078_v41  ;;  %9563 = vmatprep.subr.bf16.mxu1 %v14017_v12  ;;  %v6732_v12 = vld [vmem:[#allocation22 + $0xa10] sm:$0xff] }
 0xc60   : > { %9529 = vmatmul.mubr.bf16.gmra.mrb[68].mxu1 %v18078_v41  ;;  %9319 = vmatprep.mubr.bf16.mxu0 %v18167_v55  ;;  %v14030_v41 = vcombine.low %v6700_v24, %v6704_v54  ;;  %v6741_v24 = vld [vmem:[#allocation22 + $0xa58] sm:$0xff]  ;;  %v14062_v63 = vcombine.low %v6732_v12, %v6736_v40 }
 0xc61   : > { %9345 = vmatpush1.bf16.msra.mxu0 %v14014_v17  ;;  %9538 = vmatprep.mubr.bf16.mxu1 %v18167_v55  ;;  %v14041_v55 = vcombine.high %v6709_v47, %v6713_v58  ;;  %v14056_v17 = vcombine.low %v6725_v20, %v6729_v34  ;;  %v6745_v54 = vld [vmem:[#allocation22 + $0xa78] sm:$0xff] }
 0xc62   : > { %9564 = vmatpush1.bf16.msra.mxu1 %v14016_v21  ;;  %9346 = vmatprep.subr.bf16.mxu0 %v14023_v43  ;;  %v14063_v21 = vcombine.high %v6732_v12, %v6736_v40  ;;  %v14065_v43 = vcombine.high %v6733_v13, %v6737_v16  ;;  %v14072_v47 = vcombine.low %v6741_v24, %v6745_v54  ;;  %v6777_v12 = vld [vmem:[#allocation22 + $0xb78] sm:$0xff] }
 0xc63   : > { %9565 = vmatprep.subr.bf16.mxu1 %v14025_v57  ;;  %v6740_v57 = vld [vmem:[#allocation22 + $0xa50] sm:$0xff] }
 0xc65   : > { %9347 = vmatpush1.bf16.msra.mxu0 %v14022_v61 }
 0xc66   : > { %9566 = vmatpush1.bf16.msra.mxu1 %v14024_v49  ;;  %9348 = vmatprep.subr.bf16.mxu0 %v14031_v48  ;;  %v14073_v49 = vcombine.high %v6741_v24, %v6745_v54  ;;  %v6752_v48 = vld [vmem:[#allocation22 + $0xab0] sm:$0xff] }
 0xc67   : > { %9320 = vmatmul.mubr.bf16.gmra.mrb[56].mxu0 %v18161_v53  ;;  %9567 = vmatprep.subr.bf16.mxu1 %v14033_v35  ;;  %v6749_v35 = vld [vmem:[#allocation22 + $0xa98] sm:$0xff] }
 0xc68   : > { %9539 = vmatmul.mubr.bf16.gmra.mrb[72].mxu1 %v18161_v53  ;;  %9329 = vmatprep.mubr.bf16.mxu0 %v18228_v60  ;;  %v14046_v53 = vcombine.low %v6716_v45, %v6720_v9  ;;  %v6761_v45 = vld [vmem:[#allocation22 + $0xaf8] sm:$0xff]  ;;  %v14080_v28 = vcombine.low %v6749_v35, %v6753_v26 }
 0xc69   : > { %9349 = vmatpush1.bf16.msra.mxu0 %v14030_v41  ;;  %9548 = vmatprep.mubr.bf16.mxu1 %v18228_v60  ;;  %v14057_v60 = vcombine.high %v6725_v20, %v6729_v34  ;;  %v14081_v41 = vcombine.high %v6749_v35, %v6753_v26 }
 0xc6a   : > { %9568 = vmatpush1.bf16.msra.mxu1 %v14032_v59  ;;  %9350 = vmatprep.subr.bf16.mxu0 %v14039_v31  ;;  %v6756_v59 = vld [vmem:[#allocation22 + $0xad0] sm:$0xff] }
 0xc6b   : > { %9569 = vmatprep.subr.bf16.mxu1 %v14041_v55  ;;  %v6760_v31 = vld [vmem:[#allocation22 + $0xaf0] sm:$0xff]  ;;  %v6757_v55 = vld [vmem:[#allocation22 + $0xad8] sm:$0xff] }
 0xc6c   : > { %v14087_v8 = vcombine.high %v6756_v59, %v6760_v31  ;;  %v14086_v46 = vcombine.low %v6756_v59, %v6760_v31  ;;  %v14088_v20 = vcombine.low %v6757_v55, %v6761_v45 }
 0xc6d   : > { %9351 = vmatpush1.bf16.msra.mxu0 %v14038_v62  ;;  %v14089_v62 = vcombine.high %v6757_v55, %v6761_v45 }
 0xc6e   : > { %9570 = vmatpush1.bf16.msra.mxu1 %v14040_v2  ;;  %9352 = vmatprep.subr.bf16.mxu0 %v14047_v36  ;;  %v6764_v2 = vld [vmem:[#allocation22 + $0xb10] sm:$0xff] }
 0xc6f   : > { %9330 = vmatmul.mubr.bf16.gmra.mrb[60].mxu0 %v18222_v0  ;;  %9571 = vmatprep.subr.bf16.mxu1 %v14049_v44  ;;  %v6768_v36 = vld [vmem:[#allocation22 + $0xb30] sm:$0xff]  ;;  %v6765_v44 = vld [vmem:[#allocation22 + $0xb18] sm:$0xff] }
 0xc70   : > { %9549 = vmatmul.mubr.bf16.gmra.mrb[76].mxu1 %v18222_v0  ;;  %14203 = vmatprep.mubr.msk.bf16.mxu0 %vm18111_vm10, %v18159_v52  ;;  %v6744_v0 = vld [vmem:[#allocation22 + $0xa70] sm:$0xff]  ;;  %v14095_v34 = vcombine.high %v6764_v2, %v6768_v36  ;;  %v14094_v40 = vcombine.low %v6764_v2, %v6768_v36  ;;  %v14096_v13 = vcombine.low %v6765_v44, %v6769_v39 }
 0xc71   : > { %9353 = vmatpush1.bf16.msra.mxu0 %v14046_v53  ;;  %14235 = vmatprep.mubr.msk.bf16.mxu1 %vm18111_vm10, %v18159_v52  ;;  %v14071_v61 = vcombine.high %v6740_v57, %v6744_v0  ;;  %v6748_v52 = vld [vmem:[#allocation22 + $0xa90] sm:$0xff]  ;;  %v14070_v37 = vcombine.low %v6740_v57, %v6744_v0  ;;  %v14097_v53 = vcombine.high %v6765_v44, %v6769_v39  ;;  %v6785_v57 = vld [vmem:[#allocation22 + $0xbb8] sm:$0xff] }
 0xc72   : > { %9572 = vmatpush1.bf16.msra.mxu1 %v14048_v1  ;;  %9354 = vmatprep.subr.bf16.mxu0 %v14055_v19  ;;  %v14079_v58 = vcombine.high %v6748_v52, %v6752_v48  ;;  %v14078_v9 = vcombine.low %v6748_v52, %v6752_v48  ;;  %v6772_v1 = vld [vmem:[#allocation22 + $0xb50] sm:$0xff]  ;;  %v6793_v52 = vld [vmem:[#allocation22 + $0xbf8] sm:$0xff] }
 0xc73   : > { %9573 = vmatprep.subr.bf16.mxu1 %v14057_v60  ;;  %v6776_v19 = vld [vmem:[#allocation22 + $0xb70] sm:$0xff]  ;;  %v6773_v60 = vld [vmem:[#allocation22 + $0xb58] sm:$0xff] }
 0xc74   : > { %v14103_v16 = vcombine.high %v6772_v1, %v6776_v19  ;;  %v14102_v0 = vcombine.low %v6772_v1, %v6776_v19  ;;  %v14104_v24 = vcombine.low %v6773_v60, %v6777_v12 }
 0xc75   : > { %9355 = vmatpush1.bf16.msra.mxu0 %v14054_v38  ;;  %v14105_v38 = vcombine.high %v6773_v60, %v6777_v12 }
 0xc76   : > { %9574 = vmatpush1.bf16.msra.mxu1 %v14056_v17  ;;  %9356 = vmatprep.subr.bf16.mxu0 %v14063_v21  ;;  %v6780_v17 = vld [vmem:[#allocation22 + $0xb90] sm:$0xff] }
 0xc77   : > { %9575 = vmatprep.subr.bf16.mxu1 %v14065_v43  ;;  %v6784_v21 = vld [vmem:[#allocation22 + $0xbb0] sm:$0xff]  ;;  %v6781_v43 = vld [vmem:[#allocation22 + $0xb98] sm:$0xff] }
 0xc78   : > { %v14111_v54 = vcombine.high %v6780_v17, %v6784_v21  ;;  %v14110_v48 = vcombine.low %v6780_v17, %v6784_v21  ;;  %v14112_v35 = vcombine.low %v6781_v43, %v6785_v57 }
 0xc79   : > { %9357 = vmatpush1.bf16.msra.mxu0 %v14062_v63  ;;  %v14113_v63 = vcombine.high %v6781_v43, %v6785_v57 }
 0xc7a   : > { %9576 = vmatpush1.bf16.msra.mxu1 %v14064_v18  ;;  %9358 = vmatprep.subr.bf16.mxu0 %v14071_v61  ;;  %v6788_v18 = vld [vmem:[#allocation22 + $0xbd0] sm:$0xff] }
 0xc7b   : > { %9577 = vmatprep.subr.bf16.mxu1 %v14073_v49  ;;  %v6792_v61 = vld [vmem:[#allocation22 + $0xbf0] sm:$0xff]  ;;  %v6789_v49 = vld [vmem:[#allocation22 + $0xbd8] sm:$0xff] }
 0xc7c   : > { %v14119_v26 = vcombine.high %v6788_v18, %v6792_v61 }
 0xc7d   : > { %9359 = vmatpush1.bf16.msra.mxu0 %v14070_v37  ;;  %v14121_v37 = vcombine.high %v6789_v49, %v6793_v52 }
 0xc7e   : > { %9578 = vmatpush1.bf16.msra.mxu1 %v14072_v47  ;;  %9360 = vmatprep.subr.bf16.mxu0 %v14079_v58  ;;  %v14118_v47 = vcombine.low %v6788_v18, %v6792_v61  ;;  %v14120_v58 = vcombine.low %v6789_v49, %v6793_v52 }
 0xc7f   : > { %9579 = vmatprep.subr.bf16.mxu1 %v14081_v41 }
 0xc81   : > { %9361 = vmatpush1.bf16.msra.mxu0 %v14078_v9 }
 0xc82   : > { %9580 = vmatpush1.bf16.msra.mxu1 %v14080_v28  ;;  %9362 = vmatprep.subr.bf16.mxu0 %v14087_v8 }
 0xc83   : > { %9581 = vmatprep.subr.bf16.mxu1 %v14089_v62 }
 0xc85   : > { %9363 = vmatpush1.bf16.msra.mxu0 %v14086_v46 }
 0xc86   : > { %9582 = vmatpush1.bf16.msra.mxu1 %v14088_v20  ;;  %9364 = vmatprep.subr.bf16.mxu0 %v14095_v34 }
 0xc87   : > { %9583 = vmatprep.subr.bf16.mxu1 %v14097_v53 }
 0xc89   : > { %9365 = vmatpush1.bf16.msra.mxu0 %v14094_v40 }
 0xc8a   : > { %9584 = vmatpush1.bf16.msra.mxu1 %v14096_v13  ;;  %9366 = vmatprep.subr.bf16.mxu0 %v14103_v16 }
 0xc8b   : > { %9585 = vmatprep.subr.bf16.mxu1 %v14105_v38 }
 0xc8d   : > { %9367 = vmatpush1.bf16.msra.mxu0 %v14102_v0 }
 0xc8e   : > { %9586 = vmatpush1.bf16.msra.mxu1 %v14104_v24  ;;  %9368 = vmatprep.subr.bf16.mxu0 %v14111_v54 }
 0xc8f   : > { %9587 = vmatprep.subr.bf16.mxu1 %v14113_v63 }
 0xc91   : > { %9369 = vmatpush1.bf16.msra.mxu0 %v14110_v48 }
 0xc92   : > { %9588 = vmatpush1.bf16.msra.mxu1 %v14112_v35  ;;  %9370 = vmatprep.subr.bf16.mxu0 %v14119_v26 }
 0xc93   : > { %9589 = vmatprep.subr.bf16.mxu1 %v14121_v37 }
 0xc95   : > { %9371 = vmatpush1.bf16.msra.mxu0 %v14118_v47 }
 0xc96   : > { %9590 = vmatpush1.bf16.msra.mxu1 %v14120_v58 }
 0xc98   : > { %14205 = vmatmul.mubr.msk.bf16.vlgmr.msra.gmra.mrb[48].mxu0 %vm18111_vm10, %v18153_v30 }
 0xc99   : > { %14237 = vmatmul.mubr.msk.bf16.vlgmr.msra.gmra.mrb[64].mxu1 %vm18111_vm10, %v18153_v30  ;;  %14207 = vmatprep.mubr.msk.bf16.mxu0 %vm18316_vm1, %v18220_v11  ;;  %v16525_v30 = vld [vmem:[#allocation24] sm:$0xff] }
 0xc9a   : > { %14239 = vmatprep.mubr.msk.bf16.mxu1 %vm18316_vm1, %v18220_v11  ;;  %v18480_v41 = vrot.slane %v16525_v30, %v17719_v5  ;;  %v18483_v11 = vrot.slane %v16525_v30, %v17713_v3  ;;  %v18486_v59 = vrot.slane %v16525_v30, %v17722_v6  ;;  %v18492_v15 = vrot.slane %v16525_v30, %v17716_v4 }
 0xca0   : > { %14209 = vmatmul.mubr.msk.bf16.gmra.mrb[52].mxu0 %vm18316_vm1, %v18216_v56 }
 0xca1   : > { %14241 = vmatmul.mubr.msk.bf16.gmra.mrb[68].mxu1 %vm18316_vm1, %v18216_v56  ;;  %14211 = vmatprep.mubr.msk.bf16.mxu0 %vm18111_vm10, %v18256_v10 }
 0xca2   : > { %14243 = vmatprep.mubr.msk.bf16.mxu1 %vm18111_vm10, %v18256_v10 }
 0xca8   : > { %14213 = vmatmul.mubr.msk.bf16.gmra.mrb[56].mxu0 %vm18111_vm10, %v18251_v23  ;;  %v8936_v56 = vpop.f32.mrb[32].mxu0 }
 0xca9   : > { %14245 = vmatmul.mubr.msk.bf16.gmra.mrb[72].mxu1 %vm18111_vm10, %v18251_v23  ;;  %14215 = vmatprep.mubr.msk.bf16.mxu0 %vm18353_vm4, %v18363_v42  ;;  %v9155_v3 = vpop.f32.mrb[48].mxu1  ;;  %v8938_v5 = vpop.f32.mrb[33].mxu0  ;;  %v14659_v31 = vadd.f32 %v8936_v56, %v18480_v41 }
 0xcaa   : > { %14247 = vmatprep.mubr.msk.bf16.mxu1 %vm18353_vm4, %v18363_v42  ;;  %v9157_v6 = vpop.f32.mrb[49].mxu1  ;;  %v8940_v10 = vpop.f32.mrb[34].mxu0  ;;  %v14675_v23 = vadd.f32 %v9155_v3, %v18483_v11  ;;  %v14660_v9 = vadd.f32 %v8938_v5, %v18486_v59 }
 0xcab   : > { %v14661_v4 = vadd.f32 %v8940_v10, %v18480_v41  ;;  %v9159_v55 = vpop.f32.mrb[50].mxu1  ;;  %v8942_v45 = vpop.f32.mrb[35].mxu0  ;;  %v14676_v2 = vadd.f32 %v9157_v6, %v18492_v15 }
 0xcac   : > { %v14677_v28 = vadd.f32 %v9159_v55, %v18483_v11  ;;  %v14662_v8 = vadd.f32 %v8942_v45, %v18486_v59  ;;  %v9161_v62 = vpop.f32.mrb[51].mxu1 }
 0xcad   : > { %v9632_v42 = vpack.c.bf16 %v14661_v4, %v14659_v31  ;;  %v14678_v36 = vadd.f32 %v9161_v62, %v18492_v15 }
 0xcae   : > { %v9634_v44 = vpack.c.bf16 %v14677_v28, %v14675_v23  ;;  %v9633_v39 = vpack.c.bf16 %v14662_v8, %v14660_v9 }
 0xcaf   : > { %v9635_v46 = vpack.c.bf16 %v14678_v36, %v14676_v2 }
 0xcb0   : > { %14217 = vmatmul.mubr.msk.bf16.gmra.mrb[60].mxu0 %vm18353_vm4, %v18377_v29  ;;  %v8946_v20 = vpop.f32.mrb[36].mxu0  ;;  %9728 = vmatprep.subr.bf16.mxu0 %v9633_v39 }
 0xcb1   : > { %14249 = vmatmul.mubr.msk.bf16.gmra.mrb[76].mxu1 %vm18353_vm4, %v18377_v29  ;;  %v9165_v34 = vpop.f32.mrb[52].mxu1  ;;  %9841 = vmatprep.subr.bf16.mxu1 %v9635_v46  ;;  %v8948_v53 = vpop.f32.mrb[37].mxu0  ;;  %v14663_v60 = vadd.f32 %v8946_v20, %v18480_v41 }
 0xcb2   : > { %v9167_v1 = vpop.f32.mrb[53].mxu1  ;;  %9729 = vmatpush1.bf16.msra.mxu0 %v9632_v42  ;;  %9842 = vmatpush1.bf16.msra.mxu1 %v9634_v44  ;;  %v8950_v19 = vpop.f32.mrb[38].mxu0  ;;  %v14679_v7 = vadd.f32 %v9165_v34, %v18483_v11  ;;  %v14664_v29 = vadd.f32 %v8948_v53, %v18486_v59 }
 0xcb3   : > { %v14665_v12 = vadd.f32 %v8950_v19, %v18480_v41  ;;  %v9169_v40 = vpop.f32.mrb[54].mxu1  ;;  %v8952_v13 = vpop.f32.mrb[39].mxu0  ;;  %9760 = vmatprep.mubr.bf16.mxu0 %v19715_v51  ;;  %9873 = vmatprep.mubr.bf16.mxu1 %v19715_v51  ;;  %v14680_v21 = vadd.f32 %v9167_v1, %v18492_v15 }
 0xcb4   : > { %v14681_v16 = vadd.f32 %v9169_v40, %v18483_v11  ;;  %v14666_v38 = vadd.f32 %v8952_v13, %v18486_v59  ;;  %v9171_v17 = vpop.f32.mrb[55].mxu1 }
 0xcb5   : > { %v9636_v43 = vpack.c.bf16 %v14665_v12, %v14663_v60  ;;  %v14682_v57 = vadd.f32 %v9171_v17, %v18492_v15 }
 0xcb6   : > { %v9638_v0 = vpack.c.bf16 %v14681_v16, %v14679_v7  ;;  %v9637_v24 = vpack.c.bf16 %v14666_v38, %v14664_v29  ;;  %v19723_v29 = vld [vmem:[#allocation43_spill] sm:$0xff] }
 0xcb7   : > { %v9639_v54 = vpack.c.bf16 %v14682_v57, %v14680_v21  ;;  %v19724_v21 = vld [vmem:[#allocation44_spill] sm:$0xff] }
 0xcb8   : > { %v8956_v63 = vpop.f32.mrb[40].mxu0  ;;  %9730 = vmatprep.subr.bf16.mxu0 %v9637_v24 }
 0xcb9   : > { %v9175_v18 = vpop.f32.mrb[56].mxu1  ;;  %9843 = vmatprep.subr.bf16.mxu1 %v9639_v54  ;;  %v8958_v61 = vpop.f32.mrb[41].mxu0  ;;  %9731 = vmatpush1.bf16.msra.mxu0 %v9636_v43  ;;  %v14667_v48 = vadd.f32 %v8956_v63, %v18480_v41 }
 0xcba   : > { %v9177_v49 = vpop.f32.mrb[57].mxu1  ;;  %9844 = vmatpush1.bf16.msra.mxu1 %v9638_v0  ;;  %v8960_v52 = vpop.f32.mrb[42].mxu0  ;;  %v14683_v47 = vadd.f32 %v9175_v18, %v18483_v11  ;;  %v14668_v58 = vadd.f32 %v8958_v61, %v18486_v59 }
 0xcbb   : > { %v14669_v35 = vadd.f32 %v8960_v52, %v18480_v41  ;;  %v9179_v26 = vpop.f32.mrb[58].mxu1  ;;  %v8962_v37 = vpop.f32.mrb[43].mxu0  ;;  %v14684_v5 = vadd.f32 %v9177_v49, %v18492_v15 }
 0xcbc   : > { %v14685_v30 = vadd.f32 %v9179_v26, %v18483_v11  ;;  %v14670_v56 = vadd.f32 %v8962_v37, %v18486_v59  ;;  %v9181_v3 = vpop.f32.mrb[59].mxu1 }
 0xcbd   : > { %v9640_v6 = vpack.c.bf16 %v14669_v35, %v14667_v48  ;;  %v14686_v10 = vadd.f32 %v9181_v3, %v18492_v15 }
 0xcbe   : > { %v9642_v31 = vpack.c.bf16 %v14685_v30, %v14683_v47  ;;  %v9641_v4 = vpack.c.bf16 %v14670_v56, %v14668_v58 }
 0xcbf   : > { %v9643_v55 = vpack.c.bf16 %v14686_v10, %v14684_v5 }
 0xcc0   : > { %v8966_v45 = vpop.f32.mrb[44].mxu0  ;;  %9732 = vmatprep.subr.bf16.mxu0 %v9641_v4 }
 0xcc1   : > { %v9185_v23 = vpop.f32.mrb[60].mxu1  ;;  %9845 = vmatprep.subr.bf16.mxu1 %v9643_v55  ;;  %v8968_v9 = vpop.f32.mrb[45].mxu0  ;;  %9733 = vmatpush1.bf16.msra.mxu0 %v9640_v6  ;;  %v14671_v62 = vadd.f32 %v8966_v45, %v18480_v41 }
 0xcc2   : > { %v9187_v28 = vpop.f32.mrb[61].mxu1  ;;  %9846 = vmatpush1.bf16.msra.mxu1 %v9642_v31  ;;  %v8970_v8 = vpop.f32.mrb[46].mxu0  ;;  %v14687_v44 = vadd.f32 %v9185_v23, %v18483_v11  ;;  %v14672_v39 = vadd.f32 %v8968_v9, %v18486_v59 }
 0xcc3   : > { %v14673_v2 = vadd.f32 %v8970_v8, %v18480_v41  ;;  %v9189_v42 = vpop.f32.mrb[62].mxu1  ;;  %v8972_v36 = vpop.f32.mrb[47].mxu0  ;;  %v14688_v53 = vadd.f32 %v9187_v28, %v18492_v15 }
 0xcc4   : > { %v14689_v46 = vadd.f32 %v9189_v42, %v18483_v11  ;;  %v14674_v20 = vadd.f32 %v8972_v36, %v18486_v59  ;;  %v9191_v34 = vpop.f32.mrb[63].mxu1 }
 0xcc5   : > { %v9644_v1 = vpack.c.bf16 %v14673_v2, %v14671_v62  ;;  %v14690_v19 = vadd.f32 %v9191_v34, %v18492_v15 }
 0xcc6   : > { %v9646_v60 = vpack.c.bf16 %v14689_v46, %v14687_v44  ;;  %v9645_v12 = vpack.c.bf16 %v14674_v20, %v14672_v39 }
 0xcc7   : > { %v9647_v40 = vpack.c.bf16 %v14690_v19, %v14688_v53 }
 0xcc8   : > { %9734 = vmatprep.subr.bf16.mxu0 %v9645_v12 }
 0xcc9   : > { %9847 = vmatprep.subr.bf16.mxu1 %v9647_v40  ;;  %9735 = vmatpush1.bf16.msra.mxu0 %v9644_v1 }
 0xcca   : > { %9848 = vmatpush1.bf16.msra.mxu1 %v9646_v60 }
 0xd6b   : > { %v9374_v41 = vpop.f32.mrb[48].mxu0 }
 0xd6c   : > { %v14691_v13 = vadd.f32 %v9374_v41, %v17697_v32  ;;  %v9593_v7 = vpop.f32.mrb[64].mxu1  ;;  %v9376_v11 = vpop.f32.mrb[49].mxu0 }
 0xd6d   : > { %v14707_v59 = vadd.f32 %v9593_v7, %v17701_v33  ;;  %v14692_v16 = vadd.f32 %v9376_v11, %v19723_v29  ;;  %v9595_v38 = vpop.f32.mrb[65].mxu1  ;;  %v9378_v17 = vpop.f32.mrb[50].mxu0 }
 0xd6e   : > { %v14708_v15 = vadd.f32 %v9595_v38, %v19724_v21  ;;  %v14693_v43 = vadd.f32 %v9378_v17, %v17697_v32  ;;  %v9597_v57 = vpop.f32.mrb[66].mxu1  ;;  %v9380_v0 = vpop.f32.mrb[51].mxu0 }
 0xd6f   : > { %v14709_v24 = vadd.f32 %v9597_v57, %v17701_v33  ;;  %v14694_v54 = vadd.f32 %v9380_v0, %v19723_v29  ;;  %v9599_v63 = vpop.f32.mrb[67].mxu1 }
 0xd70   : > { %v9648_v18 = vpack.c.bf16 %v14693_v43, %v14691_v13  ;;  %v14710_v61 = vadd.f32 %v9599_v63, %v19724_v21 }
 0xd71   : > { %v9650_v49 = vpack.c.bf16 %v14709_v24, %v14707_v59  ;;  %v9649_v52 = vpack.c.bf16 %v14694_v54, %v14692_v16 }
 0xd72   : > { %v9651_v48 = vpack.c.bf16 %v14710_v61, %v14708_v15 }
 0xd73   : > { %v9384_v35 = vpop.f32.mrb[52].mxu0  ;;  %9736 = vmatprep.subr.bf16.mxu0 %v9649_v52 }
 0xd74   : > { %v14695_v26 = vadd.f32 %v9384_v35, %v17697_v32  ;;  %v9603_v37 = vpop.f32.mrb[68].mxu1  ;;  %9849 = vmatprep.subr.bf16.mxu1 %v9651_v48  ;;  %v9386_v47 = vpop.f32.mrb[53].mxu0  ;;  %9737 = vmatpush1.bf16.msra.mxu0 %v9648_v18 }
 0xd75   : > { %v14711_v58 = vadd.f32 %v9603_v37, %v17701_v33  ;;  %v14696_v30 = vadd.f32 %v9386_v47, %v19723_v29  ;;  %v9605_v56 = vpop.f32.mrb[69].mxu1  ;;  %9850 = vmatpush1.bf16.msra.mxu1 %v9650_v49  ;;  %v9388_v3 = vpop.f32.mrb[54].mxu0 }
 0xd76   : > { %v14712_v5 = vadd.f32 %v9605_v56, %v19724_v21  ;;  %v14697_v6 = vadd.f32 %v9388_v3, %v17697_v32  ;;  %v9607_v10 = vpop.f32.mrb[70].mxu1  ;;  %v9390_v31 = vpop.f32.mrb[55].mxu0  ;;  %v16165_v3 = vld [vmem:[#allocation25] sm:$0xff]  }
 0xd77   : > { %v14713_v4 = vadd.f32 %v9607_v10, %v17701_v33  ;;  %v14698_v55 = vadd.f32 %v9390_v31, %v19723_v29  ;;  %v9609_v45 = vpop.f32.mrb[71].mxu1  ;;  %v16184_v10 = vld [vmem:[#allocation27 + $0x34] ss:$8 sps:$4 sm:$0xff]   ;;  %v16182_v31 = vld [vmem:[#allocation27 + $0x30] ss:$8 sps:$4 sm:$0xff]  }
 0xd78   : > { %v9652_v23 = vpack.c.bf16 %v14697_v6, %v14695_v26  ;;  %v14714_v9 = vadd.f32 %v9609_v45, %v19724_v21  ;;  %v16179_v6 = vld [vmem:[#allocation27 + $0x20] ss:$8 sps:$4 sm:$0xff]  }
 0xd79   : > { %v9654_v28 = vpack.c.bf16 %v14713_v4, %v14711_v58  ;;  %v9653_v8 = vpack.c.bf16 %v14698_v55, %v14696_v30  ;;  %v16175_v30 = vld [vmem:[#allocation27 + $0x4] ss:$8 sps:$4 sm:$0xff]   ;;  %v16167_v55 = vld [vmem:[#allocation25 + $0x10] sm:$0xff]   ;;  %v16185_v45 = vld [vmem:[#allocation27 + $0x40] ss:$8 sps:$4 sm:$0xff]  }
 0xd7a   : > { %v9655_v62 = vpack.c.bf16 %v14714_v9, %v14712_v5  ;;  %v16178_v5 = vld [vmem:[#allocation27 + $0x14] ss:$8 sps:$4 sm:$0xff]   ;;  %v16187_v4 = vld [vmem:[#allocation27 + $0x44] ss:$8 sps:$4 sm:$0xff]   ;;  %v16188_v9 = vld [vmem:[#allocation27 + $0x50] ss:$8 sps:$4 sm:$0xff]  }
 0xd7b   : > { %v9394_v2 = vpop.f32.mrb[56].mxu0  ;;  %9738 = vmatprep.subr.bf16.mxu0 %v9653_v8  ;;  %v16168_v8 = vld [vmem:[#allocation25 + $0x18] sm:$0xff]  }
 0xd7c   : > { %v14699_v42 = vadd.f32 %v9394_v2, %v17697_v32  ;;  %v9613_v36 = vpop.f32.mrb[72].mxu1  ;;  %9851 = vmatprep.subr.bf16.mxu1 %v9655_v62  ;;  %v9396_v44 = vpop.f32.mrb[57].mxu0  ;;  %9739 = vmatpush1.bf16.msra.mxu0 %v9652_v23  ;;  %v16190_v23 = vld [vmem:[#allocation27 + $0x54] ss:$8 sps:$4 sm:$0xff]   ;;  %v16191_v62 = vld [vmem:[#allocation27 + $0x60] ss:$8 sps:$4 sm:$0xff]  }
 0xd7d   : > { %v14715_v39 = vadd.f32 %v9613_v36, %v17701_v33  ;;  %v14700_v46 = vadd.f32 %v9396_v44, %v19723_v29  ;;  %v9615_v20 = vpop.f32.mrb[73].mxu1  ;;  %9852 = vmatpush1.bf16.msra.mxu1 %v9654_v28  ;;  %v9398_v34 = vpop.f32.mrb[58].mxu0  ;;  %v16193_v28 = vld [vmem:[#allocation27 + $0x64] ss:$8 sps:$4 sm:$0xff]   ;;  %v16196_v2 = vld [vmem:[#allocation27 + $0x74] ss:$8 sps:$4 sm:$0xff]  }
 0xd7e   : > { %v14716_v53 = vadd.f32 %v9615_v20, %v19724_v21  ;;  %v14701_v1 = vadd.f32 %v9398_v34, %v17697_v32  ;;  %v9617_v19 = vpop.f32.mrb[74].mxu1  ;;  %v9400_v60 = vpop.f32.mrb[59].mxu0  ;;  %v16199_v36 = vld [vmem:[#allocation27 + $0x84] ss:$8 sps:$4 sm:$0xff]   ;;  %v16200_v20 = vld [vmem:[#allocation27 + $0x90] ss:$8 sps:$4 sm:$0xff]  }
 0xd7f   : > { %v14717_v12 = vadd.f32 %v9617_v19, %v17701_v33  ;;  %v14702_v40 = vadd.f32 %v9400_v60, %v19723_v29  ;;  %v9619_v41 = vpop.f32.mrb[75].mxu1  ;;  %v16169_v44 = vld [vmem:[#allocation25 + $0x20] sm:$0xff]   ;;  %v16208_v19 = vld [vmem:[#allocation27 + $0xb4] ss:$8 sps:$4 sm:$0xff]   ;;  %v16206_v60 = vld [vmem:[#allocation27 + $0xb0] ss:$8 sps:$4 sm:$0xff]  }
 0xd80   : > { %v9656_v13 = vpack.c.bf16 %v14701_v1, %v14699_v42  ;;  %v14718_v7 = vadd.f32 %v9619_v41, %v19724_v21  ;;  %v16194_v42 = vld [vmem:[#allocation27 + $0x70] ss:$8 sps:$4 sm:$0xff]   ;;  %v16205_v34 = vld [vmem:[#allocation27 + $0xa4] ss:$8 sps:$4 sm:$0xff]   ;;  %v16203_v1 = vld [vmem:[#allocation27 + $0xa0] ss:$8 sps:$4 sm:$0xff]  }
 0xd81   : > { %v9658_v11 = vpack.c.bf16 %v14717_v12, %v14715_v39  ;;  %v9657_v59 = vpack.c.bf16 %v14702_v40, %v14700_v46  ;;  %v16197_v39 = vld [vmem:[#allocation27 + $0x80] ss:$8 sps:$4 sm:$0xff]   ;;  %v16202_v46 = vld [vmem:[#allocation27 + $0x94] ss:$8 sps:$4 sm:$0xff]   ;;  %v16211_v12 = vld [vmem:[#allocation27 + $0xc4] ss:$8 sps:$4 sm:$0xff]  }
 0xd82   : > { %v9659_v16 = vpack.c.bf16 %v14718_v7, %v14716_v53  ;;  %v16170_v53 = vld [vmem:[#allocation25 + $0x28] sm:$0xff]   ;;  %v16171_v40 = vld [vmem:[#allocation25 + $0x30] sm:$0xff]  }
 0xd83   : > { %v9404_v38 = vpop.f32.mrb[60].mxu0  ;;  %9740 = vmatprep.subr.bf16.mxu0 %v9657_v59  ;;  %v16209_v41 = vld [vmem:[#allocation27 + $0xc0] ss:$8 sps:$4 sm:$0xff]   ;;  %v16214_v7 = vld [vmem:[#allocation27 + $0xd4] ss:$8 sps:$4 sm:$0xff]  }
 0xd84   : > { %v14703_v17 = vadd.f32 %v9404_v38, %v17697_v32  ;;  %v9623_v15 = vpop.f32.mrb[76].mxu1  ;;  %9853 = vmatprep.subr.bf16.mxu1 %v9659_v16  ;;  %v9406_v43 = vpop.f32.mrb[61].mxu0  ;;  %9741 = vmatpush1.bf16.msra.mxu0 %v9656_v13  ;;  %v16172_v13 = vld [vmem:[#allocation25 + $0x38] sm:$0xff]   ;;  %v16217_v59 = vld [vmem:[#allocation27 + $0xe4] ss:$8 sps:$4 sm:$0xff]  }
 0xd85   : > { %v14719_v57 = vadd.f32 %v9623_v15, %v17701_v33  ;;  %v14704_v0 = vadd.f32 %v9406_v43, %v19723_v29  ;;  %v9625_v24 = vpop.f32.mrb[77].mxu1  ;;  %9854 = vmatpush1.bf16.msra.mxu1 %v9658_v11  ;;  %v9408_v54 = vpop.f32.mrb[62].mxu0  ;;  %v16212_v11 = vld [vmem:[#allocation27 + $0xd0] ss:$8 sps:$4 sm:$0xff]   ;;  %v16215_v16 = vld [vmem:[#allocation27 + $0xe0] ss:$8 sps:$4 sm:$0xff]  }
 0xd86   : > { %v14720_v63 = vadd.f32 %v9625_v24, %v19724_v21  ;;  %v14705_v18 = vadd.f32 %v9408_v54, %v17697_v32  ;;  %v9627_v61 = vpop.f32.mrb[78].mxu1  ;;  %v9410_v49 = vpop.f32.mrb[63].mxu0  ;;  %v16173_v32 = vld [vmem:[#allocation27] ss:$8 sps:$4 sm:$0xff]   ;;  %v16220_v38 = vld [vmem:[#allocation27 + $0xf4] ss:$8 sps:$4 sm:$0xff]  }
 0xd87   : > { %v14721_v52 = vadd.f32 %v9627_v61, %v17701_v33  ;;  %v14706_v48 = vadd.f32 %v9410_v49, %v19723_v29  ;;  %v9629_v35 = vpop.f32.mrb[79].mxu1  ;;  %v16176_v33 = vld [vmem:[#allocation27 + $0x10] ss:$8 sps:$4 sm:$0xff]   ;;  %v16181_v29 = vld [vmem:[#allocation27 + $0x24] ss:$8 sps:$4 sm:$0xff]   ;;  %v10414_v43 = vand.u32 63, %v17690_v27 }
 0xd88   : > { %v9660_v26 = vpack.c.bf16 %v14705_v18, %v14703_v17  ;;  %v14722_v37 = vadd.f32 %v9629_v35, %v19724_v21  ;;  %v16166_v21 = vld [vmem:[#allocation25 + $0x8] sm:$0xff]   ;;  %v16218_v17 = vld [vmem:[#allocation27 + $0xf0] ss:$8 sps:$4 sm:$0xff]  }
 0xd89   : > { %v9662_v47 = vpack.c.bf16 %v14721_v52, %v14719_v57  ;;  %v9661_v58 = vpack.c.bf16 %v14706_v48, %v14704_v0  ;;  %v16223_v15 = vld [vmem:[#allocation27 + $0x104] ss:$8 sps:$4 sm:$0xff]   ;;  %vm10602_vm5 = vcmp.eq.s32.totalorder %v10414_v43, 0 }
 0xd8a   : > { %v9663_v56 = vpack.c.bf16 %v14722_v37, %v14720_v63  ;;  %vm10650_vm6 = vmpackc.low %vm10602_vm5, %vm10602_vm5 }
 0xd8b   : > { %9742 = vmatprep.subr.bf16.mxu0 %v9661_v58  ;;  %v10666_v49 = vsel %vm10650_vm6, 65537, %v19715_v51 }
 0xd8c   : > { %9855 = vmatprep.subr.bf16.mxu1 %v9663_v56  ;;  %9743 = vmatpush1.bf16.msra.mxu0 %v9660_v26 }
 0xd8d   : > { %9856 = vmatpush1.bf16.msra.mxu1 %v9662_v47  ;;  %12042 = vmatprep.subr.bf16.mxu0 %v16175_v30 }
 0xd8f   : > { %9761 = vmatmul.mubr.bf16.vlgmr.msra.gmra.mrb[64].mxu0 %v16165_v3 }
 0xd90   : > { %9770 = vmatprep.mubr.bf16.mxu0 %v19715_v51  ;;  %9874 = vmatmul.mubr.bf16.vlgmr.msra.gmra.mrb[80].mxu1 %v16165_v3  ;;  %v14258_v3 = vcombine.low %v10666_v49, %v17912_v50 }
 0xd91   : > { %9883 = vmatprep.mubr.bf16.mxu1 %v19715_v51  ;;  %12043 = vmatpush1.bf16.msra.mxu0 %v16173_v32 }
 0xd92   : > { %12044 = vmatprep.subr.bf16.mxu0 %v16178_v5  ;;  %vm18622_vm7 = vcmp.eq.s16.totalorder %v14258_v3, 0 }
 0xd95   : > { %12045 = vmatpush1.bf16.msra.mxu0 %v16176_v33 }
 0xd96   : > { %12046 = vmatprep.subr.bf16.mxu0 %v16181_v29 }
 0xd97   : > { %9771 = vmatmul.mubr.bf16.gmra.mrb[68].mxu0 %v16166_v21 }
 0xd98   : > { %9780 = vmatprep.mubr.bf16.mxu0 %v19715_v51  ;;  %9884 = vmatmul.mubr.bf16.gmra.mrb[84].mxu1 %v16166_v21 }
 0xd99   : > { %9893 = vmatprep.mubr.bf16.mxu1 %v19715_v51  ;;  %12047 = vmatpush1.bf16.msra.mxu0 %v16179_v6 }
 0xd9a   : > { %12048 = vmatprep.subr.bf16.mxu0 %v16184_v10 }
 0xd9d   : > { %12049 = vmatpush1.bf16.msra.mxu0 %v16182_v31 }
 0xd9e   : > { %12050 = vmatprep.subr.bf16.mxu0 %v16187_v4 }
 0xd9f   : > { %9781 = vmatmul.mubr.bf16.gmra.mrb[72].mxu0 %v16167_v55 }
 0xda0   : > { %9790 = vmatprep.mubr.bf16.mxu0 %v19715_v51  ;;  %9894 = vmatmul.mubr.bf16.gmra.mrb[88].mxu1 %v16167_v55 }
 0xda1   : > { %9903 = vmatprep.mubr.bf16.mxu1 %v19715_v51  ;;  %12051 = vmatpush1.bf16.msra.mxu0 %v16185_v45 }
 0xda2   : > { %12052 = vmatprep.subr.bf16.mxu0 %v16190_v23 }
 0xda5   : > { %12053 = vmatpush1.bf16.msra.mxu0 %v16188_v9 }
 0xda6   : > { %12054 = vmatprep.subr.bf16.mxu0 %v16193_v28 }
 0xda7   : > { %9791 = vmatmul.mubr.bf16.gmra.mrb[76].mxu0 %v16168_v8 }
 0xda8   : > { %9800 = vmatprep.mubr.bf16.mxu0 %v19715_v51  ;;  %9904 = vmatmul.mubr.bf16.gmra.mrb[92].mxu1 %v16168_v8 }
 0xda9   : > { %9913 = vmatprep.mubr.bf16.mxu1 %v19715_v51  ;;  %12055 = vmatpush1.bf16.msra.mxu0 %v16191_v62 }
 0xdaa   : > { %12056 = vmatprep.subr.bf16.mxu0 %v16196_v2 }
 0xdad   : > { %12057 = vmatpush1.bf16.msra.mxu0 %v16194_v42 }
 0xdae   : > { %12058 = vmatprep.subr.bf16.mxu0 %v16199_v36  ;;  %v16280_v36 = vld [vmem:[#allocation27 + $0x234] ss:$8 sps:$4 sm:$0xff]  }
 0xdaf   : > { %9801 = vmatmul.mubr.bf16.gmra.mrb[80].mxu0 %v16169_v44 }
 0xdb0   : > { %9810 = vmatprep.mubr.bf16.mxu0 %v19715_v51  ;;  %9914 = vmatmul.mubr.bf16.gmra.mrb[96].mxu1 %v16169_v44 }
 0xdb1   : > { %9923 = vmatprep.mubr.bf16.mxu1 %v19715_v51  ;;  %12059 = vmatpush1.bf16.msra.mxu0 %v16197_v39 }
 0xdb2   : > { %12060 = vmatprep.subr.bf16.mxu0 %v16202_v46 }
 0xdb5   : > { %12061 = vmatpush1.bf16.msra.mxu0 %v16200_v20 }
 0xdb6   : > { %12062 = vmatprep.subr.bf16.mxu0 %v16205_v34  ;;  %v16221_v34 = vld [vmem:[#allocation27 + $0x100] ss:$8 sps:$4 sm:$0xff]  }
 0xdb7   : > { %9811 = vmatmul.mubr.bf16.gmra.mrb[84].mxu0 %v16170_v53 }
 0xdb8   : > { %9820 = vmatprep.mubr.bf16.mxu0 %v19715_v51  ;;  %9924 = vmatmul.mubr.bf16.gmra.mrb[100].mxu1 %v16170_v53 }
 0xdb9   : > { %9933 = vmatprep.mubr.bf16.mxu1 %v19715_v51  ;;  %12063 = vmatpush1.bf16.msra.mxu0 %v16203_v1 }
 0xdba   : > { %12064 = vmatprep.subr.bf16.mxu0 %v16208_v19 }
 0xdbd   : > { %12065 = vmatpush1.bf16.msra.mxu0 %v16206_v60 }
 0xdbe   : > { %12066 = vmatprep.subr.bf16.mxu0 %v16211_v12 }
 0xdbf   : > { %9821 = vmatmul.mubr.bf16.gmra.mrb[88].mxu0 %v16171_v40 }
 0xdc0   : > { %9830 = vmatprep.mubr.bf16.mxu0 %v19715_v51  ;;  %9934 = vmatmul.mubr.bf16.gmra.mrb[104].mxu1 %v16171_v40  ;;  %v16226_v40 = vld [vmem:[#allocation27 + $0x114] ss:$8 sps:$4 sm:$0xff]  }
 0xdc1   : > { %9943 = vmatprep.mubr.bf16.mxu1 %v19715_v51  ;;  %12067 = vmatpush1.bf16.msra.mxu0 %v16209_v41 }
 0xdc2   : > { %12068 = vmatprep.subr.bf16.mxu0 %v16214_v7 }
 0xdc5   : > { %12069 = vmatpush1.bf16.msra.mxu0 %v16212_v11 }
 0xdc6   : > { %12070 = vmatprep.subr.bf16.mxu0 %v16217_v59 }
 0xdc7   : > { %9831 = vmatmul.mubr.bf16.gmra.mrb[92].mxu0 %v16172_v13 }
 0xdc8   : > { %9944 = vmatmul.mubr.bf16.gmra.mrb[108].mxu1 %v16172_v13 }
 0xdc9   : > { %12071 = vmatpush1.bf16.msra.mxu0 %v16215_v16 }
 0xdca   : > { %12072 = vmatprep.subr.bf16.mxu0 %v16220_v38 }
 0xdcd   : > { %12073 = vmatpush1.bf16.msra.mxu0 %v16218_v17 }
 0xdce   : > { %12155 = vmatprep.subr.bf16.mxu0 %v16223_v15  ;;  %v16224_v15 = vld [vmem:[#allocation27 + $0x110] ss:$8 sps:$4 sm:$0xff]  }
 0xe62   : > { %v9762_v57 = vpop.f32.mrb[64].mxu0 }
 0xe63   : > { %v9764_v0 = vpop.f32.mrb[65].mxu0  ;;  %v9875_v24 = vpop.f32.mrb[80].mxu1 }
 0xe64   : > { %v9766_v54 = vpop.f32.mrb[66].mxu0  ;;  %v9877_v63 = vpop.f32.mrb[81].mxu1 }
 0xe65   : > { %v18590_v18 = vpack.c.bf16 %v9766_v54, %v9762_v57  ;;  %v9768_v61 = vpop.f32.mrb[67].mxu0  ;;  %v9879_v52 = vpop.f32.mrb[82].mxu1 }
 0xe66   : > { %v18593_v48 = vpack.c.bf16 %v9768_v61, %v9764_v0  ;;  %v18595_v35 = vpack.c.bf16 %v9879_v52, %v9875_v24  ;;  %v9881_v26 = vpop.f32.mrb[83].mxu1  ;;  %v16229_v24 = vld [vmem:[#allocation27 + $0x124] ss:$8 sps:$4 sm:$0xff]  }
 0xe67   : > { %19725 = vst [vmem:[#allocation43_spill] sm:$0xff] %v18590_v18  ;;  %v9987_v37 = vshrl.u32 %v18590_v18, 16  ;;  %v9990_v47 = vshll.u32 %v18590_v18, 16  ;;  %v18599_v58 = vpack.c.bf16 %v9881_v26, %v9877_v63 }
 0xe68   : > { %19726 = vst [vmem:[#allocation44_spill] sm:$0xff] %v18593_v48  ;;  %v9994_v30 = vshrl.u32 %v18593_v48, 16  ;;  %v9997_v56 = vshll.u32 %v18593_v48, 16  ;;  %v19564_v32 = vshll.u32 %v18595_v35, 16  ;;  %v19569_v31 = vshrl.u32 %v18595_v35, 16 }
 0xe69   : > { %19727 = vst [vmem:[#allocation49_spill] sm:$0xff] %v18599_v58  ;;  %v18605_v5 = vrot.slane %v9987_v37, 7  ;;  %v10274_v33 = vrot.slane %v9990_v47, 1  ;;  %v19567_v29 = vshll.u32 %v18599_v58, 16  ;;  %v19571_v9 = vshrl.u32 %v18599_v58, 16 }
 0xe6a   : > { %v18608_v21 = vrot.slane %v9994_v30, 7  ;;  %v10278_v6 = vrot.slane %v9997_v56, 1  ;;  %v9772_v10 = vpop.f32.mrb[68].mxu0  ;;  %v10282_v4 = vrot.slane %v19564_v32, 1 }
 0xe6b   : > { %v9992_v55 = vor.u32 %v9990_v47, %v18605_v5  ;;  %v18614_v45 = vor.u32 %v10274_v33, %v9987_v37  ;;  %v9774_v23 = vpop.f32.mrb[69].mxu0  ;;  %v10286_v28 = vrot.slane %v19567_v29, 1  ;;  %v9885_v8 = vpop.f32.mrb[84].mxu1 }
 0xe6c   : > { %v18619_v62 = vor.u32 %v10278_v6, %v9994_v30  ;;  %v9776_v2 = vpop.f32.mrb[70].mxu0  ;;  %v9999_v42 = vor.u32 %v9997_v56, %v18608_v21  ;;  %v18628_v44 = vor.u32 %v10282_v4, %v19569_v31  ;;  %v9887_v39 = vpop.f32.mrb[85].mxu1 }
 0xe6d   : > { %v18630_v46 = vpack.c.bf16 %v9776_v2, %v9772_v10  ;;  %v9778_v20 = vpop.f32.mrb[71].mxu0  ;;  %v18634_v53 = vor.u32 %v10286_v28, %v19571_v9  ;;  %v9889_v1 = vpop.f32.mrb[86].mxu1  ;;  %v10270_v59 = vsel %vm17754_vm9, 0, %v9992_v55  ;;  %v16227_v2 = vld [vmem:[#allocation27 + $0x120] ss:$8 sps:$4 sm:$0xff]  }
 0xe6e   : > { %v18636_v19 = vpack.c.bf16 %v9778_v20, %v9774_v23  ;;  %v10271_v12 = vsel %vm17754_vm9, 0, %v9999_v42  ;;  %v18640_v41 = vpack.c.bf16 %v9889_v1, %v9885_v8  ;;  %v9891_v13 = vpop.f32.mrb[87].mxu1  ;;  %v10402_v42 = vadd.s32 64, %v17690_v27 }
 0xe6f   : > { %19730 = vst [vmem:[#allocation50_spill] sm:$0xff] %v18630_v46  ;;  %v10015_v7 = vshrl.u32 %v18630_v46, 16  ;;  %v10018_v11 = vshll.u32 %v18630_v46, 16  ;;  %14467 = vmatprep.mubr.msk.bf16.mxu0 %vm18622_vm7, %v10271_v12  ;;  %v18648_v16 = vpack.c.bf16 %v9891_v13, %v9887_v39  ;;  %v16232_v12 = vld [vmem:[#allocation27 + $0x134] ss:$8 sps:$4 sm:$0xff]  }
 0xe70   : > { %19731 = vst [vmem:[#allocation51_spill] sm:$0xff] %v18636_v19  ;;  %19733 = vst [vmem:[#allocation45_spill] sm:$0xff] %v18640_v41  ;;  %v10023_v38 = vshrl.u32 %v18636_v19, 16  ;;  %v10026_v17 = vshll.u32 %v18636_v19, 16  ;;  %14469 = vmatmul.mubr.msk.bf16.vlgmr.msra.gmra.mrb[96].mxu0 %vm18622_vm7, %v10270_v59  ;;  %v19560_v43 = vshll.u32 %v18640_v41, 16  ;;  %v19561_v52 = vshrl.u32 %v18640_v41, 16 }
 0xe71   : > { %v18655_v57 = vrot.slane %v10015_v7, 7  ;;  %v18657_v0 = vrot.slane %v10018_v11, 1  ;;  %12156 = vmatpush1.bf16.msra.mxu0 %v16221_v34  ;;  %v19563_v54 = vshll.u32 %v18648_v16, 16  ;;  %v19565_v56 = vshrl.u32 %v18648_v16, 16  ;;  %v16239_v46 = vld [vmem:[#allocation27 + $0x160] ss:$8 sps:$4 sm:$0xff]  }
 0xe72   : > { %v18660_v63 = vrot.slane %v10023_v38, 7  ;;  %v18662_v61 = vrot.slane %v10026_v17, 1  ;;  %v9782_v49 = vpop.f32.mrb[72].mxu0  ;;  %12157 = vmatprep.subr.bf16.mxu0 %v16226_v40  ;;  %v18667_v26 = vrot.slane %v19560_v43, 1  ;;  %v16245_v41 = vld [vmem:[#allocation27 + $0x180] ss:$8 sps:$4 sm:$0xff]  }
 0xe73   : > { %v10020_v37 = vor.u32 %v10018_v11, %v18655_v57  ;;  %v18671_v47 = vor.u32 %v18657_v0, %v10015_v7  ;;  %v9784_v30 = vpop.f32.mrb[73].mxu0  ;;  %v18676_v3 = vrot.slane %v19563_v54, 1  ;;  %v9895_v33 = vpop.f32.mrb[88].mxu1 }
 0xe74   : > { %v10028_v6 = vor.u32 %v10026_v17, %v18660_v63  ;;  %v18680_v10 = vor.u32 %v18662_v61, %v10023_v38  ;;  %v9786_v4 = vpop.f32.mrb[74].mxu0  ;;  %v18685_v55 = vor.u32 %v18667_v26, %v19561_v52  ;;  %v9897_v23 = vpop.f32.mrb[89].mxu1 }
 0xe75   : > { %v18687_v28 = vpack.c.bf16 %v9786_v4, %v9782_v49  ;;  %v9788_v8 = vpop.f32.mrb[75].mxu0  ;;  %12158 = vmatpush1.bf16.msra.mxu0 %v16224_v15  ;;  %v18693_v39 = vor.u32 %v18676_v3, %v19565_v56  ;;  %v9899_v20 = vpop.f32.mrb[90].mxu1  ;;  %v10021_v59 = vsel %vm1163_vm8, %v18605_v5, %v10020_v37  ;;  %v16230_v15 = vld [vmem:[#allocation27 + $0x130] ss:$8 sps:$4 sm:$0xff]   ;;  %v16233_v56 = vld [vmem:[#allocation27 + $0x140] ss:$8 sps:$4 sm:$0xff]  }
 0xe76   : > { %19734 = vst [vmem:[#allocation52_spill] sm:$0xff] %v18685_v55  ;;  %v18695_v34 = vpack.c.bf16 %v9788_v8, %v9784_v30  ;;  %v10029_v1 = vsel %vm1163_vm8, %v18608_v21, %v10028_v6  ;;  %12159 = vmatprep.subr.bf16.mxu0 %v16229_v24  ;;  %v18699_v40 = vpack.c.bf16 %v9899_v20, %v9895_v33  ;;  %v9901_v13 = vpop.f32.mrb[91].mxu1  ;;  %v16235_v33 = vld [vmem:[#allocation27 + $0x144] ss:$8 sps:$4 sm:$0xff]   ;;  %v10470_v6 = vand.u32 63, %v10402_v42 }
 0xe77   : > { %19735 = vst [vmem:[#allocation53_spill] sm:$0xff] %v18687_v28  ;;  %19736 = vst [vmem:[#allocation54_spill] sm:$0xff] %v18693_v39  ;;  %v10047_v7 = vshrl.u32 %v18687_v28, 16  ;;  %v10050_v11 = vshll.u32 %v18687_v28, 16  ;;  %14471 = vmatprep.mubr.msk.bf16.mxu0 %vm18111_vm10, %v10029_v1  ;;  %v18707_v38 = vpack.c.bf16 %v9901_v13, %v9897_v23  ;;  %v16257_v39 = vld [vmem:[#allocation27 + $0x1c0] ss:$8 sps:$4 sm:$0xff]  }
 0xe78   : > { %19737 = vst [vmem:[#allocation55_spill] sm:$0xff] %v18695_v34  ;;  %19738 = vst [vmem:[#allocation56_spill] sm:$0xff] %v18699_v40  ;;  %v10055_v17 = vshrl.u32 %v18695_v34, 16  ;;  %v10058_v21 = vshll.u32 %v18695_v34, 16  ;;  %14473 = vmatmul.mubr.msk.bf16.gmra.mrb[100].mxu0 %vm18111_vm10, %v10021_v59  ;;  %v19562_v24 = vshll.u32 %v18699_v40, 16  ;;  %v19568_v8 = vshrl.u32 %v18699_v40, 16 }
 0xe79   : > { %19739 = vst [vmem:[#allocation57_spill] sm:$0xff] %v18707_v38  ;;  %v18714_v49 = vrot.slane %v10047_v7, 7  ;;  %v18716_v30 = vrot.slane %v10050_v11, 1  ;;  %12160 = vmatpush1.bf16.msra.mxu0 %v16227_v2  ;;  %v19566_v5 = vshll.u32 %v18707_v38, 16  ;;  %v19570_v13 = vshrl.u32 %v18707_v38, 16 }
 0xe7a   : > { %v18719_v37 = vrot.slane %v10055_v17, 7  ;;  %v18721_v4 = vrot.slane %v10058_v21, 1  ;;  %v9792_v23 = vpop.f32.mrb[76].mxu0  ;;  %12161 = vmatprep.subr.bf16.mxu0 %v16232_v12  ;;  %v18726_v20 = vrot.slane %v19562_v24, 1  ;;  %vm18757_vm11 = vcmp.eq.s32.totalorder %v10470_v6, 0 }
 0xe7b   : > { %v10052_v1 = vor.u32 %v10050_v11, %v18714_v49  ;;  %v18730_v2 = vor.u32 %v18716_v30, %v10047_v7  ;;  %v9794_v42 = vpop.f32.mrb[77].mxu0  ;;  %v18735_v59 = vrot.slane %v19566_v5, 1  ;;  %v9905_v43 = vpop.f32.mrb[92].mxu1  ;;  %vm10658_vm12 = vmpackc.low %vm18757_vm11, %vm18757_vm11  ;;  %v19764_v40 = vmov 0 }
 0xe7c   : > { %19740 = vst [vmem:[#allocation58_spill] sm:$0xff] %v18726_v20  ;;  %v10060_v12 = vor.u32 %v10058_v21, %v18719_v37  ;;  %v18739_v52 = vor.u32 %v18721_v4, %v10055_v17  ;;  %v9796_v24 = vpop.f32.mrb[78].mxu0  ;;  %v18744_v11 = vor.u32 %v18726_v20, %v19568_v8  ;;  %v9907_v7 = vpop.f32.mrb[93].mxu1  ;;  %v16238_v8 = vld [vmem:[#allocation27 + $0x154] ss:$8 sps:$4 sm:$0xff]  }
 0xe7d   : > { %19741 = vst [vmem:[#allocation59_spill] sm:$0xff] %v18735_v59  ;;  %v18746_v54 = vpack.c.bf16 %v9796_v24, %v9792_v23  ;;  %v9798_v32 = vpop.f32.mrb[79].mxu0  ;;  %12162 = vmatpush1.bf16.msra.mxu0 %v16230_v15  ;;  %v18751_v5 = vor.u32 %v18735_v59, %v19570_v13  ;;  %v9909_v21 = vpop.f32.mrb[94].mxu1 }
 0xe7e   : > { %19742 = vst [vmem:[#allocation60_spill] sm:$0xff] %v18744_v11  ;;  %v18753_v17 = vpack.c.bf16 %v9798_v32, %v9794_v42  ;;  %v10061_v29 = vsel %vm1163_vm8, %v18660_v63, %v10060_v12  ;;  %12163 = vmatprep.subr.bf16.mxu0 %v16235_v33  ;;  %v18761_v24 = vpack.c.bf16 %v9909_v21, %v9905_v43  ;;  %v9911_v15 = vpop.f32.mrb[95].mxu1  ;;  %v16236_v43 = vld [vmem:[#allocation27 + $0x150] ss:$8 sps:$4 sm:$0xff]   ;;  %v16251_v11 = vld [vmem:[#allocation27 + $0x1a0] ss:$8 sps:$4 sm:$0xff]  }
 0xe7f   : > { %19743 = vst [vmem:[#allocation61_spill] sm:$0xff] %v18746_v54  ;;  %19744 = vst [vmem:[#allocation62_spill] sm:$0xff] %v18751_v5  ;;  %v10079_v23 = vshrl.u32 %v18746_v54, 16  ;;  %v10082_v13 = vshll.u32 %v18746_v54, 16  ;;  %14475 = vmatprep.mubr.msk.bf16.mxu0 %vm18111_vm10, %v10061_v29  ;;  %v10053_v32 = vsel %vm1163_vm8, %v18655_v57, %v10052_v1  ;;  %v18769_v63 = vpack.c.bf16 %v9911_v15, %v9907_v7  ;;  %v16241_v29 = vld [vmem:[#allocation27 + $0x164] ss:$8 sps:$4 sm:$0xff]  }
 0xe80   : > { %19745 = vst [vmem:[#allocation63_spill] sm:$0xff] %v18753_v17  ;;  %19748 = vst [vmem:[#allocation64_spill] sm:$0xff] %v18761_v24  ;;  %v10087_v33 = vshrl.u32 %v18753_v17, 16  ;;  %v10090_v6 = vshll.u32 %v18753_v17, 16  ;;  %14477 = vmatmul.mubr.msk.bf16.gmra.mrb[104].mxu0 %vm18111_vm10, %v10053_v32  ;;  %v19578_v42 = vshll.u32 %v18761_v24, 16  ;;  %v19753_v28 = vshrl.u32 %v18761_v24, 16 }
 0xe81   : > { %19749 = vst [vmem:[#allocation65_spill] sm:$0xff] %v18769_v63  ;;  %v18776_v12 = vrot.slane %v10079_v23, 7  ;;  %v18778_v21 = vrot.slane %v10082_v13, 1  ;;  %12164 = vmatpush1.bf16.msra.mxu0 %v16233_v56 }
 0xe82   : > { %v18781_v1 = vrot.slane %v10087_v33, 7  ;;  %v18783_v7 = vrot.slane %v10090_v6, 1  ;;  %v9802_v15 = vpop.f32.mrb[80].mxu0  ;;  %12165 = vmatprep.subr.bf16.mxu0 %v16238_v8  ;;  %v18791_v9 = vrot.slane %v19578_v42, 1  ;;  %v19751_v8 = vshll.u32 %v18769_v63, 16 }
 0xe83   : > { %v10084_v56 = vor.u32 %v10082_v13, %v18776_v12  ;;  %v18795_v57 = vor.u32 %v18778_v21, %v10079_v23  ;;  %v9804_v22 = vpop.f32.mrb[81].mxu0  ;;  %v9915_v54 = vpop.f32.mrb[96].mxu1 }
 0xe84   : > { %19750 = vst [vmem:[#allocation66_spill] sm:$0xff] %v18791_v9  ;;  %v18800_v14 = vrot.slane %v19751_v8, 1  ;;  %v10092_v17 = vor.u32 %v10090_v6, %v18781_v1  ;;  %v18804_v32 = vor.u32 %v18783_v7, %v10087_v33  ;;  %v9806_v42 = vpop.f32.mrb[82].mxu0  ;;  %v18809_v13 = vor.u32 %v18791_v9, %v19753_v28  ;;  %v9917_v23 = vpop.f32.mrb[97].mxu1 }
 0xe85   : > { %v18811_v34 = vpack.c.bf16 %v9806_v42, %v9802_v15  ;;  %v9808_v27 = vpop.f32.mrb[83].mxu0  ;;  %12166 = vmatpush1.bf16.msra.mxu0 %v16236_v43  ;;  %v10674_v33 = vsel %vm10658_vm12, 65537, %v19715_v51  ;;  %v19756_v6 = vshrl.u32 %v18769_v63, 16  ;;  %v9919_v28 = vpop.f32.mrb[98].mxu1  ;;  %v16244_v43 = vld [vmem:[#allocation27 + $0x174] ss:$8 sps:$4 sm:$0xff]  }
 0xe86   : > { %19752 = vst [vmem:[#allocation67_spill] sm:$0xff] %v18800_v14  ;;  %19754 = vst [vmem:[#allocation68_spill] sm:$0xff] %v18809_v13  ;;  %v18824_v19 = vpack.c.bf16 %v9808_v27, %v9804_v22  ;;  %v10093_v42 = vsel %vm1163_vm8, %v18719_v37, %v10092_v17  ;;  %12167 = vmatprep.subr.bf16.mxu0 %v16241_v29  ;;  %v18828_v15 = vpack.c.bf16 %v9919_v28, %v9915_v54  ;;  %v9921_v18 = vpop.f32.mrb[99].mxu1  ;;  %v16242_v54 = vld [vmem:[#allocation27 + $0x170] ss:$8 sps:$4 sm:$0xff]  }
 0xe87   : > { %19755 = vst [vmem:[#allocation69_spill] sm:$0xff] %v18811_v34  ;;  %v18822_v8 = vor.u32 %v18800_v14, %v19756_v6  ;;  %v10111_v31 = vshrl.u32 %v18811_v34, 16  ;;  %v10114_v51 = vshll.u32 %v18811_v34, 16  ;;  %14479 = vmatprep.mubr.msk.bf16.mxu0 %vm18111_vm10, %v10093_v42  ;;  %v10085_v6 = vsel %vm1163_vm8, %v18714_v49, %v10084_v56  ;;  %v16247_v49 = vld [vmem:[#allocation27 + $0x184] ss:$8 sps:$4 sm:$0xff]  }
 0xe88   : > { %19758 = vst [vmem:[#allocation71_spill] sm:$0xff] %v18824_v19  ;;  %19759 = vst [vmem:[#allocation72_spill] sm:$0xff] %v18828_v15  ;;  %v18836_v27 = vpack.c.bf16 %v9921_v18, %v9917_v23  ;;  %v10119_v22 = vshrl.u32 %v18824_v19, 16  ;;  %v10122_v37 = vshll.u32 %v18824_v19, 16  ;;  %14481 = vmatmul.mubr.msk.bf16.gmra.mrb[108].mxu0 %vm18111_vm10, %v10085_v6  ;;  %v14262_v17 = vcombine.low %v10674_v33, %v17912_v50 }
 0xe89   : > { %19757 = vst [vmem:[#allocation70_spill] sm:$0xff] %v18822_v8  ;;  %v19594_v29 = vshll.u32 %v18828_v15, 16  ;;  %v18844_v28 = vrot.slane %v10111_v31, 7  ;;  %v18846_v42 = vrot.slane %v10114_v51, 1  ;;  %12168 = vmatpush1.bf16.msra.mxu0 %v16239_v46 }
 0xe8a   : > { %19760 = vst [vmem:[#allocation73_spill] sm:$0xff] %v18836_v27  ;;  %v18849_v56 = vrot.slane %v10119_v22, 7  ;;  %v18851_v23 = vrot.slane %v10122_v37, 1  ;;  %v9812_v34 = vpop.f32.mrb[84].mxu0  ;;  %12169 = vmatprep.subr.bf16.mxu0 %v16244_v43  ;;  %v19762_v48 = vshll.u32 %v18836_v27, 16  ;;  %vm18871_vm15 = vcmp.eq.s16.totalorder %v14262_v17, 0 }
 0xe8b   : > { %v18856_v33 = vrot.slane %v19594_v29, 1  ;;  %v10116_v50 = vor.u32 %v10114_v51, %v18844_v28  ;;  %v18860_v19 = vor.u32 %v18846_v42, %v10111_v31  ;;  %v9814_v46 = vpop.f32.mrb[85].mxu0  ;;  %v9925_v63 = vpop.f32.mrb[100].mxu1  ;;  %v19765_v40 = vsel %vm18871_vm15, 4294967295, %v19764_v40 }
 0xe8c   : > { %v18865_v24 = vrot.slane %v19762_v48, 1  ;;  %v10124_v43 = vor.u32 %v10122_v37, %v18849_v56  ;;  %v18869_v6 = vor.u32 %v18851_v23, %v10119_v22  ;;  %v9816_v29 = vpop.f32.mrb[86].mxu0  ;;  %19766 = vst [vmem:[#allocation76_spill] sm:$0xff] %v19765_v40  ;;  %v19767_v51 = vshrl.u32 %v18828_v15, 16  ;;  %v9927_v18 = vpop.f32.mrb[101].mxu1 }
 0xe8d   : > { %19761 = vst [vmem:[#allocation74_spill] sm:$0xff] %v18856_v33  ;;  %v18880_v38 = vpack.c.bf16 %v9816_v29, %v9812_v34  ;;  %v9818_v48 = vpop.f32.mrb[87].mxu0  ;;  %12170 = vmatpush1.bf16.msra.mxu0 %v16242_v54  ;;  %v19770_v37 = vshrl.u32 %v18836_v27, 16  ;;  %v9929_v17 = vpop.f32.mrb[102].mxu1 }
 0xe8e   : > { %19763 = vst [vmem:[#allocation75_spill] sm:$0xff] %v18865_v24  ;;  %v18878_v31 = vor.u32 %v18856_v33, %v19767_v51  ;;  %v18887_v13 = vpack.c.bf16 %v9818_v48, %v9814_v46  ;;  %v10125_v15 = vsel %vm1163_vm8, %v18781_v1, %v10124_v43  ;;  %12171 = vmatprep.subr.bf16.mxu0 %v16247_v49  ;;  %v16250_v51 = vld [vmem:[#allocation27 + $0x194] ss:$8 sps:$4 sm:$0xff]   ;;  %v9931_v34 = vpop.f32.mrb[103].mxu1 }
 0xe8f   : > { %19769 = vst [vmem:[#allocation78_spill] sm:$0xff] %v18880_v38  ;;  %v18885_v22 = vor.u32 %v18865_v24, %v19770_v37  ;;  %v10143_v29 = vshrl.u32 %v18880_v38, 16  ;;  %v10146_v54 = vshll.u32 %v18880_v38, 16  ;;  %14483 = vmatprep.mubr.msk.bf16.mxu0 %vm18871_vm15, %v10125_v15  ;;  %v10117_v37 = vsel %vm1163_vm8, %v18776_v12, %v10116_v50  ;;  %v16253_v15 = vld [vmem:[#allocation27 + $0x1a4] ss:$8 sps:$4 sm:$0xff]  }
 0xe90   : > { %19768 = vst [vmem:[#allocation77_spill] sm:$0xff] %v18878_v31  ;;  %19772 = vst [vmem:[#allocation80_spill] sm:$0xff] %v18887_v13  ;;  %v18891_v31 = vpack.c.bf16 %v9929_v17, %v9925_v63  ;;  %v18899_v46 = vpack.c.bf16 %v9931_v34, %v9927_v18  ;;  %v10151_v48 = vshrl.u32 %v18887_v13, 16  ;;  %v10154_v1 = vshll.u32 %v18887_v13, 16  ;;  %14485 = vmatmul.mubr.msk.bf16.gmra.mrb[112].mxu0 %vm18871_vm15, %v10117_v37  ;;  %v16248_v63 = vld [vmem:[#allocation27 + $0x190] ss:$8 sps:$4 sm:$0xff]  }
 0xe91   : > { %19771 = vst [vmem:[#allocation79_spill] sm:$0xff] %v18885_v22  ;;  %v18906_v43 = vrot.slane %v10143_v29, 7  ;;  %v18908_v17 = vrot.slane %v10146_v54, 1  ;;  %12172 = vmatpush1.bf16.msra.mxu0 %v16245_v41 }
 0xe92   : > { %19773 = vst [vmem:[#allocation81_spill] sm:$0xff] %v18891_v31  ;;  %19774 = vst [vmem:[#allocation82_spill] sm:$0xff] %v18899_v46  ;;  %v19610_v49 = vshll.u32 %v18891_v31, 16  ;;  %v18911_v12 = vrot.slane %v10151_v48, 7  ;;  %v18913_v18 = vrot.slane %v10154_v1, 1  ;;  %v9822_v34 = vpop.f32.mrb[88].mxu0  ;;  %12173 = vmatprep.subr.bf16.mxu0 %v16250_v51 }
 0xe93   : > { %v10148_v13 = vor.u32 %v10146_v54, %v18906_v43  ;;  %v18922_v40 = vor.u32 %v18908_v17, %v10143_v29  ;;  %v9824_v41 = vpop.f32.mrb[89].mxu0  ;;  %v19776_v27 = vshll.u32 %v18899_v46, 16  ;;  %v9935_v33 = vpop.f32.mrb[104].mxu1  ;;  %v19778_v8 = vshrl.u32 %v18891_v31, 16 }
 0xe94   : > { %v18918_v37 = vrot.slane %v19610_v49, 1  ;;  %v10156_v51 = vor.u32 %v10154_v1, %v18911_v12  ;;  %v18931_v38 = vor.u32 %v18913_v18, %v10151_v48  ;;  %v9826_v49 = vpop.f32.mrb[90].mxu0  ;;  %v9937_v29 = vpop.f32.mrb[105].mxu1 }
 0xe95   : > { %v18927_v22 = vrot.slane %v19776_v27, 1  ;;  %v18938_v24 = vpack.c.bf16 %v9826_v49, %v9822_v34  ;;  %v9828_v50 = vpop.f32.mrb[91].mxu0  ;;  %12174 = vmatpush1.bf16.msra.mxu0 %v16248_v63  ;;  %v19781_v27 = vshrl.u32 %v18899_v46, 16  ;;  %v9939_v1 = vpop.f32.mrb[106].mxu1 }
 0xe96   : > { %19775 = vst [vmem:[#allocation83_spill] sm:$0xff] %v18918_v37  ;;  %v18936_v54 = vor.u32 %v18918_v37, %v19778_v8  ;;  %v18945_v48 = vpack.c.bf16 %v9828_v50, %v9824_v41  ;;  %v10157_v31 = vsel %vm1163_vm8, %v18849_v56, %v10156_v51  ;;  %12175 = vmatprep.subr.bf16.mxu0 %v16253_v15  ;;  %v16256_v8 = vld [vmem:[#allocation27 + $0x1b4] ss:$8 sps:$4 sm:$0xff]   ;;  %v9941_v49 = vpop.f32.mrb[107].mxu1 }
 0xe97   : > { %19777 = vst [vmem:[#allocation84_spill] sm:$0xff] %v18927_v22  ;;  %19780 = vst [vmem:[#allocation86_spill] sm:$0xff] %v18938_v24  ;;  %v18943_v9 = vor.u32 %v18927_v22, %v19781_v27  ;;  %v10175_v34 = vshrl.u32 %v18938_v24, 16  ;;  %v10178_v63 = vshll.u32 %v18938_v24, 16  ;;  %14487 = vmatprep.mubr.msk.bf16.mxu0 %vm18111_vm10, %v10157_v31  ;;  %v10149_v27 = vsel %vm1163_vm8, %v18844_v28, %v10148_v13  ;;  %v16259_v31 = vld [vmem:[#allocation27 + $0x1c4] ss:$8 sps:$4 sm:$0xff]  }
 0xe98   : > { %19779 = vst [vmem:[#allocation85_spill] sm:$0xff] %v18936_v54  ;;  %19783 = vst [vmem:[#allocation88_spill] sm:$0xff] %v18945_v48  ;;  %v18949_v54 = vpack.c.bf16 %v9939_v1, %v9935_v33  ;;  %v18957_v50 = vpack.c.bf16 %v9941_v49, %v9937_v29  ;;  %v10183_v41 = vshrl.u32 %v18945_v48, 16  ;;  %v10186_v56 = vshll.u32 %v18945_v48, 16  ;;  %14489 = vmatmul.mubr.msk.bf16.gmra.mrb[116].mxu0 %vm18111_vm10, %v10149_v27  ;;  %v16254_v33 = vld [vmem:[#allocation27 + $0x1b0] ss:$8 sps:$4 sm:$0xff]  }
 0xe99   : > { %19782 = vst [vmem:[#allocation87_spill] sm:$0xff] %v18943_v9  ;;  %v18964_v51 = vrot.slane %v10175_v34, 7  ;;  %v18966_v1 = vrot.slane %v10178_v63, 1  ;;  %12176 = vmatpush1.bf16.msra.mxu0 %v16251_v11  ;;  %v19786_v13 = vshrl.u32 %v18599_v58, 16 }
 0xe9a   : > { %19784 = vst [vmem:[#allocation89_spill] sm:$0xff] %v18949_v54  ;;  %19785 = vst [vmem:[#allocation90_spill] sm:$0xff] %v18957_v50  ;;  %v18973_v49 = vrot.slane %v10183_v41, 7  ;;  %v18975_v24 = vrot.slane %v10186_v56, 1  ;;  %v9832_v27 = vpop.f32.mrb[92].mxu0  ;;  %12177 = vmatprep.subr.bf16.mxu0 %v16256_v8  ;;  %v19787_v48 = vshll.u32 %v18949_v54, 16 }
 0xe9b   : > { %v18970_v28 = vrot.slane %v19786_v13, 7  ;;  %v10180_v11 = vor.u32 %v10178_v63, %v18964_v51  ;;  %v18984_v9 = vor.u32 %v18966_v1, %v10175_v34  ;;  %v9834_v13 = vpop.f32.mrb[93].mxu0  ;;  %v19788_v37 = vshll.u32 %v18957_v50, 16  ;;  %v9945_v5 = vpop.f32.mrb[108].mxu1 }
 0xe9c   : > { %v18980_v46 = vrot.slane %v19787_v48, 1  ;;  %v10188_v8 = vor.u32 %v10186_v56, %v18973_v49  ;;  %v18993_v15 = vor.u32 %v18975_v24, %v10183_v41  ;;  %v9836_v48 = vpop.f32.mrb[94].mxu0  ;;  %v19789_v14 = vshrl.u32 %v18949_v54, 16  ;;  %v9947_v34 = vpop.f32.mrb[109].mxu1 }
 0xe9d   : > { %v18989_v22 = vrot.slane %v19788_v37, 1  ;;  %v19000_v55 = vpack.c.bf16 %v9836_v48, %v9832_v27  ;;  %v9838_v29 = vpop.f32.mrb[95].mxu0  ;;  %12178 = vmatpush1.bf16.msra.mxu0 %v16254_v33  ;;  %v19792_v37 = vshrl.u32 %v18595_v35, 16  ;;  %v19793_v56 = vshrl.u32 %v18957_v50, 16  ;;  %v9949_v59 = vpop.f32.mrb[110].mxu1 }
 0xe9e   : > { %v18998_v63 = vor.u32 %v18980_v46, %v19789_v14  ;;  %v19011_v54 = vpack.c.bf16 %v9838_v29, %v9834_v13  ;;  %v10189_v14 = vsel %vm1163_vm8, %v18911_v12, %v10188_v8  ;;  %12179 = vmatprep.subr.bf16.mxu0 %v16259_v31  ;;  %v16262_v27 = vld [vmem:[#allocation27 + $0x1d4] ss:$8 sps:$4 sm:$0xff]   ;;  %v19795_v33 = vshll.u32 %v18599_v58, 16 }
 0xe9f   : > { %19791 = vst [vmem:[#allocation92_spill] sm:$0xff] %v19000_v55  ;;  %v19004_v20 = vrot.slane %v19792_v37, 7  ;;  %v19009_v41 = vor.u32 %v18989_v22, %v19793_v56  ;;  %v19018_v37 = vpack.c.bf16 %v9949_v59, %v9945_v5  ;;  %v10207_v50 = vshrl.u32 %v19000_v55, 16  ;;  %14491 = vmatprep.mubr.msk.bf16.mxu0 %vm18111_vm10, %v10189_v14  ;;  %v16260_v59 = vld [vmem:[#allocation27 + $0x1d0] ss:$8 sps:$4 sm:$0xff]  }
 0xea0   : > { %19790 = vst [vmem:[#allocation91_spill] sm:$0xff] %v18998_v63  ;;  %19794 = vst [vmem:[#allocation93_spill] sm:$0xff] %v19011_v54  ;;  %v10013_v48 = vor.u32 %v19795_v33, %v18970_v28  ;;  %v9951_v63 = vpop.f32.mrb[111].mxu1  ;;  %v10210_v56 = vshll.u32 %v19000_v55, 16  ;;  %v10181_v29 = vsel %vm1163_vm8, %v18906_v43, %v10180_v11  ;;  %v10215_v31 = vshrl.u32 %v19011_v54, 16 }
 0xea1   : > { %v19026_v12 = vpack.c.bf16 %v9951_v63, %v9947_v34  ;;  %v10218_v13 = vshll.u32 %v19011_v54, 16  ;;  %14493 = vmatmul.mubr.msk.bf16.gmra.mrb[120].mxu0 %vm18111_vm10, %v10181_v29  ;;  %v10209_v5 = vrot.slane %v10207_v50, 7  ;;  %v19796_v8 = vshrl.u32 %v18648_v16, 16  ;;  %v16265_v63 = vld [vmem:[#allocation27 + $0x1e4] ss:$8 sps:$4 sm:$0xff]  }
 0xea2   : > { %12180 = vmatpush1.bf16.msra.mxu0 %v16257_v39  ;;  %v10217_v14 = vrot.slane %v10215_v31, 7  ;;  %v19797_v43 = vshll.u32 %v18595_v35, 16  ;;  %v19631_v34 = vshll.u32 %v19018_v37, 16  ;;  %v10351_v55 = vrot.slane %v10210_v56, 1 }
 0xea3   : > { %v19034_v33 = vrot.slane %v19796_v8, 7  ;;  %12181 = vmatprep.subr.bf16.mxu0 %v16262_v27  ;;  %v10212_v58 = vor.u32 %v10210_v56, %v10209_v5  ;;  %v10273_v39 = vsel %vm17754_vm9, 0, %v10013_v48  ;;  %v19047_v29 = vsel %vm2715_vm13, %v18619_v62, %v18662_v61  ;;  %v16263_v5 = vld [vmem:[#allocation27 + $0x1e0] ss:$8 sps:$4 sm:$0xff]  }
 0xea4   : > { %v19039_v11 = vor.u32 %v19797_v43, %v19004_v20  ;;  %v10220_v8 = vor.u32 %v10218_v13, %v10217_v14  ;;  %v10354_v54 = vrot.slane %v10218_v13, 1  ;;  %v19052_v43 = vsel %vm2715_vm13, %v18614_v45, %v18657_v0 }
 0xea5   : > { %v19057_v27 = vsel %vm2715_vm13, %v18680_v10, %v18721_v4  ;;  %v19798_v48 = vshll.u32 %v18648_v16, 16  ;;  %v19633_v62 = vshll.u32 %v19026_v12, 16  ;;  %v19066_v61 = vsel %vm2715_vm13, %v18671_v47, %v18716_v30  ;;  %v16268_v10 = vld [vmem:[#allocation27 + $0x1f4] ss:$8 sps:$4 sm:$0xff]  }
 0xea6   : > { %12182 = vmatpush1.bf16.msra.mxu0 %v16260_v59  ;;  %v19071_v45 = vsel %vm2715_vm13, %v18739_v52, %v18783_v7  ;;  %v10221_v0 = vsel %vm1163_vm8, %v18973_v49, %v10220_v8  ;;  %v10357_v4 = vrot.slane %v19631_v34, 1  ;;  %v19080_v13 = vsel %vm2715_vm13, %v18730_v2, %v18778_v21  ;;  %v19808_v59 = vld [vmem:[#allocation70_spill] sm:$0xff] }
 0xea7   : > { %v10044_v56 = vor.u32 %v19798_v48, %v19034_v33  ;;  %12183 = vmatprep.subr.bf16.mxu0 %v16265_v63  ;;  %v19085_v47 = vsel %vm2715_vm13, %v18804_v32, %v18851_v23  ;;  %14495 = vmatprep.mubr.msk.bf16.mxu0 %vm18111_vm10, %v10221_v0  ;;  %v10213_v52 = vsel %vm1163_vm8, %v18964_v51, %v10212_v58  ;;  %v16266_v32 = vld [vmem:[#allocation27 + $0x1f0] ss:$8 sps:$4 sm:$0xff]   ;;  %v19632_v51 = vshrl.u32 %v19018_v37, 16  ;;  %v19809_v63 = vld [vmem:[#allocation74_spill] sm:$0xff] }
 0xea8   : > { %v19094_v30 = vsel %vm2715_vm13, %v18795_v57, %v18846_v42  ;;  %v19099_v2 = vsel %vm2715_vm13, %v18869_v6, %v18913_v18  ;;  %v19104_v21 = vsel %vm2715_vm13, %v18860_v19, %v18908_v17  ;;  %v19111_v58 = vsel %vm2715_vm13, %v18931_v38, %v18975_v24  ;;  %v19799_v6 = vld [vmem:[#allocation59_spill] sm:$0xff]  ;;  %v19800_v17 = vld [vmem:[#allocation54_spill] sm:$0xff]  ;;  %v19811_v48 = vld [vmem:[#allocation84_spill] sm:$0xff] }
 0xea9   : > { %14497 = vmatmul.mubr.msk.bf16.gmra.mrb[124].mxu0 %vm18111_vm10, %v10213_v52  ;;  %v19116_v57 = vsel %vm2715_vm13, %v18922_v40, %v18966_v1  ;;  %v19120_v7 = vsel %vm2715_vm13, %v18993_v15, %v10354_v54  ;;  %v19124_v19 = vsel %vm2715_vm13, %v18984_v9, %v10351_v55  ;;  %v10360_v38 = vrot.slane %v19633_v62, 1  ;;  %v16271_v9 = vld [vmem:[#allocation27 + $0x204] ss:$8 sps:$4 sm:$0xff]   ;;  %v19806_v1 = vld [vmem:[#allocation60_spill] sm:$0xff]  ;;  %v19814_v52 = vld [vmem:[#allocation77_spill] sm:$0xff] }
 0xeaa   : > { %12184 = vmatpush1.bf16.msra.mxu0 %v16263_v5  ;;  %14499 = vmatprep.mubr.msk.bf16.mxu0 %vm18622_vm7, %v10273_v39  ;;  %v19130_v24 = vor.u32 %v10354_v54, %v10215_v31  ;;  %v19132_v40 = vor.u32 %v10351_v55, %v10207_v50  ;;  %v19137_v42 = vsel %vm2715_vm13, %v18634_v53, %v18676_v3  ;;  %v19801_v54 = vld [vmem:[#allocation58_spill] sm:$0xff]  ;;  %v19802_v55 = vld [vmem:[#allocation52_spill] sm:$0xff]  ;;  %v19803_v15 = vld [vmem:[#allocation67_spill] sm:$0xff] }
 0xeab   : > { %12185 = vmatprep.subr.bf16.mxu0 %v16268_v10  ;;  %v19142_v23 = vsel %vm2715_vm13, %v18628_v44, %v18667_v26  ;;  %v19147_v18 = vsel %vm2715_vm13, %v19800_v17, %v19799_v6  ;;  %v19152_v50 = vsel %vm2715_vm13, %v19802_v55, %v19801_v54  ;;  %v19804_v53 = vld [vmem:[#allocation62_spill] sm:$0xff]  ;;  %v19634_v44 = vshrl.u32 %v19026_v12, 16  ;;  %v19807_v31 = vld [vmem:[#allocation75_spill] sm:$0xff]  ;;  %v19810_v39 = vld [vmem:[#allocation68_spill] sm:$0xff] }
 0xeac   : > { %v19157_v3 = vsel %vm2715_vm13, %v19804_v53, %v19803_v15  ;;  %v19805_v26 = vld [vmem:[#allocation66_spill] sm:$0xff]  ;;  %v19169_v14 = vsel %vm2715_vm13, %v19808_v59, %v19807_v31  ;;  %v19174_v8 = vsel %vm2715_vm13, %v19810_v39, %v19809_v63  ;;  %v19812_v5 = vld [vmem:[#allocation79_spill] sm:$0xff]  ;;  %v19816_v15 = vld [vmem:[#allocation85_spill] sm:$0xff] }
 0xead   : > { %v19164_v49 = vsel %vm2715_vm13, %v19806_v1, %v19805_v26  ;;  %v19179_v0 = vsel %vm2715_vm13, %v19812_v5, %v19811_v48  ;;  %v19813_v10 = vld [vmem:[#allocation83_spill] sm:$0xff]  ;;  %v19194_v53 = vsel %vm2715_vm13, %v19816_v15, %v18980_v46  ;;  %v19198_v26 = vsel %vm2715_vm13, %v19009_v41, %v10360_v38  ;;  %v19820_v46 = vld [vmem:[#allocation45_spill] sm:$0xff] }
 0xeae   : > { %v19184_v6 = vsel %vm2715_vm13, %v19814_v52, %v19813_v10  ;;  %v19815_v17 = vld [vmem:[#allocation87_spill] sm:$0xff]  ;;  %12186 = vmatpush1.bf16.msra.mxu0 %v16266_v32  ;;  %v19206_v59 = vor.u32 %v10360_v38, %v19634_v44  ;;  %v19210_v32 = vor.u32 %v10357_v4, %v19632_v51  ;;  %v19821_v63 = vshrl.u32 %v19820_v46, 16  ;;  %v19822_v48 = vld [vmem:[#allocation57_spill] sm:$0xff] }
 0xeaf   : > { %v19189_v54 = vsel %vm2715_vm13, %v19815_v17, %v18989_v22  ;;  %v16269_v55 = vld [vmem:[#allocation27 + $0x200] ss:$8 sps:$4 sm:$0xff]   ;;  %12268 = vmatprep.subr.bf16.mxu0 %v16271_v9  ;;  %v16274_v22 = vld [vmem:[#allocation27 + $0x214] ss:$8 sps:$4 sm:$0xff]   ;;  %v10272_v41 = vsel %vm17754_vm9, 0, %v19039_v11  ;;  %v19823_v5 = vshrl.u32 %v19822_v48, 16  ;;  %v10045_v38 = vsel %vm1163_vm8, %v18970_v28, %v10044_v56 }
 0xeb0   : > { %v19817_v1 = vld [vmem:[#allocation91_spill] sm:$0xff]  ;;  %19818 = vst [vmem:[#allocation59_spill] sm:$0xff] %v19206_v59  ;;  %19819 = vst [vmem:[#allocation54_spill] sm:$0xff] %v19210_v32  ;;  %v10033_v39 = vrot.slane %v19821_v63, 7  ;;  %v19824_v52 = vshll.u32 %v19820_v46, 16  ;;  %v19825_v11 = vshll.u32 %v19822_v48, 16 }
 0xeb1   : > { %v19202_v31 = vsel %vm2715_vm13, %v19817_v1, %v10357_v4  ;;  %v10073_v10 = vrot.slane %v19823_v5, 7  ;;  %14501 = vmatmul.mubr.msk.bf16.vlgmr.msra.gmra.mrb[96].mxu0 %vm18622_vm7, %v10272_v41  ;;  %v16272_v4 = vld [vmem:[#allocation27 + $0x210] ss:$8 sps:$4 sm:$0xff]   ;;  %v16277_v9 = vld [vmem:[#allocation27 + $0x224] ss:$8 sps:$4 sm:$0xff]  }
 0xeb2   : > { %14503 = vmatprep.mubr.msk.bf16.mxu0 %vm18111_vm10, %v10045_v38  ;;  %12269 = vmatpush1.bf16.msra.mxu0 %v16269_v55  ;;  %v10036_v60 = vor.u32 %v19824_v52, %v10033_v39  ;;  %v16275_v15 = vld [vmem:[#allocation27 + $0x220] ss:$8 sps:$4 sm:$0xff]   ;;  %v19826_v1 = vld [vmem:[#allocation56_spill] sm:$0xff]  ;;  %v19828_v55 = vld [vmem:[#allocation65_spill] sm:$0xff] }
 0xeb3   : > { %12270 = vmatprep.subr.bf16.mxu0 %v16274_v22  ;;  %v10076_v17 = vor.u32 %v19825_v11, %v10073_v10  ;;  %v19827_v63 = vshrl.u32 %v19826_v1, 16  ;;  %v19829_v41 = vshrl.u32 %v19828_v55, 16  ;;  %v16278_v38 = vld [vmem:[#allocation27 + $0x230] ss:$8 sps:$4 sm:$0xff]   ;;  %v16281_v11 = vld [vmem:[#allocation27 + $0x240] ss:$8 sps:$4 sm:$0xff]  }
 0xeb4   : > { %v10037_v56 = vsel %vm1163_vm8, %v19004_v20, %v10036_v60  ;;  %v19831_v20 = vshll.u32 %v19828_v55, 16  ;;  %v16298_v44 = vld [vmem:[#allocation27 + $0x294] ss:$8 sps:$4 sm:$0xff]  }
 0xeb5   : > { %v10065_v28 = vrot.slane %v19827_v63, 7  ;;  %v10105_v22 = vrot.slane %v19829_v41, 7  ;;  %v10077_v5 = vsel %vm1163_vm8, %v19034_v33, %v10076_v17  ;;  %v16286_v63 = vld [vmem:[#allocation27 + $0x254] ss:$8 sps:$4 sm:$0xff]  }
 0xeb6   : > { %12271 = vmatpush1.bf16.msra.mxu0 %v16272_v4  ;;  %v16283_v4 = vld [vmem:[#allocation27 + $0x244] ss:$8 sps:$4 sm:$0xff]  }
 0xeb7   : > { %12272 = vmatprep.subr.bf16.mxu0 %v16277_v9  ;;  %v19830_v9 = vshll.u32 %v19826_v1, 16  ;;  %v10108_v60 = vor.u32 %v19831_v20, %v10105_v22 }
 0xeb9   : > { %14505 = vmatmul.mubr.msk.bf16.gmra.mrb[100].mxu0 %vm18111_vm10, %v10037_v56  ;;  %v10068_v52 = vor.u32 %v19830_v9, %v10065_v28  ;;  %v19832_v56 = vld [vmem:[#allocation64_spill] sm:$0xff] }
 0xeba   : > { %14507 = vmatprep.mubr.msk.bf16.mxu0 %vm18111_vm10, %v10077_v5  ;;  %12273 = vmatpush1.bf16.msra.mxu0 %v16275_v15  ;;  %v19833_v41 = vshrl.u32 %v19832_v56, 16  ;;  %v19834_v5 = vld [vmem:[#allocation73_spill] sm:$0xff]  ;;  %v19836_v9 = vshll.u32 %v19832_v56, 16 }
 0xebb   : > { %12274 = vmatprep.subr.bf16.mxu0 %v16280_v36  ;;  %v10069_v17 = vsel %vm1163_vm8, %v10033_v39, %v10068_v52  ;;  %v19835_v15 = vshrl.u32 %v19834_v5, 16  ;;  %v10109_v36 = vsel %vm1163_vm8, %v10073_v10, %v10108_v60  ;;  %v19837_v39 = vshll.u32 %v19834_v5, 16 }
 0xebc   : > { %v10097_v33 = vrot.slane %v19833_v41, 7  ;;  %v16287_v41 = vld [vmem:[#allocation27 + $0x260] ss:$8 sps:$4 sm:$0xff]  }
 0xebd   : > { %v10137_v34 = vrot.slane %v19835_v15, 7  ;;  %v16292_v15 = vld [vmem:[#allocation27 + $0x274] ss:$8 sps:$4 sm:$0xff]  }
 0xebe   : > { %12275 = vmatpush1.bf16.msra.mxu0 %v16278_v38  ;;  %v16284_v38 = vld [vmem:[#allocation27 + $0x250] ss:$8 sps:$4 sm:$0xff]   ;;  %v10100_v20 = vor.u32 %v19836_v9, %v10097_v33  ;;  %v16304_v9 = vld [vmem:[#allocation27 + $0x2b4] ss:$8 sps:$4 sm:$0xff]  }
 0xebf   : > { %12276 = vmatprep.subr.bf16.mxu0 %v16283_v4  ;;  %v16289_v4 = vld [vmem:[#allocation27 + $0x264] ss:$8 sps:$4 sm:$0xff]   ;;  %v10140_v52 = vor.u32 %v19837_v39, %v10137_v34 }
 0xec0   : > { %v10101_v60 = vsel %vm1163_vm8, %v10065_v28, %v10100_v20 }
 0xec1   : > { %14509 = vmatmul.mubr.msk.bf16.gmra.mrb[104].mxu0 %vm18111_vm10, %v10069_v17  ;;  %v19838_v17 = vld [vmem:[#allocation72_spill] sm:$0xff] }
 0xec2   : > { %14511 = vmatprep.mubr.msk.bf16.mxu0 %vm18111_vm10, %v10109_v36  ;;  %12277 = vmatpush1.bf16.msra.mxu0 %v16281_v11  ;;  %v19839_v51 = vshrl.u32 %v19838_v17, 16  ;;  %v19840_v36 = vld [vmem:[#allocation82_spill] sm:$0xff]  ;;  %v19843_v39 = vshll.u32 %v19838_v17, 16 }
 0xec3   : > { %12278 = vmatprep.subr.bf16.mxu0 %v16286_v63  ;;  %v19841_v11 = vshrl.u32 %v19840_v36, 16  ;;  %v10141_v63 = vsel %vm1163_vm8, %v10105_v22, %v10140_v52  ;;  %v19844_v28 = vshll.u32 %v19840_v36, 16 }
 0xec4   : > { %v10129_v10 = vrot.slane %v19839_v51, 7 }
 0xec5   : > { %v10169_v62 = vrot.slane %v19841_v11, 7  ;;  %v16293_v11 = vld [vmem:[#allocation27 + $0x280] ss:$8 sps:$4 sm:$0xff]  }
 0xec6   : > { %12279 = vmatpush1.bf16.msra.mxu0 %v16284_v38  ;;  %v16290_v38 = vld [vmem:[#allocation27 + $0x270] ss:$8 sps:$4 sm:$0xff]   ;;  %v10132_v51 = vor.u32 %v19843_v39, %v10129_v10 }
 0xec7   : > { %12280 = vmatprep.subr.bf16.mxu0 %v16289_v4  ;;  %v16295_v4 = vld [vmem:[#allocation27 + $0x284] ss:$8 sps:$4 sm:$0xff]   ;;  %v10172_v20 = vor.u32 %v19844_v28, %v10169_v62  ;;  %v16299_v28 = vld [vmem:[#allocation27 + $0x2a0] ss:$8 sps:$4 sm:$0xff]  }
 0xec8   : > { %v10133_v52 = vsel %vm1163_vm8, %v10097_v33, %v10132_v51 }
 0xec9   : > { %14513 = vmatmul.mubr.msk.bf16.gmra.mrb[108].mxu0 %vm18111_vm10, %v10101_v60  ;;  %v19845_v60 = vld [vmem:[#allocation81_spill] sm:$0xff] }
 0xeca   : > { %14515 = vmatprep.mubr.msk.bf16.mxu0 %vm18871_vm15, %v10141_v63  ;;  %12281 = vmatpush1.bf16.msra.mxu0 %v16287_v41  ;;  %v19846_v32 = vshrl.u32 %v19845_v60, 16  ;;  %v19847_v63 = vld [vmem:[#allocation90_spill] sm:$0xff]  ;;  %v19849_v39 = vshll.u32 %v19845_v60, 16 }
 0xecb   : > { %12282 = vmatprep.subr.bf16.mxu0 %v16292_v15  ;;  %v19848_v41 = vshrl.u32 %v19847_v63, 16  ;;  %v10173_v15 = vsel %vm1163_vm8, %v10137_v34, %v10172_v20  ;;  %v19850_v33 = vshll.u32 %v19847_v63, 16 }
 0xecc   : > { %v10161_v22 = vrot.slane %v19846_v32, 7 }
 0xecd   : > { %v10201_v59 = vrot.slane %v19848_v41, 7 }
 0xece   : > { %12283 = vmatpush1.bf16.msra.mxu0 %v16290_v38  ;;  %v16296_v38 = vld [vmem:[#allocation27 + $0x290] ss:$8 sps:$4 sm:$0xff]   ;;  %v10164_v32 = vor.u32 %v19849_v39, %v10161_v22 }
 0xecf   : > { %12284 = vmatprep.subr.bf16.mxu0 %v16295_v4  ;;  %v16301_v4 = vld [vmem:[#allocation27 + $0x2a4] ss:$8 sps:$4 sm:$0xff]   ;;  %v10204_v51 = vor.u32 %v19850_v33, %v10201_v59 }
 0xed0   : > { %v10165_v20 = vsel %vm1163_vm8, %v10129_v10, %v10164_v32  ;;  %v19855_v10 = vshll.u32 %v19026_v12, 16 }
 0xed1   : > { %14517 = vmatmul.mubr.msk.bf16.gmra.mrb[112].mxu0 %vm18871_vm15, %v10133_v52  ;;  %v19851_v52 = vld [vmem:[#allocation89_spill] sm:$0xff] }
 0xed2   : > { %14519 = vmatprep.mubr.msk.bf16.mxu0 %vm18111_vm10, %v10173_v15  ;;  %12285 = vmatpush1.bf16.msra.mxu0 %v16293_v11  ;;  %v19852_v41 = vshrl.u32 %v19851_v52, 16  ;;  %v19853_v11 = vshrl.u32 %v19026_v12, 16  ;;  %v19854_v39 = vshll.u32 %v19851_v52, 16 }
 0xed3   : > { %12286 = vmatprep.subr.bf16.mxu0 %v16298_v44  ;;  %v10205_v44 = vsel %vm1163_vm8, %v10169_v62, %v10204_v51 }
 0xed4   : > { %v10193_v34 = vrot.slane %v19852_v41, 7  ;;  %v10233_v15 = vrot.slane %v19853_v11, 7  ;;  %v16305_v41 = vld [vmem:[#allocation27 + $0x2c0] ss:$8 sps:$4 sm:$0xff]   ;;  %v16310_v11 = vld [vmem:[#allocation27 + $0x2d4] ss:$8 sps:$4 sm:$0xff]  }
 0xed6   : > { %12287 = vmatpush1.bf16.msra.mxu0 %v16296_v38  ;;  %v16302_v38 = vld [vmem:[#allocation27 + $0x2b0] ss:$8 sps:$4 sm:$0xff]   ;;  %v10196_v33 = vor.u32 %v19854_v39, %v10193_v34  ;;  %v10236_v32 = vor.u32 %v19855_v10, %v10233_v15  ;;  %v16313_v15 = vld [vmem:[#allocation27 + $0x2e4] ss:$8 sps:$4 sm:$0xff]   ;;  %v16316_v39 = vld [vmem:[#allocation27 + $0x2f4] ss:$8 sps:$4 sm:$0xff]  }
 0xed7   : > { %12288 = vmatprep.subr.bf16.mxu0 %v16301_v4  ;;  %v16307_v4 = vld [vmem:[#allocation27 + $0x2c4] ss:$8 sps:$4 sm:$0xff]  }
 0xed8   : > { %v10197_v51 = vsel %vm1163_vm8, %v10161_v22, %v10196_v33  ;;  %v16314_v33 = vld [vmem:[#allocation27 + $0x2f0] ss:$8 sps:$4 sm:$0xff]   ;;  %v16319_v10 = vld [vmem:[#allocation27 + $0x304] ss:$8 sps:$4 sm:$0xff]  }
 0xed9   : > { %14521 = vmatmul.mubr.msk.bf16.gmra.mrb[116].mxu0 %vm18111_vm10, %v10165_v20  ;;  %v19856_v20 = vshrl.u32 %v19018_v37, 16 }
 0xeda   : > { %14523 = vmatprep.mubr.msk.bf16.mxu0 %vm18111_vm10, %v10205_v44  ;;  %12289 = vmatpush1.bf16.msra.mxu0 %v16299_v28  ;;  %v10237_v28 = vsel %vm1163_vm8, %v10201_v59, %v10236_v32  ;;  %v19857_v44 = vshll.u32 %v19018_v37, 16  ;;  %v19858_v59 = vld [vmem:[#allocation44_spill] sm:$0xff]  ;;  %v16317_v32 = vld [vmem:[#allocation27 + $0x300] ss:$8 sps:$4 sm:$0xff]  }
 0xedb   : > { %12290 = vmatprep.subr.bf16.mxu0 %v16304_v9  ;;  %v10225_v62 = vrot.slane %v19856_v20, 7  ;;  %v16308_v9 = vld [vmem:[#allocation27 + $0x2d0] ss:$8 sps:$4 sm:$0xff]   ;;  %v19860_v20 = vld [vmem:[#allocation51_spill] sm:$0xff] }
 0xede   : > { %12291 = vmatpush1.bf16.msra.mxu0 %v16302_v38  ;;  %v10228_v38 = vor.u32 %v19857_v44, %v10225_v62  ;;  %v16320_v62 = vld [vmem:[#allocation27 + $0x310] ss:$8 sps:$4 sm:$0xff]  }
 0xedf   : > { %12292 = vmatprep.subr.bf16.mxu0 %v16307_v4  ;;  %v16311_v4 = vld [vmem:[#allocation27 + $0x2e0] ss:$8 sps:$4 sm:$0xff]   ;;  %v16326_v44 = vld [vmem:[#allocation27 + $0x330] ss:$8 sps:$4 sm:$0xff]  }
 0xee0   : > { %v10229_v22 = vsel %vm1163_vm8, %v10193_v34, %v10228_v38  ;;  %v16325_v34 = vld [vmem:[#allocation27 + $0x324] ss:$8 sps:$4 sm:$0xff]  }
 0xee1   : > { %14525 = vmatmul.mubr.msk.bf16.gmra.mrb[120].mxu0 %vm18111_vm10, %v10197_v51  ;;  %v16323_v51 = vld [vmem:[#allocation27 + $0x320] ss:$8 sps:$4 sm:$0xff]   ;;  %v16331_v38 = vld [vmem:[#allocation27 + $0x344] ss:$8 sps:$4 sm:$0xff]  }
 0xee2   : > { %14527 = vmatprep.mubr.msk.bf16.mxu0 %vm18111_vm10, %v10237_v28  ;;  %12293 = vmatpush1.bf16.msra.mxu0 %v16305_v41  ;;  %v16322_v41 = vld [vmem:[#allocation27 + $0x314] ss:$8 sps:$4 sm:$0xff]  }
 0xee3   : > { %12294 = vmatprep.subr.bf16.mxu0 %v16310_v11  ;;  %v19859_v11 = vld [vmem:[#allocation43_spill] sm:$0xff]  ;;  %v16328_v28 = vld [vmem:[#allocation27 + $0x334] ss:$8 sps:$4 sm:$0xff]  }
 0xee6   : > { %12295 = vmatpush1.bf16.msra.mxu0 %v16308_v9  ;;  %v19861_v9 = vld [vmem:[#allocation50_spill] sm:$0xff] }
 0xee7   : > { %12296 = vmatprep.subr.bf16.mxu0 %v16313_v15  ;;  %v19862_v15 = vld [vmem:[#allocation55_spill] sm:$0xff] }
 0xee9   : > { %14529 = vmatmul.mubr.msk.bf16.gmra.mrb[124].mxu0 %vm18111_vm10, %v10229_v22  ;;  %v19863_v22 = vld [vmem:[#allocation53_spill] sm:$0xff] }
 0xeea   : > { %12297 = vmatpush1.bf16.msra.mxu0 %v16311_v4  ;;  %12300 = vmatprep.mubr.bf16.mxu0 %v19858_v59  ;;  %v16329_v4 = vld [vmem:[#allocation27 + $0x340] ss:$8 sps:$4 sm:$0xff]  }
 0xeeb   : > { %12298 = vmatprep.subr.bf16.mxu0 %v16316_v39  ;;  %v16334_v39 = vld [vmem:[#allocation27 + $0x354] ss:$8 sps:$4 sm:$0xff]   ;;  %v19864_v59 = vld [vmem:[#allocation63_spill] sm:$0xff] }
 0xeee   : > { %12299 = vmatpush1.bf16.msra.mxu0 %v16314_v33  ;;  %v16332_v33 = vld [vmem:[#allocation27 + $0x350] ss:$8 sps:$4 sm:$0xff]  }
 0xeef   : > { %12381 = vmatprep.subr.bf16.mxu0 %v16319_v10  ;;  %v16337_v10 = vld [vmem:[#allocation27 + $0x364] ss:$8 sps:$4 sm:$0xff]  }
 0xef1   : > { %12301 = vmatmul.mubr.bf16.vlgmr.msra.gmra.mrb[96].mxu0 %v19859_v11  ;;  %v19865_v11 = vld [vmem:[#allocation61_spill] sm:$0xff] }
 0xef2   : > { %12310 = vmatprep.mubr.bf16.mxu0 %v19860_v20  ;;  %12382 = vmatpush1.bf16.msra.mxu0 %v16317_v32  ;;  %v16335_v32 = vld [vmem:[#allocation27 + $0x360] ss:$8 sps:$4 sm:$0xff]  }
 0xef3   : > { %12383 = vmatprep.subr.bf16.mxu0 %v16322_v41  ;;  %v16340_v41 = vld [vmem:[#allocation27 + $0x374] ss:$8 sps:$4 sm:$0xff]   ;;  %v19866_v20 = vld [vmem:[#allocation71_spill] sm:$0xff] }
 0xef6   : > { %12384 = vmatpush1.bf16.msra.mxu0 %v16320_v62  ;;  %v16338_v62 = vld [vmem:[#allocation27 + $0x370] ss:$8 sps:$4 sm:$0xff]  }
 0xef7   : > { %12385 = vmatprep.subr.bf16.mxu0 %v16325_v34  ;;  %v16343_v34 = vld [vmem:[#allocation27 + $0x384] ss:$8 sps:$4 sm:$0xff]  }
 0xef9   : > { %12311 = vmatmul.mubr.bf16.gmra.mrb[100].mxu0 %v19861_v9  ;;  %v19867_v9 = vld [vmem:[#allocation69_spill] sm:$0xff] }
 0xefa   : > { %12320 = vmatprep.mubr.bf16.mxu0 %v19862_v15  ;;  %12386 = vmatpush1.bf16.msra.mxu0 %v16323_v51  ;;  %v16341_v51 = vld [vmem:[#allocation27 + $0x380] ss:$8 sps:$4 sm:$0xff]   ;;  %v19868_v15 = vld [vmem:[#allocation80_spill] sm:$0xff] }
 0xefb   : > { %12387 = vmatprep.subr.bf16.mxu0 %v16328_v28  ;;  %v16346_v28 = vld [vmem:[#allocation27 + $0x394] ss:$8 sps:$4 sm:$0xff]  }
 0xefe   : > { %12388 = vmatpush1.bf16.msra.mxu0 %v16326_v44  ;;  %v16344_v44 = vld [vmem:[#allocation27 + $0x390] ss:$8 sps:$4 sm:$0xff]  }
 0xeff   : > { %12389 = vmatprep.subr.bf16.mxu0 %v16331_v38  ;;  %v16349_v38 = vld [vmem:[#allocation27 + $0x3a4] ss:$8 sps:$4 sm:$0xff]  }
 0xf01   : > { %12321 = vmatmul.mubr.bf16.gmra.mrb[104].mxu0 %v19863_v22  ;;  %v19869_v22 = vld [vmem:[#allocation78_spill] sm:$0xff] }
 0xf02   : > { %12330 = vmatprep.mubr.bf16.mxu0 %v19864_v59  ;;  %12390 = vmatpush1.bf16.msra.mxu0 %v16329_v4  ;;  %v16347_v4 = vld [vmem:[#allocation27 + $0x3a0] ss:$8 sps:$4 sm:$0xff]   ;;  %v19870_v59 = vld [vmem:[#allocation88_spill] sm:$0xff] }
 0xf03   : > { %12391 = vmatprep.subr.bf16.mxu0 %v16334_v39  ;;  %v16352_v39 = vld [vmem:[#allocation27 + $0x3b4] ss:$8 sps:$4 sm:$0xff]  }
 0xf06   : > { %12392 = vmatpush1.bf16.msra.mxu0 %v16332_v33  ;;  %v16350_v33 = vld [vmem:[#allocation27 + $0x3b0] ss:$8 sps:$4 sm:$0xff]  }
 0xf07   : > { %12393 = vmatprep.subr.bf16.mxu0 %v16337_v10  ;;  %v16355_v10 = vld [vmem:[#allocation27 + $0x3c4] ss:$8 sps:$4 sm:$0xff]  }
 0xf09   : > { %12331 = vmatmul.mubr.bf16.gmra.mrb[108].mxu0 %v19865_v11  ;;  %v19871_v11 = vld [vmem:[#allocation86_spill] sm:$0xff] }
 0xf0a   : > { %12340 = vmatprep.mubr.bf16.mxu0 %v19866_v20  ;;  %12394 = vmatpush1.bf16.msra.mxu0 %v16335_v32  ;;  %v16353_v32 = vld [vmem:[#allocation27 + $0x3c0] ss:$8 sps:$4 sm:$0xff]   ;;  %v19872_v20 = vld [vmem:[#allocation93_spill] sm:$0xff] }
 0xf0b   : > { %12395 = vmatprep.subr.bf16.mxu0 %v16340_v41  ;;  %v16358_v41 = vld [vmem:[#allocation27 + $0x3d4] ss:$8 sps:$4 sm:$0xff]  }
 0xf0e   : > { %12396 = vmatpush1.bf16.msra.mxu0 %v16338_v62  ;;  %v16356_v62 = vld [vmem:[#allocation27 + $0x3d0] ss:$8 sps:$4 sm:$0xff]  }
 0xf0f   : > { %12397 = vmatprep.subr.bf16.mxu0 %v16343_v34  ;;  %v16361_v34 = vld [vmem:[#allocation27 + $0x3e4] ss:$8 sps:$4 sm:$0xff]  }
 0xf11   : > { %12341 = vmatmul.mubr.bf16.gmra.mrb[112].mxu0 %v19867_v9  ;;  %v19873_v9 = vld [vmem:[#allocation92_spill] sm:$0xff] }
 0xf12   : > { %12350 = vmatprep.mubr.bf16.mxu0 %v19868_v15  ;;  %12398 = vmatpush1.bf16.msra.mxu0 %v16341_v51  ;;  %v16359_v51 = vld [vmem:[#allocation27 + $0x3e0] ss:$8 sps:$4 sm:$0xff]   ;;  %v19874_v15 = vld [vmem:[#allocation49_spill] sm:$0xff] }
 0xf13   : > { %12399 = vmatprep.subr.bf16.mxu0 %v16346_v28  ;;  %v16364_v28 = vld [vmem:[#allocation27 + $0x3f4] ss:$8 sps:$4 sm:$0xff]  }
 0xf16   : > { %12400 = vmatpush1.bf16.msra.mxu0 %v16344_v44  ;;  %v16362_v44 = vld [vmem:[#allocation27 + $0x3f0] ss:$8 sps:$4 sm:$0xff]  }
 0xf17   : > { %12401 = vmatprep.subr.bf16.mxu0 %v16349_v38  ;;  %v16367_v38 = vld [vmem:[#allocation27 + $0x404] ss:$8 sps:$4 sm:$0xff]  }
 0xf19   : > { %12351 = vmatmul.mubr.bf16.gmra.mrb[116].mxu0 %v19869_v22  ;;  %v16368_v22 = vld [vmem:[#allocation27 + $0x410] ss:$8 sps:$4 sm:$0xff]  }
 0xf1a   : > { %12360 = vmatprep.mubr.bf16.mxu0 %v19870_v59  ;;  %12402 = vmatpush1.bf16.msra.mxu0 %v16347_v4  ;;  %v16365_v4 = vld [vmem:[#allocation27 + $0x400] ss:$8 sps:$4 sm:$0xff]   ;;  %v16373_v59 = vld [vmem:[#allocation27 + $0x424] ss:$8 sps:$4 sm:$0xff]  }
 0xf1b   : > { %12403 = vmatprep.subr.bf16.mxu0 %v16352_v39  ;;  %v16370_v39 = vld [vmem:[#allocation27 + $0x414] ss:$8 sps:$4 sm:$0xff]  }
 0xf1e   : > { %12404 = vmatpush1.bf16.msra.mxu0 %v16350_v33  ;;  %v16371_v33 = vld [vmem:[#allocation27 + $0x420] ss:$8 sps:$4 sm:$0xff]  }
 0xf1f   : > { %12405 = vmatprep.subr.bf16.mxu0 %v16355_v10  ;;  %v16376_v10 = vld [vmem:[#allocation27 + $0x434] ss:$8 sps:$4 sm:$0xff]  }
 0xf21   : > { %12361 = vmatmul.mubr.bf16.gmra.mrb[120].mxu0 %v19871_v11  ;;  %v16380_v11 = vld [vmem:[#allocation27 + $0x450] ss:$8 sps:$4 sm:$0xff]  }
 0xf22   : > { %12370 = vmatprep.mubr.bf16.mxu0 %v19872_v20  ;;  %12406 = vmatpush1.bf16.msra.mxu0 %v16353_v32  ;;  %v16374_v32 = vld [vmem:[#allocation27 + $0x430] ss:$8 sps:$4 sm:$0xff]   ;;  %v16385_v20 = vld [vmem:[#allocation27 + $0x464] ss:$8 sps:$4 sm:$0xff]  }
 0xf23   : > { %12407 = vmatprep.subr.bf16.mxu0 %v16358_v41  ;;  %v16379_v41 = vld [vmem:[#allocation27 + $0x444] ss:$8 sps:$4 sm:$0xff]  }
 0xf26   : > { %12408 = vmatpush1.bf16.msra.mxu0 %v16356_v62  ;;  %v16386_v62 = vld [vmem:[#allocation27 + $0x470] ss:$8 sps:$4 sm:$0xff]  }
 0xf27   : > { %12409 = vmatprep.subr.bf16.mxu0 %v16361_v34  ;;  %v16391_v34 = vld [vmem:[#allocation27 + $0x484] ss:$8 sps:$4 sm:$0xff]  }
 0xf29   : > { %12371 = vmatmul.mubr.bf16.gmra.mrb[124].mxu0 %v19873_v9  ;;  %v16398_v9 = vld [vmem:[#allocation27 + $0x4b0] ss:$8 sps:$4 sm:$0xff]  }
 0xf2a   : > { %12410 = vmatpush1.bf16.msra.mxu0 %v16359_v51  ;;  %12413 = vmatprep.mubr.bf16.mxu0 %v19874_v15  ;;  %v16392_v51 = vld [vmem:[#allocation27 + $0x490] ss:$8 sps:$4 sm:$0xff]   ;;  %v16403_v15 = vld [vmem:[#allocation27 + $0x4c4] ss:$8 sps:$4 sm:$0xff]  }
 0xf2b   : > { %12411 = vmatprep.subr.bf16.mxu0 %v16364_v28  ;;  %v16397_v28 = vld [vmem:[#allocation27 + $0x4a4] ss:$8 sps:$4 sm:$0xff]  }
 0xf2e   : > { %12412 = vmatpush1.bf16.msra.mxu0 %v16362_v44  ;;  %v16404_v44 = vld [vmem:[#allocation27 + $0x4d0] ss:$8 sps:$4 sm:$0xff]  }
 0xf2f   : > { %12494 = vmatprep.subr.bf16.mxu0 %v16367_v38  ;;  %v16409_v38 = vld [vmem:[#allocation27 + $0x4e4] ss:$8 sps:$4 sm:$0xff]  }
 0xf31   : > { %12414 = vmatmul.mubr.bf16.vlgmr.msra.gmra.mrb[96].mxu0 %v18595_v35  ;;  %v16377_v35 = vld [vmem:[#allocation27 + $0x440] ss:$8 sps:$4 sm:$0xff]  }
 0xf32   : > { %12423 = vmatprep.mubr.bf16.mxu0 %v18648_v16  ;;  %12495 = vmatpush1.bf16.msra.mxu0 %v16365_v4  ;;  %v16382_v16 = vld [vmem:[#allocation27 + $0x454] ss:$8 sps:$4 sm:$0xff]   ;;  %v16410_v4 = vld [vmem:[#allocation27 + $0x4f0] ss:$8 sps:$4 sm:$0xff]  }
 0xf33   : > { %12496 = vmatprep.subr.bf16.mxu0 %v16370_v39  ;;  %v19875_v39 = vld [vmem:[#allocation48_spill] sm:$0xff] }
 0xf36   : > { %12497 = vmatpush1.bf16.msra.mxu0 %v16368_v22  ;;  %v10463_v22 = vand.u32 63, %v19875_v39 }
 0xf37   : > { %12498 = vmatprep.subr.bf16.mxu0 %v16373_v59  ;;  %v16418_v59 = vld [vmem:[#allocation27 + $0x514] ss:$8 sps:$4 sm:$0xff]  }
 0xf38   : > { %vm10753_vm8 = vcmp.eq.s32.totalorder %v10463_v22, 63 }
 0xf39   : > { %12424 = vmatmul.mubr.bf16.gmra.mrb[100].mxu0 %v19820_v46  ;;  %v16383_v46 = vld [vmem:[#allocation27 + $0x460] ss:$8 sps:$4 sm:$0xff]   ;;  %vm10801_vm9 = vmpackc.low %vm10753_vm8, %vm10753_vm8 }
 0xf3a   : > { %12433 = vmatprep.mubr.bf16.mxu0 %v19822_v48  ;;  %12499 = vmatpush1.bf16.msra.mxu0 %v16371_v33  ;;  %v16388_v48 = vld [vmem:[#allocation27 + $0x474] ss:$8 sps:$4 sm:$0xff]   ;;  %v16419_v33 = vld [vmem:[#allocation27 + $0x520] ss:$8 sps:$4 sm:$0xff]  }
 0xf3b   : > { %12500 = vmatprep.subr.bf16.mxu0 %v16376_v10  ;;  %v16424_v10 = vld [vmem:[#allocation27 + $0x534] ss:$8 sps:$4 sm:$0xff]  }
 0xf3e   : > { %12501 = vmatpush1.bf16.msra.mxu0 %v16374_v32  ;;  %v19876_v32 = vmov 0  }
 0xf3f   : > { %12502 = vmatprep.subr.bf16.mxu0 %v16379_v41  ;;  %v10817_v41 = vsel %vm10801_vm9, 65537, %v19876_v32 }
 0xf41   : > { %12434 = vmatmul.mubr.bf16.gmra.mrb[104].mxu0 %v19826_v1  ;;  %v16389_v1 = vld [vmem:[#allocation27 + $0x480] ss:$8 sps:$4 sm:$0xff]  }
 0xf42   : > { %12443 = vmatprep.mubr.bf16.mxu0 %v19828_v55  ;;  %12503 = vmatpush1.bf16.msra.mxu0 %v16377_v35  ;;  %v16394_v55 = vld [vmem:[#allocation27 + $0x494] ss:$8 sps:$4 sm:$0xff]   ;;  %v19877_v35 = vld [vmem:[#allocation47_spill] sm:$0xff] }
 0xf43   : > { %12504 = vmatprep.subr.bf16.mxu0 %v16382_v16  ;;  %v14269_v16 = vcombine.low %v19877_v35, %v10817_v41 }
 0xf45   : > { %vm19364_vm13 = vcmp.eq.s16.totalorder %v14269_v16, 0 }
 0xf46   : > { %12505 = vmatpush1.bf16.msra.mxu0 %v16380_v11  ;;  %v16425_v11 = vld [vmem:[#allocation27 + $0x540] ss:$8 sps:$4 sm:$0xff]  }
 0xf47   : > { %12506 = vmatprep.subr.bf16.mxu0 %v16385_v20 }
 0xf49   : > { %12444 = vmatmul.mubr.bf16.gmra.mrb[108].mxu0 %v19832_v56  ;;  %v16395_v56 = vld [vmem:[#allocation27 + $0x4a0] ss:$8 sps:$4 sm:$0xff]  }
 0xf4a   : > { %12453 = vmatprep.mubr.bf16.mxu0 %v19834_v5  ;;  %12507 = vmatpush1.bf16.msra.mxu0 %v16383_v46  ;;  %v16400_v5 = vld [vmem:[#allocation27 + $0x4b4] ss:$8 sps:$4 sm:$0xff]  }
 0xf4b   : > { %12508 = vmatprep.subr.bf16.mxu0 %v16388_v48  ;;  %v16430_v46 = vld [vmem:[#allocation27 + $0x554] ss:$8 sps:$4 sm:$0xff]   ;;  %v16431_v48 = vld [vmem:[#allocation27 + $0x560] ss:$8 sps:$4 sm:$0xff]  }
 0xf4e   : > { %12509 = vmatpush1.bf16.msra.mxu0 %v16386_v62  ;;  %v16436_v62 = vld [vmem:[#allocation27 + $0x574] ss:$8 sps:$4 sm:$0xff]  }
 0xf4f   : > { %12510 = vmatprep.subr.bf16.mxu0 %v16391_v34  ;;  %v19880_v34 = vld [vmem:[#allocation42_spill] sm:$0xff] }
 0xf51   : > { %12454 = vmatmul.mubr.bf16.gmra.mrb[112].mxu0 %v19838_v17  ;;  %v16401_v17 = vld [vmem:[#allocation27 + $0x4c0] ss:$8 sps:$4 sm:$0xff]  }
 0xf52   : > { %12463 = vmatprep.mubr.bf16.mxu0 %v19840_v36  ;;  %12511 = vmatpush1.bf16.msra.mxu0 %v16389_v1  ;;  %v16406_v36 = vld [vmem:[#allocation27 + $0x4d4] ss:$8 sps:$4 sm:$0xff]   ;;  %v16439_v1 = vld [vmem:[#allocation27 + $0x584] ss:$8 sps:$4 sm:$0xff]  }
 0xf53   : > { %12512 = vmatprep.subr.bf16.mxu0 %v16394_v55  ;;  %v16437_v55 = vld [vmem:[#allocation27 + $0x580] ss:$8 sps:$4 sm:$0xff]  }
 0xf56   : > { %12513 = vmatpush1.bf16.msra.mxu0 %v16392_v51 }
 0xf57   : > { %12514 = vmatprep.subr.bf16.mxu0 %v16397_v28  ;;  %v16442_v28 = vld [vmem:[#allocation27 + $0x594] ss:$8 sps:$4 sm:$0xff]  }
 0xf59   : > { %12464 = vmatmul.mubr.bf16.gmra.mrb[116].mxu0 %v19845_v60  ;;  %v16407_v60 = vld [vmem:[#allocation27 + $0x4e0] ss:$8 sps:$4 sm:$0xff]  }
 0xf5a   : > { %12473 = vmatprep.mubr.bf16.mxu0 %v19847_v63  ;;  %12515 = vmatpush1.bf16.msra.mxu0 %v16395_v56  ;;  %v16412_v63 = vld [vmem:[#allocation27 + $0x4f4] ss:$8 sps:$4 sm:$0xff]   ;;  %v16443_v56 = vld [vmem:[#allocation27 + $0x5a0] ss:$8 sps:$4 sm:$0xff]  }
 0xf5b   : > { %12516 = vmatprep.subr.bf16.mxu0 %v16400_v5  ;;  %v16448_v5 = vld [vmem:[#allocation27 + $0x5b4] ss:$8 sps:$4 sm:$0xff]  }
 0xf5e   : > { %12517 = vmatpush1.bf16.msra.mxu0 %v16398_v9 }
 0xf5f   : > { %12518 = vmatprep.subr.bf16.mxu0 %v16403_v15 }
 0xf61   : > { %12474 = vmatmul.mubr.bf16.gmra.mrb[120].mxu0 %v19851_v52  ;;  %v16415_v52 = vld [vmem:[#allocation27 + $0x504] ss:$8 sps:$4 sm:$0xff]  }
 0xf62   : > { %12483 = vmatprep.mubr.bf16.mxu0 %v19026_v12  ;;  %12519 = vmatpush1.bf16.msra.mxu0 %v16401_v17  ;;  %v16413_v12 = vld [vmem:[#allocation27 + $0x500] ss:$8 sps:$4 sm:$0xff]  }
 0xf63   : > { %12520 = vmatprep.subr.bf16.mxu0 %v16406_v36  ;;  %v16449_v17 = vld [vmem:[#allocation27 + $0x5c0] ss:$8 sps:$4 sm:$0xff]  }
 0xf66   : > { %12521 = vmatpush1.bf16.msra.mxu0 %v16404_v44  ;;  %v16454_v44 = vld [vmem:[#allocation27 + $0x5d4] ss:$8 sps:$4 sm:$0xff]  }
 0xf67   : > { %12522 = vmatprep.subr.bf16.mxu0 %v16409_v38  ;;  %v16452_v38 = vld [vmem:[#allocation27 + $0x5d0] ss:$8 sps:$4 sm:$0xff]  }
 0xf69   : > { %12484 = vmatmul.mubr.bf16.gmra.mrb[124].mxu0 %v19018_v37  ;;  %v16416_v37 = vld [vmem:[#allocation27 + $0x510] ss:$8 sps:$4 sm:$0xff]  }
 0xf6a   : > { %12523 = vmatpush1.bf16.msra.mxu0 %v16407_v60  ;;  %14531 = vmatprep.mubr.msk.bf16.mxu0 %vm18111_vm10, %v19047_v29  ;;  %v16421_v29 = vld [vmem:[#allocation27 + $0x524] ss:$8 sps:$4 sm:$0xff]  }
 0xf6b   : > { %12524 = vmatprep.subr.bf16.mxu0 %v16412_v63  ;;  %v16457_v60 = vld [vmem:[#allocation27 + $0x5e4] ss:$8 sps:$4 sm:$0xff]   ;;  %v16455_v63 = vld [vmem:[#allocation27 + $0x5e0] ss:$8 sps:$4 sm:$0xff]  }
 0xf6e   : > { %12525 = vmatpush1.bf16.msra.mxu0 %v16410_v4  ;;  %v16460_v4 = vld [vmem:[#allocation27 + $0x5f4] ss:$8 sps:$4 sm:$0xff]  }
 0xf6f   : > { %12607 = vmatprep.subr.bf16.mxu0 %v16415_v52  ;;  %v10398_v52 = vsel %vm17876_vm14, %v19132_v40, 0 }
 0xf71   : > { %14533 = vmatmul.mubr.msk.bf16.vlgmr.msra.gmra.mrb[96].mxu0 %vm18111_vm10, %v19052_v43  ;;  %v16422_v43 = vld [vmem:[#allocation27 + $0x530] ss:$8 sps:$4 sm:$0xff]  }
 0xf72   : > { %14535 = vmatprep.mubr.msk.bf16.mxu0 %vm18111_vm10, %v19057_v27  ;;  %12608 = vmatpush1.bf16.msra.mxu0 %v16413_v12  ;;  %v16427_v27 = vld [vmem:[#allocation27 + $0x544] ss:$8 sps:$4 sm:$0xff]  }
 0xf73   : > { %12609 = vmatprep.subr.bf16.mxu0 %v16418_v59 }
 0xf76   : > { %12610 = vmatpush1.bf16.msra.mxu0 %v16416_v37 }
 0xf77   : > { %12611 = vmatprep.subr.bf16.mxu0 %v16421_v29 }
 0xf79   : > { %14537 = vmatmul.mubr.msk.bf16.gmra.mrb[100].mxu0 %vm18111_vm10, %v19066_v61  ;;  %v16428_v61 = vld [vmem:[#allocation27 + $0x550] ss:$8 sps:$4 sm:$0xff]  }
 0xf7a   : > { %14539 = vmatprep.mubr.msk.bf16.mxu0 %vm18111_vm10, %v19071_v45  ;;  %12612 = vmatpush1.bf16.msra.mxu0 %v16419_v33  ;;  %v16433_v45 = vld [vmem:[#allocation27 + $0x564] ss:$8 sps:$4 sm:$0xff]  }
 0xf7b   : > { %12613 = vmatprep.subr.bf16.mxu0 %v16424_v10 }
 0xf7e   : > { %12614 = vmatpush1.bf16.msra.mxu0 %v16422_v43 }
 0xf7f   : > { %12615 = vmatprep.subr.bf16.mxu0 %v16427_v27 }
 0xf81   : > { %14541 = vmatmul.mubr.msk.bf16.gmra.mrb[104].mxu0 %vm18111_vm10, %v19080_v13  ;;  %v16434_v13 = vld [vmem:[#allocation27 + $0x570] ss:$8 sps:$4 sm:$0xff]  }
 0xf82   : > { %14543 = vmatprep.mubr.msk.bf16.mxu0 %vm19364_vm13, %v19085_v47  ;;  %12616 = vmatpush1.bf16.msra.mxu0 %v16425_v11  ;;  %v10409_v47 = vadd.s32 120, %v19880_v34 }
 0xf83   : > { %12617 = vmatprep.subr.bf16.mxu0 %v16430_v46 }
 0xf84   : > { %v10519_v51 = vand.u32 63, %v10409_v47 }
 0xf86   : > { %12618 = vmatpush1.bf16.msra.mxu0 %v16428_v61  ;;  %vm10761_vm0 = vcmp.eq.s32.totalorder %v10519_v51, 63 }
 0xf87   : > { %12619 = vmatprep.subr.bf16.mxu0 %v16433_v45  ;;  %vm10809_vm1 = vmpackc.low %vm10761_vm0, %vm10761_vm0 }
 0xf88   : > { %v10825_v9 = vsel %vm10809_vm1, 65537, %v19876_v32 }
 0xf89   : > { %14545 = vmatmul.mubr.msk.bf16.gmra.mrb[108].mxu0 %vm19364_vm13, %v19094_v30  ;;  %v16440_v30 = vld [vmem:[#allocation27 + $0x590] ss:$8 sps:$4 sm:$0xff]   ;;  %v14273_v15 = vcombine.low %v19877_v35, %v10825_v9 }
 0xf8a   : > { %14547 = vmatprep.mubr.msk.bf16.mxu0 %vm18111_vm10, %v19099_v2  ;;  %12620 = vmatpush1.bf16.msra.mxu0 %v16431_v48  ;;  %v16445_v2 = vld [vmem:[#allocation27 + $0x5a4] ss:$8 sps:$4 sm:$0xff]  }
 0xf8b   : > { %12621 = vmatprep.subr.bf16.mxu0 %v16436_v62  ;;  %vm19395_vm2 = vcmp.eq.s16.totalorder %v14273_v15, 0 }
 0xf8e   : > { %12622 = vmatpush1.bf16.msra.mxu0 %v16434_v13 }
 0xf8f   : > { %12623 = vmatprep.subr.bf16.mxu0 %v16439_v1 }
 0xf91   : > { %14549 = vmatmul.mubr.msk.bf16.gmra.mrb[112].mxu0 %vm18111_vm10, %v19104_v21  ;;  %v16446_v21 = vld [vmem:[#allocation27 + $0x5b0] ss:$8 sps:$4 sm:$0xff]  }
 0xf92   : > { %14551 = vmatprep.mubr.msk.bf16.mxu0 %vm18111_vm10, %v19111_v58  ;;  %12624 = vmatpush1.bf16.msra.mxu0 %v16437_v55  ;;  %v16451_v58 = vld [vmem:[#allocation27 + $0x5c4] ss:$8 sps:$4 sm:$0xff]  }
 0xf93   : > { %12625 = vmatprep.subr.bf16.mxu0 %v16442_v28 }
 0xf96   : > { %12626 = vmatpush1.bf16.msra.mxu0 %v16440_v30 }
 0xf97   : > { %12627 = vmatprep.subr.bf16.mxu0 %v16445_v2 }
 0xf99   : > { %14553 = vmatmul.mubr.msk.bf16.gmra.mrb[116].mxu0 %vm18111_vm10, %v19116_v57 }
 0xf9a   : > { %14555 = vmatprep.mubr.msk.bf16.mxu0 %vm18111_vm10, %v19120_v7  ;;  %12628 = vmatpush1.bf16.msra.mxu0 %v16443_v56  ;;  %v10399_v7 = vsel %vm17876_vm14, %v19130_v24, 0  ;;  %v19884_v24 = vld [vmem:[#allocation59_spill] sm:$0xff] }
 0xf9b   : > { %12629 = vmatprep.subr.bf16.mxu0 %v16448_v5  ;;  %v10401_v40 = vsel %vm17876_vm14, %v19884_v24, 0 }
 0xf9e   : > { %12630 = vmatpush1.bf16.msra.mxu0 %v16446_v21 }
 0xf9f   : > { %12631 = vmatprep.subr.bf16.mxu0 %v16451_v58 }
 0xfa1   : > { %14557 = vmatmul.mubr.msk.bf16.gmra.mrb[120].mxu0 %vm18111_vm10, %v19124_v19  ;;  %v16458_v19 = vld [vmem:[#allocation27 + $0x5f0] ss:$8 sps:$4 sm:$0xff]  }
 0xfa2   : > { %14559 = vmatprep.mubr.msk.bf16.mxu0 %vm19395_vm2, %v10399_v7  ;;  %12632 = vmatpush1.bf16.msra.mxu0 %v16449_v17 }
 0xfa3   : > { %12633 = vmatprep.subr.bf16.mxu0 %v16454_v44 }
 0xfa6   : > { %12634 = vmatpush1.bf16.msra.mxu0 %v16452_v38 }
 0xfa7   : > { %12635 = vmatprep.subr.bf16.mxu0 %v16457_v60 }
 0xfa9   : > { %14561 = vmatmul.mubr.msk.bf16.gmra.mrb[124].mxu0 %vm19395_vm2, %v10398_v52 }
 0xfaa   : > { %12636 = vmatpush1.bf16.msra.mxu0 %v16455_v63  ;;  %14563 = vmatprep.mubr.msk.bf16.mxu0 %vm18111_vm10, %v19137_v42  ;;  %v19885_v42 = vld [vmem:[#allocation54_spill] sm:$0xff] }
 0xfab   : > { %12637 = vmatprep.subr.bf16.mxu0 %v16460_v4 }
 0xfae   : > { %12638 = vmatpush1.bf16.msra.mxu0 %v16458_v19 }
 0xfb1   : > { %14565 = vmatmul.mubr.msk.bf16.vlgmr.msra.gmra.mrb[96].mxu0 %vm18111_vm10, %v19142_v23  ;;  %v10400_v23 = vsel %vm17876_vm14, %v19885_v42, 0 }
 0xfb2   : > { %14567 = vmatprep.mubr.msk.bf16.mxu0 %vm18111_vm10, %v19147_v18 }
 0xfb9   : > { %14569 = vmatmul.mubr.msk.bf16.gmra.mrb[100].mxu0 %vm18111_vm10, %v19152_v50 }
 0xfba   : > { %14571 = vmatprep.mubr.msk.bf16.mxu0 %vm18111_vm10, %v19157_v3 }
 0xfc1   : > { %14573 = vmatmul.mubr.msk.bf16.gmra.mrb[104].mxu0 %vm18111_vm10, %v19164_v49 }
 0xfc2   : > { %14575 = vmatprep.mubr.msk.bf16.mxu0 %vm19364_vm13, %v19169_v14 }
 0xfc9   : > { %14577 = vmatmul.mubr.msk.bf16.gmra.mrb[108].mxu0 %vm19364_vm13, %v19174_v8 }
 0xfca   : > { %14579 = vmatprep.mubr.msk.bf16.mxu0 %vm18111_vm10, %v19179_v0 }
 0xfd1   : > { %14581 = vmatmul.mubr.msk.bf16.gmra.mrb[112].mxu0 %vm18111_vm10, %v19184_v6 }
 0xfd2   : > { %14583 = vmatprep.mubr.msk.bf16.mxu0 %vm18111_vm10, %v19189_v54 }
 0xfd9   : > { %14585 = vmatmul.mubr.msk.bf16.gmra.mrb[116].mxu0 %vm18111_vm10, %v19194_v53 }
 0xfda   : > { %14587 = vmatprep.mubr.msk.bf16.mxu0 %vm18111_vm10, %v19198_v26 }
 0xfe1   : > { %14589 = vmatmul.mubr.msk.bf16.gmra.mrb[120].mxu0 %vm18111_vm10, %v19202_v31 }
 0xfe2   : > { %14591 = vmatprep.mubr.msk.bf16.mxu0 %vm19395_vm2, %v10401_v40 }
 0xfe9   : > { %14593 = vmatmul.mubr.msk.bf16.gmra.mrb[124].mxu0 %vm19395_vm2, %v10400_v23 }
0x1084   : > { %v12641_v18 = vpop.f32.mrb[96].mxu0 }
0x1085   : > { %16461 = vtanh.f32 %v12641_v18  ;;  %v12643_v25 = vpop.f32.mrb[97].mxu0 }
0x1086   : > { %16463 = vtanh.f32 %v12643_v25  ;;  %v12645_v50 = vpop.f32.mrb[98].mxu0 }
0x1087   : > { %16465 = vtanh.f32 %v12645_v50  ;;  %v12647_v3 = vpop.f32.mrb[99].mxu0 }
0x1088   : > { %16467 = vtanh.f32 %v12647_v3 }
0x108c   : > { %v12651_v49 = vpop.f32.mrb[100].mxu0 }
0x108d   : > { %16469 = vtanh.f32 %v12651_v49  ;;  %v12653_v14 = vpop.f32.mrb[101].mxu0 }
0x108e   : > { %16471 = vtanh.f32 %v12653_v14  ;;  %v12655_v8 = vpop.f32.mrb[102].mxu0 }
0x108f   : > { %v16462_v0 = vpop.eup %16461  ;;  %16473 = vtanh.f32 %v12655_v8  ;;  %v12657_v6 = vpop.f32.mrb[103].mxu0 }
0x1090   : > { %v16464_v54 = vpop.eup %16463  ;;  %12752 = vst [vmem:[%s19469_s25] sm:$0xff] %v16462_v0  ;;  %16475 = vtanh.f32 %v12657_v6 }
0x1091   : > { %v16466_v53 = vpop.eup %16465  ;;  %12753 = vst [vmem:[%s19469_s25 + $0x8] sm:$0xff] %v16464_v54 }
0x1092   : > { %v16468_v26 = vpop.eup %16467  ;;  %12754 = vst [vmem:[%s19469_s25 + $0x10] sm:$0xff] %v16466_v53 }
0x1093   : > { %12755 = vst [vmem:[%s19469_s25 + $0x18] sm:$0xff] %v16468_v26 }
0x1094   : > { %v12661_v31 = vpop.f32.mrb[104].mxu0 }
0x1095   : > { %16477 = vtanh.f32 %v12661_v31  ;;  %v12663_v12 = vpop.f32.mrb[105].mxu0 }
0x1096   : > { %16479 = vtanh.f32 %v12663_v12  ;;  %v12665_v39 = vpop.f32.mrb[106].mxu0 }
0x1097   : > { %v16470_v22 = vpop.eup %16469  ;;  %16481 = vtanh.f32 %v12665_v39  ;;  %v12667_v59 = vpop.f32.mrb[107].mxu0 }
0x1098   : > { %v16472_v37 = vpop.eup %16471  ;;  %12756 = vst [vmem:[%s19469_s25 + $0x20] sm:$0xff] %v16470_v22  ;;  %16483 = vtanh.f32 %v12667_v59 }
0x1099   : > { %v16474_v29 = vpop.eup %16473  ;;  %12757 = vst [vmem:[%s19469_s25 + $0x28] sm:$0xff] %v16472_v37 }
0x109a   : > { %v16476_v33 = vpop.eup %16475  ;;  %12758 = vst [vmem:[%s19469_s25 + $0x30] sm:$0xff] %v16474_v29 }
0x109b   : > { %12759 = vst [vmem:[%s19469_s25 + $0x38] sm:$0xff] %v16476_v33 }
0x109c   : > { %v12671_v10 = vpop.f32.mrb[108].mxu0 }
0x109d   : > { %16485 = vtanh.f32 %v12671_v10  ;;  %v12673_v32 = vpop.f32.mrb[109].mxu0 }
0x109e   : > { %16487 = vtanh.f32 %v12673_v32  ;;  %v12675_v41 = vpop.f32.mrb[110].mxu0 }
0x109f   : > { %v16478_v43 = vpop.eup %16477  ;;  %16489 = vtanh.f32 %v12675_v41  ;;  %v12677_v27 = vpop.f32.mrb[111].mxu0 }
0x10a0   : > { %v16480_v35 = vpop.eup %16479  ;;  %12760 = vst [vmem:[%s19469_s25 + $0x40] sm:$0xff] %v16478_v43  ;;  %16491 = vtanh.f32 %v12677_v27 }
0x10a1   : > { %v16482_v16 = vpop.eup %16481  ;;  %12761 = vst [vmem:[%s19469_s25 + $0x48] sm:$0xff] %v16480_v35 }
0x10a2   : > { %v16484_v11 = vpop.eup %16483  ;;  %12762 = vst [vmem:[%s19469_s25 + $0x50] sm:$0xff] %v16482_v16 }
0x10a3   : > { %12763 = vst [vmem:[%s19469_s25 + $0x58] sm:$0xff] %v16484_v11 }
0x10a4   : > { %v12681_v20 = vpop.f32.mrb[112].mxu0 }
0x10a5   : > { %16493 = vtanh.f32 %v12681_v20  ;;  %v12683_v46 = vpop.f32.mrb[113].mxu0 }
0x10a6   : > { %16495 = vtanh.f32 %v12683_v46  ;;  %v12685_v61 = vpop.f32.mrb[114].mxu0 }
0x10a7   : > { %v16486_v45 = vpop.eup %16485  ;;  %16497 = vtanh.f32 %v12685_v61  ;;  %v12687_v48 = vpop.f32.mrb[115].mxu0 }
0x10a8   : > { %v16488_v62 = vpop.eup %16487  ;;  %12764 = vst [vmem:[%s19469_s25 + $0x60] sm:$0xff] %v16486_v45  ;;  %16499 = vtanh.f32 %v12687_v48 }
0x10a9   : > { %v16490_v13 = vpop.eup %16489  ;;  %12765 = vst [vmem:[%s19469_s25 + $0x68] sm:$0xff] %v16488_v62 }
0x10aa   : > { %v16492_v34 = vpop.eup %16491  ;;  %12766 = vst [vmem:[%s19469_s25 + $0x70] sm:$0xff] %v16490_v13 }
0x10ab   : > { %12767 = vst [vmem:[%s19469_s25 + $0x78] sm:$0xff] %v16492_v34 }
0x10ac   : > { %v12691_v47 = vpop.f32.mrb[116].mxu0 }
0x10ad   : > { %16501 = vtanh.f32 %v12691_v47  ;;  %v12693_v1 = vpop.f32.mrb[117].mxu0 }
0x10ae   : > { %16503 = vtanh.f32 %v12693_v1  ;;  %v12695_v55 = vpop.f32.mrb[118].mxu0 }
0x10af   : > { %v16494_v51 = vpop.eup %16493  ;;  %16505 = vtanh.f32 %v12695_v55  ;;  %v12697_v28 = vpop.f32.mrb[119].mxu0 }
0x10b0   : > { %v16496_v30 = vpop.eup %16495  ;;  %14594 = vst [vmem:[%s19469_s25 + $0x80] sm:$0xff] %v16494_v51  ;;  %16507 = vtanh.f32 %v12697_v28 }
0x10b1   : > { %v16498_v2 = vpop.eup %16497  ;;  %14595 = vst [vmem:[%s19469_s25 + $0x88] sm:$0xff] %v16496_v30 }
0x10b2   : > { %v16500_v56 = vpop.eup %16499  ;;  %14596 = vst [vmem:[%s19469_s25 + $0x90] sm:$0xff] %v16498_v2 }
0x10b3   : > { %14597 = vst [vmem:[%s19469_s25 + $0x98] sm:$0xff] %v16500_v56 }
0x10b4   : > { %v12701_v5 = vpop.f32.mrb[120].mxu0 }
0x10b5   : > { %16509 = vtanh.f32 %v12701_v5  ;;  %v12703_v9 = vpop.f32.mrb[121].mxu0 }
0x10b6   : > { %16511 = vtanh.f32 %v12703_v9  ;;  %v12705_v21 = vpop.f32.mrb[122].mxu0 }
0x10b7   : > { %v16502_v58 = vpop.eup %16501  ;;  %16513 = vtanh.f32 %v12705_v21  ;;  %v12707_v15 = vpop.f32.mrb[123].mxu0 }
0x10b8   : > { %v16504_v17 = vpop.eup %16503  ;;  %14598 = vst [vmem:[%s19469_s25 + $0xa0] sm:$0xff] %v16502_v58  ;;  %16515 = vtanh.f32 %v12707_v15 }
0x10b9   : > { %v16506_v36 = vpop.eup %16505  ;;  %14599 = vst [vmem:[%s19469_s25 + $0xa8] sm:$0xff] %v16504_v17 }
0x10ba   : > { %v16508_v44 = vpop.eup %16507  ;;  %14600 = vst [vmem:[%s19469_s25 + $0xb0] sm:$0xff] %v16506_v36 }
0x10bb   : > { %14601 = vst [vmem:[%s19469_s25 + $0xb8] sm:$0xff] %v16508_v44 }
0x10bc   : > { %v12711_v57 = vpop.f32.mrb[124].mxu0 }
0x10bd   : > { %16517 = vtanh.f32 %v12711_v57  ;;  %v12713_v7 = vpop.f32.mrb[125].mxu0 }
0x10be   : > { %16519 = vtanh.f32 %v12713_v7  ;;  %v12715_v38 = vpop.f32.mrb[126].mxu0 }
0x10bf   : > { %v16510_v60 = vpop.eup %16509  ;;  %16521 = vtanh.f32 %v12715_v38  ;;  %v12717_v63 = vpop.f32.mrb[127].mxu0 }
0x10c0   : > { %v16512_v4 = vpop.eup %16511  ;;  %14602 = vst [vmem:[%s19469_s25 + $0xc0] sm:$0xff] %v16510_v60  ;;  %16523 = vtanh.f32 %v12717_v63 }
0x10c1   : > { %v16514_v52 = vpop.eup %16513  ;;  %14603 = vst [vmem:[%s19469_s25 + $0xc8] sm:$0xff] %v16512_v4 }
0x10c2   : > { %v16516_v19 = vpop.eup %16515  ;;  %14604 = vst [vmem:[%s19469_s25 + $0xd0] sm:$0xff] %v16514_v52 }
0x10c3   : > { %14605 = vst [vmem:[%s19469_s25 + $0xd8] sm:$0xff] %v16516_v19 }
0x10c7   : > { %v16518_v24 = vpop.eup %16517 }
0x10c8   : > { %v16520_v40 = vpop.eup %16519  ;;  %14606 = vst [vmem:[%s19469_s25 + $0xe0] sm:$0xff] %v16518_v24 }
0x10c9   : > { %v16522_v42 = vpop.eup %16521  ;;  %14607 = vst [vmem:[%s19469_s25 + $0xe8] sm:$0xff] %v16520_v40 }
0x10ca   : > { %v16524_v23 = vpop.eup %16523  ;;  %14608 = vst [vmem:[%s19469_s25 + $0xf0] sm:$0xff] %v16522_v42 }
0x10cb   : > { %14609 = vst [vmem:[%s19469_s25 + $0xf8] sm:$0xff] %v16524_v23 }
0x10cc PF: > { %s19888_s24 = sld [smem:[#allocation38_spill]]  ;;  %s19889_s25 = sld [smem:[#allocation39_spill]] }
0x10cd   : > { %p35_p5 = scmp.ge.s32.totalorder %s17568_s20, 4   ;;  %s19890_s26 = smov %s17580_s23 }
0x10ce   : > { %s19891_s27 = smov %s17568_s20 }
0x10cf   :  { %37 = sbr.rel (!%p35_p5) target bundleno = 19 (0x13), region = 193 }
0x10d6   :  { %12809 = vsyncpa [#allocation3], 1 }
0x10d7   :  { %12811 = vsyncpa [#allocation3 + $0x1], 1 }
0x10d8   :  { %12812 = vsyncpa [#allocation5], 1 }
0x10d9   :  { %12813 = vsyncpa [#allocation8], 1 }
0x10da   :  { %12814 = vsyncpa [#allocation11], 1 }
0x10db   :  { %12815 = vsyncpa [#allocation14], 1 }
0x10dc   :  { %12816 = vsyncpa [#allocation17], 1 }
0x10dd   :  { %12817 = vsyncpa [#allocation20], 1 }
0x10de   :  { %12818 = vsyncpa [#allocation23], 1 }
0x10df   :  { %12819 = vsyncpa [#allocation26], 1 }

</bundles_post_ra>
